<compile_context>
chip_gen: v7x
topology: tpu7x:2x2x1
jax: 0.10.0
libtpu: 0.0.40
codegen_flags: <defaults>
</compile_context>

<pallas_src>
import numpy as np

import jax
import jax.numpy as jnp
from jax.experimental import pallas as pl
from jax.experimental.pallas import tpu as pltpu


_DEFAULT_WEIGHTS = (0.0448, 0.2856, 0.3001, 0.2363, 0.1333)


# ----------------------------------------------------------------------------
# Host-side (numpy) geometry planning and banded operator matrices.
# ----------------------------------------------------------------------------
def _round_up(v, m):
    return (v + m - 1) // m * m


def _fspecial_gauss_1d(size, sigma):
    """Same construction as the torch reference (normalized 1-D Gaussian)."""
    coords = np.arange(size, dtype=np.float32) - size // 2
    g = np.exp(-(coords ** 2) / (2.0 * float(sigma) ** 2)).astype(np.float32)
    return (g / g.sum()).astype(np.float32)


def _plan_levels(h, w, win_size, levels):
    """Static per-level geometry: valid-conv sizes, avg-pool sizes, 8-row padding."""
    plans = []
    for _ in range(levels):
        hc, wc = h - win_size + 1, w - win_size + 1
        if hc <= 0 or wc <= 0:
            raise ValueError("image too small for the requested number of levels")
        pad_h, pad_w = h % 2, w % 2
        hp = (h + 2 * pad_h - 2) // 2 + 1
        wp = (w + 2 * pad_w - 2) // 2 + 1
        plans.append(dict(h=h, w=w, hs=_round_up(h, 8), hc=hc, wc=wc,
                          hp=hp, wp=wp, hs_next=_round_up(hp, 8)))
        h, w = hp, wp
    return plans


def _gauss_matrices(plan, gauss):
    """Banded matrices so that valid separable conv == G_H @ X @ G_W.
    G_H is built against the 8-aligned padded height hs (extra columns are zero)."""
    ws = int(gauss.shape[0])
    w, hs, hc, wc = plan["w"], plan["hs"], plan["hc"], plan["wc"]
    g_h = np.zeros((hc, hs), np.float32)   # left-multiply: conv along H
    g_w = np.zeros((w, wc), np.float32)    # right-multiply: conv along W
    for t in range(ws):
        g_h[np.arange(hc), np.arange(hc) + t] = gauss[t]
        g_w[np.arange(wc) + t, np.arange(wc)] = gauss[t]
    return g_h, g_w


def _pool_matrices(plan):
    """P_H @ X @ P_W == F.avg_pool2d(X, 2, padding=(h%2, w%2), count_include_pad).
    P_H has hs_next rows so the pooled plane comes out already 8-row padded
    (padding rows are exactly zero)."""
    h, w, hs = plan["h"], plan["w"], plan["hs"]
    hp, wp, hs_next = plan["hp"], plan["wp"], plan["hs_next"]
    pad_h, pad_w = h % 2, w % 2
    p_h = np.zeros((hs_next, hs), np.float32)
    for k in range(hp):
        for d in range(2):
            r = 2 * k + d - pad_h
            if 0 <= r < h:          # zero-padded cells contribute 0; divisor stays 4
                p_h[k, r] = 0.5
    p_w = np.zeros((w, wp), np.float32)
    for k in range(wp):
        for d in range(2):
            col = 2 * k + d - pad_w
            if 0 <= col < w:
                p_w[col, k] = 0.5
    return p_h, p_w


# ----------------------------------------------------------------------------
# Fused Pallas kernel: all pyramid levels for one (n, c) plane.
# ----------------------------------------------------------------------------
def _make_fused_kernel(plans, c1, c2, nonnegative, levels):
    def recip(d):
        # EUP approximate reciprocal + one Newton step (~f32 accuracy, no divide).
        r = pl.reciprocal(d, approx=True)
        return r * (2.0 - d * r)

    def kernel(*refs):
        x_ref, y_ref = refs[0], refs[1]
        mats = refs[2:-1]
        sums_ref = refs[-1]

        rows = jax.lax.broadcasted_iota(jnp.int32, (8, 128), 0)
        lanes = jax.lax.broadcasted_iota(jnp.int32, (8, 128), 1)
        acc = jnp.zeros((8, 128), jnp.float32)

        h0, hs0, w0 = plans[0]["h"], plans[0]["hs"], plans[0]["w"]
        xp = x_ref[0, 0].astype(jnp.float32)
        yp = y_ref[0, 0].astype(jnp.float32)
        if hs0 > h0:                         # pad level-0 plane to 8-aligned height
            zpad = jnp.zeros((hs0 - h0, w0), jnp.float32)
            xp = jnp.concatenate([xp, zpad], axis=0)
            yp = jnp.concatenate([yp, zpad], axis=0)

        mi = 0
        for lvl in range(levels):
            p = plans[lvl]
            hs = p["hs"]
            g_h = mats[mi][...]              # (hc, hs)
            g_w = mats[mi + 1][...]          # (w,  wc)
            mi += 2

            # Batched separable Gaussian filter: one wide matmul (M = 5*hs) for the
            # W pass over all five operands, then five aligned-slice H passes.
            packed = jnp.concatenate([xp, yp, xp * xp, yp * yp, xp * yp], axis=0)
            t = jnp.dot(packed, g_w, preferred_element_type=jnp.float32)     # (5hs, wc)
            mu1 = jnp.dot(g_h, t[0 * hs:1 * hs], preferred_element_type=jnp.float32)
            mu2 = jnp.dot(g_h, t[1 * hs:2 * hs], preferred_element_type=jnp.float32)
            e_xx = jnp.dot(g_h, t[2 * hs:3 * hs], preferred_element_type=jnp.float32)
            e_yy = jnp.dot(g_h, t[3 * hs:4 * hs], preferred_element_type=jnp.float32)
            e_xy = jnp.dot(g_h, t[4 * hs:5 * hs], preferred_element_type=jnp.float32)

            mu1_sq = mu1 * mu1
            mu2_sq = mu2 * mu2
            mu12 = mu1 * mu2
            sigma1_sq = e_xx - mu1_sq
            sigma2_sq = e_yy - mu2_sq
            sigma12 = e_xy - mu12

            cs_map = (2.0 * sigma12 + c2) * recip(sigma1_sq + sigma2_sq + c2)
            if nonnegative:
                cs_map = jnp.maximum(cs_map, 0.0)
            acc = acc + ((rows == 1) & (lanes == lvl)).astype(jnp.float32) * jnp.sum(cs_map)

            if lvl == levels - 1:
                # ssim_val is only consumed for the last level (as in the torch code).
                ssim_map = (2.0 * mu12 + c1) * recip(mu1_sq + mu2_sq + c1) * cs_map
                if nonnegative:
                    ssim_map = jnp.maximum(ssim_map, 0.0)
                acc = acc + ((rows == 0) & (lanes == 0)).astype(jnp.float32) * jnp.sum(ssim_map)
            else:
                # Fused 2x2 avg-pool (zero-padded odd dims, count_include_pad=True)
                # producing the next (already 8-row-padded) pyramid level in VMEM.
                p_h = mats[mi][...]          # (hs_next, hs)
                p_w = mats[mi + 1][...]      # (w, wp)
                mi += 2
                tp = jnp.dot(packed[0:2 * hs], p_w, preferred_element_type=jnp.float32)
                xp = jnp.dot(p_h, tp[0:hs], preferred_element_type=jnp.float32)
                yp = jnp.dot(p_h, tp[hs:2 * hs], preferred_element_type=jnp.float32)

        sums_ref[0, 0] = acc                 # single lane-dense (8,128) store per plane

    return kernel


# ----------------------------------------------------------------------------
# Top-level MS-SSIM (mirrors the torch ms_ssim / MS_SSIM.forward semantics).
# ----------------------------------------------------------------------------
def ms_ssim_pallas(x, y, *, win_size=11, win_sigma=1.5, data_range=1.0,
                   weights=None, K=(0.01, 0.03), nonnegative_ssim=True):
    if x.ndim != 4:
        raise ValueError("Input images must be 4-d tensors.")
    if x.shape != y.shape:
        raise ValueError("Input images must have the same dimensions.")
    if win_size % 2 != 1:
        raise ValueError("Window size must be odd.")
    smaller_side = min(x.shape[-2:])
    assert smaller_side > (win_size - 1) * 2 ** 4, (
        "Image size should be larger than %d due to the 4 downsamplings in ms-ssim"
        % ((win_size - 1) * 2 ** 4))

    if weights is None:
        weights = _DEFAULT_WEIGHTS
    weights = jnp.asarray(weights, jnp.float32)
    levels = int(weights.shape[0])

    n, c, h, w = x.shape
    k1, k2 = K
    c1 = float((k1 * data_range) ** 2)
    c2 = float((k2 * data_range) ** 2)
    gauss = _fspecial_gauss_1d(win_size, win_sigma)

    plans = _plan_levels(h, w, win_size, levels)

    mats = []
    for lvl, p in enumerate(plans):
        g_h, g_w = _gauss_matrices(p, gauss)
        mats += [g_h, g_w]
        if lvl < levels - 1:
            p_h, p_w = _pool_matrices(p)
            mats += [p_h, p_w]

    kernel = _make_fused_kernel(plans, c1, c2, nonnegative_ssim, levels)

    plane_map = lambda i, j: (i, j, 0, 0)
    const_map = lambda i, j: (0, 0)
    in_specs = [pl.BlockSpec((1, 1, h, w), plane_map),
                pl.BlockSpec((1, 1, h, w), plane_map)]
    in_specs += [pl.BlockSpec(m.shape, const_map) for m in mats]

    # Advisory cost estimate so XLA schedules the surrounding glue around the kernel.
    flops = 0
    trans = 0
    for lvl, p in enumerate(plans):
        hs, wl, hc, wc = p["hs"], p["w"], p["hc"], p["wc"]
        flops += 2 * 5 * hs * wl * wc + 2 * 5 * hc * hs * wc + 20 * hc * wc
        trans += hc * wc * (2 if lvl == levels - 1 else 1)
        if lvl < levels - 1:
            flops += 2 * 2 * hs * wl * p["wp"] + 2 * 2 * p["hs_next"] * hs * p["wp"]
    flops *= n * c
    trans *= n * c
    bytes_accessed = (2 * x.size * x.dtype.itemsize
                      + sum(m.size * 4 for m in mats) + n * c * 8 * 128 * 4)

    sums = pl.pallas_call(
        kernel,
        out_shape=jax.ShapeDtypeStruct((n, c, 8, 128), jnp.float32),
        grid_spec=pl.GridSpec(
            grid=(n, c),
            in_specs=in_specs,
            out_specs=pl.BlockSpec((1, 1, 8, 128), plane_map),
        ),
        compiler_params=pltpu.CompilerParams(
            dimension_semantics=("parallel", "parallel"),
            vmem_limit_bytes=32 * 1024 * 1024,
        ),
        cost_estimate=pl.CostEstimate(flops=int(flops), transcendentals=int(trans),
                                      bytes_accessed=int(bytes_accessed)),
    )(x, y, *[jnp.asarray(m) for m in mats])

    # Tiny final reduction + weighted power/product combination (plain JAX), matching
    # the PyTorch module exactly: per-level whole-batch means (size_average=True in
    # _ssim), last-level ssim only, and the (L-1, L-1) outer-power broadcast.
    denoms = jnp.asarray([n * c * p["hc"] * p["wc"] for p in plans], jnp.float32)
    mcs = jnp.sum(sums[:, :, 1, :levels], axis=(0, 1)) / denoms        # per-level cs mean
    ssim_val = jnp.sum(sums[:, :, 0, 0]) / denoms[-1]                  # last-level ssim mean

    pow_cs = mcs[:-1][None, :] ** weights[:-1][:, None]
    msssim_val = jnp.prod(pow_cs * (ssim_val ** weights[-1]), axis=0)
    return jnp.mean(msssim_val)                                        # size_average=True


class MSSSIM:
    """Pallas-TPU equivalent of the PyTorch MS_SSIM module's forward pass."""

    def __init__(self, win_size=11, win_sigma=1.5, data_range=1.0,
                 size_average=True, channel=1, weights=None,
                 K=(0.01, 0.03), nonnegative_ssim=True):
        # TODO(synk): the torch module defaults data_range=None which raises inside
        #             _ssim; a numeric data_range is required here (default 1.0).
        del size_average, channel   # only size_average=True path; window identical per channel
        self.win_size = win_size
        self.win_sigma = win_sigma
        self.data_range = data_range
        self.weights = weights
        self.K = K
        self.nonnegative_ssim = nonnegative_ssim

    def __call__(self, x, y):
        return ms_ssim_pallas(
            x, y, win_size=self.win_size, win_sigma=self.win_sigma,
            data_range=self.data_range, weights=self.weights, K=self.K,
            nonnegative_ssim=self.nonnegative_ssim)


# ----------------------------------------------------------------------------
# Pure-JAX reference (lax.conv + reshape pooling) for the sanity check.
# ----------------------------------------------------------------------------
def _ref_gaussian_filter(x, gauss):
    n, c, h, w = x.shape
    ws = int(gauss.shape[0])
    hi = jax.lax.Precision.HIGHEST
    dn = ("NCHW", "OIHW", "NCHW")
    xr = x.reshape(n * c, 1, h, w)
    out = jax.lax.conv_general_dilated(xr, gauss.reshape(1, 1, 1, ws), (1, 1),
                                       "VALID", dimension_numbers=dn, precision=hi)
    out = jax.lax.conv_general_dilated(out, gauss.reshape(1, 1, ws, 1), (1, 1),
                                       "VALID", dimension_numbers=dn, precision=hi)
    return out.reshape(n, c, h - ws + 1, w - ws + 1)


def _ref_avg_pool2(x):
    n, c, h, w = x.shape
    ph, pw = h % 2, w % 2
    hp = (h + 2 * ph - 2) // 2 + 1
    wp = (w + 2 * pw - 2) // 2 + 1
    xpad = jnp.pad(x, ((0, 0), (0, 0), (ph, ph), (pw, pw)))
    xpad = xpad[:, :, : 2 * hp, : 2 * wp]
    return xpad.reshape(n, c, hp, 2, wp, 2).mean(axis=(3, 5))


def _ref_ms_ssim(x, y, win_size=11, win_sigma=1.5, data_range=1.0,
                 weights=None, K=(0.01, 0.03), nonnegative_ssim=True):
    if weights is None:
        weights = _DEFAULT_WEIGHTS
    weights = jnp.asarray(weights, jnp.float32)
    gauss = jnp.asarray(_fspecial_gauss_1d(win_size, win_sigma))
    k1, k2 = K
    c1 = (k1 * data_range) ** 2
    c2 = (k2 * data_range) ** 2
    mcs = []
    ssim_val = None
    for _ in range(int(weights.shape[0])):
        mu1 = _ref_gaussian_filter(x, gauss)
        mu2 = _ref_gaussian_filter(y, gauss)
        mu1_sq, mu2_sq, mu12 = mu1 * mu1, mu2 * mu2, mu1 * mu2
        s1 = _ref_gaussian_filter(x * x, gauss) - mu1_sq
        s2 = _ref_gaussian_filter(y * y, gauss) - mu2_sq
        s12 = _ref_gaussian_filter(x * y, gauss) - mu12
        cs_map = (2 * s12 + c2) / (s1 + s2 + c2)
        if nonnegative_ssim:
            cs_map = jnp.maximum(cs_map, 0.0)
        ssim_map = (2 * mu12 + c1) / (mu1_sq + mu2_sq + c1) * cs_map
        if nonnegative_ssim:
            ssim_map = jnp.maximum(ssim_map, 0.0)
        ssim_val = jnp.mean(ssim_map)
        mcs.append(jnp.mean(cs_map))
        x = _ref_avg_pool2(x)
        y = _ref_avg_pool2(y)
    mcs = jnp.stack(mcs)
    pow_cs = mcs[:-1][None, :] ** weights[:-1][:, None]
    return jnp.mean(jnp.prod(pow_cs * (ssim_val ** weights[-1]), axis=0))


if __name__ == "__main__":
    key = jax.random.PRNGKey(0)
    ka, kb = jax.random.split(key)

    # Smallest spatial sizes allowed by the module's assert:
    #   min(H, W) > (win_size - 1) * 2**4 = 160 for the default win_size=11.
    n, c, h, w = 2, 2, 161, 168
    base = jax.random.uniform(ka, (n, c, h, w), dtype=jnp.float32)
    noise = 0.05 * jax.random.normal(kb, (n, c, h, w), dtype=jnp.float32)
    img1 = base
    img2 = jnp.clip(base + noise, 0.0, 1.0)

    model = MSSSIM(data_range=1.0, channel=c)
    out = jax.block_until_ready(jax.jit(model.__call__)(img1, img2))

    ref = jax.block_until_ready(_ref_ms_ssim(img1, img2, data_range=1.0))

    assert jnp.isfinite(out), out
    # Tolerance covers f32-matmul pass differences and the Newton-refined
    # approximate reciprocal vs. exact division in the reference.
    assert jnp.allclose(out, ref, rtol=5e-3, atol=2e-3), (float(out), float(ref))

    print("KERNEL_OK")
</pallas_src>

<mosaic_0001>
module attributes {stable_mosaic.version = 11 : i64} {
  func.func @kernel(%arg0: i32, %arg1: i32, %arg2: memref<1x1x161x168xf32, #tpu.memory_space<vmem>>, %arg3: memref<1x1x161x168xf32, #tpu.memory_space<vmem>>, %arg4: memref<151x168xf32, #tpu.memory_space<vmem>>, %arg5: memref<168x158xf32, #tpu.memory_space<vmem>>, %arg6: memref<88x168xf32, #tpu.memory_space<vmem>>, %arg7: memref<168x84xf32, #tpu.memory_space<vmem>>, %arg8: memref<71x88xf32, #tpu.memory_space<vmem>>, %arg9: memref<84x74xf32, #tpu.memory_space<vmem>>, %arg10: memref<48x88xf32, #tpu.memory_space<vmem>>, %arg11: memref<84x42xf32, #tpu.memory_space<vmem>>, %arg12: memref<31x48xf32, #tpu.memory_space<vmem>>, %arg13: memref<42x32xf32, #tpu.memory_space<vmem>>, %arg14: memref<24x48xf32, #tpu.memory_space<vmem>>, %arg15: memref<42x21xf32, #tpu.memory_space<vmem>>, %arg16: memref<11x24xf32, #tpu.memory_space<vmem>>, %arg17: memref<21x11xf32, #tpu.memory_space<vmem>>, %arg18: memref<16x24xf32, #tpu.memory_space<vmem>>, %arg19: memref<21x11xf32, #tpu.memory_space<vmem>>, %arg20: memref<1x16xf32, #tpu.memory_space<vmem>>, %arg21: memref<11x1xf32, #tpu.memory_space<vmem>>, %arg22: memref<1x1x8x128xf32, #tpu.memory_space<vmem>>) attributes {dimension_semantics = [#tpu.dimension_semantics<parallel>, #tpu.dimension_semantics<parallel>], iteration_bounds = array<i64: 2, 2>, scalar_prefetch = 0 : i64, scratch_operands = 0 : i64, tpu.core_type = #tpu.core_type<tc>, window_params = [{transform_indices = @transform_0, window_bounds = array<i64: 1, 1, 161, 168>}, {transform_indices = @transform_1, window_bounds = array<i64: 1, 1, 161, 168>}, {pipeline_mode = #tpu.pipeline_mode<synchronous>, transform_indices = @transform_2, window_bounds = array<i64: 151, 168>}, {pipeline_mode = #tpu.pipeline_mode<synchronous>, transform_indices = @transform_3, window_bounds = array<i64: 168, 158>}, {pipeline_mode = #tpu.pipeline_mode<synchronous>, transform_indices = @transform_4, window_bounds = array<i64: 88, 168>}, {pipeline_mode = #tpu.pipeline_mode<synchronous>, transform_indices = @transform_5, window_bounds = array<i64: 168, 84>}, {pipeline_mode = #tpu.pipeline_mode<synchronous>, transform_indices = @transform_6, window_bounds = array<i64: 71, 88>}, {pipeline_mode = #tpu.pipeline_mode<synchronous>, transform_indices = @transform_7, window_bounds = array<i64: 84, 74>}, {pipeline_mode = #tpu.pipeline_mode<synchronous>, transform_indices = @transform_8, window_bounds = array<i64: 48, 88>}, {pipeline_mode = #tpu.pipeline_mode<synchronous>, transform_indices = @transform_9, window_bounds = array<i64: 84, 42>}, {pipeline_mode = #tpu.pipeline_mode<synchronous>, transform_indices = @transform_10, window_bounds = array<i64: 31, 48>}, {pipeline_mode = #tpu.pipeline_mode<synchronous>, transform_indices = @transform_11, window_bounds = array<i64: 42, 32>}, {pipeline_mode = #tpu.pipeline_mode<synchronous>, transform_indices = @transform_12, window_bounds = array<i64: 24, 48>}, {pipeline_mode = #tpu.pipeline_mode<synchronous>, transform_indices = @transform_13, window_bounds = array<i64: 42, 21>}, {pipeline_mode = #tpu.pipeline_mode<synchronous>, transform_indices = @transform_14, window_bounds = array<i64: 11, 24>}, {pipeline_mode = #tpu.pipeline_mode<synchronous>, transform_indices = @transform_15, window_bounds = array<i64: 21, 11>}, {pipeline_mode = #tpu.pipeline_mode<synchronous>, transform_indices = @transform_16, window_bounds = array<i64: 16, 24>}, {pipeline_mode = #tpu.pipeline_mode<synchronous>, transform_indices = @transform_17, window_bounds = array<i64: 21, 11>}, {pipeline_mode = #tpu.pipeline_mode<synchronous>, transform_indices = @transform_18, window_bounds = array<i64: 1, 16>}, {pipeline_mode = #tpu.pipeline_mode<synchronous>, transform_indices = @transform_19, window_bounds = array<i64: 11, 1>}, {transform_indices = @transform_20, window_bounds = array<i64: 1, 1, 8, 128>}]} {
    %0 = tpu.iota {dimensions = array<i32: 0>} : vector<8x128xi32>
    %1 = tpu.iota {dimensions = array<i32: 1>} : vector<8x128xi32>
    %cst = arith.constant 0.000000e+00 : f32
    %2 = vector.broadcast %cst : f32 to vector<8x128xf32>
    %c0 = arith.constant 0 : index
    %c0_0 = arith.constant 0 : index
    %c0_1 = arith.constant 0 : index
    %c0_2 = arith.constant 0 : index
    %3 = vector.load %arg2[%c0, %c0_0, %c0_1, %c0_2] : memref<1x1x161x168xf32, #tpu.memory_space<vmem>>, vector<1x1x161x168xf32>
    %4 = vector.shape_cast %3 : vector<1x1x161x168xf32> to vector<161x168xf32>
    %c0_3 = arith.constant 0 : index
    %c0_4 = arith.constant 0 : index
    %c0_5 = arith.constant 0 : index
    %c0_6 = arith.constant 0 : index
    %5 = vector.load %arg3[%c0_3, %c0_4, %c0_5, %c0_6] : memref<1x1x161x168xf32, #tpu.memory_space<vmem>>, vector<1x1x161x168xf32>
    %6 = vector.shape_cast %5 : vector<1x1x161x168xf32> to vector<161x168xf32>
    %cst_7 = arith.constant 0.000000e+00 : f32
    %7 = vector.broadcast %cst_7 : f32 to vector<7x168xf32>
    %8 = tpu.concatenate %4, %7 in 0 : vector<161x168xf32>, vector<7x168xf32> -> vector<168x168xf32>
    %9 = tpu.concatenate %6, %7 in 0 : vector<161x168xf32>, vector<7x168xf32> -> vector<168x168xf32>
    %c0_8 = arith.constant 0 : index
    %c0_9 = arith.constant 0 : index
    %10 = vector.load %arg4[%c0_8, %c0_9] : memref<151x168xf32, #tpu.memory_space<vmem>>, vector<151x168xf32>
    %c0_10 = arith.constant 0 : index
    %c0_11 = arith.constant 0 : index
    %11 = vector.load %arg5[%c0_10, %c0_11] : memref<168x158xf32, #tpu.memory_space<vmem>>, vector<168x158xf32>
    %12 = arith.mulf %8, %8 : vector<168x168xf32>
    %13 = arith.mulf %9, %9 : vector<168x168xf32>
    %14 = arith.mulf %8, %9 : vector<168x168xf32>
    %15 = tpu.concatenate %8, %9, %12, %13, %14 in 0 : vector<168x168xf32>, vector<168x168xf32>, vector<168x168xf32>, vector<168x168xf32>, vector<168x168xf32> -> vector<840x168xf32>
    %cst_12 = arith.constant dense<0.000000e+00> : vector<840x158xf32>
    %16 = tpu.matmul %15, %11, %cst_12 {dimension_numbers = #tpu.dot_dimension_numbers<[1], [0], [0], [1], [0, 0, 1, 1], [], []>} : vector<840x168xf32>, vector<168x158xf32>, vector<840x158xf32> -> vector<840x158xf32>
    %17 = vector.extract_strided_slice %16 {offsets = [0, 0], sizes = [168, 158], strides = [1, 1]} : vector<840x158xf32> to vector<168x158xf32>
    %cst_13 = arith.constant dense<0.000000e+00> : vector<151x158xf32>
    %18 = tpu.matmul %10, %17, %cst_13 {dimension_numbers = #tpu.dot_dimension_numbers<[1], [0], [0], [1], [0, 0, 1, 1], [], []>} : vector<151x168xf32>, vector<168x158xf32>, vector<151x158xf32> -> vector<151x158xf32>
    %19 = vector.extract_strided_slice %16 {offsets = [168, 0], sizes = [168, 158], strides = [1, 1]} : vector<840x158xf32> to vector<168x158xf32>
    %cst_14 = arith.constant dense<0.000000e+00> : vector<151x158xf32>
    %20 = tpu.matmul %10, %19, %cst_14 {dimension_numbers = #tpu.dot_dimension_numbers<[1], [0], [0], [1], [0, 0, 1, 1], [], []>} : vector<151x168xf32>, vector<168x158xf32>, vector<151x158xf32> -> vector<151x158xf32>
    %21 = vector.extract_strided_slice %16 {offsets = [336, 0], sizes = [168, 158], strides = [1, 1]} : vector<840x158xf32> to vector<168x158xf32>
    %cst_15 = arith.constant dense<0.000000e+00> : vector<151x158xf32>
    %22 = tpu.matmul %10, %21, %cst_15 {dimension_numbers = #tpu.dot_dimension_numbers<[1], [0], [0], [1], [0, 0, 1, 1], [], []>} : vector<151x168xf32>, vector<168x158xf32>, vector<151x158xf32> -> vector<151x158xf32>
    %23 = vector.extract_strided_slice %16 {offsets = [504, 0], sizes = [168, 158], strides = [1, 1]} : vector<840x158xf32> to vector<168x158xf32>
    %cst_16 = arith.constant dense<0.000000e+00> : vector<151x158xf32>
    %24 = tpu.matmul %10, %23, %cst_16 {dimension_numbers = #tpu.dot_dimension_numbers<[1], [0], [0], [1], [0, 0, 1, 1], [], []>} : vector<151x168xf32>, vector<168x158xf32>, vector<151x158xf32> -> vector<151x158xf32>
    %25 = vector.extract_strided_slice %16 {offsets = [672, 0], sizes = [168, 158], strides = [1, 1]} : vector<840x158xf32> to vector<168x158xf32>
    %cst_17 = arith.constant dense<0.000000e+00> : vector<151x158xf32>
    %26 = tpu.matmul %10, %25, %cst_17 {dimension_numbers = #tpu.dot_dimension_numbers<[1], [0], [0], [1], [0, 0, 1, 1], [], []>} : vector<151x168xf32>, vector<168x158xf32>, vector<151x158xf32> -> vector<151x158xf32>
    %27 = arith.mulf %18, %18 : vector<151x158xf32>
    %28 = arith.mulf %20, %20 : vector<151x158xf32>
    %29 = arith.mulf %18, %20 : vector<151x158xf32>
    %30 = arith.subf %22, %27 : vector<151x158xf32>
    %31 = arith.subf %24, %28 : vector<151x158xf32>
    %32 = arith.subf %26, %29 : vector<151x158xf32>
    %cst_18 = arith.constant 2.000000e+00 : f32
    %33 = vector.broadcast %cst_18 : f32 to vector<151x158xf32>
    %34 = arith.mulf %33, %32 : vector<151x158xf32>
    %cst_19 = arith.constant 8.99999984E-4 : f32
    %35 = vector.broadcast %cst_19 : f32 to vector<151x158xf32>
    %36 = arith.addf %34, %35 : vector<151x158xf32>
    %37 = arith.addf %30, %31 : vector<151x158xf32>
    %cst_20 = arith.constant 8.99999984E-4 : f32
    %38 = vector.broadcast %cst_20 : f32 to vector<151x158xf32>
    %39 = arith.addf %37, %38 : vector<151x158xf32>
    %40 = tpu.reciprocal %39 {approx = true} : vector<151x158xf32> -> vector<151x158xf32>
    %41 = arith.mulf %39, %40 : vector<151x158xf32>
    %cst_21 = arith.constant 2.000000e+00 : f32
    %42 = vector.broadcast %cst_21 : f32 to vector<151x158xf32>
    %43 = arith.subf %42, %41 : vector<151x158xf32>
    %44 = arith.mulf %40, %43 : vector<151x158xf32>
    %45 = arith.mulf %36, %44 : vector<151x158xf32>
    %cst_22 = arith.constant 0.000000e+00 : f32
    %46 = vector.broadcast %cst_22 : f32 to vector<151x158xf32>
    %47 = arith.maximumf %45, %46 : vector<151x158xf32>
    %c1_i32 = arith.constant 1 : i32
    %48 = vector.broadcast %c1_i32 : i32 to vector<8x128xi32>
    %49 = arith.cmpi eq, %0, %48 : vector<8x128xi32>
    %c0_i32 = arith.constant 0 : i32
    %50 = vector.broadcast %c0_i32 : i32 to vector<8x128xi32>
    %51 = arith.cmpi eq, %1, %50 : vector<8x128xi32>
    %52 = arith.andi %49, %51 : vector<8x128xi1>
    %53 = arith.extui %52 : vector<8x128xi1> to vector<8x128xi32>
    %54 = arith.sitofp %53 : vector<8x128xi32> to vector<8x128xf32>
    %55 = vector.shape_cast %47 : vector<151x158xf32> to vector<1x151x158xf32>
    %cst_23 = arith.constant dense<0.000000e+00> : vector<1xf32>
    %56 = vector.multi_reduction <add>, %55, %cst_23 [1, 2] : vector<1x151x158xf32> to vector<1xf32>
    %57 = vector.shape_cast %56 : vector<1xf32> to vector<1x1x1xf32>
    %58 = vector.extract %57[0, 0, 0] : f32 from vector<1x1x1xf32>
    %59 = vector.broadcast %58 : f32 to vector<8x128xf32>
    %60 = arith.mulf %54, %59 : vector<8x128xf32>
    %61 = arith.addf %2, %60 : vector<8x128xf32>
    %c0_24 = arith.constant 0 : index
    %c0_25 = arith.constant 0 : index
    %62 = vector.load %arg6[%c0_24, %c0_25] : memref<88x168xf32, #tpu.memory_space<vmem>>, vector<88x168xf32>
    %c0_26 = arith.constant 0 : index
    %c0_27 = arith.constant 0 : index
    %63 = vector.load %arg7[%c0_26, %c0_27] : memref<168x84xf32, #tpu.memory_space<vmem>>, vector<168x84xf32>
    %64 = vector.extract_strided_slice %15 {offsets = [0, 0], sizes = [336, 168], strides = [1, 1]} : vector<840x168xf32> to vector<336x168xf32>
    %cst_28 = arith.constant dense<0.000000e+00> : vector<336x84xf32>
    %65 = tpu.matmul %64, %63, %cst_28 {dimension_numbers = #tpu.dot_dimension_numbers<[1], [0], [0], [1], [0, 0, 1, 1], [], []>} : vector<336x168xf32>, vector<168x84xf32>, vector<336x84xf32> -> vector<336x84xf32>
    %66 = vector.extract_strided_slice %65 {offsets = [0, 0], sizes = [168, 84], strides = [1, 1]} : vector<336x84xf32> to vector<168x84xf32>
    %cst_29 = arith.constant dense<0.000000e+00> : vector<88x84xf32>
    %67 = tpu.matmul %62, %66, %cst_29 {dimension_numbers = #tpu.dot_dimension_numbers<[1], [0], [0], [1], [0, 0, 1, 1], [], []>} : vector<88x168xf32>, vector<168x84xf32>, vector<88x84xf32> -> vector<88x84xf32>
    %68 = vector.extract_strided_slice %65 {offsets = [168, 0], sizes = [168, 84], strides = [1, 1]} : vector<336x84xf32> to vector<168x84xf32>
    %cst_30 = arith.constant dense<0.000000e+00> : vector<88x84xf32>
    %69 = tpu.matmul %62, %68, %cst_30 {dimension_numbers = #tpu.dot_dimension_numbers<[1], [0], [0], [1], [0, 0, 1, 1], [], []>} : vector<88x168xf32>, vector<168x84xf32>, vector<88x84xf32> -> vector<88x84xf32>
    %c0_31 = arith.constant 0 : index
    %c0_32 = arith.constant 0 : index
    %70 = vector.load %arg8[%c0_31, %c0_32] : memref<71x88xf32, #tpu.memory_space<vmem>>, vector<71x88xf32>
    %c0_33 = arith.constant 0 : index
    %c0_34 = arith.constant 0 : index
    %71 = vector.load %arg9[%c0_33, %c0_34] : memref<84x74xf32, #tpu.memory_space<vmem>>, vector<84x74xf32>
    %72 = arith.mulf %67, %67 : vector<88x84xf32>
    %73 = arith.mulf %69, %69 : vector<88x84xf32>
    %74 = arith.mulf %67, %69 : vector<88x84xf32>
    %75 = tpu.concatenate %67, %69, %72, %73, %74 in 0 : vector<88x84xf32>, vector<88x84xf32>, vector<88x84xf32>, vector<88x84xf32>, vector<88x84xf32> -> vector<440x84xf32>
    %cst_35 = arith.constant dense<0.000000e+00> : vector<440x74xf32>
    %76 = tpu.matmul %75, %71, %cst_35 {dimension_numbers = #tpu.dot_dimension_numbers<[1], [0], [0], [1], [0, 0, 1, 1], [], []>} : vector<440x84xf32>, vector<84x74xf32>, vector<440x74xf32> -> vector<440x74xf32>
    %77 = vector.extract_strided_slice %76 {offsets = [0, 0], sizes = [88, 74], strides = [1, 1]} : vector<440x74xf32> to vector<88x74xf32>
    %cst_36 = arith.constant dense<0.000000e+00> : vector<71x74xf32>
    %78 = tpu.matmul %70, %77, %cst_36 {dimension_numbers = #tpu.dot_dimension_numbers<[1], [0], [0], [1], [0, 0, 1, 1], [], []>} : vector<71x88xf32>, vector<88x74xf32>, vector<71x74xf32> -> vector<71x74xf32>
    %79 = vector.extract_strided_slice %76 {offsets = [88, 0], sizes = [88, 74], strides = [1, 1]} : vector<440x74xf32> to vector<88x74xf32>
    %cst_37 = arith.constant dense<0.000000e+00> : vector<71x74xf32>
    %80 = tpu.matmul %70, %79, %cst_37 {dimension_numbers = #tpu.dot_dimension_numbers<[1], [0], [0], [1], [0, 0, 1, 1], [], []>} : vector<71x88xf32>, vector<88x74xf32>, vector<71x74xf32> -> vector<71x74xf32>
    %81 = vector.extract_strided_slice %76 {offsets = [176, 0], sizes = [88, 74], strides = [1, 1]} : vector<440x74xf32> to vector<88x74xf32>
    %cst_38 = arith.constant dense<0.000000e+00> : vector<71x74xf32>
    %82 = tpu.matmul %70, %81, %cst_38 {dimension_numbers = #tpu.dot_dimension_numbers<[1], [0], [0], [1], [0, 0, 1, 1], [], []>} : vector<71x88xf32>, vector<88x74xf32>, vector<71x74xf32> -> vector<71x74xf32>
    %83 = vector.extract_strided_slice %76 {offsets = [264, 0], sizes = [88, 74], strides = [1, 1]} : vector<440x74xf32> to vector<88x74xf32>
    %cst_39 = arith.constant dense<0.000000e+00> : vector<71x74xf32>
    %84 = tpu.matmul %70, %83, %cst_39 {dimension_numbers = #tpu.dot_dimension_numbers<[1], [0], [0], [1], [0, 0, 1, 1], [], []>} : vector<71x88xf32>, vector<88x74xf32>, vector<71x74xf32> -> vector<71x74xf32>
    %85 = vector.extract_strided_slice %76 {offsets = [352, 0], sizes = [88, 74], strides = [1, 1]} : vector<440x74xf32> to vector<88x74xf32>
    %cst_40 = arith.constant dense<0.000000e+00> : vector<71x74xf32>
    %86 = tpu.matmul %70, %85, %cst_40 {dimension_numbers = #tpu.dot_dimension_numbers<[1], [0], [0], [1], [0, 0, 1, 1], [], []>} : vector<71x88xf32>, vector<88x74xf32>, vector<71x74xf32> -> vector<71x74xf32>
    %87 = arith.mulf %78, %78 : vector<71x74xf32>
    %88 = arith.mulf %80, %80 : vector<71x74xf32>
    %89 = arith.mulf %78, %80 : vector<71x74xf32>
    %90 = arith.subf %82, %87 : vector<71x74xf32>
    %91 = arith.subf %84, %88 : vector<71x74xf32>
    %92 = arith.subf %86, %89 : vector<71x74xf32>
    %cst_41 = arith.constant 2.000000e+00 : f32
    %93 = vector.broadcast %cst_41 : f32 to vector<71x74xf32>
    %94 = arith.mulf %93, %92 : vector<71x74xf32>
    %cst_42 = arith.constant 8.99999984E-4 : f32
    %95 = vector.broadcast %cst_42 : f32 to vector<71x74xf32>
    %96 = arith.addf %94, %95 : vector<71x74xf32>
    %97 = arith.addf %90, %91 : vector<71x74xf32>
    %cst_43 = arith.constant 8.99999984E-4 : f32
    %98 = vector.broadcast %cst_43 : f32 to vector<71x74xf32>
    %99 = arith.addf %97, %98 : vector<71x74xf32>
    %100 = tpu.reciprocal %99 {approx = true} : vector<71x74xf32> -> vector<71x74xf32>
    %101 = arith.mulf %99, %100 : vector<71x74xf32>
    %cst_44 = arith.constant 2.000000e+00 : f32
    %102 = vector.broadcast %cst_44 : f32 to vector<71x74xf32>
    %103 = arith.subf %102, %101 : vector<71x74xf32>
    %104 = arith.mulf %100, %103 : vector<71x74xf32>
    %105 = arith.mulf %96, %104 : vector<71x74xf32>
    %cst_45 = arith.constant 0.000000e+00 : f32
    %106 = vector.broadcast %cst_45 : f32 to vector<71x74xf32>
    %107 = arith.maximumf %105, %106 : vector<71x74xf32>
    %c1_i32_46 = arith.constant 1 : i32
    %108 = vector.broadcast %c1_i32_46 : i32 to vector<8x128xi32>
    %109 = arith.cmpi eq, %0, %108 : vector<8x128xi32>
    %c1_i32_47 = arith.constant 1 : i32
    %110 = vector.broadcast %c1_i32_47 : i32 to vector<8x128xi32>
    %111 = arith.cmpi eq, %1, %110 : vector<8x128xi32>
    %112 = arith.andi %109, %111 : vector<8x128xi1>
    %113 = arith.extui %112 : vector<8x128xi1> to vector<8x128xi32>
    %114 = arith.sitofp %113 : vector<8x128xi32> to vector<8x128xf32>
    %115 = vector.shape_cast %107 : vector<71x74xf32> to vector<1x71x74xf32>
    %cst_48 = arith.constant dense<0.000000e+00> : vector<1xf32>
    %116 = vector.multi_reduction <add>, %115, %cst_48 [1, 2] : vector<1x71x74xf32> to vector<1xf32>
    %117 = vector.shape_cast %116 : vector<1xf32> to vector<1x1x1xf32>
    %118 = vector.extract %117[0, 0, 0] : f32 from vector<1x1x1xf32>
    %119 = vector.broadcast %118 : f32 to vector<8x128xf32>
    %120 = arith.mulf %114, %119 : vector<8x128xf32>
    %121 = arith.addf %61, %120 : vector<8x128xf32>
    %c0_49 = arith.constant 0 : index
    %c0_50 = arith.constant 0 : index
    %122 = vector.load %arg10[%c0_49, %c0_50] : memref<48x88xf32, #tpu.memory_space<vmem>>, vector<48x88xf32>
    %c0_51 = arith.constant 0 : index
    %c0_52 = arith.constant 0 : index
    %123 = vector.load %arg11[%c0_51, %c0_52] : memref<84x42xf32, #tpu.memory_space<vmem>>, vector<84x42xf32>
    %124 = vector.extract_strided_slice %75 {offsets = [0, 0], sizes = [176, 84], strides = [1, 1]} : vector<440x84xf32> to vector<176x84xf32>
    %cst_53 = arith.constant dense<0.000000e+00> : vector<176x42xf32>
    %125 = tpu.matmul %124, %123, %cst_53 {dimension_numbers = #tpu.dot_dimension_numbers<[1], [0], [0], [1], [0, 0, 1, 1], [], []>} : vector<176x84xf32>, vector<84x42xf32>, vector<176x42xf32> -> vector<176x42xf32>
    %126 = vector.extract_strided_slice %125 {offsets = [0, 0], sizes = [88, 42], strides = [1, 1]} : vector<176x42xf32> to vector<88x42xf32>
    %cst_54 = arith.constant dense<0.000000e+00> : vector<48x42xf32>
    %127 = tpu.matmul %122, %126, %cst_54 {dimension_numbers = #tpu.dot_dimension_numbers<[1], [0], [0], [1], [0, 0, 1, 1], [], []>} : vector<48x88xf32>, vector<88x42xf32>, vector<48x42xf32> -> vector<48x42xf32>
    %128 = vector.extract_strided_slice %125 {offsets = [88, 0], sizes = [88, 42], strides = [1, 1]} : vector<176x42xf32> to vector<88x42xf32>
    %cst_55 = arith.constant dense<0.000000e+00> : vector<48x42xf32>
    %129 = tpu.matmul %122, %128, %cst_55 {dimension_numbers = #tpu.dot_dimension_numbers<[1], [0], [0], [1], [0, 0, 1, 1], [], []>} : vector<48x88xf32>, vector<88x42xf32>, vector<48x42xf32> -> vector<48x42xf32>
    %c0_56 = arith.constant 0 : index
    %c0_57 = arith.constant 0 : index
    %130 = vector.load %arg12[%c0_56, %c0_57] : memref<31x48xf32, #tpu.memory_space<vmem>>, vector<31x48xf32>
    %c0_58 = arith.constant 0 : index
    %c0_59 = arith.constant 0 : index
    %131 = vector.load %arg13[%c0_58, %c0_59] : memref<42x32xf32, #tpu.memory_space<vmem>>, vector<42x32xf32>
    %132 = arith.mulf %127, %127 : vector<48x42xf32>
    %133 = arith.mulf %129, %129 : vector<48x42xf32>
    %134 = arith.mulf %127, %129 : vector<48x42xf32>
    %135 = tpu.concatenate %127, %129, %132, %133, %134 in 0 : vector<48x42xf32>, vector<48x42xf32>, vector<48x42xf32>, vector<48x42xf32>, vector<48x42xf32> -> vector<240x42xf32>
    %cst_60 = arith.constant dense<0.000000e+00> : vector<240x32xf32>
    %136 = tpu.matmul %135, %131, %cst_60 {dimension_numbers = #tpu.dot_dimension_numbers<[1], [0], [0], [1], [0, 0, 1, 1], [], []>} : vector<240x42xf32>, vector<42x32xf32>, vector<240x32xf32> -> vector<240x32xf32>
    %137 = vector.extract_strided_slice %136 {offsets = [0, 0], sizes = [48, 32], strides = [1, 1]} : vector<240x32xf32> to vector<48x32xf32>
    %cst_61 = arith.constant dense<0.000000e+00> : vector<31x32xf32>
    %138 = tpu.matmul %130, %137, %cst_61 {dimension_numbers = #tpu.dot_dimension_numbers<[1], [0], [0], [1], [0, 0, 1, 1], [], []>} : vector<31x48xf32>, vector<48x32xf32>, vector<31x32xf32> -> vector<31x32xf32>
    %139 = vector.extract_strided_slice %136 {offsets = [48, 0], sizes = [48, 32], strides = [1, 1]} : vector<240x32xf32> to vector<48x32xf32>
    %cst_62 = arith.constant dense<0.000000e+00> : vector<31x32xf32>
    %140 = tpu.matmul %130, %139, %cst_62 {dimension_numbers = #tpu.dot_dimension_numbers<[1], [0], [0], [1], [0, 0, 1, 1], [], []>} : vector<31x48xf32>, vector<48x32xf32>, vector<31x32xf32> -> vector<31x32xf32>
    %141 = vector.extract_strided_slice %136 {offsets = [96, 0], sizes = [48, 32], strides = [1, 1]} : vector<240x32xf32> to vector<48x32xf32>
    %cst_63 = arith.constant dense<0.000000e+00> : vector<31x32xf32>
    %142 = tpu.matmul %130, %141, %cst_63 {dimension_numbers = #tpu.dot_dimension_numbers<[1], [0], [0], [1], [0, 0, 1, 1], [], []>} : vector<31x48xf32>, vector<48x32xf32>, vector<31x32xf32> -> vector<31x32xf32>
    %143 = vector.extract_strided_slice %136 {offsets = [144, 0], sizes = [48, 32], strides = [1, 1]} : vector<240x32xf32> to vector<48x32xf32>
    %cst_64 = arith.constant dense<0.000000e+00> : vector<31x32xf32>
    %144 = tpu.matmul %130, %143, %cst_64 {dimension_numbers = #tpu.dot_dimension_numbers<[1], [0], [0], [1], [0, 0, 1, 1], [], []>} : vector<31x48xf32>, vector<48x32xf32>, vector<31x32xf32> -> vector<31x32xf32>
    %145 = vector.extract_strided_slice %136 {offsets = [192, 0], sizes = [48, 32], strides = [1, 1]} : vector<240x32xf32> to vector<48x32xf32>
    %cst_65 = arith.constant dense<0.000000e+00> : vector<31x32xf32>
    %146 = tpu.matmul %130, %145, %cst_65 {dimension_numbers = #tpu.dot_dimension_numbers<[1], [0], [0], [1], [0, 0, 1, 1], [], []>} : vector<31x48xf32>, vector<48x32xf32>, vector<31x32xf32> -> vector<31x32xf32>
    %147 = arith.mulf %138, %138 : vector<31x32xf32>
    %148 = arith.mulf %140, %140 : vector<31x32xf32>
    %149 = arith.mulf %138, %140 : vector<31x32xf32>
    %150 = arith.subf %142, %147 : vector<31x32xf32>
    %151 = arith.subf %144, %148 : vector<31x32xf32>
    %152 = arith.subf %146, %149 : vector<31x32xf32>
    %cst_66 = arith.constant 2.000000e+00 : f32
    %153 = vector.broadcast %cst_66 : f32 to vector<31x32xf32>
    %154 = arith.mulf %153, %152 : vector<31x32xf32>
    %cst_67 = arith.constant 8.99999984E-4 : f32
    %155 = vector.broadcast %cst_67 : f32 to vector<31x32xf32>
    %156 = arith.addf %154, %155 : vector<31x32xf32>
    %157 = arith.addf %150, %151 : vector<31x32xf32>
    %cst_68 = arith.constant 8.99999984E-4 : f32
    %158 = vector.broadcast %cst_68 : f32 to vector<31x32xf32>
    %159 = arith.addf %157, %158 : vector<31x32xf32>
    %160 = tpu.reciprocal %159 {approx = true} : vector<31x32xf32> -> vector<31x32xf32>
    %161 = arith.mulf %159, %160 : vector<31x32xf32>
    %cst_69 = arith.constant 2.000000e+00 : f32
    %162 = vector.broadcast %cst_69 : f32 to vector<31x32xf32>
    %163 = arith.subf %162, %161 : vector<31x32xf32>
    %164 = arith.mulf %160, %163 : vector<31x32xf32>
    %165 = arith.mulf %156, %164 : vector<31x32xf32>
    %cst_70 = arith.constant 0.000000e+00 : f32
    %166 = vector.broadcast %cst_70 : f32 to vector<31x32xf32>
    %167 = arith.maximumf %165, %166 : vector<31x32xf32>
    %c1_i32_71 = arith.constant 1 : i32
    %168 = vector.broadcast %c1_i32_71 : i32 to vector<8x128xi32>
    %169 = arith.cmpi eq, %0, %168 : vector<8x128xi32>
    %c2_i32 = arith.constant 2 : i32
    %170 = vector.broadcast %c2_i32 : i32 to vector<8x128xi32>
    %171 = arith.cmpi eq, %1, %170 : vector<8x128xi32>
    %172 = arith.andi %169, %171 : vector<8x128xi1>
    %173 = arith.extui %172 : vector<8x128xi1> to vector<8x128xi32>
    %174 = arith.sitofp %173 : vector<8x128xi32> to vector<8x128xf32>
    %175 = vector.shape_cast %167 : vector<31x32xf32> to vector<1x31x32xf32>
    %cst_72 = arith.constant dense<0.000000e+00> : vector<1xf32>
    %176 = vector.multi_reduction <add>, %175, %cst_72 [1, 2] : vector<1x31x32xf32> to vector<1xf32>
    %177 = vector.shape_cast %176 : vector<1xf32> to vector<1x1x1xf32>
    %178 = vector.extract %177[0, 0, 0] : f32 from vector<1x1x1xf32>
    %179 = vector.broadcast %178 : f32 to vector<8x128xf32>
    %180 = arith.mulf %174, %179 : vector<8x128xf32>
    %181 = arith.addf %121, %180 : vector<8x128xf32>
    %c0_73 = arith.constant 0 : index
    %c0_74 = arith.constant 0 : index
    %182 = vector.load %arg14[%c0_73, %c0_74] : memref<24x48xf32, #tpu.memory_space<vmem>>, vector<24x48xf32>
    %c0_75 = arith.constant 0 : index
    %c0_76 = arith.constant 0 : index
    %183 = vector.load %arg15[%c0_75, %c0_76] : memref<42x21xf32, #tpu.memory_space<vmem>>, vector<42x21xf32>
    %184 = vector.extract_strided_slice %135 {offsets = [0, 0], sizes = [96, 42], strides = [1, 1]} : vector<240x42xf32> to vector<96x42xf32>
    %cst_77 = arith.constant dense<0.000000e+00> : vector<96x21xf32>
    %185 = tpu.matmul %184, %183, %cst_77 {dimension_numbers = #tpu.dot_dimension_numbers<[1], [0], [0], [1], [0, 0, 1, 1], [], []>} : vector<96x42xf32>, vector<42x21xf32>, vector<96x21xf32> -> vector<96x21xf32>
    %186 = vector.extract_strided_slice %185 {offsets = [0, 0], sizes = [48, 21], strides = [1, 1]} : vector<96x21xf32> to vector<48x21xf32>
    %cst_78 = arith.constant dense<0.000000e+00> : vector<24x21xf32>
    %187 = tpu.matmul %182, %186, %cst_78 {dimension_numbers = #tpu.dot_dimension_numbers<[1], [0], [0], [1], [0, 0, 1, 1], [], []>} : vector<24x48xf32>, vector<48x21xf32>, vector<24x21xf32> -> vector<24x21xf32>
    %188 = vector.extract_strided_slice %185 {offsets = [48, 0], sizes = [48, 21], strides = [1, 1]} : vector<96x21xf32> to vector<48x21xf32>
    %cst_79 = arith.constant dense<0.000000e+00> : vector<24x21xf32>
    %189 = tpu.matmul %182, %188, %cst_79 {dimension_numbers = #tpu.dot_dimension_numbers<[1], [0], [0], [1], [0, 0, 1, 1], [], []>} : vector<24x48xf32>, vector<48x21xf32>, vector<24x21xf32> -> vector<24x21xf32>
    %c0_80 = arith.constant 0 : index
    %c0_81 = arith.constant 0 : index
    %190 = vector.load %arg16[%c0_80, %c0_81] : memref<11x24xf32, #tpu.memory_space<vmem>>, vector<11x24xf32>
    %c0_82 = arith.constant 0 : index
    %c0_83 = arith.constant 0 : index
    %191 = vector.load %arg17[%c0_82, %c0_83] : memref<21x11xf32, #tpu.memory_space<vmem>>, vector<21x11xf32>
    %192 = arith.mulf %187, %187 : vector<24x21xf32>
    %193 = arith.mulf %189, %189 : vector<24x21xf32>
    %194 = arith.mulf %187, %189 : vector<24x21xf32>
    %195 = tpu.concatenate %187, %189, %192, %193, %194 in 0 : vector<24x21xf32>, vector<24x21xf32>, vector<24x21xf32>, vector<24x21xf32>, vector<24x21xf32> -> vector<120x21xf32>
    %cst_84 = arith.constant dense<0.000000e+00> : vector<120x11xf32>
    %196 = tpu.matmul %195, %191, %cst_84 {dimension_numbers = #tpu.dot_dimension_numbers<[1], [0], [0], [1], [0, 0, 1, 1], [], []>} : vector<120x21xf32>, vector<21x11xf32>, vector<120x11xf32> -> vector<120x11xf32>
    %197 = vector.extract_strided_slice %196 {offsets = [0, 0], sizes = [24, 11], strides = [1, 1]} : vector<120x11xf32> to vector<24x11xf32>
    %cst_85 = arith.constant dense<0.000000e+00> : vector<11x11xf32>
    %198 = tpu.matmul %190, %197, %cst_85 {dimension_numbers = #tpu.dot_dimension_numbers<[1], [0], [0], [1], [0, 0, 1, 1], [], []>} : vector<11x24xf32>, vector<24x11xf32>, vector<11x11xf32> -> vector<11x11xf32>
    %199 = vector.extract_strided_slice %196 {offsets = [24, 0], sizes = [24, 11], strides = [1, 1]} : vector<120x11xf32> to vector<24x11xf32>
    %cst_86 = arith.constant dense<0.000000e+00> : vector<11x11xf32>
    %200 = tpu.matmul %190, %199, %cst_86 {dimension_numbers = #tpu.dot_dimension_numbers<[1], [0], [0], [1], [0, 0, 1, 1], [], []>} : vector<11x24xf32>, vector<24x11xf32>, vector<11x11xf32> -> vector<11x11xf32>
    %201 = vector.extract_strided_slice %196 {offsets = [48, 0], sizes = [24, 11], strides = [1, 1]} : vector<120x11xf32> to vector<24x11xf32>
    %cst_87 = arith.constant dense<0.000000e+00> : vector<11x11xf32>
    %202 = tpu.matmul %190, %201, %cst_87 {dimension_numbers = #tpu.dot_dimension_numbers<[1], [0], [0], [1], [0, 0, 1, 1], [], []>} : vector<11x24xf32>, vector<24x11xf32>, vector<11x11xf32> -> vector<11x11xf32>
    %203 = vector.extract_strided_slice %196 {offsets = [72, 0], sizes = [24, 11], strides = [1, 1]} : vector<120x11xf32> to vector<24x11xf32>
    %cst_88 = arith.constant dense<0.000000e+00> : vector<11x11xf32>
    %204 = tpu.matmul %190, %203, %cst_88 {dimension_numbers = #tpu.dot_dimension_numbers<[1], [0], [0], [1], [0, 0, 1, 1], [], []>} : vector<11x24xf32>, vector<24x11xf32>, vector<11x11xf32> -> vector<11x11xf32>
    %205 = vector.extract_strided_slice %196 {offsets = [96, 0], sizes = [24, 11], strides = [1, 1]} : vector<120x11xf32> to vector<24x11xf32>
    %cst_89 = arith.constant dense<0.000000e+00> : vector<11x11xf32>
    %206 = tpu.matmul %190, %205, %cst_89 {dimension_numbers = #tpu.dot_dimension_numbers<[1], [0], [0], [1], [0, 0, 1, 1], [], []>} : vector<11x24xf32>, vector<24x11xf32>, vector<11x11xf32> -> vector<11x11xf32>
    %207 = arith.mulf %198, %198 : vector<11x11xf32>
    %208 = arith.mulf %200, %200 : vector<11x11xf32>
    %209 = arith.mulf %198, %200 : vector<11x11xf32>
    %210 = arith.subf %202, %207 : vector<11x11xf32>
    %211 = arith.subf %204, %208 : vector<11x11xf32>
    %212 = arith.subf %206, %209 : vector<11x11xf32>
    %cst_90 = arith.constant 2.000000e+00 : f32
    %213 = vector.broadcast %cst_90 : f32 to vector<11x11xf32>
    %214 = arith.mulf %213, %212 : vector<11x11xf32>
    %cst_91 = arith.constant 8.99999984E-4 : f32
    %215 = vector.broadcast %cst_91 : f32 to vector<11x11xf32>
    %216 = arith.addf %214, %215 : vector<11x11xf32>
    %217 = arith.addf %210, %211 : vector<11x11xf32>
    %cst_92 = arith.constant 8.99999984E-4 : f32
    %218 = vector.broadcast %cst_92 : f32 to vector<11x11xf32>
    %219 = arith.addf %217, %218 : vector<11x11xf32>
    %220 = tpu.reciprocal %219 {approx = true} : vector<11x11xf32> -> vector<11x11xf32>
    %221 = arith.mulf %219, %220 : vector<11x11xf32>
    %cst_93 = arith.constant 2.000000e+00 : f32
    %222 = vector.broadcast %cst_93 : f32 to vector<11x11xf32>
    %223 = arith.subf %222, %221 : vector<11x11xf32>
    %224 = arith.mulf %220, %223 : vector<11x11xf32>
    %225 = arith.mulf %216, %224 : vector<11x11xf32>
    %cst_94 = arith.constant 0.000000e+00 : f32
    %226 = vector.broadcast %cst_94 : f32 to vector<11x11xf32>
    %227 = arith.maximumf %225, %226 : vector<11x11xf32>
    %c1_i32_95 = arith.constant 1 : i32
    %228 = vector.broadcast %c1_i32_95 : i32 to vector<8x128xi32>
    %229 = arith.cmpi eq, %0, %228 : vector<8x128xi32>
    %c3_i32 = arith.constant 3 : i32
    %230 = vector.broadcast %c3_i32 : i32 to vector<8x128xi32>
    %231 = arith.cmpi eq, %1, %230 : vector<8x128xi32>
    %232 = arith.andi %229, %231 : vector<8x128xi1>
    %233 = arith.extui %232 : vector<8x128xi1> to vector<8x128xi32>
    %234 = arith.sitofp %233 : vector<8x128xi32> to vector<8x128xf32>
    %235 = vector.shape_cast %227 : vector<11x11xf32> to vector<1x11x11xf32>
    %cst_96 = arith.constant dense<0.000000e+00> : vector<1xf32>
    %236 = vector.multi_reduction <add>, %235, %cst_96 [1, 2] : vector<1x11x11xf32> to vector<1xf32>
    %237 = vector.shape_cast %236 : vector<1xf32> to vector<1x1x1xf32>
    %238 = vector.extract %237[0, 0, 0] : f32 from vector<1x1x1xf32>
    %239 = vector.broadcast %238 : f32 to vector<8x128xf32>
    %240 = arith.mulf %234, %239 : vector<8x128xf32>
    %241 = arith.addf %181, %240 : vector<8x128xf32>
    %c0_97 = arith.constant 0 : index
    %c0_98 = arith.constant 0 : index
    %242 = vector.load %arg18[%c0_97, %c0_98] : memref<16x24xf32, #tpu.memory_space<vmem>>, vector<16x24xf32>
    %c0_99 = arith.constant 0 : index
    %c0_100 = arith.constant 0 : index
    %243 = vector.load %arg19[%c0_99, %c0_100] : memref<21x11xf32, #tpu.memory_space<vmem>>, vector<21x11xf32>
    %244 = vector.extract_strided_slice %195 {offsets = [0, 0], sizes = [48, 21], strides = [1, 1]} : vector<120x21xf32> to vector<48x21xf32>
    %cst_101 = arith.constant dense<0.000000e+00> : vector<48x11xf32>
    %245 = tpu.matmul %244, %243, %cst_101 {dimension_numbers = #tpu.dot_dimension_numbers<[1], [0], [0], [1], [0, 0, 1, 1], [], []>} : vector<48x21xf32>, vector<21x11xf32>, vector<48x11xf32> -> vector<48x11xf32>
    %246 = vector.extract_strided_slice %245 {offsets = [0, 0], sizes = [24, 11], strides = [1, 1]} : vector<48x11xf32> to vector<24x11xf32>
    %cst_102 = arith.constant dense<0.000000e+00> : vector<16x11xf32>
    %247 = tpu.matmul %242, %246, %cst_102 {dimension_numbers = #tpu.dot_dimension_numbers<[1], [0], [0], [1], [0, 0, 1, 1], [], []>} : vector<16x24xf32>, vector<24x11xf32>, vector<16x11xf32> -> vector<16x11xf32>
    %248 = vector.extract_strided_slice %245 {offsets = [24, 0], sizes = [24, 11], strides = [1, 1]} : vector<48x11xf32> to vector<24x11xf32>
    %cst_103 = arith.constant dense<0.000000e+00> : vector<16x11xf32>
    %249 = tpu.matmul %242, %248, %cst_103 {dimension_numbers = #tpu.dot_dimension_numbers<[1], [0], [0], [1], [0, 0, 1, 1], [], []>} : vector<16x24xf32>, vector<24x11xf32>, vector<16x11xf32> -> vector<16x11xf32>
    %c0_104 = arith.constant 0 : index
    %c0_105 = arith.constant 0 : index
    %250 = vector.load %arg20[%c0_104, %c0_105] : memref<1x16xf32, #tpu.memory_space<vmem>>, vector<1x16xf32>
    %c0_106 = arith.constant 0 : index
    %c0_107 = arith.constant 0 : index
    %251 = vector.load %arg21[%c0_106, %c0_107] : memref<11x1xf32, #tpu.memory_space<vmem>>, vector<11x1xf32>
    %252 = arith.mulf %247, %247 : vector<16x11xf32>
    %253 = arith.mulf %249, %249 : vector<16x11xf32>
    %254 = arith.mulf %247, %249 : vector<16x11xf32>
    %255 = tpu.concatenate %247, %249, %252, %253, %254 in 0 : vector<16x11xf32>, vector<16x11xf32>, vector<16x11xf32>, vector<16x11xf32>, vector<16x11xf32> -> vector<80x11xf32>
    %cst_108 = arith.constant dense<0.000000e+00> : vector<80x1xf32>
    %256 = tpu.matmul %255, %251, %cst_108 {dimension_numbers = #tpu.dot_dimension_numbers<[1], [0], [0], [1], [0, 0, 1, 1], [], []>} : vector<80x11xf32>, vector<11x1xf32>, vector<80x1xf32> -> vector<80x1xf32>
    %257 = vector.extract_strided_slice %256 {offsets = [0, 0], sizes = [16, 1], strides = [1, 1]} : vector<80x1xf32> to vector<16x1xf32>
    %cst_109 = arith.constant dense<0.000000e+00> : vector<1x1xf32>
    %258 = tpu.matmul %250, %257, %cst_109 {dimension_numbers = #tpu.dot_dimension_numbers<[1], [0], [0], [1], [0, 0, 1, 1], [], []>} : vector<1x16xf32>, vector<16x1xf32>, vector<1x1xf32> -> vector<1x1xf32>
    %259 = vector.extract_strided_slice %256 {offsets = [16, 0], sizes = [16, 1], strides = [1, 1]} : vector<80x1xf32> to vector<16x1xf32>
    %cst_110 = arith.constant dense<0.000000e+00> : vector<1x1xf32>
    %260 = tpu.matmul %250, %259, %cst_110 {dimension_numbers = #tpu.dot_dimension_numbers<[1], [0], [0], [1], [0, 0, 1, 1], [], []>} : vector<1x16xf32>, vector<16x1xf32>, vector<1x1xf32> -> vector<1x1xf32>
    %261 = vector.extract_strided_slice %256 {offsets = [32, 0], sizes = [16, 1], strides = [1, 1]} : vector<80x1xf32> to vector<16x1xf32>
    %cst_111 = arith.constant dense<0.000000e+00> : vector<1x1xf32>
    %262 = tpu.matmul %250, %261, %cst_111 {dimension_numbers = #tpu.dot_dimension_numbers<[1], [0], [0], [1], [0, 0, 1, 1], [], []>} : vector<1x16xf32>, vector<16x1xf32>, vector<1x1xf32> -> vector<1x1xf32>
    %263 = vector.extract_strided_slice %256 {offsets = [48, 0], sizes = [16, 1], strides = [1, 1]} : vector<80x1xf32> to vector<16x1xf32>
    %cst_112 = arith.constant dense<0.000000e+00> : vector<1x1xf32>
    %264 = tpu.matmul %250, %263, %cst_112 {dimension_numbers = #tpu.dot_dimension_numbers<[1], [0], [0], [1], [0, 0, 1, 1], [], []>} : vector<1x16xf32>, vector<16x1xf32>, vector<1x1xf32> -> vector<1x1xf32>
    %265 = vector.extract_strided_slice %256 {offsets = [64, 0], sizes = [16, 1], strides = [1, 1]} : vector<80x1xf32> to vector<16x1xf32>
    %cst_113 = arith.constant dense<0.000000e+00> : vector<1x1xf32>
    %266 = tpu.matmul %250, %265, %cst_113 {dimension_numbers = #tpu.dot_dimension_numbers<[1], [0], [0], [1], [0, 0, 1, 1], [], []>} : vector<1x16xf32>, vector<16x1xf32>, vector<1x1xf32> -> vector<1x1xf32>
    %267 = arith.mulf %258, %258 : vector<1x1xf32>
    %268 = arith.mulf %260, %260 : vector<1x1xf32>
    %269 = arith.mulf %258, %260 : vector<1x1xf32>
    %270 = arith.subf %262, %267 : vector<1x1xf32>
    %271 = arith.subf %264, %268 : vector<1x1xf32>
    %272 = arith.subf %266, %269 : vector<1x1xf32>
    %cst_114 = arith.constant 2.000000e+00 : f32
    %273 = vector.broadcast %cst_114 : f32 to vector<1x1xf32>
    %274 = arith.mulf %273, %272 : vector<1x1xf32>
    %cst_115 = arith.constant 8.99999984E-4 : f32
    %275 = vector.broadcast %cst_115 : f32 to vector<1x1xf32>
    %276 = arith.addf %274, %275 : vector<1x1xf32>
    %277 = arith.addf %270, %271 : vector<1x1xf32>
    %cst_116 = arith.constant 8.99999984E-4 : f32
    %278 = vector.broadcast %cst_116 : f32 to vector<1x1xf32>
    %279 = arith.addf %277, %278 : vector<1x1xf32>
    %280 = tpu.reciprocal %279 {approx = true} : vector<1x1xf32> -> vector<1x1xf32>
    %281 = arith.mulf %279, %280 : vector<1x1xf32>
    %cst_117 = arith.constant 2.000000e+00 : f32
    %282 = vector.broadcast %cst_117 : f32 to vector<1x1xf32>
    %283 = arith.subf %282, %281 : vector<1x1xf32>
    %284 = arith.mulf %280, %283 : vector<1x1xf32>
    %285 = arith.mulf %276, %284 : vector<1x1xf32>
    %cst_118 = arith.constant 0.000000e+00 : f32
    %286 = vector.broadcast %cst_118 : f32 to vector<1x1xf32>
    %287 = arith.maximumf %285, %286 : vector<1x1xf32>
    %c1_i32_119 = arith.constant 1 : i32
    %288 = vector.broadcast %c1_i32_119 : i32 to vector<8x128xi32>
    %289 = arith.cmpi eq, %0, %288 : vector<8x128xi32>
    %c4_i32 = arith.constant 4 : i32
    %290 = vector.broadcast %c4_i32 : i32 to vector<8x128xi32>
    %291 = arith.cmpi eq, %1, %290 : vector<8x128xi32>
    %292 = arith.andi %289, %291 : vector<8x128xi1>
    %293 = arith.extui %292 : vector<8x128xi1> to vector<8x128xi32>
    %294 = arith.sitofp %293 : vector<8x128xi32> to vector<8x128xf32>
    %295 = vector.shape_cast %287 : vector<1x1xf32> to vector<1x1x1xf32>
    %cst_120 = arith.constant dense<0.000000e+00> : vector<1xf32>
    %296 = vector.multi_reduction <add>, %295, %cst_120 [1, 2] : vector<1x1x1xf32> to vector<1xf32>
    %297 = vector.shape_cast %296 : vector<1xf32> to vector<1x1x1xf32>
    %298 = vector.extract %297[0, 0, 0] : f32 from vector<1x1x1xf32>
    %299 = vector.broadcast %298 : f32 to vector<8x128xf32>
    %300 = arith.mulf %294, %299 : vector<8x128xf32>
    %301 = arith.addf %241, %300 : vector<8x128xf32>
    %cst_121 = arith.constant 2.000000e+00 : f32
    %302 = vector.broadcast %cst_121 : f32 to vector<1x1xf32>
    %303 = arith.mulf %302, %269 : vector<1x1xf32>
    %cst_122 = arith.constant 9.99999974E-5 : f32
    %304 = vector.broadcast %cst_122 : f32 to vector<1x1xf32>
    %305 = arith.addf %303, %304 : vector<1x1xf32>
    %306 = arith.addf %267, %268 : vector<1x1xf32>
    %cst_123 = arith.constant 9.99999974E-5 : f32
    %307 = vector.broadcast %cst_123 : f32 to vector<1x1xf32>
    %308 = arith.addf %306, %307 : vector<1x1xf32>
    %309 = tpu.reciprocal %308 {approx = true} : vector<1x1xf32> -> vector<1x1xf32>
    %310 = arith.mulf %308, %309 : vector<1x1xf32>
    %cst_124 = arith.constant 2.000000e+00 : f32
    %311 = vector.broadcast %cst_124 : f32 to vector<1x1xf32>
    %312 = arith.subf %311, %310 : vector<1x1xf32>
    %313 = arith.mulf %309, %312 : vector<1x1xf32>
    %314 = arith.mulf %305, %313 : vector<1x1xf32>
    %315 = arith.mulf %314, %287 : vector<1x1xf32>
    %cst_125 = arith.constant 0.000000e+00 : f32
    %316 = vector.broadcast %cst_125 : f32 to vector<1x1xf32>
    %317 = arith.maximumf %315, %316 : vector<1x1xf32>
    %c0_i32_126 = arith.constant 0 : i32
    %318 = vector.broadcast %c0_i32_126 : i32 to vector<8x128xi32>
    %319 = arith.cmpi eq, %0, %318 : vector<8x128xi32>
    %c0_i32_127 = arith.constant 0 : i32
    %320 = vector.broadcast %c0_i32_127 : i32 to vector<8x128xi32>
    %321 = arith.cmpi eq, %1, %320 : vector<8x128xi32>
    %322 = arith.andi %319, %321 : vector<8x128xi1>
    %323 = arith.extui %322 : vector<8x128xi1> to vector<8x128xi32>
    %324 = arith.sitofp %323 : vector<8x128xi32> to vector<8x128xf32>
    %325 = vector.shape_cast %317 : vector<1x1xf32> to vector<1x1x1xf32>
    %cst_128 = arith.constant dense<0.000000e+00> : vector<1xf32>
    %326 = vector.multi_reduction <add>, %325, %cst_128 [1, 2] : vector<1x1x1xf32> to vector<1xf32>
    %327 = vector.shape_cast %326 : vector<1xf32> to vector<1x1x1xf32>
    %328 = vector.extract %327[0, 0, 0] : f32 from vector<1x1x1xf32>
    %329 = vector.broadcast %328 : f32 to vector<8x128xf32>
    %330 = arith.mulf %324, %329 : vector<8x128xf32>
    %331 = arith.addf %301, %330 : vector<8x128xf32>
    %c0_129 = arith.constant 0 : index
    %c0_130 = arith.constant 0 : index
    %c0_131 = arith.constant 0 : index
    %c0_132 = arith.constant 0 : index
    %332 = vector.load %arg22[%c0_129, %c0_130, %c0_131, %c0_132] : memref<1x1x8x128xf32, #tpu.memory_space<vmem>>, vector<1x1x8x128xf32>
    %333 = vector.shape_cast %332 : vector<1x1x8x128xf32> to vector<8x128xf32>
    %334 = vector.shape_cast %331 : vector<8x128xf32> to vector<1x1x8x128xf32>
    tpu.vector_store %arg22[%c0_129, %c0_130, %c0_131, %c0_132], %334 {strides = array<i32>} : memref<1x1x8x128xf32, #tpu.memory_space<vmem>>, vector<1x1x8x128xf32>,
    return
  }
  func.func @transform_0(%arg0: i32, %arg1: i32) -> (i32, i32, i32, i32) {
    %c0_i32 = arith.constant 0 : i32
    %c0_i32_0 = arith.constant 0 : i32
    %c0_i32_1 = arith.constant 0 : i32
    return %arg0, %arg1, %c0_i32, %c0_i32_0 : i32, i32, i32, i32
  }
  func.func @transform_1(%arg0: i32, %arg1: i32) -> (i32, i32, i32, i32) {
    %c0_i32 = arith.constant 0 : i32
    %c0_i32_0 = arith.constant 0 : i32
    %c0_i32_1 = arith.constant 0 : i32
    return %arg0, %arg1, %c0_i32, %c0_i32_0 : i32, i32, i32, i32
  }
  func.func @transform_2(%arg0: i32, %arg1: i32) -> (i32, i32) {
    %c0_i32 = arith.constant 0 : i32
    %c0_i32_0 = arith.constant 0 : i32
    %c0_i32_1 = arith.constant 0 : i32
    return %c0_i32, %c0_i32_0 : i32, i32
  }
  func.func @transform_3(%arg0: i32, %arg1: i32) -> (i32, i32) {
    %c0_i32 = arith.constant 0 : i32
    %c0_i32_0 = arith.constant 0 : i32
    %c0_i32_1 = arith.constant 0 : i32
    return %c0_i32, %c0_i32_0 : i32, i32
  }
  func.func @transform_4(%arg0: i32, %arg1: i32) -> (i32, i32) {
    %c0_i32 = arith.constant 0 : i32
    %c0_i32_0 = arith.constant 0 : i32
    %c0_i32_1 = arith.constant 0 : i32
    return %c0_i32, %c0_i32_0 : i32, i32
  }
  func.func @transform_5(%arg0: i32, %arg1: i32) -> (i32, i32) {
    %c0_i32 = arith.constant 0 : i32
    %c0_i32_0 = arith.constant 0 : i32
    %c0_i32_1 = arith.constant 0 : i32
    return %c0_i32, %c0_i32_0 : i32, i32
  }
  func.func @transform_6(%arg0: i32, %arg1: i32) -> (i32, i32) {
    %c0_i32 = arith.constant 0 : i32
    %c0_i32_0 = arith.constant 0 : i32
    %c0_i32_1 = arith.constant 0 : i32
    return %c0_i32, %c0_i32_0 : i32, i32
  }
  func.func @transform_7(%arg0: i32, %arg1: i32) -> (i32, i32) {
    %c0_i32 = arith.constant 0 : i32
    %c0_i32_0 = arith.constant 0 : i32
    %c0_i32_1 = arith.constant 0 : i32
    return %c0_i32, %c0_i32_0 : i32, i32
  }
  func.func @transform_8(%arg0: i32, %arg1: i32) -> (i32, i32) {
    %c0_i32 = arith.constant 0 : i32
    %c0_i32_0 = arith.constant 0 : i32
    %c0_i32_1 = arith.constant 0 : i32
    return %c0_i32, %c0_i32_0 : i32, i32
  }
  func.func @transform_9(%arg0: i32, %arg1: i32) -> (i32, i32) {
    %c0_i32 = arith.constant 0 : i32
    %c0_i32_0 = arith.constant 0 : i32
    %c0_i32_1 = arith.constant 0 : i32
    return %c0_i32, %c0_i32_0 : i32, i32
  }
  func.func @transform_10(%arg0: i32, %arg1: i32) -> (i32, i32) {
    %c0_i32 = arith.constant 0 : i32
    %c0_i32_0 = arith.constant 0 : i32
    %c0_i32_1 = arith.constant 0 : i32
    return %c0_i32, %c0_i32_0 : i32, i32
  }
  func.func @transform_11(%arg0: i32, %arg1: i32) -> (i32, i32) {
    %c0_i32 = arith.constant 0 : i32
    %c0_i32_0 = arith.constant 0 : i32
    %c0_i32_1 = arith.constant 0 : i32
    return %c0_i32, %c0_i32_0 : i32, i32
  }
  func.func @transform_12(%arg0: i32, %arg1: i32) -> (i32, i32) {
    %c0_i32 = arith.constant 0 : i32
    %c0_i32_0 = arith.constant 0 : i32
    %c0_i32_1 = arith.constant 0 : i32
    return %c0_i32, %c0_i32_0 : i32, i32
  }
  func.func @transform_13(%arg0: i32, %arg1: i32) -> (i32, i32) {
    %c0_i32 = arith.constant 0 : i32
    %c0_i32_0 = arith.constant 0 : i32
    %c0_i32_1 = arith.constant 0 : i32
    return %c0_i32, %c0_i32_0 : i32, i32
  }
  func.func @transform_14(%arg0: i32, %arg1: i32) -> (i32, i32) {
    %c0_i32 = arith.constant 0 : i32
    %c0_i32_0 = arith.constant 0 : i32
    %c0_i32_1 = arith.constant 0 : i32
    return %c0_i32, %c0_i32_0 : i32, i32
  }
  func.func @transform_15(%arg0: i32, %arg1: i32) -> (i32, i32) {
    %c0_i32 = arith.constant 0 : i32
    %c0_i32_0 = arith.constant 0 : i32
    %c0_i32_1 = arith.constant 0 : i32
    return %c0_i32, %c0_i32_0 : i32, i32
  }
  func.func @transform_16(%arg0: i32, %arg1: i32) -> (i32, i32) {
    %c0_i32 = arith.constant 0 : i32
    %c0_i32_0 = arith.constant 0 : i32
    %c0_i32_1 = arith.constant 0 : i32
    return %c0_i32, %c0_i32_0 : i32, i32
  }
  func.func @transform_17(%arg0: i32, %arg1: i32) -> (i32, i32) {
    %c0_i32 = arith.constant 0 : i32
    %c0_i32_0 = arith.constant 0 : i32
    %c0_i32_1 = arith.constant 0 : i32
    return %c0_i32, %c0_i32_0 : i32, i32
  }
  func.func @transform_18(%arg0: i32, %arg1: i32) -> (i32, i32) {
    %c0_i32 = arith.constant 0 : i32
    %c0_i32_0 = arith.constant 0 : i32
    %c0_i32_1 = arith.constant 0 : i32
    return %c0_i32, %c0_i32_0 : i32, i32
  }
  func.func @transform_19(%arg0: i32, %arg1: i32) -> (i32, i32) {
    %c0_i32 = arith.constant 0 : i32
    %c0_i32_0 = arith.constant 0 : i32
    %c0_i32_1 = arith.constant 0 : i32
    return %c0_i32, %c0_i32_0 : i32, i32
  }
  func.func @transform_20(%arg0: i32, %arg1: i32) -> (i32, i32, i32, i32) {
    %c0_i32 = arith.constant 0 : i32
    %c0_i32_0 = arith.constant 0 : i32
    %c0_i32_1 = arith.constant 0 : i32
    return %arg0, %arg1, %c0_i32, %c0_i32_0 : i32, i32, i32, i32
  }
}

</mosaic_0001>

<bundles_post_ra>
// kernel: a_call__.1
= control target key start
LH: loop header
LB: loop body
LE: loop exit
PB: predicated region body
PF: predicated region fallthrough
CT: control target
= control target key end

     0   :  { %s11764_s22 = smov 0   ;;  %s11766_s23 = smov 0   ;;  %s16394_s0 = inlined_call_operand.vmem [shape: f32[2,2,161,168], index: 0, kind: input, shape index: {}]   ;;  %s16395_s1 = inlined_call_operand.vmem [shape: f32[2,2,161,168], index: 1, kind: input, shape index: {}]   ;;  %s16396_s2 = inlined_call_operand.vmem [shape: f32[151,168], index: 2, kind: input, shape index: {}]   ;;  %s16397_s3 = inlined_call_operand.vmem [shape: f32[168,158], index: 3, kind: input, shape index: {}]   ;;  %s16398_s4 = inlined_call_operand.vmem [shape: f32[88,168], index: 4, kind: input, shape index: {}]   ;;  %s16399_s5 = inlined_call_operand.vmem [shape: f32[168,84], index: 5, kind: input, shape index: {}]   ;;  %s16400_s6 = inlined_call_operand.vmem [shape: f32[71,88], index: 6, kind: input, shape index: {}]   ;;  %s16401_s7 = inlined_call_operand.vmem [shape: f32[84,74], index: 7, kind: input, shape index: {}]   ;;  %s16402_s8 = inlined_call_operand.vmem [shape: f32[48,88], index: 8, kind: input, shape index: {}]   ;;  %s16403_s9 = inlined_call_operand.vmem [shape: f32[84,42], index: 9, kind: input, shape index: {}]   ;;  %s16404_s10 = inlined_call_operand.vmem [shape: f32[31,48], index: 10, kind: input, shape index: {}]   ;;  %s16405_s11 = inlined_call_operand.vmem [shape: f32[42,32], index: 11, kind: input, shape index: {}]   ;;  %s16406_s12 = inlined_call_operand.vmem [shape: f32[24,48], index: 12, kind: input, shape index: {}]   ;;  %s16407_s13 = inlined_call_operand.vmem [shape: f32[42,21], index: 13, kind: input, shape index: {}]   ;;  %s16408_s14 = inlined_call_operand.vmem [shape: f32[11,24], index: 14, kind: input, shape index: {}]   ;;  %s16409_s15 = inlined_call_operand.vmem [shape: f32[21,11], index: 15, kind: input, shape index: {}]   ;;  %s16410_s16 = inlined_call_operand.vmem [shape: f32[16,24], index: 16, kind: input, shape index: {}]   ;;  %s16411_s17 = inlined_call_operand.vmem [shape: f32[21,11], index: 17, kind: input, shape index: {}]   ;;  %s16412_s18 = inlined_call_operand.vmem [shape: f32[1,16], index: 18, kind: input, shape index: {}]   ;;  %s16413_s19 = inlined_call_operand.vmem [shape: f32[11,1], index: 19, kind: input, shape index: {}]   ;;  %s16414_s20 = inlined_call_operand.vmem [shape: f32[2,2,8,128], index: 20, kind: output, shape index: {}]  }
   0x1   :  { %16554 = sst [smem:[#allocation108_spill]] %s16394_s0  ;;  %s11768_s24 = smov 0  }
   0x2   :  { %16555 = sst [smem:[#allocation109_spill]] %s16395_s1  ;;  %s11762_s1 = smov 0  }
   0x3   :  { %16556 = sst [smem:[#allocation110_spill]] %s16396_s2  ;;  %s11770_s2 = smov 0  }
   0x4   :  { %16557 = sst [smem:[#allocation111_spill]] %s16397_s3 }
   0x5   :  { %16558 = sst [smem:[#allocation112_spill]] %s16398_s4 }
   0x6   :  { %16559 = sst [smem:[#allocation113_spill]] %s16414_s20 }
   0x7 LB: > { %16560 = sst [smem:[#allocation2_spill]] %s11643_s23  ;;  %s39_s25 = sadd.s32 1, %s11643_s23  ;;  %s11651_s2 = sphi %s11770_s2, %s30_s2   ;;  %s11647_s24 = sphi %s11768_s24, %s16917_s24   ;;  %s11643_s23 = sphi %s11766_s23, %s16916_s23   ;;  %s11639_s22 = sphi %s11764_s22, %s16915_s22   ;;  %s11635_s1 = sphi %s11762_s1, %s16914_s1  }
   0x8   : > { %16561 = sst [smem:[#allocation3_spill]] %s11647_s24  ;;  %s42_s3 = sadd.s32 1, %s11647_s24 }
   0x9   : > { %16562 = sst [smem:[#allocation4_spill]] %s11651_s2  ;;  %p40_p0 = scmp.ge.s32.totalorder %s39_s25, 2 }
   0xa   : > { %p8700_p1 = scmp.ge.s32.totalorder %s11651_s2, 1  ;;  %p598_p2 = scmp.lt.s32.totalorder %s11651_s2, 5 }
   0xb   : > { %s16919_s25 = smov (%p40_p0, %s39_s25), 0  ;;  %s16921_s3 = smov (!%p40_p0, %s42_s3), %s11647_s24 }
   0xc   : > { %16563 = sst [smem:[#allocation5_spill]] %s16919_s25  ;;  %p599_p3 = pnand %p8700_p1, %p598_p2 }
   0xd   : > { %p44_p4 = scmp.ge.s32.totalorder %s16921_s3, 2 }
   0xe   : > { %602 = sbr.rel (%p599_p3) target bundleno = 3765 (0xeb5), region = 100 }
   0xf   : > { %s16923_s3 = smov (%p44_p4, %s16921_s3), 0 }
  0x10   : > { %16564 = sst [smem:[#allocation6_spill]] %s16923_s3 }
  0x15   : > { %s16565_s28 = sld [smem:[#allocation111_spill]]  ;;  %p672_p5 = scmp.lt.s32.totalorder %s11639_s22, 1  ;;  %vm997_vm0 = vcmask 326656   ;;  %vm786_vm1 = vcmask 1040384   ;;  %vm3573_vm2 = vcmask 244736   ;;  %vm3627_vm3 = vcmask 1046528  }
  0x16   : > { %p674_p6 = scmp.lt.s32.totalorder %s11635_s1, 1  ;;  %s16567_s20 = sld [smem:[#allocation108_spill]]  ;;  %vm3630_vm4 = vcmask 243712   ;;  %vm11655_vm5 = vmmov 0   ;;  %vm4455_vm6 = vcmask 1043456   ;;  %vm4289_vm7 = vcmask 687104  }
  0x17   : > { %s16925_s22 = smov (!%p672_p5, %s11639_s22), 1  ;;  %s16885_s3 = sld [smem:[#allocation112_spill]]  ;;  %vm4799_vm8 = vcmask 719872   ;;  %vm6078_vm9 = vcmask 1041408   ;;  %vm11656_vm10 = vmmov 1   ;;  %vm5525_vm12 = vcmask 605184  }
  0x18   : > { %s16927_s1 = smov (!%p674_p6, %s11635_s1), 1  ;;  %s11278_s26 = smul.u32 84, %s16925_s22  ;;  %vm15911_vm11 = vmpackc.low %vm6078_vm9, %vm11656_vm10  ;;  %vm5987_vm13 = vcmask 343040   ;;  %vm5541_vm14 = vcmask 604160   ;;  %vm6297_vm15 = vcmask 392192  }
  0x19   : > { %16566 = sst [smem:[#allocation7_spill]] %s16927_s1  ;;  %s11277_s0 = smul.u32 42, %s16927_s1 }
  0x1b   : > { %v830_v0 = vld [vmem:[%s16565_s28 + $0x8] sm:$0xff]  ;;  %v832_v1 = vld [vmem:[%s16565_s28 + $0x18] sm:$0xff]  ;;  %v829_v2 = vld [vmem:[%s16565_s28] sm:$0xff]  ;;  %s11844_s23 = sadd.s32 %s11278_s26, %s11277_s0  ;;  %s16595_s26 = sld [smem:[#allocation110_spill]] }
  0x1c   : > { %v10635_v3 = vpack.c.bf16 %v832_v1, %v830_v0  ;;  %v831_v4 = vld [vmem:[%s16565_s28 + $0x10] sm:$0xff]  ;;  %v834_v5 = vld [vmem:[%s16565_s28 + $0x28] sm:$0xff]  ;;  %v836_v6 = vld [vmem:[%s16565_s28 + $0x38] sm:$0xff]  ;;  %s8701_s27 = sshll.u32 %s11844_s23, 3  ;;  %s8703_s0 = sshll.u32 %s16925_s22, 1 }
  0x1d   : > { %v10637_v7 = vpack.c.bf16 %v831_v4, %v829_v2  ;;  %v10639_v8 = vpack.c.bf16 %v836_v6, %v834_v5  ;;  %v833_v9 = vld [vmem:[%s16565_s28 + $0x20] sm:$0xff]  ;;  %v835_v10 = vld [vmem:[%s16565_s28 + $0x30] sm:$0xff]  ;;  %v838_v11 = vld [vmem:[%s16565_s28 + $0x48] sm:$0xff]  ;;  %s11864_s1 = scalar_lea.vmem %s16567_s20, %s8701_s27  ;;  %s16569_s20 = sld [smem:[#allocation109_spill]] }
  0x1e   : > { %10636 = vmatprep.subr.bf16.mxu0 %v10635_v3  ;;  %v840_v12 = vld [vmem:[%s16565_s28 + $0x58] sm:$0xff]  ;;  %v10641_v13 = vpack.c.bf16 %v835_v10, %v833_v9  ;;  %v837_v15 = vld [vmem:[%s16565_s28 + $0x40] sm:$0xff]  ;;  %v839_v16 = vld [vmem:[%s16565_s28 + $0x50] sm:$0xff] }
  0x1f   : > { %10638 = vmatpush1.bf16.msra.mxu0 %v10637_v7  ;;  %v10643_v14 = vpack.c.bf16 %v840_v12, %v838_v11  ;;  %v842_v17 = vld [vmem:[%s16565_s28 + $0x68] sm:$0xff]  ;;  %v844_v18 = vld [vmem:[%s16565_s28 + $0x78] sm:$0xff]  ;;  %v10645_v19 = vpack.c.bf16 %v839_v16, %v837_v15  ;;  %v841_v21 = vld [vmem:[%s16565_s28 + $0x60] sm:$0xff] }
  0x20   : > { %10640 = vmatprep.subr.bf16.mxu0 %v10639_v8  ;;  %v10647_v20 = vpack.c.bf16 %v844_v18, %v842_v17  ;;  %v843_v22 = vld [vmem:[%s16565_s28 + $0x70] sm:$0xff]  ;;  %v846_v23 = vld [vmem:[%s16565_s28 + $0x88] sm:$0xff]  ;;  %v848_v24 = vld [vmem:[%s16565_s28 + $0x98] sm:$0xff] }
  0x21   : > { %v10649_v25 = vpack.c.bf16 %v843_v22, %v841_v21  ;;  %v10651_v26 = vpack.c.bf16 %v848_v24, %v846_v23  ;;  %v845_v27 = vld [vmem:[%s16565_s28 + $0x80] sm:$0xff]  ;;  %v847_v28 = vld [vmem:[%s16565_s28 + $0x90] sm:$0xff]  ;;  %v850_v29 = vld [vmem:[%s16565_s28 + $0xa8] sm:$0xff] }
  0x22   : > { %v852_v30 = vld [vmem:[%s16565_s28 + $0xb8] sm:$0xff]  ;;  %v11879_v31 = vld [vmem:[%s11864_s1 + $0x8] sm:$0xff]  ;;  %v10653_v32 = vpack.c.bf16 %v847_v28, %v845_v27  ;;  %v849_v34 = vld [vmem:[%s16565_s28 + $0xa0] sm:$0xff] }
  0x23   : > { %10642 = vmatpush1.bf16.msra.mxu0 %v10641_v13  ;;  %8705 = vmatprep.mubr.msk.f32.mxu0 %vm997_vm0, %v11879_v31  ;;  %v10655_v33 = vpack.c.bf16 %v852_v30, %v850_v29  ;;  %v851_v35 = vld [vmem:[%s16565_s28 + $0xb0] sm:$0xff]  ;;  %v854_v36 = vld [vmem:[%s16565_s28 + $0xc8] sm:$0xff]  ;;  %v856_v37 = vld [vmem:[%s16565_s28 + $0xd8] sm:$0xff]  ;;  %s12126_s2 = scalar_lea.vmem %s16569_s20, %s8701_s27  ;;  %s16911_s27 = sld [smem:[#allocation7_spill]] }
  0x24   : > { %10644 = vmatprep.subr.bf16.mxu0 %v10643_v14  ;;  %v10657_v38 = vpack.c.bf16 %v851_v35, %v849_v34  ;;  %v10659_v39 = vpack.c.bf16 %v856_v37, %v854_v36  ;;  %v853_v40 = vld [vmem:[%s16565_s28 + $0xc0] sm:$0xff]  ;;  %v855_v41 = vld [vmem:[%s16565_s28 + $0xd0] sm:$0xff]  ;;  %v858_v42 = vld [vmem:[%s16565_s28 + $0xe8] sm:$0xff] }
  0x25   : > { %v860_v43 = vld [vmem:[%s16565_s28 + $0xf8] sm:$0xff]  ;;  %v10661_v44 = vpack.c.bf16 %v855_v41, %v853_v40  ;;  %v857_v46 = vld [vmem:[%s16565_s28 + $0xe0] sm:$0xff]  ;;  %v859_v47 = vld [vmem:[%s16565_s28 + $0xf0] sm:$0xff] }
  0x26   : > { %v10663_v45 = vpack.c.bf16 %v860_v43, %v858_v42  ;;  %v862_v48 = vld [vmem:[%s16565_s28 + $0x108] sm:$0xff]  ;;  %v864_v49 = vld [vmem:[%s16565_s28 + $0x118] sm:$0xff]  ;;  %v10665_v50 = vpack.c.bf16 %v859_v47, %v857_v46  ;;  %v861_v52 = vld [vmem:[%s16565_s28 + $0x100] sm:$0xff] }
  0x27   : > { %10646 = vmatpush1.bf16.msra.mxu0 %v10645_v19  ;;  %v10667_v51 = vpack.c.bf16 %v864_v49, %v862_v48  ;;  %v863_v53 = vld [vmem:[%s16565_s28 + $0x110] sm:$0xff]  ;;  %v866_v54 = vld [vmem:[%s16565_s28 + $0x128] sm:$0xff]  ;;  %v868_v55 = vld [vmem:[%s16565_s28 + $0x138] sm:$0xff] }
  0x28   : > { %10648 = vmatprep.subr.bf16.mxu0 %v10647_v20  ;;  %v10669_v56 = vpack.c.bf16 %v863_v53, %v861_v52  ;;  %v10671_v57 = vpack.c.bf16 %v868_v55, %v866_v54  ;;  %v865_v58 = vld [vmem:[%s16565_s28 + $0x120] sm:$0xff]  ;;  %v867_v59 = vld [vmem:[%s16565_s28 + $0x130] sm:$0xff]  ;;  %v870_v61 = vld [vmem:[%s16565_s28 + $0x148] sm:$0xff] }
  0x29   : > { %v10673_v60 = vpack.c.bf16 %v867_v59, %v865_v58  ;;  %v869_v62 = vld [vmem:[%s16565_s28 + $0x140] sm:$0xff]  ;;  %v11947_v0 = vld [vmem:[%s11864_s1 + $0x18] sm:$0xff]  ;;  %v11953_v1 = vld [vmem:[%s11864_s1 + $0x10] sm:$0xff]  ;;  %s695_s4 = sadd.s32 %s8703_s0, %s16911_s27 }
  0x2a   : > { %v11944_v63 = vld [vmem:[%s11864_s1] sm:$0xff]  ;;  %v11956_v2 = vld [vmem:[%s11864_s1 + $0x28] sm:$0xff]  ;;  %v11965_v4 = vld [vmem:[%s11864_s1 + $0x38] sm:$0xff]  ;;  %s8704_s29 = sshll.u32 %s695_s4, 3 }
  0x2b   : > { %10650 = vmatpush1.bf16.msra.mxu0 %v10649_v25  ;;  %v11962_v3 = vld [vmem:[%s11864_s1 + $0x20] sm:$0xff]  ;;  %v11971_v5 = vld [vmem:[%s11864_s1 + $0x30] sm:$0xff]  ;;  %v11974_v6 = vld [vmem:[%s11864_s1 + $0x48] sm:$0xff] }
  0x2c   : > { %10652 = vmatprep.subr.bf16.mxu0 %v10651_v26  ;;  %v11980_v7 = vld [vmem:[%s11864_s1 + $0x40] sm:$0xff]  ;;  %v11983_v8 = vld [vmem:[%s11864_s1 + $0x58] sm:$0xff]  ;;  %v11989_v9 = vld [vmem:[%s11864_s1 + $0x50] sm:$0xff] }
  0x2d   : > { %v11992_v10 = vld [vmem:[%s11864_s1 + $0x68] sm:$0xff]  ;;  %v11998_v11 = vld [vmem:[%s11864_s1 + $0x60] sm:$0xff]  ;;  %v12001_v12 = vld [vmem:[%s11864_s1 + $0x78] sm:$0xff] }
  0x2e   : > { %v12007_v13 = vld [vmem:[%s11864_s1 + $0x70] sm:$0xff]  ;;  %v12010_v14 = vld [vmem:[%s11864_s1 + $0x88] sm:$0xff]  ;;  %v12016_v15 = vld [vmem:[%s11864_s1 + $0x80] sm:$0xff] }
  0x2f   : > { %10654 = vmatpush1.bf16.msra.mxu0 %v10653_v32  ;;  %v12019_v16 = vld [vmem:[%s11864_s1 + $0x98] sm:$0xff]  ;;  %v12025_v17 = vld [vmem:[%s11864_s1 + $0x90] sm:$0xff]  ;;  %v12028_v18 = vld [vmem:[%s11864_s1 + $0xa8] sm:$0xff] }
  0x30   : > { %10656 = vmatprep.subr.bf16.mxu0 %v10655_v33  ;;  %v12034_v19 = vld [vmem:[%s11864_s1 + $0xa0] sm:$0xff]  ;;  %v12037_v20 = vld [vmem:[%s11864_s1 + $0xb8] sm:$0xff]  ;;  %v12043_v21 = vld [vmem:[%s11864_s1 + $0xb0] sm:$0xff] }
  0x31   : > { %v12046_v22 = vld [vmem:[%s11864_s1 + $0xc8] sm:$0xff]  ;;  %v12052_v23 = vld [vmem:[%s11864_s1 + $0xc0] sm:$0xff]  ;;  %v12055_v24 = vld [vmem:[%s11864_s1 + $0xd8] sm:$0xff] }
  0x32   : > { %v12061_v25 = vld [vmem:[%s11864_s1 + $0xd0] sm:$0xff]  ;;  %v12064_v26 = vld [vmem:[%s11864_s1 + $0xe8] sm:$0xff]  ;;  %v12070_v27 = vld [vmem:[%s11864_s1 + $0xe0] sm:$0xff] }
  0x33   : > { %10658 = vmatpush1.bf16.msra.mxu0 %v10657_v38  ;;  %v12073_v28 = vld [vmem:[%s11864_s1 + $0xf8] sm:$0xff]  ;;  %v12079_v29 = vld [vmem:[%s11864_s1 + $0xf0] sm:$0xff]  ;;  %v12082_v30 = vld [vmem:[%s11864_s1 + $0x108] sm:$0xff] }
  0x34   : > { %10660 = vmatprep.subr.bf16.mxu0 %v10659_v39  ;;  %v12088_v32 = vld [vmem:[%s11864_s1 + $0x100] sm:$0xff]  ;;  %v12091_v33 = vld [vmem:[%s11864_s1 + $0x118] sm:$0xff]  ;;  %v12097_v34 = vld [vmem:[%s11864_s1 + $0x110] sm:$0xff] }
  0x35   : > { %v12100_v35 = vld [vmem:[%s11864_s1 + $0x128] sm:$0xff]  ;;  %v12106_v36 = vld [vmem:[%s11864_s1 + $0x120] sm:$0xff]  ;;  %v12109_v37 = vld [vmem:[%s11864_s1 + $0x138] sm:$0xff] }
  0x36   : > { %v743_v38 = vld [vmem:[%s11864_s1 + $0x148] sm:$0x1]  ;;  %v12116_v39 = vld [vmem:[%s11864_s1 + $0x130] sm:$0xff]  ;;  %v12132_v41 = vld [vmem:[%s11864_s1 + $0x140] sm:$0x1] }
  0x37   : > { %10662 = vmatpush1.bf16.msra.mxu0 %v10661_v44  ;;  %v12119_v40 = vsel %vm786_vm1, %v743_v38, 0.0  ;;  %v12135_v42 = vld [vmem:[%s12126_s2 + $0x8] sm:$0xff]  ;;  %v12142_v43 = vld [vmem:[%s12126_s2] sm:$0xff]  ;;  %v12145_v44 = vld [vmem:[%s12126_s2 + $0x18] sm:$0xff] }
  0x38   : > { %10664 = vmatprep.subr.bf16.mxu0 %v10663_v45  ;;  %16568 = vst [vmem:[#allocation8_spill] sm:$0xff] %v12119_v40  ;;  %v12151_v45 = vld [vmem:[%s12126_s2 + $0x10] sm:$0xff]  ;;  %v12154_v46 = vld [vmem:[%s12126_s2 + $0x28] sm:$0xff]  ;;  %v12160_v47 = vld [vmem:[%s12126_s2 + $0x20] sm:$0xff] }
  0x39   : > { %v12163_v48 = vld [vmem:[%s12126_s2 + $0x38] sm:$0xff]  ;;  %v12169_v49 = vld [vmem:[%s12126_s2 + $0x30] sm:$0xff]  ;;  %v12190_v54 = vld [vmem:[%s12126_s2 + $0x68] sm:$0xff] }
  0x3a   : > { %v12181_v52 = vld [vmem:[%s12126_s2 + $0x58] sm:$0xff]  ;;  %v12187_v53 = vld [vmem:[%s12126_s2 + $0x50] sm:$0xff]  ;;  %v12196_v55 = vld [vmem:[%s12126_s2 + $0x60] sm:$0xff] }
  0x3b   : > { %10666 = vmatpush1.bf16.msra.mxu0 %v10665_v50  ;;  %v12172_v50 = vld [vmem:[%s12126_s2 + $0x48] sm:$0xff]  ;;  %v12214_v59 = vld [vmem:[%s12126_s2 + $0x80] sm:$0xff] }
  0x3c   : > { %10668 = vmatprep.subr.bf16.mxu0 %v10667_v51  ;;  %v12178_v51 = vld [vmem:[%s12126_s2 + $0x40] sm:$0xff]  ;;  %v12208_v58 = vld [vmem:[%s12126_s2 + $0x88] sm:$0xff]  ;;  %16572 = vst [vmem:[#allocation11_spill] sm:$0xff] %v12214_v59 }
  0x3d   : > { %16571 = vst [vmem:[#allocation10_spill] sm:$0xff] %v12208_v58  ;;  %v12232_v38 = vld [vmem:[%s12126_s2 + $0xa0] sm:$0xff] }
  0x3e   : > { %16576 = vst [vmem:[#allocation15_spill] sm:$0xff] %v12232_v38 }
  0x3f   : > { %10670 = vmatpush1.bf16.msra.mxu0 %v10669_v56  ;;  %v12199_v56 = vld [vmem:[%s12126_s2 + $0x78] sm:$0xff] }
  0x40   : > { %10672 = vmatprep.subr.bf16.mxu0 %v10671_v57  ;;  %v12205_v57 = vld [vmem:[%s12126_s2 + $0x70] sm:$0xff] }
  0x41   : > { %16570 = vst [vmem:[#allocation9_spill] sm:$0xff] %v12205_v57 }
  0x43   : > { %10674 = vmatpush1.bf16.msra.mxu0 %v10673_v60  ;;  %v12217_v60 = vld [vmem:[%s12126_s2 + $0x98] sm:$0xff] }
  0x44   : > { %1353 = vmatprep.subr.mxu0 %v870_v61  ;;  %16573 = vst [vmem:[#allocation12_spill] sm:$0xff] %v12217_v60  ;;  %v12223_v61 = vld [vmem:[%s12126_s2 + $0x90] sm:$0xff] }
  0x45   : > { %16574 = vst [vmem:[#allocation13_spill] sm:$0xff] %v12223_v61 }
  0x47   : > { %1354 = vmatpush1.msra.mxu0 %v869_v62  ;;  %v12226_v62 = vld [vmem:[%s12126_s2 + $0xa8] sm:$0xff] }
  0x48   : > { %1378 = vmatmul.mubr.f32.vlgmr.msra.gmra.mrb[0].mxu0 %v11944_v63  ;;  %16575 = vst [vmem:[#allocation14_spill] sm:$0xff] %v12226_v62 }
  0x49   : > { %8706 = vmatprep.mubr.msk.f32.mxu0 %vm997_vm0, %v11947_v0 }
  0x4c   : > { %1384 = vmatmul.mubr.f32.gmra.mrb[2].mxu0 %v11953_v1 }
  0x4d   : > { %8707 = vmatprep.mubr.msk.f32.mxu0 %vm997_vm0, %v11956_v2 }
  0x50   : > { %1390 = vmatmul.mubr.f32.gmra.mrb[4].mxu0 %v11962_v3 }
  0x51   : > { %8708 = vmatprep.mubr.msk.f32.mxu0 %vm997_vm0, %v11965_v4 }
  0x54   : > { %1396 = vmatmul.mubr.f32.gmra.mrb[6].mxu0 %v11971_v5 }
  0x55   : > { %8709 = vmatprep.mubr.msk.f32.mxu0 %vm997_vm0, %v11974_v6 }
  0x58   : > { %1402 = vmatmul.mubr.f32.gmra.mrb[8].mxu0 %v11980_v7 }
  0x59   : > { %8710 = vmatprep.mubr.msk.f32.mxu0 %vm997_vm0, %v11983_v8 }
  0x5c   : > { %1408 = vmatmul.mubr.f32.gmra.mrb[10].mxu0 %v11989_v9 }
  0x5d   : > { %8711 = vmatprep.mubr.msk.f32.mxu0 %vm997_vm0, %v11992_v10 }
  0x60   : > { %1414 = vmatmul.mubr.f32.gmra.mrb[12].mxu0 %v11998_v11 }
  0x61   : > { %8712 = vmatprep.mubr.msk.f32.mxu0 %vm997_vm0, %v12001_v12 }
  0x64   : > { %1420 = vmatmul.mubr.f32.gmra.mrb[14].mxu0 %v12007_v13 }
  0x65   : > { %8713 = vmatprep.mubr.msk.f32.mxu0 %vm997_vm0, %v12010_v14 }
  0x68   : > { %1426 = vmatmul.mubr.f32.gmra.mrb[16].mxu0 %v12016_v15 }
  0x69   : > { %8714 = vmatprep.mubr.msk.f32.mxu0 %vm997_vm0, %v12019_v16 }
  0x6c   : > { %1432 = vmatmul.mubr.f32.gmra.mrb[18].mxu0 %v12025_v17 }
  0x6d   : > { %8715 = vmatprep.mubr.msk.f32.mxu0 %vm997_vm0, %v12028_v18 }
  0x70   : > { %1438 = vmatmul.mubr.f32.gmra.mrb[20].mxu0 %v12034_v19 }
  0x71   : > { %8716 = vmatprep.mubr.msk.f32.mxu0 %vm997_vm0, %v12037_v20 }
  0x74   : > { %1444 = vmatmul.mubr.f32.gmra.mrb[22].mxu0 %v12043_v21 }
  0x75   : > { %8717 = vmatprep.mubr.msk.f32.mxu0 %vm997_vm0, %v12046_v22 }
  0x78   : > { %1450 = vmatmul.mubr.f32.gmra.mrb[24].mxu0 %v12052_v23 }
  0x79   : > { %8718 = vmatprep.mubr.msk.f32.mxu0 %vm997_vm0, %v12055_v24 }
  0x7c   : > { %1456 = vmatmul.mubr.f32.gmra.mrb[26].mxu0 %v12061_v25 }
  0x7d   : > { %8719 = vmatprep.mubr.msk.f32.mxu0 %vm997_vm0, %v12064_v26 }
  0x80   : > { %1462 = vmatmul.mubr.f32.gmra.mrb[28].mxu0 %v12070_v27 }
  0x81   : > { %8720 = vmatprep.mubr.msk.f32.mxu0 %vm997_vm0, %v12073_v28 }
  0x84   : > { %1468 = vmatmul.mubr.f32.gmra.mrb[30].mxu0 %v12079_v29 }
  0x85   : > { %8721 = vmatprep.mubr.msk.f32.mxu0 %vm997_vm0, %v12082_v30 }
  0x88   : > { %1474 = vmatmul.mubr.f32.gmra.mrb[32].mxu0 %v12088_v32 }
  0x89   : > { %8722 = vmatprep.mubr.msk.f32.mxu0 %vm997_vm0, %v12091_v33 }
  0x8c   : > { %1480 = vmatmul.mubr.f32.gmra.mrb[34].mxu0 %v12097_v34 }
  0x8d   : > { %8723 = vmatprep.mubr.msk.f32.mxu0 %vm997_vm0, %v12100_v35 }
  0x90   : > { %1486 = vmatmul.mubr.f32.gmra.mrb[36].mxu0 %v12106_v36 }
  0x91   : > { %8724 = vmatprep.mubr.msk.f32.mxu0 %vm997_vm0, %v12109_v37 }
  0x94   : > { %1492 = vmatmul.mubr.f32.gmra.mrb[38].mxu0 %v12116_v39 }
  0x95   : > { %8725 = vmatprep.mubr.msk.f32.mxu0 %vm997_vm0, %v12119_v40 }
  0x98   : > { %8726 = vmatmul.mubr.msk.f32.gmra.mrb[40].mxu0 %vm786_vm1, %v12132_v41 }
  0x99   : > { %8727 = vmatprep.mubr.msk.f32.mxu0 %vm997_vm0, %v12135_v42 }
  0x9c   : > { %1504 = vmatmul.mubr.f32.gmra.mrb[42].mxu0 %v12142_v43 }
  0x9d   : > { %8728 = vmatprep.mubr.msk.f32.mxu0 %vm997_vm0, %v12145_v44 }
  0xa0   : > { %1510 = vmatmul.mubr.f32.gmra.mrb[44].mxu0 %v12151_v45 }
  0xa1   : > { %8729 = vmatprep.mubr.msk.f32.mxu0 %vm997_vm0, %v12154_v46 }
  0xa4   : > { %1516 = vmatmul.mubr.f32.gmra.mrb[46].mxu0 %v12160_v47 }
  0xa5   : > { %8730 = vmatprep.mubr.msk.f32.mxu0 %vm997_vm0, %v12163_v48 }
  0xa8   : > { %1522 = vmatmul.mubr.f32.gmra.mrb[48].mxu0 %v12169_v49 }
  0xa9   : > { %8731 = vmatprep.mubr.msk.f32.mxu0 %vm997_vm0, %v12172_v50 }
  0xac   : > { %1528 = vmatmul.mubr.f32.gmra.mrb[50].mxu0 %v12178_v51 }
  0xad   : > { %8732 = vmatprep.mubr.msk.f32.mxu0 %vm997_vm0, %v12181_v52 }
  0xb0   : > { %1534 = vmatmul.mubr.f32.gmra.mrb[52].mxu0 %v12187_v53 }
  0xb1   : > { %8733 = vmatprep.mubr.msk.f32.mxu0 %vm997_vm0, %v12190_v54 }
  0xb4   : > { %1540 = vmatmul.mubr.f32.gmra.mrb[54].mxu0 %v12196_v55 }
  0xb5   : > { %8734 = vmatprep.mubr.msk.f32.mxu0 %vm997_vm0, %v12199_v56 }
  0xb8   : > { %1546 = vmatmul.mubr.f32.gmra.mrb[56].mxu0 %v12205_v57  ;;  %v785_v57 = vld [vmem:[%s12126_s2 + $0x148] sm:$0x1] }
  0xb9   : > { %8735 = vmatprep.mubr.msk.f32.mxu0 %vm997_vm0, %v12208_v58  ;;  %v12235_v58 = vld [vmem:[%s12126_s2 + $0xb8] sm:$0xff] }
  0xba   : > { %16577 = vst [vmem:[#allocation16_spill] sm:$0xff] %v12235_v58 }
  0xbc   : > { %1552 = vmatmul.mubr.f32.gmra.mrb[58].mxu0 %v12214_v59  ;;  %v12244_v59 = vld [vmem:[%s12126_s2 + $0xc8] sm:$0xff] }
  0xbd   : > { %8736 = vmatprep.mubr.msk.f32.mxu0 %vm997_vm0, %v12217_v60  ;;  %v12241_v60 = vld [vmem:[%s12126_s2 + $0xb0] sm:$0xff]  ;;  %16579 = vst [vmem:[#allocation18_spill] sm:$0xff] %v12244_v59 }
  0xbe   : > { %16578 = vst [vmem:[#allocation17_spill] sm:$0xff] %v12241_v60 }
  0xc0   : > { %1558 = vmatmul.mubr.f32.gmra.mrb[60].mxu0 %v12223_v61  ;;  %v12253_v61 = vld [vmem:[%s12126_s2 + $0xd8] sm:$0xff] }
  0xc1   : > { %8737 = vmatprep.mubr.msk.f32.mxu0 %vm997_vm0, %v12226_v62  ;;  %v12250_v62 = vld [vmem:[%s12126_s2 + $0xc0] sm:$0xff]  ;;  %16581 = vst [vmem:[#allocation20_spill] sm:$0xff] %v12253_v61 }
  0xc2   : > { %16580 = vst [vmem:[#allocation19_spill] sm:$0xff] %v12250_v62 }
  0xc4   : > { %1564 = vmatmul.mubr.f32.gmra.mrb[62].mxu0 %v12232_v38  ;;  %v12262_v38 = vld [vmem:[%s12126_s2 + $0xe8] sm:$0xff] }
  0xc5   : > { %8738 = vmatprep.mubr.msk.f32.mxu0 %vm997_vm0, %v12235_v58  ;;  %v12259_v58 = vld [vmem:[%s12126_s2 + $0xd0] sm:$0xff]  ;;  %16583 = vst [vmem:[#allocation22_spill] sm:$0xff] %v12262_v38 }
  0xc6   : > { %16582 = vst [vmem:[#allocation21_spill] sm:$0xff] %v12259_v58 }
  0xc8   : > { %1570 = vmatmul.mubr.f32.gmra.mrb[64].mxu0 %v12241_v60  ;;  %v12271_v60 = vld [vmem:[%s12126_s2 + $0xf8] sm:$0xff] }
  0xc9   : > { %8739 = vmatprep.mubr.msk.f32.mxu0 %vm997_vm0, %v12244_v59  ;;  %v12268_v59 = vld [vmem:[%s12126_s2 + $0xe0] sm:$0xff]  ;;  %16585 = vst [vmem:[#allocation24_spill] sm:$0xff] %v12271_v60 }
  0xca   : > { %16584 = vst [vmem:[#allocation23_spill] sm:$0xff] %v12268_v59 }
  0xcc   : > { %1576 = vmatmul.mubr.f32.gmra.mrb[66].mxu0 %v12250_v62  ;;  %v12280_v62 = vld [vmem:[%s12126_s2 + $0x108] sm:$0xff] }
  0xcd   : > { %8740 = vmatprep.mubr.msk.f32.mxu0 %vm997_vm0, %v12253_v61  ;;  %v12277_v61 = vld [vmem:[%s12126_s2 + $0xf0] sm:$0xff]  ;;  %16587 = vst [vmem:[#allocation26_spill] sm:$0xff] %v12280_v62 }
  0xce   : > { %16586 = vst [vmem:[#allocation25_spill] sm:$0xff] %v12277_v61 }
  0xd0   : > { %1582 = vmatmul.mubr.f32.gmra.mrb[68].mxu0 %v12259_v58  ;;  %v12289_v58 = vld [vmem:[%s12126_s2 + $0x118] sm:$0xff] }
  0xd1   : > { %8741 = vmatprep.mubr.msk.f32.mxu0 %vm997_vm0, %v12262_v38  ;;  %v12286_v38 = vld [vmem:[%s12126_s2 + $0x100] sm:$0xff]  ;;  %16589 = vst [vmem:[#allocation28_spill] sm:$0xff] %v12289_v58 }
  0xd2   : > { %16588 = vst [vmem:[#allocation27_spill] sm:$0xff] %v12286_v38 }
  0xd4   : > { %1588 = vmatmul.mubr.f32.gmra.mrb[70].mxu0 %v12268_v59  ;;  %v12298_v59 = vld [vmem:[%s12126_s2 + $0x128] sm:$0xff] }
  0xd5   : > { %8742 = vmatprep.mubr.msk.f32.mxu0 %vm997_vm0, %v12271_v60  ;;  %v12295_v60 = vld [vmem:[%s12126_s2 + $0x110] sm:$0xff]  ;;  %16591 = vst [vmem:[#allocation30_spill] sm:$0xff] %v12298_v59 }
  0xd6   : > { %16590 = vst [vmem:[#allocation29_spill] sm:$0xff] %v12295_v60 }
  0xd8   : > { %1594 = vmatmul.mubr.f32.gmra.mrb[72].mxu0 %v12277_v61  ;;  %v12307_v61 = vld [vmem:[%s12126_s2 + $0x138] sm:$0xff] }
  0xd9   : > { %8743 = vmatprep.mubr.msk.f32.mxu0 %vm997_vm0, %v12280_v62  ;;  %v12304_v62 = vld [vmem:[%s12126_s2 + $0x120] sm:$0xff]  ;;  %16592 = vst [vmem:[#allocation31_spill] sm:$0xff] %v12307_v61 }
  0xdc   : > { %1600 = vmatmul.mubr.f32.gmra.mrb[74].mxu0 %v12286_v38  ;;  %v12317_v38 = vsel %vm786_vm1, %v785_v57, 0.0  ;;  %v874_v57 = vmul.f32 %v11947_v0, %v11947_v0 }
  0xdd   : > { %8744 = vmatprep.mubr.msk.f32.mxu0 %vm997_vm0, %v12289_v58  ;;  %v12314_v58 = vld [vmem:[%s12126_s2 + $0x130] sm:$0xff]  ;;  %16593 = vst [vmem:[#allocation32_spill] sm:$0xff] %v12317_v38 }
  0xe0   : > { %1606 = vmatmul.mubr.f32.gmra.mrb[76].mxu0 %v12295_v60  ;;  %v872_v60 = vmul.f32 %v11879_v31, %v11879_v31  ;;  %v876_v31 = vmul.f32 %v11956_v2, %v11956_v2  ;;  %v877_v2 = vmul.f32 %v11971_v5, %v11971_v5  ;;  %v884_v5 = vmul.f32 %v11992_v10, %v11992_v10 }
  0xe1   : > { %8745 = vmatprep.mubr.msk.f32.mxu0 %vm997_vm0, %v12298_v59  ;;  %v12323_v59 = vld [vmem:[%s12126_s2 + $0x140] sm:$0x1]  ;;  %v887_v10 = vmul.f32 %v12016_v15, %v12016_v15  ;;  %v894_v15 = vmul.f32 %v12037_v20, %v12037_v20  ;;  %v898_v20 = vmul.f32 %v12055_v24, %v12055_v24  ;;  %v899_v24 = vmul.f32 %v12070_v27, %v12070_v27 }
  0xe2   : > { %16594 = vst [vmem:[#allocation33_spill] sm:$0xff] %v12323_v59 }
  0xe4   : > { %1612 = vmatmul.mubr.f32.gmra.mrb[78].mxu0 %v12304_v62 }
  0xe5   : > { %8746 = vmatprep.mubr.msk.f32.mxu0 %vm997_vm0, %v12307_v61  ;;  %v871_v61 = vmul.f32 %v11944_v63, %v11944_v63 }
  0xe8   : > { %1618 = vmatmul.mubr.f32.gmra.mrb[80].mxu0 %v12314_v58 }
  0xe9   : > { %8747 = vmatprep.mubr.msk.f32.mxu0 %vm997_vm0, %v12317_v38  ;;  %v873_v38 = vmul.f32 %v11953_v1, %v11953_v1 }
  0xec   : > { %8748 = vmatmul.mubr.msk.f32.gmra.mrb[82].mxu0 %vm786_vm1, %v12323_v59  ;;  %v875_v59 = vmul.f32 %v11962_v3, %v11962_v3  ;;  %v880_v3 = vmul.f32 %v11974_v6, %v11974_v6  ;;  %v883_v6 = vmul.f32 %v11998_v11, %v11998_v11  ;;  %v890_v11 = vmul.f32 %v12019_v16, %v12019_v16 }
  0xed   : > { %8749 = vmatprep.mubr.msk.f32.mxu0 %vm997_vm0, %v872_v60  ;;  %v878_v60 = vmul.f32 %v11965_v4, %v11965_v4  ;;  %v879_v4 = vmul.f32 %v11980_v7, %v11980_v7  ;;  %v886_v7 = vmul.f32 %v12001_v12, %v12001_v12  ;;  %v889_v12 = vmul.f32 %v12025_v17, %v12025_v17 }
  0xee   : > { %v893_v16 = vmul.f32 %v12043_v21, %v12043_v21  ;;  %v896_v17 = vmul.f32 %v12046_v22, %v12046_v22  ;;  %v897_v21 = vmul.f32 %v12061_v25, %v12061_v25  ;;  %v902_v25 = vmul.f32 %v12073_v28, %v12073_v28 }
  0xef   : > { %v903_v28 = vmul.f32 %v12088_v32, %v12088_v32 }
  0xf0   : > { %1630 = vmatmul.mubr.f32.gmra.mrb[84].mxu0 %v871_v61  ;;  %v12347_v61 = vld [vmem:[%s16595_s26 + $0x8] sm:$0xff] }
  0xf1   : > { %8750 = vmatprep.mubr.msk.f32.mxu0 %vm997_vm0, %v874_v57  ;;  %8812 = vmatprep.mubr.msk.f32.mxu1 %vm997_vm0, %v12347_v61 }
  0xf4   : > { %1636 = vmatmul.mubr.f32.gmra.mrb[86].mxu0 %v873_v38  ;;  %v882_v38 = vmul.f32 %v11983_v8, %v11983_v8  ;;  %v885_v8 = vmul.f32 %v12007_v13, %v12007_v13  ;;  %v892_v13 = vmul.f32 %v12028_v18, %v12028_v18 }
  0xf5   : > { %8751 = vmatprep.mubr.msk.f32.mxu0 %vm997_vm0, %v876_v31 }
  0xf8   : > { %1642 = vmatmul.mubr.f32.gmra.mrb[88].mxu0 %v875_v59  ;;  %v881_v59 = vmul.f32 %v11989_v9, %v11989_v9  ;;  %v888_v9 = vmul.f32 %v12010_v14, %v12010_v14  ;;  %v891_v14 = vmul.f32 %v12034_v19, %v12034_v19  ;;  %v895_v19 = vmul.f32 %v12052_v23, %v12052_v23 }
  0xf9   : > { %8752 = vmatprep.mubr.msk.f32.mxu0 %vm997_vm0, %v878_v60 }
  0xfc   : > { %1648 = vmatmul.mubr.f32.gmra.mrb[90].mxu0 %v877_v2 }
  0xfd   : > { %8753 = vmatprep.mubr.msk.f32.mxu0 %vm997_vm0, %v880_v3  ;;  %v900_v3 = vmul.f32 %v12064_v26, %v12064_v26  ;;  %v901_v26 = vmul.f32 %v12079_v29, %v12079_v29 }
 0x100   : > { %1654 = vmatmul.mubr.f32.gmra.mrb[92].mxu0 %v879_v4 }
 0x101   : > { %8754 = vmatprep.mubr.msk.f32.mxu0 %vm997_vm0, %v882_v38 }
 0x104   : > { %1660 = vmatmul.mubr.f32.gmra.mrb[94].mxu0 %v881_v59 }
 0x105   : > { %8755 = vmatprep.mubr.msk.f32.mxu0 %vm997_vm0, %v884_v5 }
 0x108   : > { %1666 = vmatmul.mubr.f32.gmra.mrb[96].mxu0 %v883_v6 }
 0x109   : > { %8756 = vmatprep.mubr.msk.f32.mxu0 %vm997_vm0, %v886_v7  ;;  %v904_v7 = vmul.f32 %v12082_v30, %v12082_v30  ;;  %v905_v30 = vmul.f32 %v12097_v34, %v12097_v34 }
 0x10c   : > { %1672 = vmatmul.mubr.f32.gmra.mrb[98].mxu0 %v885_v8 }
 0x10d   : > { %8757 = vmatprep.mubr.msk.f32.mxu0 %vm997_vm0, %v888_v9  ;;  %v906_v9 = vmul.f32 %v12091_v33, %v12091_v33  ;;  %v907_v33 = vmul.f32 %v12106_v36, %v12106_v36  ;;  %v12438_v36 = vsel %vm786_vm1, %v12132_v41, 0.0  ;;  %v913_v41 = vmul.f32 %v12142_v43, %v12142_v43 }
 0x10e   : > { %16596 = vst [vmem:[#allocation34_spill] sm:$0xff] %v12438_v36 }
 0x110   : > { %1678 = vmatmul.mubr.f32.gmra.mrb[100].mxu0 %v887_v10 }
 0x111   : > { %8758 = vmatprep.mubr.msk.f32.mxu0 %vm997_vm0, %v890_v11 }
 0x114   : > { %1684 = vmatmul.mubr.f32.gmra.mrb[102].mxu0 %v889_v12 }
 0x115   : > { %8759 = vmatprep.mubr.msk.f32.mxu0 %vm997_vm0, %v892_v13  ;;  %v908_v13 = vmul.f32 %v12100_v35, %v12100_v35  ;;  %v909_v35 = vmul.f32 %v12116_v39, %v12116_v39  ;;  %v914_v39 = vmul.f32 %v12135_v42, %v12135_v42 }
 0x118   : > { %1690 = vmatmul.mubr.f32.gmra.mrb[104].mxu0 %v891_v14 }
 0x119   : > { %8760 = vmatprep.mubr.msk.f32.mxu0 %vm997_vm0, %v894_v15  ;;  %v910_v15 = vmul.f32 %v12109_v37, %v12109_v37 }
 0x11b   : > { %v1379_v57 = vpop.f32.mrb[0].mxu0 }
 0x11c   : > { %v1381_v18 = vpop.f32.mrb[1].mxu0  ;;  %1696 = vmatmul.mubr.f32.gmra.mrb[106].mxu0 %v893_v16 }
 0x11d   : > { %8761 = vmatprep.mubr.msk.f32.mxu0 %vm997_vm0, %v896_v17 }
 0x11f   : > { %v1385_v31 = vpop.f32.mrb[2].mxu0 }
 0x120   : > { %v1387_v60 = vpop.f32.mrb[3].mxu0  ;;  %1702 = vmatmul.mubr.f32.gmra.mrb[108].mxu0 %v895_v19  ;;  %v10677_v2 = vpack.c.bf16 %v1385_v31, %v1379_v57 }
 0x121   : > { %8762 = vmatprep.mubr.msk.f32.mxu0 %vm997_vm0, %v898_v20  ;;  %v10675_v22 = vpack.c.bf16 %v1387_v60, %v1381_v18  ;;  %v912_v18 = vmul.f32 %v12119_v40, %v12119_v40  ;;  %v911_v20 = vmul.f32 %v12438_v36, %v12438_v36 }
 0x123   : > { %v1391_v4 = vpop.f32.mrb[4].mxu0  ;;  %10676 = vmatprep.subr.bf16.mxu1 %v10675_v22  ;;  %v916_v22 = vmul.f32 %v12145_v44, %v12145_v44 }
 0x124   : > { %v1393_v23 = vpop.f32.mrb[5].mxu0  ;;  %1708 = vmatmul.mubr.f32.gmra.mrb[110].mxu0 %v897_v21  ;;  %10678 = vmatpush1.bf16.msra.mxu1 %v10677_v2 }
 0x125   : > { %8763 = vmatprep.mubr.msk.f32.mxu0 %vm997_vm0, %v900_v3 }
 0x127   : > { %v1397_v38 = vpop.f32.mrb[6].mxu0 }
 0x128   : > { %v10681_v59 = vpack.c.bf16 %v1397_v38, %v1391_v4  ;;  %v1399_v5 = vpop.f32.mrb[7].mxu0  ;;  %1714 = vmatmul.mubr.f32.gmra.mrb[112].mxu0 %v899_v24  ;;  %v918_v24 = vmul.f32 %v12154_v46, %v12154_v46 }
 0x129   : > { %v10679_v6 = vpack.c.bf16 %v1399_v5, %v1393_v23  ;;  %8764 = vmatprep.mubr.msk.f32.mxu0 %vm997_vm0, %v902_v25  ;;  %v915_v23 = vmul.f32 %v12151_v45, %v12151_v45  ;;  %v917_v5 = vmul.f32 %v12160_v47, %v12160_v47 }
 0x12b   : > { %v1403_v8 = vpop.f32.mrb[8].mxu0  ;;  %10680 = vmatprep.subr.bf16.mxu1 %v10679_v6  ;;  %v920_v6 = vmul.f32 %v12163_v48, %v12163_v48 }
 0x12c   : > { %v1405_v27 = vpop.f32.mrb[9].mxu0  ;;  %1720 = vmatmul.mubr.f32.gmra.mrb[114].mxu0 %v901_v26  ;;  %10682 = vmatpush1.bf16.msra.mxu1 %v10681_v59 }
 0x12d   : > { %8765 = vmatprep.mubr.msk.f32.mxu0 %vm997_vm0, %v904_v7 }
 0x12f   : > { %v1409_v29 = vpop.f32.mrb[10].mxu0 }
 0x130   : > { %v10685_v10 = vpack.c.bf16 %v1409_v29, %v1403_v8  ;;  %v1411_v11 = vpop.f32.mrb[11].mxu0  ;;  %1726 = vmatmul.mubr.f32.gmra.mrb[116].mxu0 %v903_v28  ;;  %v922_v28 = vmul.f32 %v12172_v50, %v12172_v50 }
 0x131   : > { %v10683_v12 = vpack.c.bf16 %v1411_v11, %v1405_v27  ;;  %8766 = vmatprep.mubr.msk.f32.mxu0 %vm997_vm0, %v906_v9  ;;  %v919_v27 = vmul.f32 %v12169_v49, %v12169_v49  ;;  %v921_v11 = vmul.f32 %v12178_v51, %v12178_v51 }
 0x133   : > { %v1415_v14 = vpop.f32.mrb[12].mxu0  ;;  %10684 = vmatprep.subr.bf16.mxu1 %v10683_v12  ;;  %v924_v12 = vmul.f32 %v12181_v52, %v12181_v52 }
 0x134   : > { %v1417_v32 = vpop.f32.mrb[13].mxu0  ;;  %1732 = vmatmul.mubr.f32.gmra.mrb[118].mxu0 %v905_v30  ;;  %10686 = vmatpush1.bf16.msra.mxu1 %v10685_v10 }
 0x135   : > { %8767 = vmatprep.mubr.msk.f32.mxu0 %vm997_vm0, %v908_v13 }
 0x137   : > { %v1421_v34 = vpop.f32.mrb[14].mxu0 }
 0x138   : > { %v10689_v16 = vpack.c.bf16 %v1421_v34, %v1415_v14  ;;  %v1423_v17 = vpop.f32.mrb[15].mxu0  ;;  %1738 = vmatmul.mubr.f32.gmra.mrb[120].mxu0 %v907_v33  ;;  %v926_v33 = vmul.f32 %v12190_v54, %v12190_v54 }
 0x139   : > { %v10687_v57 = vpack.c.bf16 %v1423_v17, %v1417_v32  ;;  %8768 = vmatprep.mubr.msk.f32.mxu0 %vm997_vm0, %v910_v15  ;;  %v923_v32 = vmul.f32 %v12187_v53, %v12187_v53  ;;  %v925_v17 = vmul.f32 %v12196_v55, %v12196_v55 }
 0x13b   : > { %v1427_v19 = vpop.f32.mrb[16].mxu0  ;;  %10688 = vmatprep.subr.bf16.mxu1 %v10687_v57  ;;  %v928_v57 = vmul.f32 %v12199_v56, %v12199_v56 }
 0x13c   : > { %v1429_v37 = vpop.f32.mrb[17].mxu0  ;;  %1744 = vmatmul.mubr.f32.gmra.mrb[122].mxu0 %v909_v35  ;;  %10690 = vmatpush1.bf16.msra.mxu1 %v10689_v16 }
 0x13d   : > { %8769 = vmatprep.mubr.msk.f32.mxu0 %vm997_vm0, %v912_v18 }
 0x13f   : > { %v1433_v31 = vpop.f32.mrb[18].mxu0 }
 0x140   : > { %v10693_v60 = vpack.c.bf16 %v1433_v31, %v1427_v19  ;;  %v1435_v21 = vpop.f32.mrb[19].mxu0  ;;  %1750 = vmatmul.mubr.f32.gmra.mrb[124].mxu0 %v911_v20 }
 0x141   : > { %v10691_v2 = vpack.c.bf16 %v1435_v21, %v1429_v37  ;;  %8770 = vmatprep.mubr.msk.f32.mxu0 %vm997_vm0, %v914_v39  ;;  %v16597_v37 = vld [vmem:[#allocation9_spill] sm:$0xff]  ;;  %v16598_v39 = vld [vmem:[#allocation10_spill] sm:$0xff] }
 0x142   : > { %v927_v20 = vmul.f32 %v16597_v37, %v16597_v37  ;;  %v930_v31 = vmul.f32 %v16598_v39, %v16598_v39 }
 0x143   : > { %v1439_v3 = vpop.f32.mrb[20].mxu0  ;;  %10692 = vmatprep.subr.bf16.mxu1 %v10691_v2  ;;  %v16599_v2 = vld [vmem:[#allocation11_spill] sm:$0xff] }
 0x144   : > { %v1441_v4 = vpop.f32.mrb[21].mxu0  ;;  %1756 = vmatmul.mubr.f32.gmra.mrb[126].mxu0 %v913_v41  ;;  %10694 = vmatpush1.bf16.msra.mxu1 %v10693_v60 }
 0x145   : > { %8771 = vmatprep.mubr.msk.f32.mxu0 %vm997_vm0, %v916_v22  ;;  %v929_v22 = vmul.f32 %v16599_v2, %v16599_v2 }
 0x147   : > { %v1445_v25 = vpop.f32.mrb[22].mxu0 }
 0x148   : > { %v10697_v38 = vpack.c.bf16 %v1445_v25, %v1439_v3  ;;  %v1447_v59 = vpop.f32.mrb[23].mxu0  ;;  %1762 = vmatmul.mubr.f32.gmra.mrb[128].mxu0 %v915_v23 }
 0x149   : > { %v10695_v26 = vpack.c.bf16 %v1447_v59, %v1441_v4  ;;  %8772 = vmatprep.mubr.msk.f32.mxu0 %vm997_vm0, %v918_v24  ;;  %v16600_v4 = vld [vmem:[#allocation12_spill] sm:$0xff] }
 0x14a   : > { %v932_v23 = vmul.f32 %v16600_v4, %v16600_v4 }
 0x14b   : > { %v1451_v7 = vpop.f32.mrb[24].mxu0  ;;  %10696 = vmatprep.subr.bf16.mxu1 %v10695_v26 }
 0x14c   : > { %v1453_v8 = vpop.f32.mrb[25].mxu0  ;;  %1768 = vmatmul.mubr.f32.gmra.mrb[130].mxu0 %v917_v5  ;;  %10698 = vmatpush1.bf16.msra.mxu1 %v10697_v38  ;;  %v16601_v38 = vld [vmem:[#allocation13_spill] sm:$0xff]  ;;  %v16602_v5 = vld [vmem:[#allocation14_spill] sm:$0xff] }
 0x14d   : > { %8773 = vmatprep.mubr.msk.f32.mxu0 %vm997_vm0, %v920_v6  ;;  %v931_v59 = vmul.f32 %v16601_v38, %v16601_v38  ;;  %v934_v26 = vmul.f32 %v16602_v5, %v16602_v5 }
 0x14f   : > { %v1457_v9 = vpop.f32.mrb[26].mxu0 }
 0x150   : > { %v10701_v29 = vpack.c.bf16 %v1457_v9, %v1451_v7  ;;  %v1459_v10 = vpop.f32.mrb[27].mxu0  ;;  %1774 = vmatmul.mubr.f32.gmra.mrb[132].mxu0 %v919_v27  ;;  %v16603_v27 = vld [vmem:[#allocation15_spill] sm:$0xff] }
 0x151   : > { %v10699_v30 = vpack.c.bf16 %v1459_v10, %v1453_v8  ;;  %8774 = vmatprep.mubr.msk.f32.mxu0 %vm997_vm0, %v922_v28  ;;  %v933_v28 = vmul.f32 %v16603_v27, %v16603_v27 }
 0x153   : > { %v1463_v13 = vpop.f32.mrb[28].mxu0  ;;  %10700 = vmatprep.subr.bf16.mxu1 %v10699_v30 }
 0x154   : > { %v1465_v14 = vpop.f32.mrb[29].mxu0  ;;  %1780 = vmatmul.mubr.f32.gmra.mrb[134].mxu0 %v921_v11  ;;  %10702 = vmatpush1.bf16.msra.mxu1 %v10701_v29  ;;  %v16604_v29 = vld [vmem:[#allocation16_spill] sm:$0xff] }
 0x155   : > { %8775 = vmatprep.mubr.msk.f32.mxu0 %vm997_vm0, %v924_v12  ;;  %v936_v10 = vmul.f32 %v16604_v29, %v16604_v29  ;;  %v16605_v12 = vld [vmem:[#allocation17_spill] sm:$0xff] }
 0x157   : > { %v1469_v15 = vpop.f32.mrb[30].mxu0 }
 0x158   : > { %v10705_v34 = vpack.c.bf16 %v1469_v15, %v1463_v13  ;;  %v1471_v16 = vpop.f32.mrb[31].mxu0  ;;  %1786 = vmatmul.mubr.f32.gmra.mrb[136].mxu0 %v923_v32  ;;  %v935_v13 = vmul.f32 %v16605_v12, %v16605_v12 }
 0x159   : > { %v10703_v35 = vpack.c.bf16 %v1471_v16, %v1465_v14  ;;  %8776 = vmatprep.mubr.msk.f32.mxu0 %vm997_vm0, %v926_v33  ;;  %v16606_v14 = vld [vmem:[#allocation18_spill] sm:$0xff]  ;;  %v12508_v33 = vld [vmem:[%s16595_s26] sm:$0xff] }
 0x15a   : > { %v938_v32 = vmul.f32 %v16606_v14, %v16606_v14 }
 0x15b   : > { %v1475_v18 = vpop.f32.mrb[32].mxu0  ;;  %10704 = vmatprep.subr.bf16.mxu1 %v10703_v35 }
 0x15c   : > { %v1477_v19 = vpop.f32.mrb[33].mxu0  ;;  %1792 = vmatmul.mubr.f32.gmra.mrb[138].mxu0 %v925_v17  ;;  %10706 = vmatpush1.bf16.msra.mxu1 %v10705_v34  ;;  %v12513_v34 = vld [vmem:[%s16595_s26 + $0x18] sm:$0xff] }
 0x15d   : > { %8777 = vmatprep.mubr.msk.f32.mxu0 %vm997_vm0, %v928_v57  ;;  %v16607_v17 = vld [vmem:[#allocation19_spill] sm:$0xff]  ;;  %v16608_v57 = vld [vmem:[#allocation20_spill] sm:$0xff] }
 0x15e   : > { %v937_v35 = vmul.f32 %v16607_v17, %v16607_v17 }
 0x15f   : > { %v1481_v60 = vpop.f32.mrb[34].mxu0 }
 0x160   : > { %v10709_v21 = vpack.c.bf16 %v1481_v60, %v1475_v18  ;;  %v1483_v41 = vpop.f32.mrb[35].mxu0  ;;  %1798 = vmatmul.mubr.f32.gmra.mrb[140].mxu0 %v927_v20  ;;  %v940_v18 = vmul.f32 %v16608_v57, %v16608_v57 }
 0x161   : > { %v10707_v3 = vpack.c.bf16 %v1483_v41, %v1477_v19  ;;  %8778 = vmatprep.mubr.msk.f32.mxu0 %vm997_vm0, %v930_v31  ;;  %v12526_v19 = vld [vmem:[%s16595_s26 + $0x10] sm:$0xff]  ;;  %v12531_v31 = vld [vmem:[%s16595_s26 + $0x28] sm:$0xff] }
 0x162   : > { %v16609_v41 = vld [vmem:[#allocation21_spill] sm:$0xff] }
 0x163   : > { %v1487_v24 = vpop.f32.mrb[36].mxu0  ;;  %10708 = vmatprep.subr.bf16.mxu1 %v10707_v3 }
 0x164   : > { %v1489_v25 = vpop.f32.mrb[37].mxu0  ;;  %1804 = vmatmul.mubr.f32.gmra.mrb[142].mxu0 %v929_v22  ;;  %10710 = vmatpush1.bf16.msra.mxu1 %v10709_v21  ;;  %v939_v22 = vmul.f32 %v16609_v41, %v16609_v41 }
 0x165   : > { %8779 = vmatprep.mubr.msk.f32.mxu0 %vm997_vm0, %v932_v23  ;;  %v16610_v23 = vld [vmem:[#allocation22_spill] sm:$0xff] }
 0x167   : > { %v1493_v6 = vpop.f32.mrb[38].mxu0 }
 0x168   : > { %v10713_v7 = vpack.c.bf16 %v1493_v6, %v1487_v24  ;;  %v1495_v8 = vpop.f32.mrb[39].mxu0  ;;  %1810 = vmatmul.mubr.f32.gmra.mrb[144].mxu0 %v931_v59  ;;  %v942_v24 = vmul.f32 %v16610_v23, %v16610_v23 }
 0x169   : > { %v10711_v9 = vpack.c.bf16 %v1495_v8, %v1489_v25  ;;  %8780 = vmatprep.mubr.msk.f32.mxu0 %vm997_vm0, %v934_v26  ;;  %v12544_v25 = vld [vmem:[%s16595_s26 + $0x20] sm:$0xff]  ;;  %v12549_v26 = vld [vmem:[%s16595_s26 + $0x38] sm:$0xff] }
 0x16b   : > { %v1499_v11 = vpop.f32.mrb[40].mxu0  ;;  %10712 = vmatprep.subr.bf16.mxu1 %v10711_v9 }
 0x16c   : > { %v1501_v30 = vpop.f32.mrb[41].mxu0  ;;  %1816 = vmatmul.mubr.f32.gmra.mrb[146].mxu0 %v933_v28  ;;  %10714 = vmatpush1.bf16.msra.mxu1 %v10713_v7  ;;  %v16611_v7 = vld [vmem:[#allocation23_spill] sm:$0xff]  ;;  %v16612_v28 = vld [vmem:[#allocation24_spill] sm:$0xff] }
 0x16d   : > { %2105 = vmatprep.subr.mxu1 %v1501_v30  ;;  %8781 = vmatprep.mubr.msk.f32.mxu0 %vm997_vm0, %v936_v10  ;;  %v941_v8 = vmul.f32 %v16611_v7, %v16611_v7  ;;  %v944_v9 = vmul.f32 %v16612_v28, %v16612_v28  ;;  %v12562_v10 = vld [vmem:[%s16595_s26 + $0x30] sm:$0xff]  ;;  %v12567_v30 = vld [vmem:[%s16595_s26 + $0x48] sm:$0xff] }
 0x16f   : > { %v1505_v15 = vpop.f32.mrb[42].mxu0 }
 0x170   : > { %v1507_v16 = vpop.f32.mrb[43].mxu0  ;;  %1822 = vmatmul.mubr.f32.gmra.mrb[148].mxu0 %v935_v13  ;;  %2106 = vmatpush1.msra.mxu1 %v1499_v11 }
 0x171   : > { %8782 = vmatprep.mubr.msk.f32.mxu0 %vm997_vm0, %v938_v32  ;;  %2130 = vmatmul.mubr.f32.vlgmr.msra.gmra.mrb[0].mxu1 %v12508_v33 }
 0x172   : > { %8813 = vmatprep.mubr.msk.f32.mxu1 %vm997_vm0, %v12513_v34 }
 0x173   : > { %v1511_v20 = vpop.f32.mrb[44].mxu0 }
 0x174   : > { %v10717_v60 = vpack.c.bf16 %v1511_v20, %v1505_v15  ;;  %v1513_v21 = vpop.f32.mrb[45].mxu0  ;;  %1828 = vmatmul.mubr.f32.gmra.mrb[150].mxu0 %v937_v35  ;;  %v16613_v15 = vld [vmem:[#allocation25_spill] sm:$0xff] }
 0x175   : > { %v10715_v3 = vpack.c.bf16 %v1513_v21, %v1507_v16  ;;  %8783 = vmatprep.mubr.msk.f32.mxu0 %vm997_vm0, %v940_v18  ;;  %2136 = vmatmul.mubr.f32.gmra.mrb[2].mxu1 %v12526_v19  ;;  %v943_v16 = vmul.f32 %v16613_v15, %v16613_v15  ;;  %v16614_v18 = vld [vmem:[#allocation26_spill] sm:$0xff] }
 0x176   : > { %8814 = vmatprep.mubr.msk.f32.mxu1 %vm997_vm0, %v12531_v31  ;;  %v946_v20 = vmul.f32 %v16614_v18, %v16614_v18 }
 0x177   : > { %v1517_v59 = vpop.f32.mrb[46].mxu0  ;;  %10716 = vmatprep.subr.bf16.mxu1 %v10715_v3 }
 0x178   : > { %v1519_v6 = vpop.f32.mrb[47].mxu0  ;;  %1834 = vmatmul.mubr.f32.gmra.mrb[152].mxu0 %v939_v22  ;;  %10718 = vmatpush1.bf16.msra.mxu1 %v10717_v60  ;;  %v12580_v60 = vld [vmem:[%s16595_s26 + $0x40] sm:$0xff]  ;;  %v12585_v22 = vld [vmem:[%s16595_s26 + $0x58] sm:$0xff] }
 0x179   : > { %8784 = vmatprep.mubr.msk.f32.mxu0 %vm997_vm0, %v942_v24  ;;  %2142 = vmatmul.mubr.f32.gmra.mrb[4].mxu1 %v12544_v25  ;;  %v16615_v24 = vld [vmem:[#allocation27_spill] sm:$0xff] }
 0x17a   : > { %8815 = vmatprep.mubr.msk.f32.mxu1 %vm997_vm0, %v12549_v26 }
 0x17b   : > { %v1523_v11 = vpop.f32.mrb[48].mxu0 }
 0x17c   : > { %v10721_v13 = vpack.c.bf16 %v1523_v11, %v1517_v59  ;;  %v1525_v32 = vpop.f32.mrb[49].mxu0  ;;  %1840 = vmatmul.mubr.f32.gmra.mrb[154].mxu0 %v941_v8  ;;  %v945_v59 = vmul.f32 %v16615_v24, %v16615_v24  ;;  %v12598_v8 = vld [vmem:[%s16595_s26 + $0x50] sm:$0xff] }
 0x17d   : > { %v10719_v35 = vpack.c.bf16 %v1525_v32, %v1519_v6  ;;  %8785 = vmatprep.mubr.msk.f32.mxu0 %vm997_vm0, %v944_v9  ;;  %2148 = vmatmul.mubr.f32.gmra.mrb[6].mxu1 %v12562_v10  ;;  %v16616_v6 = vld [vmem:[#allocation28_spill] sm:$0xff]  ;;  %v12603_v9 = vld [vmem:[%s16595_s26 + $0x68] sm:$0xff] }
 0x17e   : > { %8816 = vmatprep.mubr.msk.f32.mxu1 %vm997_vm0, %v12567_v30  ;;  %v948_v7 = vmul.f32 %v16616_v6, %v16616_v6  ;;  %v16617_v32 = vld [vmem:[#allocation29_spill] sm:$0xff]  ;;  %v16619_v6 = vld [vmem:[#allocation31_spill] sm:$0xff] }
 0x17f   : > { %v1529_v21 = vpop.f32.mrb[50].mxu0  ;;  %10720 = vmatprep.subr.bf16.mxu1 %v10719_v35  ;;  %v947_v15 = vmul.f32 %v16617_v32, %v16617_v32  ;;  %v16618_v35 = vld [vmem:[#allocation30_spill] sm:$0xff] }
 0x180   : > { %v1531_v3 = vpop.f32.mrb[51].mxu0  ;;  %1846 = vmatmul.mubr.f32.gmra.mrb[156].mxu0 %v943_v16  ;;  %10722 = vmatpush1.bf16.msra.mxu1 %v10721_v13  ;;  %v950_v18 = vmul.f32 %v16618_v35, %v16618_v35  ;;  %v16620_v35 = vld [vmem:[#allocation32_spill] sm:$0xff] }
 0x181   : > { %8786 = vmatprep.mubr.msk.f32.mxu0 %vm997_vm0, %v946_v20  ;;  %2154 = vmatmul.mubr.f32.gmra.mrb[8].mxu1 %v12580_v60  ;;  %v12616_v20 = vld [vmem:[%s16595_s26 + $0x60] sm:$0xff] }
 0x182   : > { %8817 = vmatprep.mubr.msk.f32.mxu1 %vm997_vm0, %v12585_v22 }
 0x183   : > { %v1535_v28 = vpop.f32.mrb[52].mxu0 }
 0x184   : > { %v10725_v11 = vpack.c.bf16 %v1535_v28, %v1529_v21  ;;  %v1537_v13 = vpop.f32.mrb[53].mxu0  ;;  %1852 = vmatmul.mubr.f32.gmra.mrb[158].mxu0 %v945_v59  ;;  %v949_v59 = vmul.f32 %v12304_v62, %v12304_v62  ;;  %v12634_v28 = vld [vmem:[%s16595_s26 + $0x70] sm:$0xff]  ;;  %v12639_v62 = vld [vmem:[%s16595_s26 + $0x88] sm:$0xff] }
 0x185   : > { %v10723_v16 = vpack.c.bf16 %v1537_v13, %v1531_v3  ;;  %8787 = vmatprep.mubr.msk.f32.mxu0 %vm997_vm0, %v948_v7  ;;  %2160 = vmatmul.mubr.f32.gmra.mrb[10].mxu1 %v12598_v8  ;;  %v12621_v3 = vld [vmem:[%s16595_s26 + $0x78] sm:$0xff]  ;;  %v952_v7 = vmul.f32 %v16619_v6, %v16619_v6  ;;  %v16621_v6 = vld [vmem:[#allocation33_spill] sm:$0xff] }
 0x186   : > { %8818 = vmatprep.mubr.msk.f32.mxu1 %vm997_vm0, %v12603_v9  ;;  %v12648_v36 = vsel %vm786_vm1, %v16621_v6, 0.0 }
 0x187   : > { %v1541_v21 = vpop.f32.mrb[54].mxu0  ;;  %10724 = vmatprep.subr.bf16.mxu1 %v10723_v16 }
 0x188   : > { %v1543_v24 = vpop.f32.mrb[55].mxu0  ;;  %1858 = vmatmul.mubr.f32.gmra.mrb[160].mxu0 %v947_v15  ;;  %10726 = vmatpush1.bf16.msra.mxu1 %v10725_v11  ;;  %v951_v15 = vmul.f32 %v12314_v58, %v12314_v58  ;;  %v12656_v58 = vld [vmem:[%s16595_s26 + $0x80] sm:$0xff] }
 0x189   : > { %8788 = vmatprep.mubr.msk.f32.mxu0 %vm997_vm0, %v950_v18  ;;  %2166 = vmatmul.mubr.f32.gmra.mrb[12].mxu1 %v12616_v20  ;;  %v954_v18 = vmul.f32 %v16620_v35, %v16620_v35 }
 0x18a   : > { %8819 = vmatprep.mubr.msk.f32.mxu1 %vm997_vm0, %v12621_v3 }
 0x18b   : > { %v1547_v13 = vpop.f32.mrb[56].mxu0 }
 0x18c   : > { %v10729_v11 = vpack.c.bf16 %v1547_v13, %v1541_v21  ;;  %v1549_v32 = vpop.f32.mrb[57].mxu0  ;;  %1864 = vmatmul.mubr.f32.gmra.mrb[162].mxu0 %v949_v59  ;;  %v11445_v13 = vld [vmem:[%s11864_s1 + $0x8] sm:$0xff] }
 0x18d   : > { %v10727_v16 = vpack.c.bf16 %v1549_v32, %v1543_v24  ;;  %8789 = vmatprep.mubr.msk.f32.mxu0 %vm997_vm0, %v952_v7  ;;  %2172 = vmatmul.mubr.f32.gmra.mrb[14].mxu1 %v12634_v28  ;;  %v12661_v24 = vld [vmem:[%s16595_s26 + $0x98] sm:$0xff]  ;;  %v953_v7 = vmul.f32 %v12648_v36, %v12648_v36  ;;  %v956_v32 = vmul.f32 %v11445_v13, %v12135_v42 }
 0x18e   : > { %8820 = vmatprep.mubr.msk.f32.mxu1 %vm997_vm0, %v12639_v62  ;;  %16622 = vst [vmem:[#allocation9_spill] sm:$0xff] %v12661_v24  ;;  %v955_v42 = vmul.f32 %v12142_v43, %v11944_v63  ;;  %v12697_v63 = vld [vmem:[%s16595_s26 + $0xb8] sm:$0xff] }
 0x18f   : > { %v1553_v21 = vpop.f32.mrb[58].mxu0  ;;  %10728 = vmatprep.subr.bf16.mxu1 %v10727_v16  ;;  %v12674_v16 = vld [vmem:[%s16595_s26 + $0x90] sm:$0xff] }
 0x190   : > { %v1555_v59 = vpop.f32.mrb[59].mxu0  ;;  %1870 = vmatmul.mubr.f32.gmra.mrb[164].mxu0 %v951_v15  ;;  %10730 = vmatpush1.bf16.msra.mxu1 %v10729_v11  ;;  %v12679_v11 = vld [vmem:[%s16595_s26 + $0xa8] sm:$0xff] }
 0x191   : > { %8790 = vmatprep.mubr.msk.f32.mxu0 %vm997_vm0, %v954_v18  ;;  %2178 = vmatmul.mubr.f32.gmra.mrb[16].mxu1 %v12656_v58 }
 0x192   : > { %8821 = vmatprep.mubr.msk.f32.mxu1 %vm997_vm0, %v12661_v24  ;;  %v958_v24 = vmul.f32 %v12145_v44, %v11947_v0  ;;  %v957_v0 = vmul.f32 %v12151_v45, %v11953_v1  ;;  %v11446_v44 = vld [vmem:[%s11864_s1 + $0x28] sm:$0xff] }
 0x193   : > { %v1559_v15 = vpop.f32.mrb[60].mxu0  ;;  %v12715_v1 = vld [vmem:[%s16595_s26 + $0xc8] sm:$0xff] }
 0x194   : > { %v10733_v18 = vpack.c.bf16 %v1559_v15, %v1553_v21  ;;  %v1561_v6 = vpop.f32.mrb[61].mxu0  ;;  %1876 = vmatmul.mubr.f32.gmra.mrb[166].mxu0 %v953_v7  ;;  %v12692_v21 = vld [vmem:[%s16595_s26 + $0xa0] sm:$0xff] }
 0x195   : > { %v10731_v13 = vpack.c.bf16 %v1561_v6, %v1555_v59  ;;  %8791 = vmatprep.mubr.msk.f32.mxu0 %vm997_vm0, %v956_v32  ;;  %2184 = vmatmul.mubr.f32.gmra.mrb[18].mxu1 %v12674_v16  ;;  %v960_v59 = vmul.f32 %v11446_v44, %v12154_v46  ;;  %v12710_v32 = vld [vmem:[%s16595_s26 + $0xb0] sm:$0xff]  ;;  %v11447_v46 = vld [vmem:[%s11864_s1 + $0x20] sm:$0xff] }
 0x196   : > { %8822 = vmatprep.mubr.msk.f32.mxu1 %vm997_vm0, %v12679_v11 }
 0x197   : > { %v1565_v7 = vpop.f32.mrb[62].mxu0  ;;  %10732 = vmatprep.subr.bf16.mxu1 %v10731_v13 }
 0x198   : > { %v1567_v43 = vpop.f32.mrb[63].mxu0  ;;  %1882 = vmatmul.mubr.f32.gmra.mrb[168].mxu0 %v955_v42  ;;  %10734 = vmatpush1.bf16.msra.mxu1 %v10733_v18  ;;  %v959_v18 = vmul.f32 %v11447_v46, %v12160_v47  ;;  %v11448_v42 = vld [vmem:[%s11864_s1 + $0x38] sm:$0xff] }
 0x199   : > { %8792 = vmatprep.mubr.msk.f32.mxu0 %vm997_vm0, %v958_v24  ;;  %2190 = vmatmul.mubr.f32.gmra.mrb[20].mxu1 %v12692_v21  ;;  %v962_v13 = vmul.f32 %v11448_v42, %v12163_v48  ;;  %v12733_v47 = vld [vmem:[%s16595_s26 + $0xd8] sm:$0xff]  ;;  %v11449_v48 = vld [vmem:[%s11864_s1 + $0x30] sm:$0xff] }
 0x19a   : > { %8823 = vmatprep.mubr.msk.f32.mxu1 %vm997_vm0, %v12697_v63  ;;  %v961_v44 = vmul.f32 %v11449_v48, %v12169_v49  ;;  %v12751_v49 = vld [vmem:[%s16595_s26 + $0xe8] sm:$0xff] }
 0x19b   : > { %v1571_v15 = vpop.f32.mrb[64].mxu0 }
 0x19c   : > { %v10737_v45 = vpack.c.bf16 %v1571_v15, %v1565_v7  ;;  %v1573_v24 = vpop.f32.mrb[65].mxu0  ;;  %1888 = vmatmul.mubr.f32.gmra.mrb[170].mxu0 %v957_v0  ;;  %v12728_v7 = vld [vmem:[%s16595_s26 + $0xc0] sm:$0xff] }
 0x19d   : > { %v10735_v6 = vpack.c.bf16 %v1573_v24, %v1567_v43  ;;  %8793 = vmatprep.mubr.msk.f32.mxu0 %vm997_vm0, %v960_v59  ;;  %2196 = vmatmul.mubr.f32.gmra.mrb[22].mxu1 %v12710_v32  ;;  %v11450_v59 = vld [vmem:[%s11864_s1 + $0x48] sm:$0xff]  ;;  %v12746_v24 = vld [vmem:[%s16595_s26 + $0xd0] sm:$0xff] }
 0x19e   : > { %8824 = vmatprep.mubr.msk.f32.mxu1 %vm997_vm0, %v12715_v1  ;;  %v964_v15 = vmul.f32 %v11450_v59, %v12172_v50  ;;  %v11451_v50 = vld [vmem:[%s11864_s1 + $0x40] sm:$0xff] }
 0x19f   : > { %v1577_v0 = vpop.f32.mrb[66].mxu0  ;;  %10736 = vmatprep.subr.bf16.mxu1 %v10735_v6  ;;  %v963_v6 = vmul.f32 %v11451_v50, %v12178_v51  ;;  %v12769_v51 = vld [vmem:[%s16595_s26 + $0xf8] sm:$0xff] }
 0x1a0   : > { %v1579_v43 = vpop.f32.mrb[67].mxu0  ;;  %1894 = vmatmul.mubr.f32.gmra.mrb[172].mxu0 %v959_v18  ;;  %10738 = vmatpush1.bf16.msra.mxu1 %v10737_v45 }
 0x1a1   : > { %8794 = vmatprep.mubr.msk.f32.mxu0 %vm997_vm0, %v962_v13  ;;  %2202 = vmatmul.mubr.f32.gmra.mrb[24].mxu1 %v12728_v7  ;;  %v11452_v13 = vld [vmem:[%s11864_s1 + $0x58] sm:$0xff] }
 0x1a2   : > { %8825 = vmatprep.mubr.msk.f32.mxu1 %vm997_vm0, %v12733_v47  ;;  %v966_v48 = vmul.f32 %v11452_v13, %v12181_v52  ;;  %v11453_v52 = vld [vmem:[%s11864_s1 + $0x50] sm:$0xff] }
 0x1a3   : > { %v1583_v45 = vpop.f32.mrb[68].mxu0  ;;  %v965_v59 = vmul.f32 %v11453_v52, %v12187_v53  ;;  %v12787_v53 = vld [vmem:[%s16595_s26 + $0x108] sm:$0xff] }
 0x1a4   : > { %v10741_v46 = vpack.c.bf16 %v1583_v45, %v1577_v0  ;;  %v1585_v18 = vpop.f32.mrb[69].mxu0  ;;  %1900 = vmatmul.mubr.f32.gmra.mrb[174].mxu0 %v961_v44  ;;  %v12764_v0 = vld [vmem:[%s16595_s26 + $0xe0] sm:$0xff] }
 0x1a5   : > { %v10739_v42 = vpack.c.bf16 %v1585_v18, %v1579_v43  ;;  %8795 = vmatprep.mubr.msk.f32.mxu0 %vm997_vm0, %v964_v15  ;;  %2208 = vmatmul.mubr.f32.gmra.mrb[26].mxu1 %v12746_v24  ;;  %v11454_v15 = vld [vmem:[%s11864_s1 + $0x68] sm:$0xff]  ;;  %v12782_v18 = vld [vmem:[%s16595_s26 + $0xf0] sm:$0xff] }
 0x1a6   : > { %8826 = vmatprep.mubr.msk.f32.mxu1 %vm997_vm0, %v12751_v49  ;;  %v968_v45 = vmul.f32 %v11454_v15, %v12190_v54  ;;  %v11455_v54 = vld [vmem:[%s11864_s1 + $0x60] sm:$0xff] }
 0x1a7   : > { %v1589_v44 = vpop.f32.mrb[70].mxu0  ;;  %10740 = vmatprep.subr.bf16.mxu1 %v10739_v42  ;;  %v967_v42 = vmul.f32 %v11455_v54, %v12196_v55  ;;  %v12805_v55 = vld [vmem:[%s16595_s26 + $0x118] sm:$0xff] }
 0x1a8   : > { %v1591_v43 = vpop.f32.mrb[71].mxu0  ;;  %1906 = vmatmul.mubr.f32.gmra.mrb[176].mxu0 %v963_v6  ;;  %10742 = vmatpush1.bf16.msra.mxu1 %v10741_v46 }
 0x1a9   : > { %8796 = vmatprep.mubr.msk.f32.mxu0 %vm997_vm0, %v966_v48  ;;  %2214 = vmatmul.mubr.f32.gmra.mrb[28].mxu1 %v12764_v0  ;;  %v11456_v48 = vld [vmem:[%s11864_s1 + $0x78] sm:$0xff] }
 0x1aa   : > { %8827 = vmatprep.mubr.msk.f32.mxu1 %vm997_vm0, %v12769_v51  ;;  %v970_v52 = vmul.f32 %v11456_v48, %v12199_v56  ;;  %v11457_v56 = vld [vmem:[%s11864_s1 + $0x70] sm:$0xff] }
 0x1ab   : > { %v1595_v46 = vpop.f32.mrb[72].mxu0  ;;  %v969_v15 = vmul.f32 %v11457_v56, %v16597_v37  ;;  %v12823_v37 = vld [vmem:[%s16595_s26 + $0x128] sm:$0x7f] }
 0x1ac   : > { %v10745_v50 = vpack.c.bf16 %v1595_v46, %v1589_v44  ;;  %v1597_v6 = vpop.f32.mrb[73].mxu0  ;;  %1912 = vmatmul.mubr.f32.gmra.mrb[178].mxu0 %v965_v59  ;;  %v12800_v44 = vld [vmem:[%s16595_s26 + $0x100] sm:$0xff] }
 0x1ad   : > { %v10743_v13 = vpack.c.bf16 %v1597_v6, %v1591_v43  ;;  %8797 = vmatprep.mubr.msk.f32.mxu0 %vm997_vm0, %v968_v45  ;;  %2220 = vmatmul.mubr.f32.gmra.mrb[30].mxu1 %v12782_v18  ;;  %v11458_v45 = vld [vmem:[%s11864_s1 + $0x88] sm:$0xff]  ;;  %v12818_v6 = vld [vmem:[%s16595_s26 + $0x110] sm:$0xff] }
 0x1ae   : > { %8828 = vmatprep.mubr.msk.f32.mxu1 %vm997_vm0, %v12787_v53  ;;  %v972_v46 = vmul.f32 %v11458_v45, %v16598_v39  ;;  %v11459_v39 = vld [vmem:[%s11864_s1 + $0x80] sm:$0xff]  ;;  %v11462_v45 = vld [vmem:[%s11864_s1 + $0xa8] sm:$0xff] }
 0x1af   : > { %v1601_v59 = vpop.f32.mrb[74].mxu0  ;;  %10744 = vmatprep.subr.bf16.mxu1 %v10743_v13  ;;  %v971_v13 = vmul.f32 %v11459_v39, %v16599_v2 }
 0x1b0   : > { %v1603_v43 = vpop.f32.mrb[75].mxu0  ;;  %1918 = vmatmul.mubr.f32.gmra.mrb[180].mxu0 %v967_v42  ;;  %10746 = vmatpush1.bf16.msra.mxu1 %v10745_v50 }
 0x1b1   : > { %8798 = vmatprep.mubr.msk.f32.mxu0 %vm997_vm0, %v970_v52  ;;  %2226 = vmatmul.mubr.f32.gmra.mrb[32].mxu1 %v12800_v44  ;;  %v11460_v52 = vld [vmem:[%s11864_s1 + $0x98] sm:$0xff] }
 0x1b2   : > { %8829 = vmatprep.mubr.msk.f32.mxu1 %vm997_vm0, %v12805_v55  ;;  %v974_v56 = vmul.f32 %v11460_v52, %v16600_v4 }
 0x1b3   : > { %v1607_v50 = vpop.f32.mrb[76].mxu0 }
 0x1b4   : > { %v10749_v54 = vpack.c.bf16 %v1607_v50, %v1601_v59  ;;  %v1609_v42 = vpop.f32.mrb[77].mxu0  ;;  %1924 = vmatmul.mubr.f32.gmra.mrb[182].mxu0 %v969_v15  ;;  %v12836_v59 = vld [vmem:[%s16595_s26 + $0x120] sm:$0x7f] }
 0x1b5   : > { %v10747_v48 = vpack.c.bf16 %v1609_v42, %v1603_v43  ;;  %8799 = vmatprep.mubr.msk.f32.mxu0 %vm997_vm0, %v972_v46  ;;  %2232 = vmatmul.mubr.f32.gmra.mrb[34].mxu1 %v12818_v6  ;;  %v11461_v43 = vld [vmem:[%s11864_s1 + $0x90] sm:$0xff]  ;;  %v976_v46 = vmul.f32 %v11462_v45, %v16602_v5 }
 0x1b6   : > { %8830 = vmatprep.mubr.msk.f32.mxu1 %vm997_vm0, %v12823_v37  ;;  %v973_v4 = vmul.f32 %v11461_v43, %v16601_v38 }
 0x1b7   : > { %v1613_v15 = vpop.f32.mrb[78].mxu0  ;;  %10748 = vmatprep.subr.bf16.mxu1 %v10747_v48  ;;  %v11464_v48 = vld [vmem:[%s11864_s1 + $0xb8] sm:$0xff] }
 0x1b8   : > { %v1615_v2 = vpop.f32.mrb[79].mxu0  ;;  %1930 = vmatmul.mubr.f32.gmra.mrb[184].mxu0 %v971_v13  ;;  %10750 = vmatpush1.bf16.msra.mxu1 %v10749_v54  ;;  %v11463_v54 = vld [vmem:[%s11864_s1 + $0xa0] sm:$0xff]  ;;  %v978_v5 = vmul.f32 %v11464_v48, %v16604_v29 }
 0x1b9   : > { %8800 = vmatprep.mubr.msk.f32.mxu0 %vm997_vm0, %v974_v56  ;;  %2238 = vmatmul.mubr.f32.gmra.mrb[36].mxu1 %v12836_v59  ;;  %v975_v13 = vmul.f32 %v11463_v54, %v16603_v27  ;;  %v11466_v27 = vld [vmem:[%s11864_s1 + $0xc8] sm:$0xff]  ;;  %v11467_v29 = vld [vmem:[%s11864_s1 + $0xc0] sm:$0xff] }
 0x1ba   : > { %8831 = vmatprep.mubr.msk.f32.mxu1 %vm997_vm0, %v12347_v61  ;;  %v11465_v61 = vld [vmem:[%s11864_s1 + $0xb0] sm:$0xff]  ;;  %v979_v45 = vmul.f32 %v11467_v29, %v16607_v17 }
 0x1bb   : > { %v1619_v50 = vpop.f32.mrb[80].mxu0 }
 0x1bc   : > { %v10753_v42 = vpack.c.bf16 %v1619_v50, %v1613_v15  ;;  %v1621_v39 = vpop.f32.mrb[81].mxu0  ;;  %1936 = vmatmul.mubr.f32.gmra.mrb[186].mxu0 %v973_v4  ;;  %v977_v15 = vmul.f32 %v11465_v61, %v16605_v12  ;;  %v11468_v12 = vld [vmem:[%s11864_s1 + $0xd8] sm:$0xff] }
 0x1bd   : > { %v10751_v38 = vpack.c.bf16 %v1621_v39, %v1615_v2  ;;  %8801 = vmatprep.mubr.msk.f32.mxu0 %vm997_vm0, %v976_v46  ;;  %v980_v2 = vmul.f32 %v11466_v27, %v16606_v14  ;;  %v982_v46 = vmul.f32 %v11468_v12, %v16608_v57  ;;  %v11469_v39 = vld [vmem:[%s11864_s1 + $0xd0] sm:$0xff]  ;;  %v11470_v57 = vld [vmem:[%s11864_s1 + $0xe8] sm:$0xff] }
 0x1be   : > { %v981_v54 = vmul.f32 %v11469_v39, %v16609_v41  ;;  %v11471_v41 = vld [vmem:[%s11864_s1 + $0xe0] sm:$0xff]  ;;  %v11477_v12 = vld [vmem:[%s11864_s1 + $0x108] sm:$0xff] }
 0x1bf   : > { %v1625_v52 = vpop.f32.mrb[82].mxu0  ;;  %10752 = vmatprep.subr.bf16.mxu1 %v10751_v38  ;;  %v11479_v39 = vld [vmem:[%s11864_s1 + $0x100] sm:$0xff] }
 0x1c0   : > { %v1627_v56 = vpop.f32.mrb[83].mxu0  ;;  %1942 = vmatmul.mubr.f32.gmra.mrb[188].mxu0 %v975_v13  ;;  %10754 = vmatpush1.bf16.msra.mxu1 %v10753_v42  ;;  %v984_v13 = vmul.f32 %v11470_v57, %v16610_v23  ;;  %v11473_v23 = vld [vmem:[%s11864_s1 + $0xf8] sm:$0xff] }
 0x1c1   : > { %2284 = vmatprep.subr.mxu1 %v1627_v56  ;;  %8802 = vmatprep.mubr.msk.f32.mxu0 %vm997_vm0, %v978_v5  ;;  %v11472_v5 = vld [vmem:[%s12126_s2 + $0xe0] sm:$0xff]  ;;  %v11474_v56 = vld [vmem:[%s12126_s2 + $0xf8] sm:$0xff] }
 0x1c2   : > { %v986_v61 = vmul.f32 %v11474_v56, %v11473_v23  ;;  %v11481_v57 = vld [vmem:[%s11864_s1 + $0x118] sm:$0xff]  ;;  %v11484_v23 = vld [vmem:[%s12126_s2 + $0x110] sm:$0xff] }
 0x1c3   : > { %v1631_v43 = vpop.f32.mrb[84].mxu0 }
 0x1c4   : > { %v1633_v4 = vpop.f32.mrb[85].mxu0  ;;  %1948 = vmatmul.mubr.f32.gmra.mrb[190].mxu0 %v977_v15  ;;  %2285 = vmatpush1.msra.mxu1 %v1625_v52  ;;  %v983_v52 = vmul.f32 %v11472_v5, %v11471_v41 }
 0x1c5   : > { %2309 = vmatmul.mubr.f32.vlgmr.msra.gmra.mrb[38].mxu1 %v12508_v33  ;;  %8803 = vmatprep.mubr.msk.f32.mxu0 %vm997_vm0, %v980_v2 }
 0x1c6   : > { %8832 = vmatprep.mubr.msk.f32.mxu1 %vm997_vm0, %v12513_v34 }
 0x1c7   : > { %v1637_v14 = vpop.f32.mrb[86].mxu0 }
 0x1c8   : > { %v10757_v50 = vpack.c.bf16 %v1637_v14, %v1631_v43  ;;  %v1639_v42 = vpop.f32.mrb[87].mxu0  ;;  %1954 = vmatmul.mubr.f32.gmra.mrb[192].mxu0 %v979_v45  ;;  %v11475_v43 = vld [vmem:[%s11864_s1 + $0xf0] sm:$0xff] }
 0x1c9   : > { %v10755_v17 = vpack.c.bf16 %v1639_v42, %v1633_v4  ;;  %2315 = vmatmul.mubr.f32.gmra.mrb[40].mxu1 %v12526_v19  ;;  %8804 = vmatprep.mubr.msk.f32.mxu0 %vm997_vm0, %v982_v46  ;;  %v11476_v4 = vld [vmem:[%s12126_s2 + $0xf0] sm:$0xff]  ;;  %v11478_v46 = vld [vmem:[%s12126_s2 + $0x108] sm:$0xff] }
 0x1ca   : > { %8833 = vmatprep.mubr.msk.f32.mxu1 %vm997_vm0, %v12531_v31  ;;  %v985_v29 = vmul.f32 %v11476_v4, %v11475_v43  ;;  %v988_v14 = vmul.f32 %v11478_v46, %v11477_v12  ;;  %v11489_v46 = vld [vmem:[%s11864_s1 + $0x138] sm:$0xff] }
 0x1cb   : > { %v1643_v38 = vpop.f32.mrb[88].mxu0  ;;  %10756 = vmatprep.subr.bf16.mxu1 %v10755_v17 }
 0x1cc   : > { %v1645_v48 = vpop.f32.mrb[89].mxu0  ;;  %1960 = vmatmul.mubr.f32.gmra.mrb[194].mxu0 %v981_v54  ;;  %10758 = vmatpush1.bf16.msra.mxu1 %v10757_v50  ;;  %v11480_v54 = vld [vmem:[%s12126_s2 + $0x100] sm:$0xff] }
 0x1cd   : > { %2321 = vmatmul.mubr.f32.gmra.mrb[42].mxu1 %v12544_v25  ;;  %8805 = vmatprep.mubr.msk.f32.mxu0 %vm997_vm0, %v984_v13  ;;  %v987_v17 = vmul.f32 %v11480_v54, %v11479_v39  ;;  %v11482_v13 = vld [vmem:[%s12126_s2 + $0x118] sm:$0xff] }
 0x1ce   : > { %8834 = vmatprep.mubr.msk.f32.mxu1 %vm997_vm0, %v12549_v26 }
 0x1cf   : > { %v1649_v15 = vpop.f32.mrb[90].mxu0 }
 0x1d0   : > { %v10761_v27 = vpack.c.bf16 %v1649_v15, %v1643_v38  ;;  %v1651_v2 = vpop.f32.mrb[91].mxu0  ;;  %1966 = vmatmul.mubr.f32.gmra.mrb[196].mxu0 %v983_v52  ;;  %v990_v38 = vmul.f32 %v11482_v13, %v11481_v57  ;;  %v11483_v52 = vld [vmem:[%s11864_s1 + $0x110] sm:$0xff]  ;;  %v11485_v15 = vld [vmem:[%s11864_s1 + $0x128] sm:$0xff] }
 0x1d1   : > { %v10759_v45 = vpack.c.bf16 %v1651_v2, %v1645_v48  ;;  %2327 = vmatmul.mubr.f32.gmra.mrb[44].mxu1 %v12562_v10  ;;  %8806 = vmatprep.mubr.msk.f32.mxu0 %vm997_vm0, %v986_v61  ;;  %v989_v56 = vmul.f32 %v11484_v23, %v11483_v52  ;;  %v11492_v57 = vld [vmem:[%s12126_s2 + $0x130] sm:$0xff] }
 0x1d2   : > { %8835 = vmatprep.mubr.msk.f32.mxu1 %vm997_vm0, %v12567_v30  ;;  %v16623_v52 = vld [vmem:[#allocation34_spill] sm:$0xff] }
 0x1d3   : > { %v1655_v50 = vpop.f32.mrb[92].mxu0  ;;  %10760 = vmatprep.subr.bf16.mxu1 %v10759_v45  ;;  %v11488_v45 = vld [vmem:[%s12126_s2 + $0x120] sm:$0xff]  ;;  %v995_v23 = vmul.f32 %v12648_v36, %v16623_v52 }
 0x1d4   : > { %v1657_v42 = vpop.f32.mrb[93].mxu0  ;;  %1972 = vmatmul.mubr.f32.gmra.mrb[198].mxu0 %v985_v29  ;;  %10762 = vmatpush1.bf16.msra.mxu1 %v10761_v27  ;;  %v11486_v27 = vld [vmem:[%s12126_s2 + $0x128] sm:$0xff]  ;;  %v11487_v29 = vld [vmem:[%s11864_s1 + $0x120] sm:$0xff] }
 0x1d5   : > { %2333 = vmatmul.mubr.f32.gmra.mrb[46].mxu1 %v12580_v60  ;;  %8807 = vmatprep.mubr.msk.f32.mxu0 %vm997_vm0, %v988_v14  ;;  %v992_v2 = vmul.f32 %v11486_v27, %v11485_v15  ;;  %v991_v12 = vmul.f32 %v11488_v45, %v11487_v29  ;;  %v11490_v14 = vld [vmem:[%s12126_s2 + $0x138] sm:$0xff] }
 0x1d6   : > { %8836 = vmatprep.mubr.msk.f32.mxu1 %vm997_vm0, %v12585_v22 }
 0x1d7   : > { %v1661_v48 = vpop.f32.mrb[94].mxu0 }
 0x1d8   : > { %v10765_v41 = vpack.c.bf16 %v1661_v48, %v1655_v50  ;;  %v1663_v5 = vpop.f32.mrb[95].mxu0  ;;  %1978 = vmatmul.mubr.f32.gmra.mrb[200].mxu0 %v987_v17  ;;  %v994_v50 = vmul.f32 %v11490_v14, %v11489_v46  ;;  %v11491_v17 = vld [vmem:[%s11864_s1 + $0x130] sm:$0xff]  ;;  %v996_v48 = vmul.f32 %v16620_v35, %v12119_v40 }
 0x1d9   : > { %v10763_v61 = vpack.c.bf16 %v1663_v5, %v1657_v42  ;;  %2339 = vmatmul.mubr.f32.gmra.mrb[48].mxu1 %v12598_v8  ;;  %8808 = vmatprep.mubr.msk.f32.mxu0 %vm997_vm0, %v990_v38  ;;  %v993_v13 = vmul.f32 %v11492_v57, %v11491_v17 }
 0x1da   : > { %8837 = vmatprep.mubr.msk.f32.mxu1 %vm997_vm0, %v12603_v9 }
 0x1db   : > { %v1667_v43 = vpop.f32.mrb[96].mxu0  ;;  %10764 = vmatprep.subr.bf16.mxu1 %v10763_v61 }
 0x1dc   : > { %v1669_v4 = vpop.f32.mrb[97].mxu0  ;;  %1984 = vmatmul.mubr.f32.gmra.mrb[202].mxu0 %v989_v56  ;;  %10766 = vmatpush1.bf16.msra.mxu1 %v10765_v41  ;;  %v16624_v56 = vld [vmem:[#allocation9_spill] sm:$0xff] }
 0x1dd   : > { %2345 = vmatmul.mubr.f32.gmra.mrb[50].mxu1 %v12616_v20  ;;  %8809 = vmatprep.mubr.msk.f32.mxu0 %vm997_vm0, %v992_v2 }
 0x1de   : > { %8838 = vmatprep.mubr.msk.f32.mxu1 %vm997_vm0, %v12621_v3 }
 0x1df   : > { %v1673_v42 = vpop.f32.mrb[98].mxu0 }
 0x1e0   : > { %v10769_v39 = vpack.c.bf16 %v1673_v42, %v1667_v43  ;;  %v1675_v54 = vpop.f32.mrb[99].mxu0  ;;  %1990 = vmatmul.mubr.f32.gmra.mrb[204].mxu0 %v991_v12 }
 0x1e1   : > { %v10767_v38 = vpack.c.bf16 %v1675_v54, %v1669_v4  ;;  %2351 = vmatmul.mubr.f32.gmra.mrb[52].mxu1 %v12634_v28  ;;  %8810 = vmatprep.mubr.msk.f32.mxu0 %vm997_vm0, %v994_v50 }
 0x1e2   : > { %8839 = vmatprep.mubr.msk.f32.mxu1 %vm997_vm0, %v12639_v62 }
 0x1e3   : > { %v1679_v41 = vpop.f32.mrb[100].mxu0  ;;  %10768 = vmatprep.subr.bf16.mxu1 %v10767_v38 }
 0x1e4   : > { %v1681_v5 = vpop.f32.mrb[101].mxu0  ;;  %1996 = vmatmul.mubr.f32.gmra.mrb[206].mxu0 %v993_v13  ;;  %10770 = vmatpush1.bf16.msra.mxu1 %v10769_v39 }
 0x1e5   : > { %2357 = vmatmul.mubr.f32.gmra.mrb[54].mxu1 %v12656_v58  ;;  %8811 = vmatprep.mubr.msk.f32.mxu0 %vm997_vm0, %v996_v48 }
 0x1e6   : > { %8840 = vmatprep.mubr.msk.f32.mxu1 %vm997_vm0, %v16624_v56 }
 0x1e7   : > { %v1685_v61 = vpop.f32.mrb[102].mxu0 }
 0x1e8   : > { %v10773_v15 = vpack.c.bf16 %v1685_v61, %v1679_v41  ;;  %v1687_v27 = vpop.f32.mrb[103].mxu0  ;;  %2002 = vmatmul.mubr.f32.gmra.mrb[208].mxu0 %v995_v23 }
 0x1e9   : > { %v10771_v2 = vpack.c.bf16 %v1687_v27, %v1681_v5  ;;  %2363 = vmatmul.mubr.f32.gmra.mrb[56].mxu1 %v12674_v16 }
 0x1ea   : > { %8841 = vmatprep.mubr.msk.f32.mxu1 %vm997_vm0, %v12679_v11 }
 0x1eb   : > { %v1691_v43 = vpop.f32.mrb[104].mxu0  ;;  %10772 = vmatprep.subr.bf16.mxu1 %v10771_v2 }
 0x1ec   : > { %v1693_v36 = vpop.f32.mrb[105].mxu0  ;;  %10774 = vmatpush1.bf16.msra.mxu1 %v10773_v15 }
 0x1ed   : > { %2369 = vmatmul.mubr.f32.gmra.mrb[58].mxu1 %v12692_v21 }
 0x1ee   : > { %8842 = vmatprep.mubr.msk.f32.mxu1 %vm997_vm0, %v12697_v63 }
 0x1ef   : > { %v1697_v4 = vpop.f32.mrb[106].mxu0 }
 0x1f0   : > { %v10777_v29 = vpack.c.bf16 %v1697_v4, %v1691_v43  ;;  %v1699_v45 = vpop.f32.mrb[107].mxu0 }
 0x1f1   : > { %v10775_v12 = vpack.c.bf16 %v1699_v45, %v1693_v36  ;;  %2375 = vmatmul.mubr.f32.gmra.mrb[60].mxu1 %v12710_v32  ;;  %v12957_v36 = vld [vmem:[%s16595_s26 + $0x8] sm:$0xff] }
 0x1f2   : > { %8843 = vmatprep.mubr.msk.f32.mxu1 %vm997_vm0, %v12715_v1 }
 0x1f3   : > { %v1703_v46 = vpop.f32.mrb[108].mxu0  ;;  %10776 = vmatprep.subr.bf16.mxu1 %v10775_v12 }
 0x1f4   : > { %v1705_v14 = vpop.f32.mrb[109].mxu0  ;;  %10778 = vmatpush1.bf16.msra.mxu1 %v10777_v29 }
 0x1f5   : > { %2381 = vmatmul.mubr.f32.gmra.mrb[62].mxu1 %v12728_v7 }
 0x1f6   : > { %8844 = vmatprep.mubr.msk.f32.mxu1 %vm997_vm0, %v12733_v47 }
 0x1f7   : > { %v1709_v50 = vpop.f32.mrb[110].mxu0 }
 0x1f8   : > { %v10781_v42 = vpack.c.bf16 %v1709_v50, %v1703_v46  ;;  %v1711_v39 = vpop.f32.mrb[111].mxu0 }
 0x1f9   : > { %v10779_v54 = vpack.c.bf16 %v1711_v39, %v1705_v14  ;;  %2387 = vmatmul.mubr.f32.gmra.mrb[64].mxu1 %v12746_v24 }
 0x1fa   : > { %8845 = vmatprep.mubr.msk.f32.mxu1 %vm997_vm0, %v12751_v49 }
 0x1fb   : > { %v1715_v17 = vpop.f32.mrb[112].mxu0  ;;  %10780 = vmatprep.subr.bf16.mxu1 %v10779_v54 }
 0x1fc   : > { %v1717_v57 = vpop.f32.mrb[113].mxu0  ;;  %10782 = vmatpush1.bf16.msra.mxu1 %v10781_v42 }
 0x1fd   : > { %2393 = vmatmul.mubr.f32.gmra.mrb[66].mxu1 %v12764_v0 }
 0x1fe   : > { %8846 = vmatprep.mubr.msk.f32.mxu1 %vm997_vm0, %v12769_v51 }
 0x1ff   : > { %v1721_v13 = vpop.f32.mrb[114].mxu0 }
 0x200   : > { %v10785_v38 = vpack.c.bf16 %v1721_v13, %v1715_v17  ;;  %v1723_v48 = vpop.f32.mrb[115].mxu0 }
 0x201   : > { %v10783_v41 = vpack.c.bf16 %v1723_v48, %v1717_v57  ;;  %2399 = vmatmul.mubr.f32.gmra.mrb[68].mxu1 %v12782_v18 }
 0x202   : > { %8847 = vmatprep.mubr.msk.f32.mxu1 %vm997_vm0, %v12787_v53 }
 0x203   : > { %v1727_v5 = vpop.f32.mrb[116].mxu0  ;;  %10784 = vmatprep.subr.bf16.mxu1 %v10783_v41 }
 0x204   : > { %v1729_v52 = vpop.f32.mrb[117].mxu0  ;;  %10786 = vmatpush1.bf16.msra.mxu1 %v10785_v38 }
 0x205   : > { %2405 = vmatmul.mubr.f32.gmra.mrb[70].mxu1 %v12800_v44 }
 0x206   : > { %8848 = vmatprep.mubr.msk.f32.mxu1 %vm997_vm0, %v12805_v55 }
 0x207   : > { %v1733_v23 = vpop.f32.mrb[118].mxu0 }
 0x208   : > { %v10789_v61 = vpack.c.bf16 %v1733_v23, %v1727_v5  ;;  %v1735_v15 = vpop.f32.mrb[119].mxu0 }
 0x209   : > { %v10787_v27 = vpack.c.bf16 %v1735_v15, %v1729_v52  ;;  %2411 = vmatmul.mubr.f32.gmra.mrb[72].mxu1 %v12818_v6 }
 0x20a   : > { %8849 = vmatprep.mubr.msk.f32.mxu1 %vm997_vm0, %v12823_v37 }
 0x20b   : > { %v1739_v2 = vpop.f32.mrb[120].mxu0  ;;  %10788 = vmatprep.subr.bf16.mxu1 %v10787_v27 }
 0x20c   : > { %v1741_v43 = vpop.f32.mrb[121].mxu0  ;;  %10790 = vmatpush1.bf16.msra.mxu1 %v10789_v61 }
 0x20d   : > { %2417 = vmatmul.mubr.f32.gmra.mrb[74].mxu1 %v12836_v59 }
 0x20e   : > { %8850 = vmatprep.mubr.msk.f32.mxu1 %vm997_vm0, %v12957_v36 }
 0x20f   : > { %v1745_v4 = vpop.f32.mrb[122].mxu0 }
 0x210   : > { %v10793_v29 = vpack.c.bf16 %v1745_v4, %v1739_v2  ;;  %v1747_v45 = vpop.f32.mrb[123].mxu0 }
 0x211   : > { %v10791_v12 = vpack.c.bf16 %v1747_v45, %v1741_v43 }
 0x213   : > { %v1751_v46 = vpop.f32.mrb[124].mxu0  ;;  %10792 = vmatprep.subr.bf16.mxu1 %v10791_v12 }
 0x214   : > { %v1753_v14 = vpop.f32.mrb[125].mxu0  ;;  %10794 = vmatpush1.bf16.msra.mxu1 %v10793_v29 }
 0x215   : > { %2463 = vmatprep.subr.mxu1 %v1753_v14 }
 0x217   : > { %v1757_v50 = vpop.f32.mrb[126].mxu0 }
 0x218   : > { %v1759_v42 = vpop.f32.mrb[127].mxu0  ;;  %2464 = vmatpush1.msra.mxu1 %v1751_v46 }
 0x219   : > { %2488 = vmatmul.mubr.f32.vlgmr.msra.gmra.mrb[76].mxu1 %v12508_v33 }
 0x21a   : > { %8851 = vmatprep.mubr.msk.f32.mxu1 %vm997_vm0, %v12513_v34 }
 0x21b   : > { %v1763_v39 = vpop.f32.mrb[128].mxu0 }
 0x21c   : > { %v10797_v54 = vpack.c.bf16 %v1763_v39, %v1757_v50  ;;  %v1765_v17 = vpop.f32.mrb[129].mxu0 }
 0x21d   : > { %v10795_v57 = vpack.c.bf16 %v1765_v17, %v1759_v42  ;;  %2494 = vmatmul.mubr.f32.gmra.mrb[78].mxu1 %v12526_v19 }
 0x21e   : > { %8852 = vmatprep.mubr.msk.f32.mxu1 %vm997_vm0, %v12531_v31 }
 0x21f   : > { %v1769_v13 = vpop.f32.mrb[130].mxu0  ;;  %10796 = vmatprep.subr.bf16.mxu1 %v10795_v57 }
 0x220   : > { %v1771_v38 = vpop.f32.mrb[131].mxu0  ;;  %10798 = vmatpush1.bf16.msra.mxu1 %v10797_v54 }
 0x221   : > { %2500 = vmatmul.mubr.f32.gmra.mrb[80].mxu1 %v12544_v25 }
 0x222   : > { %8853 = vmatprep.mubr.msk.f32.mxu1 %vm997_vm0, %v12549_v26 }
 0x223   : > { %v1775_v33 = vpop.f32.mrb[132].mxu0 }
 0x224   : > { %v10801_v34 = vpack.c.bf16 %v1775_v33, %v1769_v13  ;;  %v1777_v48 = vpop.f32.mrb[133].mxu0 }
 0x225   : > { %v10799_v41 = vpack.c.bf16 %v1777_v48, %v1771_v38  ;;  %2506 = vmatmul.mubr.f32.gmra.mrb[82].mxu1 %v12562_v10 }
 0x226   : > { %8854 = vmatprep.mubr.msk.f32.mxu1 %vm997_vm0, %v12567_v30 }
 0x227   : > { %v1781_v19 = vpop.f32.mrb[134].mxu0  ;;  %10800 = vmatprep.subr.bf16.mxu1 %v10799_v41 }
 0x228   : > { %v1783_v31 = vpop.f32.mrb[135].mxu0  ;;  %10802 = vmatpush1.bf16.msra.mxu1 %v10801_v34 }
 0x229   : > { %2512 = vmatmul.mubr.f32.gmra.mrb[84].mxu1 %v12580_v60 }
 0x22a   : > { %8855 = vmatprep.mubr.msk.f32.mxu1 %vm997_vm0, %v12585_v22 }
 0x22b   : > { %v1787_v25 = vpop.f32.mrb[136].mxu0 }
 0x22c   : > { %v10805_v26 = vpack.c.bf16 %v1787_v25, %v1781_v19  ;;  %v1789_v5 = vpop.f32.mrb[137].mxu0 }
 0x22d   : > { %v10803_v52 = vpack.c.bf16 %v1789_v5, %v1783_v31  ;;  %2518 = vmatmul.mubr.f32.gmra.mrb[86].mxu1 %v12598_v8 }
 0x22e   : > { %8856 = vmatprep.mubr.msk.f32.mxu1 %vm997_vm0, %v12603_v9 }
 0x22f   : > { %v1793_v10 = vpop.f32.mrb[138].mxu0  ;;  %10804 = vmatprep.subr.bf16.mxu1 %v10803_v52 }
 0x230   : > { %v1795_v30 = vpop.f32.mrb[139].mxu0  ;;  %10806 = vmatpush1.bf16.msra.mxu1 %v10805_v26 }
 0x231   : > { %2524 = vmatmul.mubr.f32.gmra.mrb[88].mxu1 %v12616_v20 }
 0x232   : > { %8857 = vmatprep.mubr.msk.f32.mxu1 %vm997_vm0, %v12621_v3 }
 0x233   : > { %v1799_v60 = vpop.f32.mrb[140].mxu0 }
 0x234   : > { %v10809_v22 = vpack.c.bf16 %v1799_v60, %v1793_v10  ;;  %v1801_v23 = vpop.f32.mrb[141].mxu0 }
 0x235   : > { %v10807_v61 = vpack.c.bf16 %v1801_v23, %v1795_v30  ;;  %2530 = vmatmul.mubr.f32.gmra.mrb[90].mxu1 %v12634_v28 }
 0x236   : > { %8858 = vmatprep.mubr.msk.f32.mxu1 %vm997_vm0, %v12639_v62 }
 0x237   : > { %v1805_v8 = vpop.f32.mrb[142].mxu0  ;;  %10808 = vmatprep.subr.bf16.mxu1 %v10807_v61 }
 0x238   : > { %v1807_v9 = vpop.f32.mrb[143].mxu0  ;;  %10810 = vmatpush1.bf16.msra.mxu1 %v10809_v22 }
 0x239   : > { %2536 = vmatmul.mubr.f32.gmra.mrb[92].mxu1 %v12656_v58 }
 0x23a   : > { %8859 = vmatprep.mubr.msk.f32.mxu1 %vm997_vm0, %v16624_v56 }
 0x23b   : > { %v1811_v20 = vpop.f32.mrb[144].mxu0 }
 0x23c   : > { %v10813_v3 = vpack.c.bf16 %v1811_v20, %v1805_v8  ;;  %v1813_v15 = vpop.f32.mrb[145].mxu0 }
 0x23d   : > { %v10811_v27 = vpack.c.bf16 %v1813_v15, %v1807_v9  ;;  %2542 = vmatmul.mubr.f32.gmra.mrb[94].mxu1 %v12674_v16  ;;  %v16465_v15 = vmov 0.0|0.0  }
 0x23e   : > { %8860 = vmatprep.mubr.msk.f32.mxu1 %vm997_vm0, %v12679_v11  ;;  %10905 = vmatprep.subr.bf16.mxu0 %v16465_v15  ;;  %v13140_v15 = vld [vmem:[%s16595_s26 + $0x58] sm:$0xff] }
 0x23f   : > { %v1817_v28 = vpop.f32.mrb[146].mxu0  ;;  %10812 = vmatprep.subr.bf16.mxu1 %v10811_v27  ;;  %16629 = vst [vmem:[#allocation14_spill] sm:$0xff] %v13140_v15 }
 0x240   : > { %v1819_v62 = vpop.f32.mrb[147].mxu0  ;;  %10814 = vmatpush1.bf16.msra.mxu1 %v10813_v3 }
 0x241   : > { %2548 = vmatmul.mubr.f32.gmra.mrb[96].mxu1 %v12692_v21 }
 0x242   : > { %8861 = vmatprep.mubr.msk.f32.mxu1 %vm997_vm0, %v12697_v63 }
 0x243   : > { %v1823_v58 = vpop.f32.mrb[148].mxu0 }
 0x244   : > { %v10817_v56 = vpack.c.bf16 %v1823_v58, %v1817_v28  ;;  %v1825_v2 = vpop.f32.mrb[149].mxu0  ;;  %v12994_v43 = vpop.f32.mrb[0].mxu1 }
 0x245   : > { %v10815_v4 = vpack.c.bf16 %v1825_v2, %v1819_v62  ;;  %2554 = vmatmul.mubr.f32.gmra.mrb[98].mxu1 %v12710_v32  ;;  %v12997_v16 = vpop.f32.mrb[1].mxu1 }
 0x246   : > { %8862 = vmatprep.mubr.msk.f32.mxu1 %vm997_vm0, %v12715_v1 }
 0x247   : > { %v1829_v11 = vpop.f32.mrb[150].mxu0  ;;  %10816 = vmatprep.subr.bf16.mxu1 %v10815_v4 }
 0x248   : > { %v1831_v29 = vpop.f32.mrb[151].mxu0  ;;  %10818 = vmatpush1.bf16.msra.mxu1 %v10817_v56  ;;  %v13001_v45 = vpop.f32.mrb[2].mxu1 }
 0x249   : > { %2560 = vmatmul.mubr.f32.gmra.mrb[100].mxu1 %v12728_v7  ;;  %v13004_v12 = vpop.f32.mrb[3].mxu1 }
 0x24a   : > { %8863 = vmatprep.mubr.msk.f32.mxu1 %vm997_vm0, %v12733_v47 }
 0x24b   : > { %v1835_v46 = vpop.f32.mrb[152].mxu0 }
 0x24c   : > { %v10821_v14 = vpack.c.bf16 %v1835_v46, %v1829_v11  ;;  %v1837_v50 = vpop.f32.mrb[153].mxu0  ;;  %v13008_v42 = vpop.f32.mrb[4].mxu1 }
 0x24d   : > { %v10819_v39 = vpack.c.bf16 %v1837_v50, %v1831_v29  ;;  %2566 = vmatmul.mubr.f32.gmra.mrb[102].mxu1 %v12746_v24  ;;  %v13011_v54 = vpop.f32.mrb[5].mxu1 }
 0x24e   : > { %8864 = vmatprep.mubr.msk.f32.mxu1 %vm997_vm0, %v12751_v49 }
 0x24f   : > { %v1841_v17 = vpop.f32.mrb[154].mxu0  ;;  %10820 = vmatprep.subr.bf16.mxu1 %v10819_v39 }
 0x250   : > { %v1843_v57 = vpop.f32.mrb[155].mxu0  ;;  %10822 = vmatpush1.bf16.msra.mxu1 %v10821_v14  ;;  %v13015_v13 = vpop.f32.mrb[6].mxu1 }
 0x251   : > { %2572 = vmatmul.mubr.f32.gmra.mrb[104].mxu1 %v12764_v0  ;;  %v13018_v38 = vpop.f32.mrb[7].mxu1 }
 0x252   : > { %8865 = vmatprep.mubr.msk.f32.mxu1 %vm997_vm0, %v12769_v51 }
 0x253   : > { %v1847_v33 = vpop.f32.mrb[156].mxu0 }
 0x254   : > { %v10825_v34 = vpack.c.bf16 %v1847_v33, %v1841_v17  ;;  %v1849_v48 = vpop.f32.mrb[157].mxu0  ;;  %v13022_v41 = vpop.f32.mrb[8].mxu1  ;;  %v13064_v17 = vld [vmem:[%s16595_s26] sm:$0xff]  ;;  %v13072_v33 = vld [vmem:[%s16595_s26 + $0x18] sm:$0xff] }
 0x255   : > { %v10823_v19 = vpack.c.bf16 %v1849_v48, %v1843_v57  ;;  %2578 = vmatmul.mubr.f32.gmra.mrb[106].mxu1 %v12782_v18  ;;  %v13025_v31 = vpop.f32.mrb[9].mxu1 }
 0x256   : > { %8866 = vmatprep.mubr.msk.f32.mxu1 %vm997_vm0, %v12787_v53 }
 0x257   : > { %v1853_v25 = vpop.f32.mrb[158].mxu0  ;;  %10824 = vmatprep.subr.bf16.mxu1 %v10823_v19 }
 0x258   : > { %v1855_v26 = vpop.f32.mrb[159].mxu0  ;;  %10826 = vmatpush1.bf16.msra.mxu1 %v10825_v34  ;;  %v13029_v5 = vpop.f32.mrb[10].mxu1 }
 0x259   : > { %2584 = vmatmul.mubr.f32.gmra.mrb[108].mxu1 %v12800_v44  ;;  %v13032_v52 = vpop.f32.mrb[11].mxu1 }
 0x25a   : > { %8867 = vmatprep.mubr.msk.f32.mxu1 %vm997_vm0, %v12805_v55 }
 0x25b   : > { %v1859_v10 = vpop.f32.mrb[160].mxu0 }
 0x25c   : > { %v10829_v30 = vpack.c.bf16 %v1859_v10, %v1853_v25  ;;  %v1861_v60 = vpop.f32.mrb[161].mxu0  ;;  %v13036_v22 = vpop.f32.mrb[12].mxu1  ;;  %v13081_v10 = vld [vmem:[%s16595_s26 + $0x10] sm:$0xff] }
 0x25d   : > { %v10827_v23 = vpack.c.bf16 %v1861_v60, %v1855_v26  ;;  %2590 = vmatmul.mubr.f32.gmra.mrb[110].mxu1 %v12818_v6  ;;  %v13039_v61 = vpop.f32.mrb[13].mxu1  ;;  %v13089_v60 = vld [vmem:[%s16595_s26 + $0x28] sm:$0xff] }
 0x25e   : > { %8868 = vmatprep.mubr.msk.f32.mxu1 %vm997_vm0, %v12823_v37 }
 0x25f   : > { %v1865_v8 = vpop.f32.mrb[162].mxu0  ;;  %10828 = vmatprep.subr.bf16.mxu1 %v10827_v23 }
 0x260   : > { %v1867_v9 = vpop.f32.mrb[163].mxu0  ;;  %10830 = vmatpush1.bf16.msra.mxu1 %v10829_v30  ;;  %v13043_v20 = vpop.f32.mrb[14].mxu1 }
 0x261   : > { %2596 = vmatmul.mubr.f32.gmra.mrb[112].mxu1 %v12836_v59  ;;  %v13046_v3 = vpop.f32.mrb[15].mxu1 }
 0x262   : > { %8869 = vmatprep.mubr.msk.f32.mxu1 %vm997_vm0, %v12957_v36 }
 0x263   : > { %v1871_v27 = vpop.f32.mrb[164].mxu0 }
 0x264   : > { %v10833_v28 = vpack.c.bf16 %v1871_v27, %v1865_v8  ;;  %v1873_v62 = vpop.f32.mrb[165].mxu0  ;;  %v13051_v58 = vpop.f32.mrb[16].mxu1  ;;  %v13098_v27 = vld [vmem:[%s16595_s26 + $0x20] sm:$0xff] }
 0x265   : > { %v10831_v56 = vpack.c.bf16 %v1873_v62, %v1867_v9  ;;  %v13053_v2 = vpop.f32.mrb[17].mxu1  ;;  %v13106_v62 = vld [vmem:[%s16595_s26 + $0x38] sm:$0xff] }
 0x267   : > { %v1877_v4 = vpop.f32.mrb[166].mxu0  ;;  %10832 = vmatprep.subr.bf16.mxu1 %v10831_v56 }
 0x268   : > { %v1879_v11 = vpop.f32.mrb[167].mxu0  ;;  %10834 = vmatpush1.bf16.msra.mxu1 %v10833_v28  ;;  %v13055_v29 = vpop.f32.mrb[18].mxu1 }
 0x269   : > { %2642 = vmatprep.subr.mxu1 %v1879_v11  ;;  %v13057_v46 = vpop.f32.mrb[19].mxu1 }
 0x26b   : > { %v1883_v14 = vpop.f32.mrb[168].mxu0 }
 0x26c   : > { %v1885_v50 = vpop.f32.mrb[169].mxu0  ;;  %2643 = vmatpush1.msra.mxu1 %v1877_v4  ;;  %v13059_v39 = vpop.f32.mrb[20].mxu1 }
 0x26d   : > { %2667 = vmatmul.mubr.f32.vlgmr.msra.gmra.mrb[114].mxu1 %v13064_v17  ;;  %v13067_v57 = vpop.f32.mrb[21].mxu1 }
 0x26e   : > { %8870 = vmatprep.mubr.msk.f32.mxu1 %vm997_vm0, %v13072_v33 }
 0x26f   : > { %v1889_v34 = vpop.f32.mrb[170].mxu0 }
 0x270   : > { %v10837_v48 = vpack.c.bf16 %v1889_v34, %v1883_v14  ;;  %v1891_v19 = vpop.f32.mrb[171].mxu0  ;;  %v13076_v25 = vpop.f32.mrb[22].mxu1  ;;  %v13115_v34 = vld [vmem:[%s16595_s26 + $0x30] sm:$0xff] }
 0x271   : > { %v10835_v26 = vpack.c.bf16 %v1891_v19, %v1885_v50  ;;  %2673 = vmatmul.mubr.f32.gmra.mrb[116].mxu1 %v13081_v10  ;;  %v13084_v30 = vpop.f32.mrb[23].mxu1  ;;  %v13123_v19 = vld [vmem:[%s16595_s26 + $0x48] sm:$0xff] }
 0x272   : > { %8871 = vmatprep.mubr.msk.f32.mxu1 %vm997_vm0, %v13089_v60 }
 0x273   : > { %v1895_v23 = vpop.f32.mrb[172].mxu0  ;;  %10836 = vmatprep.subr.bf16.mxu1 %v10835_v26 }
 0x274   : > { %v1897_v8 = vpop.f32.mrb[173].mxu0  ;;  %10838 = vmatpush1.bf16.msra.mxu1 %v10837_v48  ;;  %v13093_v9 = vpop.f32.mrb[24].mxu1 }
 0x275   : > { %2679 = vmatmul.mubr.f32.gmra.mrb[118].mxu1 %v13098_v27  ;;  %v13101_v28 = vpop.f32.mrb[25].mxu1 }
 0x276   : > { %8872 = vmatprep.mubr.msk.f32.mxu1 %vm997_vm0, %v13106_v62 }
 0x277   : > { %v1901_v56 = vpop.f32.mrb[174].mxu0 }
 0x278   : > { %v10841_v4 = vpack.c.bf16 %v1901_v56, %v1895_v23  ;;  %v1903_v11 = vpop.f32.mrb[175].mxu0  ;;  %v13110_v14 = vpop.f32.mrb[26].mxu1  ;;  %v13132_v56 = vld [vmem:[%s16595_s26 + $0x40] sm:$0xff] }
 0x279   : > { %v10839_v50 = vpack.c.bf16 %v1903_v11, %v1897_v8  ;;  %2685 = vmatmul.mubr.f32.gmra.mrb[120].mxu1 %v13115_v34  ;;  %v13118_v48 = vpop.f32.mrb[27].mxu1  ;;  %16627 = vst [vmem:[#allocation12_spill] sm:$0xff] %v13132_v56 }
 0x27a   : > { %16625 = vst [vmem:[#allocation10_spill] sm:$0xff] %v13118_v48  ;;  %8873 = vmatprep.mubr.msk.f32.mxu1 %vm997_vm0, %v13123_v19  ;;  %v13157_v48 = vld [vmem:[%s16595_s26 + $0x68] sm:$0xff] }
 0x27b   : > { %v1907_v26 = vpop.f32.mrb[176].mxu0  ;;  %10840 = vmatprep.subr.bf16.mxu1 %v10839_v50  ;;  %16633 = vst [vmem:[#allocation18_spill] sm:$0xff] %v13157_v48 }
 0x27c   : > { %v1909_v23 = vpop.f32.mrb[177].mxu0  ;;  %10842 = vmatpush1.bf16.msra.mxu1 %v10841_v4  ;;  %v13127_v8 = vpop.f32.mrb[28].mxu1 }
 0x27d   : > { %16626 = vst [vmem:[#allocation11_spill] sm:$0xff] %v13127_v8  ;;  %2691 = vmatmul.mubr.f32.gmra.mrb[122].mxu1 %v13132_v56  ;;  %v13135_v11 = vpop.f32.mrb[29].mxu1  ;;  %v13149_v56 = vld [vmem:[%s16595_s26 + $0x50] sm:$0xff] }
 0x27e   : > { %16628 = vst [vmem:[#allocation13_spill] sm:$0xff] %v13135_v11  ;;  %8874 = vmatprep.mubr.msk.f32.mxu1 %vm997_vm0, %v13140_v15  ;;  %16631 = vst [vmem:[#allocation16_spill] sm:$0xff] %v13149_v56  ;;  %v13191_v15 = vld [vmem:[%s16595_s26 + $0x88] sm:$0xff] }
 0x27f   : > { %v1913_v4 = vpop.f32.mrb[178].mxu0  ;;  %16641 = vst [vmem:[#allocation26_spill] sm:$0xff] %v13191_v15 }
 0x280   : > { %v10845_v50 = vpack.c.bf16 %v1913_v4, %v1907_v26  ;;  %v1915_v35 = vpop.f32.mrb[179].mxu0  ;;  %v13144_v40 = vpop.f32.mrb[30].mxu1  ;;  %v13166_v4 = vld [vmem:[%s16595_s26 + $0x60] sm:$0xff] }
 0x281   : > { %16630 = vst [vmem:[#allocation15_spill] sm:$0xff] %v13144_v40  ;;  %v10843_v8 = vpack.c.bf16 %v1915_v35, %v1909_v23  ;;  %2697 = vmatmul.mubr.f32.gmra.mrb[124].mxu1 %v13149_v56  ;;  %v13152_v11 = vpop.f32.mrb[31].mxu1  ;;  %16635 = vst [vmem:[#allocation20_spill] sm:$0xff] %v13166_v4  ;;  %v13174_v40 = vld [vmem:[%s16595_s26 + $0x78] sm:$0xff] }
 0x282   : > { %16632 = vst [vmem:[#allocation17_spill] sm:$0xff] %v13152_v11  ;;  %8875 = vmatprep.mubr.msk.f32.mxu1 %vm997_vm0, %v13157_v48  ;;  %16637 = vst [vmem:[#allocation22_spill] sm:$0xff] %v13174_v40 }
 0x283   : > { %v1919_v26 = vpop.f32.mrb[180].mxu0  ;;  %10844 = vmatprep.subr.bf16.mxu1 %v10843_v8 }
 0x284   : > { %v1921_v35 = vpop.f32.mrb[181].mxu0  ;;  %10846 = vmatpush1.bf16.msra.mxu1 %v10845_v50  ;;  %v13161_v23 = vpop.f32.mrb[32].mxu1 }
 0x285   : > { %16634 = vst [vmem:[#allocation19_spill] sm:$0xff] %v13161_v23  ;;  %2703 = vmatmul.mubr.f32.gmra.mrb[126].mxu1 %v13166_v4  ;;  %v13169_v11 = vpop.f32.mrb[33].mxu1  ;;  %v13183_v4 = vld [vmem:[%s16595_s26 + $0x70] sm:$0xff] }
 0x286   : > { %16636 = vst [vmem:[#allocation21_spill] sm:$0xff] %v13169_v11  ;;  %8876 = vmatprep.mubr.msk.f32.mxu1 %vm997_vm0, %v13174_v40  ;;  %16639 = vst [vmem:[#allocation24_spill] sm:$0xff] %v13183_v4 }
 0x287   : > { %v1925_v8 = vpop.f32.mrb[182].mxu0 }
 0x288   : > { %v10849_v50 = vpack.c.bf16 %v1925_v8, %v1919_v26  ;;  %v1927_v23 = vpop.f32.mrb[183].mxu0  ;;  %v13178_v48 = vpop.f32.mrb[34].mxu1  ;;  %v13200_v8 = vld [vmem:[%s16595_s26 + $0x80] sm:$0xff] }
 0x289   : > { %16638 = vst [vmem:[#allocation23_spill] sm:$0xff] %v13178_v48  ;;  %v10847_v56 = vpack.c.bf16 %v1927_v23, %v1921_v35  ;;  %2709 = vmatmul.mubr.f32.gmra.mrb[128].mxu1 %v13183_v4  ;;  %v13186_v11 = vpop.f32.mrb[35].mxu1  ;;  %16643 = vst [vmem:[#allocation28_spill] sm:$0xff] %v13200_v8  ;;  %v13208_v48 = vld [vmem:[%s16595_s26 + $0x98] sm:$0xff]  ;;  %v13215_v4 = vld [vmem:[%s16595_s26 + $0x90] sm:$0xff] }
 0x28a   : > { %16640 = vst [vmem:[#allocation25_spill] sm:$0xff] %v13186_v11  ;;  %8877 = vmatprep.mubr.msk.f32.mxu1 %vm997_vm0, %v13191_v15  ;;  %16645 = vst [vmem:[#allocation30_spill] sm:$0xff] %v13208_v48 }
 0x28b   : > { %v1931_v26 = vpop.f32.mrb[184].mxu0  ;;  %10848 = vmatprep.subr.bf16.mxu1 %v10847_v56  ;;  %16646 = vst [vmem:[#allocation31_spill] sm:$0xff] %v13215_v4 }
 0x28c   : > { %v1933_v35 = vpop.f32.mrb[185].mxu0  ;;  %10850 = vmatpush1.bf16.msra.mxu1 %v10849_v50  ;;  %v13195_v23 = vpop.f32.mrb[36].mxu1 }
 0x28d   : > { %16642 = vst [vmem:[#allocation27_spill] sm:$0xff] %v13195_v23  ;;  %2715 = vmatmul.mubr.f32.gmra.mrb[130].mxu1 %v13200_v8  ;;  %v13203_v11 = vpop.f32.mrb[37].mxu1 }
 0x28e   : > { %16644 = vst [vmem:[#allocation29_spill] sm:$0xff] %v13203_v11  ;;  %8878 = vmatprep.mubr.msk.f32.mxu1 %vm997_vm0, %v13208_v48  ;;  %v13221_v11 = vld [vmem:[%s16595_s26 + $0xa8] sm:$0xff] }
 0x28f   : > { %v1937_v56 = vpop.f32.mrb[186].mxu0 }
 0x290   : > { %v10853_v50 = vpack.c.bf16 %v1937_v56, %v1931_v26  ;;  %v1939_v23 = vpop.f32.mrb[187].mxu0 }
 0x291   : > { %v10851_v15 = vpack.c.bf16 %v1939_v23, %v1933_v35  ;;  %2721 = vmatmul.mubr.f32.gmra.mrb[132].mxu1 %v13215_v4 }
 0x292   : > { %8879 = vmatprep.mubr.msk.f32.mxu1 %vm997_vm0, %v13221_v11 }
 0x293   : > { %v1943_v48 = vpop.f32.mrb[188].mxu0  ;;  %10852 = vmatprep.subr.bf16.mxu1 %v10851_v15 }
 0x294   : > { %v1945_v26 = vpop.f32.mrb[189].mxu0  ;;  %10854 = vmatpush1.bf16.msra.mxu1 %v10853_v50 }
 0x295   : > { %2727 = vmatmul.mubr.f32.gmra.mrb[134].mxu1 %v12692_v21 }
 0x296   : > { %8880 = vmatprep.mubr.msk.f32.mxu1 %vm997_vm0, %v12697_v63 }
 0x297   : > { %v1949_v35 = vpop.f32.mrb[190].mxu0 }
 0x298   : > { %v10857_v23 = vpack.c.bf16 %v1949_v35, %v1943_v48  ;;  %v1951_v56 = vpop.f32.mrb[191].mxu0  ;;  %v13228_v4 = vpop.f32.mrb[38].mxu1 }
 0x299   : > { %v10855_v8 = vpack.c.bf16 %v1951_v56, %v1945_v26  ;;  %v13230_v40 = vpop.f32.mrb[39].mxu1  ;;  %2733 = vmatmul.mubr.f32.gmra.mrb[136].mxu1 %v12710_v32  ;;  %v13235_v15 = vmul.f32 %v13228_v4, %v12994_v43 }
 0x29a   : > { %8881 = vmatprep.mubr.msk.f32.mxu1 %vm997_vm0, %v12715_v1  ;;  %v13241_v21 = vmul.f32 %v13230_v40, %v12997_v16 }
 0x29b   : > { %16647 = vst [vmem:[#allocation33_spill] sm:$0xff] %v13235_v15  ;;  %v1955_v63 = vpop.f32.mrb[192].mxu0  ;;  %10856 = vmatprep.subr.bf16.mxu1 %v10855_v8 }
 0x29c   : > { %16648 = vst [vmem:[#allocation34_spill] sm:$0xff] %v13241_v21  ;;  %v1957_v48 = vpop.f32.mrb[193].mxu0  ;;  %v13243_v50 = vpop.f32.mrb[40].mxu1  ;;  %10858 = vmatpush1.bf16.msra.mxu1 %v10857_v23 }
 0x29d   : > { %v13245_v26 = vpop.f32.mrb[41].mxu1  ;;  %2739 = vmatmul.mubr.f32.gmra.mrb[138].mxu1 %v12728_v7  ;;  %v13250_v32 = vmul.f32 %v13243_v50, %v13001_v45 }
 0x29e   : > { %8882 = vmatprep.mubr.msk.f32.mxu1 %vm997_vm0, %v12733_v47  ;;  %v13256_v1 = vmul.f32 %v13245_v26, %v13004_v12 }
 0x29f   : > { %16649 = vst [vmem:[#allocation9_spill] sm:$0xff] %v13250_v32  ;;  %v1961_v8 = vpop.f32.mrb[194].mxu0 }
 0x2a0   : > { %16650 = vst [vmem:[#allocation35_spill] sm:$0xff] %v13256_v1  ;;  %v10861_v35 = vpack.c.bf16 %v1961_v8, %v1955_v63  ;;  %v1963_v56 = vpop.f32.mrb[195].mxu0  ;;  %v13258_v21 = vpop.f32.mrb[42].mxu1 }
 0x2a1   : > { %v10859_v23 = vpack.c.bf16 %v1963_v56, %v1957_v48  ;;  %v13260_v15 = vpop.f32.mrb[43].mxu1  ;;  %2745 = vmatmul.mubr.f32.gmra.mrb[140].mxu1 %v12746_v24  ;;  %v13265_v7 = vmul.f32 %v13258_v21, %v13008_v42 }
 0x2a2   : > { %8883 = vmatprep.mubr.msk.f32.mxu1 %vm997_vm0, %v12751_v49  ;;  %v13271_v47 = vmul.f32 %v13260_v15, %v13011_v54 }
 0x2a3   : > { %16651 = vst [vmem:[#allocation36_spill] sm:$0xff] %v13265_v7  ;;  %v1967_v63 = vpop.f32.mrb[196].mxu0  ;;  %10860 = vmatprep.subr.bf16.mxu1 %v10859_v23 }
 0x2a4   : > { %16652 = vst [vmem:[#allocation37_spill] sm:$0xff] %v13271_v47  ;;  %v1969_v8 = vpop.f32.mrb[197].mxu0  ;;  %v13273_v1 = vpop.f32.mrb[44].mxu1  ;;  %10862 = vmatpush1.bf16.msra.mxu1 %v10861_v35 }
 0x2a5   : > { %v13275_v48 = vpop.f32.mrb[45].mxu1  ;;  %2751 = vmatmul.mubr.f32.gmra.mrb[142].mxu1 %v12764_v0  ;;  %v13280_v24 = vmul.f32 %v13273_v1, %v13015_v13 }
 0x2a6   : > { %8884 = vmatprep.mubr.msk.f32.mxu1 %vm997_vm0, %v12769_v51  ;;  %v13286_v49 = vmul.f32 %v13275_v48, %v13018_v38 }
 0x2a7   : > { %16653 = vst [vmem:[#allocation38_spill] sm:$0xff] %v13280_v24  ;;  %v1973_v56 = vpop.f32.mrb[198].mxu0 }
 0x2a8   : > { %16654 = vst [vmem:[#allocation39_spill] sm:$0xff] %v13286_v49  ;;  %v10865_v23 = vpack.c.bf16 %v1973_v56, %v1967_v63  ;;  %v1975_v47 = vpop.f32.mrb[199].mxu0  ;;  %v13288_v7 = vpop.f32.mrb[46].mxu1 }
 0x2a9   : > { %v10863_v35 = vpack.c.bf16 %v1975_v47, %v1969_v8  ;;  %v13290_v32 = vpop.f32.mrb[47].mxu1  ;;  %2757 = vmatmul.mubr.f32.gmra.mrb[144].mxu1 %v12782_v18  ;;  %v13295_v0 = vmul.f32 %v13288_v7, %v13022_v41 }
 0x2aa   : > { %8885 = vmatprep.mubr.msk.f32.mxu1 %vm997_vm0, %v12787_v53  ;;  %v13301_v51 = vmul.f32 %v13290_v32, %v13025_v31 }
 0x2ab   : > { %16655 = vst [vmem:[#allocation40_spill] sm:$0xff] %v13295_v0  ;;  %v1979_v63 = vpop.f32.mrb[200].mxu0  ;;  %10864 = vmatprep.subr.bf16.mxu1 %v10863_v35 }
 0x2ac   : > { %16656 = vst [vmem:[#allocation41_spill] sm:$0xff] %v13301_v51  ;;  %v1981_v56 = vpop.f32.mrb[201].mxu0  ;;  %v13303_v49 = vpop.f32.mrb[48].mxu1  ;;  %10866 = vmatpush1.bf16.msra.mxu1 %v10865_v23 }
 0x2ad   : > { %16657 = vst [vmem:[#allocation42_spill] sm:$0xff] %v13303_v49  ;;  %v13305_v47 = vpop.f32.mrb[49].mxu1  ;;  %2763 = vmatmul.mubr.f32.gmra.mrb[146].mxu1 %v12800_v44  ;;  %v13310_v18 = vmul.f32 %v13303_v49, %v13029_v5  ;;  %v13715_v49 = vmul.f32 %v13032_v52, %v13032_v52 }
 0x2ae   : > { %16658 = vst [vmem:[#allocation43_spill] sm:$0xff] %v13305_v47  ;;  %8886 = vmatprep.mubr.msk.f32.mxu1 %vm997_vm0, %v12805_v55  ;;  %v13316_v53 = vmul.f32 %v13305_v47, %v13032_v52  ;;  %v11524_v47 = vld [vmem:[%s16595_s26 + $0xf0] sm:$0xff]  ;;  %v13732_v52 = vmul.f32 %v13036_v22, %v13036_v22 }
 0x2af   : > { %16659 = vst [vmem:[#allocation44_spill] sm:$0xff] %v13310_v18  ;;  %v1985_v8 = vpop.f32.mrb[202].mxu0 }
 0x2b0   : > { %16660 = vst [vmem:[#allocation45_spill] sm:$0xff] %v13316_v53  ;;  %v10869_v35 = vpack.c.bf16 %v1985_v8, %v1979_v63  ;;  %v1987_v51 = vpop.f32.mrb[203].mxu0  ;;  %v13318_v0 = vpop.f32.mrb[50].mxu1  ;;  %16739 = vst [vmem:[#allocation79_spill] sm:$0xff] %v13732_v52  ;;  %v13761_v52 = vmul.f32 %v13046_v3, %v13046_v3 }
 0x2b1   : > { %16661 = vst [vmem:[#allocation46_spill] sm:$0xff] %v13318_v0  ;;  %v10867_v23 = vpack.c.bf16 %v1987_v51, %v1981_v56  ;;  %v13320_v24 = vpop.f32.mrb[51].mxu1  ;;  %2769 = vmatmul.mubr.f32.gmra.mrb[148].mxu1 %v12818_v6  ;;  %v13325_v44 = vmul.f32 %v13318_v0, %v13036_v22  ;;  %v13692_v0 = vmul.f32 %v13025_v31, %v13025_v31 }
 0x2b2   : > { %16662 = vst [vmem:[#allocation47_spill] sm:$0xff] %v13320_v24  ;;  %8887 = vmatprep.mubr.msk.f32.mxu1 %vm997_vm0, %v12823_v37  ;;  %v13331_v55 = vmul.f32 %v13320_v24, %v13039_v61  ;;  %v16735_v24 = vld [vmem:[#allocation31_spill] sm:$0xff]  ;;  %v13709_v31 = vmul.f32 %v13029_v5, %v13029_v5  ;;  %16743 = vst [vmem:[#allocation83_spill] sm:$0xff] %v13761_v52 }
 0x2b3   : > { %16663 = vst [vmem:[#allocation48_spill] sm:$0xff] %v13325_v44  ;;  %v1991_v63 = vpop.f32.mrb[204].mxu0  ;;  %10868 = vmatprep.subr.bf16.mxu1 %v10867_v23  ;;  %16738 = vst [vmem:[#allocation31_spill] sm:$0xff] %v13715_v49  ;;  %v11529_v49 = vld [vmem:[%s16595_s26 + $0x128] sm:$0x7f]  ;;  %v11533_v52 = vld [vmem:[%s11864_s1 + $0x18] sm:$0xff] }
 0x2b4   : > { %16664 = vst [vmem:[#allocation49_spill] sm:$0xff] %v13331_v55  ;;  %v1993_v8 = vpop.f32.mrb[205].mxu0  ;;  %v13333_v53 = vpop.f32.mrb[52].mxu1  ;;  %10870 = vmatpush1.bf16.msra.mxu1 %v10869_v35 }
 0x2b5   : > { %16665 = vst [vmem:[#allocation50_spill] sm:$0xff] %v13333_v53  ;;  %v13335_v51 = vpop.f32.mrb[53].mxu1  ;;  %2775 = vmatmul.mubr.f32.gmra.mrb[150].mxu1 %v12836_v59  ;;  %v13340_v6 = vmul.f32 %v13333_v53, %v13043_v20 }
 0x2b6   : > { %16666 = vst [vmem:[#allocation51_spill] sm:$0xff] %v13335_v51  ;;  %8888 = vmatprep.mubr.msk.f32.mxu1 %vm997_vm0, %v12957_v36  ;;  %v13346_v37 = vmul.f32 %v13335_v51, %v13046_v3  ;;  %v3685_v51 = vld [vmem:[%s16399_s5 + $0x90] sm:$0xff]  ;;  %v13776_v3 = vmul.f32 %v13051_v58, %v13051_v58 }
 0x2b7   : > { %16667 = vst [vmem:[#allocation52_spill] sm:$0xff] %v13340_v6  ;;  %v1997_v56 = vpop.f32.mrb[206].mxu0 }
 0x2b8   : > { %16668 = vst [vmem:[#allocation53_spill] sm:$0xff] %v13346_v37  ;;  %v10873_v23 = vpack.c.bf16 %v1997_v56, %v1991_v63  ;;  %v1999_v55 = vpop.f32.mrb[207].mxu0  ;;  %v13348_v44 = vpop.f32.mrb[54].mxu1  ;;  %v3667_v63 = vld [vmem:[%s16399_s5] sm:$0xff]  ;;  %16744 = vst [vmem:[#allocation84_spill] sm:$0xff] %v13776_v3 }
 0x2b9   : > { %16669 = vst [vmem:[#allocation54_spill] sm:$0xff] %v13348_v44  ;;  %v10871_v35 = vpack.c.bf16 %v1999_v55, %v1993_v8  ;;  %v13350_v18 = vpop.f32.mrb[55].mxu1  ;;  %v13354_v59 = vmul.f32 %v13348_v44, %v13051_v58  ;;  %v3668_v55 = vld [vmem:[%s16399_s5 + $0x8] sm:$0xff]  ;;  %v13795_v58 = vmul.f32 %v13055_v29, %v13055_v29 }
 0x2ba   : > { %16670 = vst [vmem:[#allocation55_spill] sm:$0xff] %v13350_v18  ;;  %v13358_v6 = vmul.f32 %v13350_v18, %v13053_v2  ;;  %v3669_v18 = vld [vmem:[%s16399_s5 + $0x10] sm:$0xff] }
 0x2bb   : > { %16671 = vst [vmem:[#allocation56_spill] sm:$0xff] %v13354_v59  ;;  %10872 = vmatprep.subr.bf16.mxu1 %v10871_v35  ;;  %v2003_v36 = vpop.f32.mrb[208].mxu0  ;;  %v10876_v35 = vpack.c.bf16 %v3668_v55, %v3667_v63  ;;  %v16679_v63 = vmov 0.0|0.0   ;;  %16746 = vst [vmem:[#allocation86_spill] sm:$0xff] %v13795_v58 }
 0x2bc   : > { %16672 = vst [vmem:[#allocation57_spill] sm:$0xff] %v13358_v6  ;;  %v13366_v8 = vpop.f32.mrb[56].mxu1  ;;  %10874 = vmatpush1.bf16.msra.mxu1 %v10873_v23  ;;  %v2005_v56 = vpop.f32.mrb[209].mxu0  ;;  %v3670_v23 = vld [vmem:[%s16399_s5 + $0x18] sm:$0xff] }
 0x2bd   : > { %16673 = vst [vmem:[#allocation58_spill] sm:$0xff] %v13366_v8  ;;  %v13368_v37 = vpop.f32.mrb[57].mxu1  ;;  %2821 = vmatprep.subr.mxu1 %v2005_v56  ;;  %v13372_v6 = vmul.f32 %v13366_v8, %v13055_v29  ;;  %v13814_v29 = vmul.f32 %v13059_v39, %v13059_v39 }
 0x2be   : > { %16674 = vst [vmem:[#allocation59_spill] sm:$0xff] %v13368_v37  ;;  %v13376_v59 = vmul.f32 %v13368_v37, %v13057_v46  ;;  %v3683_v37 = vld [vmem:[%s16399_s5 + $0x80] sm:$0xff] }
 0x2bf   : > { %16675 = vst [vmem:[#allocation60_spill] sm:$0xff] %v13372_v6  ;;  %16748 = vst [vmem:[#allocation88_spill] sm:$0xff] %v13814_v29 }
 0x2c0   : > { %16676 = vst [vmem:[#allocation61_spill] sm:$0xff] %v13376_v59  ;;  %v13384_v44 = vpop.f32.mrb[58].mxu1  ;;  %2822 = vmatpush1.msra.mxu1 %v2003_v36  ;;  %v10879_v59 = vpack.c.bf16 %v3670_v23, %v3669_v18  ;;  %v3672_v36 = vld [vmem:[%s16399_s5 + $0x28] sm:$0xff]  ;;  %v3673_v23 = vld [vmem:[%s16399_s5 + $0x30] sm:$0xff] }
 0x2c1   : > { %16677 = vst [vmem:[#allocation62_spill] sm:$0xff] %v13384_v44  ;;  %v13386_v56 = vpop.f32.mrb[59].mxu1  ;;  %2846 = vmatmul.mubr.f32.vlgmr.msra.gmra.mrb[152].mxu1 %v13064_v17  ;;  %10875 = vmatprep.subr.bf16.mxu1 %v16679_v63  ;;  %v13392_v55 = vmul.f32 %v13384_v44, %v13059_v39  ;;  %v3671_v17 = vld [vmem:[%s16399_s5 + $0x20] sm:$0xff]  ;;  %v13833_v39 = vmul.f32 %v13076_v25, %v13076_v25 }
 0x2c2   : > { %16678 = vst [vmem:[#allocation63_spill] sm:$0xff] %v13386_v56  ;;  %8889 = vmatprep.mubr.msk.f32.mxu1 %vm997_vm0, %v13072_v33  ;;  %10877 = vmatpush1.bf16.msra.mxu1 %v10876_v35  ;;  %v13398_v6 = vmul.f32 %v13386_v56, %v13067_v57  ;;  %v10882_v18 = vpack.c.bf16 %v3672_v36, %v3671_v17  ;;  %v3675_v36 = vld [vmem:[%s16399_s5 + $0x40] sm:$0xff] }
 0x2c3   : > { %16680 = vst [vmem:[#allocation64_spill] sm:$0xff] %v13392_v55  ;;  %10878 = vmatprep.subr.bf16.mxu1 %v16679_v63  ;;  %16750 = vst [vmem:[#allocation90_spill] sm:$0xff] %v13833_v39 }
 0x2c4   : > { %16681 = vst [vmem:[#allocation65_spill] sm:$0xff] %v13398_v6  ;;  %v13407_v55 = vpop.f32.mrb[60].mxu1 }
 0x2c5   : > { %16682 = vst [vmem:[#allocation66_spill] sm:$0xff] %v13407_v55  ;;  %v13409_v44 = vpop.f32.mrb[61].mxu1  ;;  %2852 = vmatmul.mubr.f32.gmra.mrb[154].mxu1 %v13081_v10  ;;  %v13414_v33 = vmul.f32 %v13407_v55, %v13076_v25  ;;  %v3674_v10 = vld [vmem:[%s16399_s5 + $0x38] sm:$0xff]  ;;  %v3681_v55 = vld [vmem:[%s16399_s5 + $0x70] sm:$0xff]  ;;  %v13852_v25 = vmul.f32 %v13093_v9, %v13093_v9 }
 0x2c6   : > { %16683 = vst [vmem:[#allocation67_spill] sm:$0xff] %v13409_v44  ;;  %8890 = vmatprep.mubr.msk.f32.mxu1 %vm997_vm0, %v13089_v60  ;;  %10880 = vmatpush1.bf16.msra.mxu1 %v10879_v59  ;;  %v13420_v35 = vmul.f32 %v13409_v44, %v13084_v30  ;;  %v10885_v59 = vpack.c.bf16 %v3674_v10, %v3673_v23  ;;  %v16693_v23 = vld [vmem:[#allocation10_spill] sm:$0xff] }
 0x2c7   : > { %16684 = vst [vmem:[#allocation68_spill] sm:$0xff] %v13414_v33  ;;  %10881 = vmatprep.subr.bf16.mxu1 %v16679_v63  ;;  %16752 = vst [vmem:[#allocation92_spill] sm:$0xff] %v13852_v25 }
 0x2c8   : > { %16685 = vst [vmem:[#allocation69_spill] sm:$0xff] %v13420_v35  ;;  %v13429_v33 = vpop.f32.mrb[62].mxu1 }
 0x2c9   : > { %16686 = vst [vmem:[#allocation70_spill] sm:$0xff] %v13429_v33  ;;  %v13431_v6 = vpop.f32.mrb[63].mxu1  ;;  %2858 = vmatmul.mubr.f32.gmra.mrb[156].mxu1 %v13098_v27  ;;  %v13436_v60 = vmul.f32 %v13429_v33, %v13093_v9  ;;  %v3676_v27 = vld [vmem:[%s16399_s5 + $0x48] sm:$0xff]  ;;  %v3679_v33 = vld [vmem:[%s16399_s5 + $0x60] sm:$0xff]  ;;  %v13871_v9 = vmul.f32 %v13110_v14, %v13110_v14 }
 0x2ca   : > { %16687 = vst [vmem:[#allocation71_spill] sm:$0xff] %v13431_v6  ;;  %8891 = vmatprep.mubr.msk.f32.mxu1 %vm997_vm0, %v13106_v62  ;;  %10883 = vmatpush1.bf16.msra.mxu1 %v10882_v18  ;;  %v13442_v17 = vmul.f32 %v13431_v6, %v13101_v28  ;;  %v10888_v18 = vpack.c.bf16 %v3676_v27, %v3675_v36  ;;  %v16700_v27 = vld [vmem:[#allocation14_spill] sm:$0xff] }
 0x2cb   : > { %16688 = vst [vmem:[#allocation72_spill] sm:$0xff] %v13436_v60  ;;  %10884 = vmatprep.subr.bf16.mxu1 %v16679_v63  ;;  %16754 = vst [vmem:[#allocation94_spill] sm:$0xff] %v13871_v9 }
 0x2cc   : > { %16689 = vst [vmem:[#allocation73_spill] sm:$0xff] %v13442_v17  ;;  %v13451_v60 = vpop.f32.mrb[64].mxu1  ;;  %v3677_v17 = vld [vmem:[%s16399_s5 + $0x50] sm:$0xff] }
 0x2cd   : > { %16690 = vst [vmem:[#allocation74_spill] sm:$0xff] %v13451_v60  ;;  %v13453_v35 = vpop.f32.mrb[65].mxu1  ;;  %2864 = vmatmul.mubr.f32.gmra.mrb[158].mxu1 %v13115_v34  ;;  %v13458_v62 = vmul.f32 %v13451_v60, %v13110_v14  ;;  %v3678_v34 = vld [vmem:[%s16399_s5 + $0x58] sm:$0xff] }
 0x2ce   : > { %16691 = vst [vmem:[#allocation75_spill] sm:$0xff] %v13453_v35  ;;  %8892 = vmatprep.mubr.msk.f32.mxu1 %vm997_vm0, %v13123_v19  ;;  %10886 = vmatpush1.bf16.msra.mxu1 %v10885_v59  ;;  %v13464_v10 = vmul.f32 %v13453_v35, %v16693_v23  ;;  %v16697_v19 = vld [vmem:[#allocation12_spill] sm:$0xff]  ;;  %v16698_v59 = vld [vmem:[#allocation11_spill] sm:$0xff]  ;;  %v16701_v35 = vld [vmem:[#allocation13_spill] sm:$0xff] }
 0x2cf   : > { %16692 = vst [vmem:[#allocation76_spill] sm:$0xff] %v13458_v62  ;;  %10887 = vmatprep.subr.bf16.mxu1 %v16679_v63  ;;  %v13890_v14 = vmul.f32 %v16698_v59, %v16698_v59 }
 0x2d0   : > { %16694 = vst [vmem:[#allocation10_spill] sm:$0xff] %v13464_v10  ;;  %v13473_v62 = vpop.f32.mrb[66].mxu1  ;;  %v10891_v10 = vpack.c.bf16 %v3678_v34, %v3677_v17  ;;  %v16706_v17 = vld [vmem:[#allocation15_spill] sm:$0xff] }
 0x2d1   : > { %16695 = vst [vmem:[#allocation77_spill] sm:$0xff] %v13473_v62  ;;  %v13475_v60 = vpop.f32.mrb[67].mxu1  ;;  %2870 = vmatmul.mubr.f32.gmra.mrb[160].mxu1 %v16697_v19  ;;  %v13480_v36 = vmul.f32 %v13473_v62, %v16698_v59  ;;  %v3680_v19 = vld [vmem:[%s16399_s5 + $0x68] sm:$0xff]  ;;  %16756 = vst [vmem:[#allocation96_spill] sm:$0xff] %v13890_v14  ;;  %v13909_v59 = vmul.f32 %v16706_v17, %v16706_v17 }
 0x2d2   : > { %16696 = vst [vmem:[#allocation78_spill] sm:$0xff] %v13475_v60  ;;  %8893 = vmatprep.mubr.msk.f32.mxu1 %vm997_vm0, %v16700_v27  ;;  %10889 = vmatpush1.bf16.msra.mxu1 %v10888_v18  ;;  %v13486_v6 = vmul.f32 %v13475_v60, %v16701_v35  ;;  %v16705_v18 = vld [vmem:[#allocation16_spill] sm:$0xff]  ;;  %v16708_v27 = vld [vmem:[#allocation18_spill] sm:$0xff]  ;;  %v16709_v60 = vld [vmem:[#allocation17_spill] sm:$0xff] }
 0x2d3   : > { %16699 = vst [vmem:[#allocation12_spill] sm:$0xff] %v13480_v36  ;;  %10890 = vmatprep.subr.bf16.mxu1 %v16679_v63  ;;  %16758 = vst [vmem:[#allocation98_spill] sm:$0xff] %v13909_v59 }
 0x2d4   : > { %16702 = vst [vmem:[#allocation11_spill] sm:$0xff] %v13486_v6  ;;  %v13495_v36 = vpop.f32.mrb[68].mxu1  ;;  %v10894_v6 = vpack.c.bf16 %v3680_v19, %v3679_v33  ;;  %v16714_v33 = vld [vmem:[#allocation19_spill] sm:$0xff] }
 0x2d5   : > { %16703 = vst [vmem:[#allocation14_spill] sm:$0xff] %v13495_v36  ;;  %v13497_v62 = vpop.f32.mrb[69].mxu1  ;;  %2876 = vmatmul.mubr.f32.gmra.mrb[162].mxu1 %v16705_v18  ;;  %v13502_v34 = vmul.f32 %v13495_v36, %v16706_v17  ;;  %v3682_v18 = vld [vmem:[%s16399_s5 + $0x78] sm:$0xff]  ;;  %v13928_v17 = vmul.f32 %v16714_v33, %v16714_v33 }
 0x2d6   : > { %16704 = vst [vmem:[#allocation13_spill] sm:$0xff] %v13497_v62  ;;  %8894 = vmatprep.mubr.msk.f32.mxu1 %vm997_vm0, %v16708_v27  ;;  %10892 = vmatpush1.bf16.msra.mxu1 %v10891_v10  ;;  %v13508_v44 = vmul.f32 %v13497_v62, %v16709_v60  ;;  %v16713_v10 = vld [vmem:[#allocation20_spill] sm:$0xff]  ;;  %v16716_v27 = vld [vmem:[#allocation22_spill] sm:$0xff]  ;;  %v16717_v62 = vld [vmem:[#allocation21_spill] sm:$0xff] }
 0x2d7   : > { %16707 = vst [vmem:[#allocation16_spill] sm:$0xff] %v13502_v34  ;;  %10893 = vmatprep.subr.bf16.mxu1 %v16679_v63  ;;  %16760 = vst [vmem:[#allocation100_spill] sm:$0xff] %v13928_v17 }
 0x2d8   : > { %16710 = vst [vmem:[#allocation15_spill] sm:$0xff] %v13508_v44  ;;  %v13517_v34 = vpop.f32.mrb[70].mxu1  ;;  %v10897_v44 = vpack.c.bf16 %v3682_v18, %v3681_v55  ;;  %v16722_v55 = vld [vmem:[#allocation23_spill] sm:$0xff] }
 0x2d9   : > { %16711 = vst [vmem:[#allocation18_spill] sm:$0xff] %v13517_v34  ;;  %v13519_v36 = vpop.f32.mrb[71].mxu1  ;;  %2882 = vmatmul.mubr.f32.gmra.mrb[164].mxu1 %v16713_v10  ;;  %v13524_v19 = vmul.f32 %v13517_v34, %v16714_v33  ;;  %v3684_v10 = vld [vmem:[%s16399_s5 + $0x88] sm:$0xff]  ;;  %v13947_v33 = vmul.f32 %v16722_v55, %v16722_v55 }
 0x2da   : > { %16712 = vst [vmem:[#allocation17_spill] sm:$0xff] %v13519_v36  ;;  %8895 = vmatprep.mubr.msk.f32.mxu1 %vm997_vm0, %v16716_v27  ;;  %10895 = vmatpush1.bf16.msra.mxu1 %v10894_v6  ;;  %v13530_v56 = vmul.f32 %v13519_v36, %v16717_v62  ;;  %v16721_v6 = vld [vmem:[#allocation24_spill] sm:$0xff]  ;;  %v16724_v27 = vld [vmem:[#allocation26_spill] sm:$0xff]  ;;  %v16725_v36 = vld [vmem:[#allocation25_spill] sm:$0xff] }
 0x2db   : > { %16715 = vst [vmem:[#allocation20_spill] sm:$0xff] %v13524_v19  ;;  %10896 = vmatprep.subr.bf16.mxu1 %v16679_v63  ;;  %16762 = vst [vmem:[#allocation102_spill] sm:$0xff] %v13947_v33 }
 0x2dc   : > { %16718 = vst [vmem:[#allocation19_spill] sm:$0xff] %v13530_v56  ;;  %v13539_v19 = vpop.f32.mrb[72].mxu1  ;;  %v10900_v56 = vpack.c.bf16 %v3684_v10, %v3683_v37  ;;  %v16730_v37 = vld [vmem:[#allocation27_spill] sm:$0xff] }
 0x2dd   : > { %16719 = vst [vmem:[#allocation22_spill] sm:$0xff] %v13539_v19  ;;  %v13541_v34 = vpop.f32.mrb[73].mxu1  ;;  %2888 = vmatmul.mubr.f32.gmra.mrb[166].mxu1 %v16721_v6  ;;  %v13546_v18 = vmul.f32 %v13539_v19, %v16722_v55  ;;  %v3686_v6 = vld [vmem:[%s16399_s5 + $0x98] sm:$0xff]  ;;  %v11552_v55 = vld [vmem:[%s11864_s1 + $0xa0] sm:$0xff] }
 0x2de   : > { %16720 = vst [vmem:[#allocation21_spill] sm:$0xff] %v13541_v34  ;;  %8896 = vmatprep.mubr.msk.f32.mxu1 %vm997_vm0, %v16724_v27  ;;  %10898 = vmatpush1.bf16.msra.mxu1 %v10897_v44  ;;  %v13552_v8 = vmul.f32 %v13541_v34, %v16725_v36  ;;  %v16729_v44 = vld [vmem:[#allocation28_spill] sm:$0xff]  ;;  %v16732_v27 = vld [vmem:[#allocation30_spill] sm:$0xff]  ;;  %v16733_v34 = vld [vmem:[#allocation29_spill] sm:$0xff] }
 0x2df   : > { %16723 = vst [vmem:[#allocation24_spill] sm:$0xff] %v13546_v18  ;;  %10899 = vmatprep.subr.bf16.mxu1 %v16679_v63  ;;  %16736 = vst [vmem:[#allocation30_spill] sm:$0xff] %v13692_v0  ;;  %v11526_v0 = vld [vmem:[%s16595_s26 + $0x100] sm:$0xff] }
 0x2e0   : > { %16726 = vst [vmem:[#allocation23_spill] sm:$0xff] %v13552_v8  ;;  %v13561_v18 = vpop.f32.mrb[74].mxu1  ;;  %v10903_v8 = vpack.c.bf16 %v3686_v6, %v3685_v51  ;;  %v11514_v51 = vld [vmem:[%s16595_s26 + $0xa0] sm:$0xff]  ;;  %v13600_v6 = vmul.f32 %v12997_v16, %v12997_v16  ;;  %v13617_v16 = vmul.f32 %v13001_v45, %v13001_v45  ;;  %16737 = vst [vmem:[#allocation29_spill] sm:$0xff] %v13709_v31 }
 0x2e1   : > { %16727 = vst [vmem:[#allocation26_spill] sm:$0xff] %v13561_v18  ;;  %v13563_v19 = vpop.f32.mrb[75].mxu1  ;;  %2894 = vmatmul.mubr.f32.gmra.mrb[168].mxu1 %v16729_v44  ;;  %v13568_v10 = vmul.f32 %v13561_v18, %v16730_v37  ;;  %v16514_v44 = vmov 0.0   ;;  %v11522_v18 = vld [vmem:[%s16595_s26 + $0xe0] sm:$0xff]  ;;  %v13738_v31 = vmul.f32 %v13039_v61, %v13039_v61  ;;  %v13755_v61 = vmul.f32 %v13043_v20, %v13043_v20 }
 0x2e2   : > { %16728 = vst [vmem:[#allocation25_spill] sm:$0xff] %v13563_v19  ;;  %8897 = vmatprep.mubr.msk.f32.mxu1 %vm997_vm0, %v16732_v27  ;;  %10901 = vmatpush1.bf16.msra.mxu1 %v10900_v56  ;;  %v13574_v53 = vmul.f32 %v13563_v19, %v16733_v34  ;;  %v3687_v56 = vld [vmem:[%s16399_s5 + $0xa0] sm:$0xff]  ;;  %v13623_v27 = vmul.f32 %v13004_v12, %v13004_v12 }
 0x2e3   : > { %16731 = vst [vmem:[#allocation28_spill] sm:$0xff] %v13568_v10  ;;  %10902 = vmatprep.subr.bf16.mxu1 %v16679_v63  ;;  %v13640_v12 = vmul.f32 %v13008_v42, %v13008_v42  ;;  %v11520_v10 = vld [vmem:[%s16595_s26 + $0xd0] sm:$0xff]  ;;  %v13669_v19 = vmul.f32 %v13018_v38, %v13018_v38  ;;  %v13686_v38 = vmul.f32 %v13022_v41, %v13022_v41  ;;  %16740 = vst [vmem:[#allocation80_spill] sm:$0xff] %v13738_v31  ;;  %v11531_v31 = vld [vmem:[%s11864_s1 + $0x8] sm:$0xff] }
 0x2e4   : > { %16734 = vst [vmem:[#allocation27_spill] sm:$0xff] %v13574_v53  ;;  %v13646_v53 = vmul.f32 %v13011_v54, %v13011_v54  ;;  %v13663_v54 = vmul.f32 %v13015_v13, %v13015_v13  ;;  %16742 = vst [vmem:[#allocation82_spill] sm:$0xff] %v13755_v61  ;;  %v11532_v20 = vld [vmem:[%s11864_s1] sm:$0xff] }
 0x2e5   : > { %2900 = vmatmul.mubr.f32.gmra.mrb[170].mxu1 %v16735_v24  ;;  %v11515_v24 = vld [vmem:[%s16595_s26 + $0xb8] sm:$0xff] }
 0x2e6   : > { %8898 = vmatprep.mubr.msk.f32.mxu1 %vm997_vm0, %v13221_v11  ;;  %10904 = vmatpush1.bf16.msra.mxu1 %v10903_v8  ;;  %v13593_v11 = vmul.f32 %v12994_v43, %v12994_v43 }
 0x2e7   : > { %3728 = vmatprep.subr.mxu1 %v16514_v44 }
 0x2e9   : > { %2906 = vmatmul.mubr.f32.gmra.mrb[172].mxu1 %v11514_v51 }
 0x2ea   : > { %8899 = vmatprep.mubr.msk.f32.mxu1 %vm997_vm0, %v11515_v24  ;;  %3729 = vmatpush1.msra.mxu1 %v3687_v56  ;;  %v11516_v56 = vld [vmem:[%s16595_s26 + $0xb0] sm:$0xff]  ;;  %v11517_v24 = vld [vmem:[%s16595_s26 + $0xc8] sm:$0xff] }
 0x2eb   : > { %10980 = vmatprep.subr.bf16.mxu1 %v16679_v63  ;;  %v11518_v63 = vld [vmem:[%s16595_s26 + $0xc0] sm:$0xff] }
 0x2ec   : > { %v13596_v8 = vpop.f32.mrb[76].mxu1 }
 0x2ed   : > { %v13604_v51 = vpop.f32.mrb[77].mxu1  ;;  %2912 = vmatmul.mubr.f32.gmra.mrb[174].mxu1 %v11516_v56 }
 0x2ee   : > { %8900 = vmatprep.mubr.msk.f32.mxu1 %vm997_vm0, %v11517_v24  ;;  %v11519_v24 = vld [vmem:[%s16595_s26 + $0xd8] sm:$0xff] }
 0x2f0   : > { %v13619_v44 = vpop.f32.mrb[78].mxu1 }
 0x2f1   : > { %v13627_v43 = vpop.f32.mrb[79].mxu1  ;;  %2918 = vmatmul.mubr.f32.gmra.mrb[176].mxu1 %v11518_v63 }
 0x2f2   : > { %8901 = vmatprep.mubr.msk.f32.mxu1 %vm997_vm0, %v11519_v24  ;;  %v11521_v24 = vld [vmem:[%s16595_s26 + $0xe8] sm:$0xff] }
 0x2f4   : > { %v13642_v56 = vpop.f32.mrb[80].mxu1 }
 0x2f5   : > { %v13650_v45 = vpop.f32.mrb[81].mxu1  ;;  %2924 = vmatmul.mubr.f32.gmra.mrb[178].mxu1 %v11520_v10 }
 0x2f6   : > { %8902 = vmatprep.mubr.msk.f32.mxu1 %vm997_vm0, %v11521_v24  ;;  %v11523_v24 = vld [vmem:[%s16595_s26 + $0xf8] sm:$0xff] }
 0x2f8   : > { %v13665_v63 = vpop.f32.mrb[82].mxu1 }
 0x2f9   : > { %v13673_v42 = vpop.f32.mrb[83].mxu1  ;;  %2930 = vmatmul.mubr.f32.gmra.mrb[180].mxu1 %v11522_v18 }
 0x2fa   : > { %8903 = vmatprep.mubr.msk.f32.mxu1 %vm997_vm0, %v11523_v24  ;;  %v11525_v24 = vld [vmem:[%s16595_s26 + $0x108] sm:$0xff] }
 0x2fc   : > { %v13688_v10 = vpop.f32.mrb[84].mxu1 }
 0x2fd   : > { %v13696_v13 = vpop.f32.mrb[85].mxu1  ;;  %2936 = vmatmul.mubr.f32.gmra.mrb[182].mxu1 %v11524_v47 }
 0x2fe   : > { %8904 = vmatprep.mubr.msk.f32.mxu1 %vm997_vm0, %v11525_v24  ;;  %v11527_v24 = vld [vmem:[%s16595_s26 + $0x118] sm:$0xff] }
 0x300   : > { %v13711_v18 = vpop.f32.mrb[86].mxu1 }
 0x301   : > { %v13719_v41 = vpop.f32.mrb[87].mxu1  ;;  %2942 = vmatmul.mubr.f32.gmra.mrb[184].mxu1 %v11526_v0 }
 0x302   : > { %8905 = vmatprep.mubr.msk.f32.mxu1 %vm997_vm0, %v11527_v24  ;;  %v11528_v24 = vld [vmem:[%s16595_s26 + $0x110] sm:$0xff] }
 0x304   : > { %v13734_v47 = vpop.f32.mrb[88].mxu1 }
 0x305   : > { %v13742_v5 = vpop.f32.mrb[89].mxu1  ;;  %2948 = vmatmul.mubr.f32.gmra.mrb[186].mxu1 %v11528_v24  ;;  %v13782_v24 = vmul.f32 %v13053_v2, %v13053_v2 }
 0x306   : > { %16741 = vst [vmem:[#allocation81_spill] sm:$0xff] %v13742_v5  ;;  %8906 = vmatprep.mubr.msk.f32.mxu1 %vm997_vm0, %v11529_v49  ;;  %v11530_v49 = vld [vmem:[%s16595_s26 + $0x120] sm:$0x7f] }
 0x307   : > { %16745 = vst [vmem:[#allocation85_spill] sm:$0xff] %v13782_v24  ;;  %v11535_v24 = vld [vmem:[%s11864_s1 + $0x28] sm:$0xff] }
 0x308   : > { %v13757_v0 = vpop.f32.mrb[90].mxu1 }
 0x309   : > { %v13765_v22 = vpop.f32.mrb[91].mxu1  ;;  %2954 = vmatmul.mubr.f32.gmra.mrb[188].mxu1 %v11530_v49  ;;  %v13801_v49 = vmul.f32 %v13057_v46, %v13057_v46 }
 0x30a   : > { %8908 = vmatprep.mubr.msk.f32.mxu1 %vm997_vm0, %v11531_v31  ;;  %v11534_v31 = vld [vmem:[%s11864_s1 + $0x10] sm:$0xff] }
 0x30b   : > { %16747 = vst [vmem:[#allocation87_spill] sm:$0xff] %v13801_v49  ;;  %v11537_v49 = vld [vmem:[%s11864_s1 + $0x38] sm:$0xff] }
 0x30c   : > { %v13778_v5 = vpop.f32.mrb[92].mxu1 }
 0x30d   : > { %v13786_v61 = vpop.f32.mrb[93].mxu1  ;;  %3753 = vmatmul.mubr.f32.vlgmr.msra.gmra.mrb[190].mxu1 %v11532_v20  ;;  %v13820_v20 = vmul.f32 %v13067_v57, %v13067_v57 }
 0x30e   : > { %8909 = vmatprep.mubr.msk.f32.mxu1 %vm997_vm0, %v11533_v52  ;;  %v11536_v52 = vld [vmem:[%s11864_s1 + $0x20] sm:$0xff] }
 0x30f   : > { %16749 = vst [vmem:[#allocation89_spill] sm:$0xff] %v13820_v20  ;;  %v11539_v20 = vld [vmem:[%s11864_s1 + $0x48] sm:$0xff] }
 0x310   : > { %v13797_v2 = vpop.f32.mrb[94].mxu1 }
 0x311   : > { %v13805_v3 = vpop.f32.mrb[95].mxu1  ;;  %3758 = vmatmul.mubr.f32.gmra.mrb[192].mxu1 %v11534_v31  ;;  %v13839_v31 = vmul.f32 %v13084_v30, %v13084_v30 }
 0x312   : > { %8910 = vmatprep.mubr.msk.f32.mxu1 %vm997_vm0, %v11535_v24  ;;  %v11538_v24 = vld [vmem:[%s11864_s1 + $0x30] sm:$0xff] }
 0x313   : > { %16751 = vst [vmem:[#allocation91_spill] sm:$0xff] %v13839_v31  ;;  %v11541_v31 = vld [vmem:[%s11864_s1 + $0x58] sm:$0xff] }
 0x314   : > { %v13816_v46 = vpop.f32.mrb[96].mxu1 }
 0x315   : > { %v13824_v58 = vpop.f32.mrb[97].mxu1  ;;  %3763 = vmatmul.mubr.f32.gmra.mrb[194].mxu1 %v11536_v52  ;;  %v13858_v52 = vmul.f32 %v13101_v28, %v13101_v28 }
 0x316   : > { %8911 = vmatprep.mubr.msk.f32.mxu1 %vm997_vm0, %v11537_v49  ;;  %v11540_v49 = vld [vmem:[%s11864_s1 + $0x40] sm:$0xff] }
 0x317   : > { %16753 = vst [vmem:[#allocation93_spill] sm:$0xff] %v13858_v52  ;;  %v11543_v52 = vld [vmem:[%s11864_s1 + $0x68] sm:$0xff] }
 0x318   : > { %v13835_v57 = vpop.f32.mrb[98].mxu1 }
 0x319   : > { %v13843_v29 = vpop.f32.mrb[99].mxu1  ;;  %3768 = vmatmul.mubr.f32.gmra.mrb[196].mxu1 %v11538_v24  ;;  %v13877_v24 = vmul.f32 %v16693_v23, %v16693_v23 }
 0x31a   : > { %8912 = vmatprep.mubr.msk.f32.mxu1 %vm997_vm0, %v11539_v20  ;;  %v11542_v20 = vld [vmem:[%s11864_s1 + $0x50] sm:$0xff] }
 0x31b   : > { %16755 = vst [vmem:[#allocation95_spill] sm:$0xff] %v13877_v24  ;;  %v11545_v24 = vld [vmem:[%s11864_s1 + $0x78] sm:$0xff] }
 0x31c   : > { %v13854_v30 = vpop.f32.mrb[100].mxu1 }
 0x31d   : > { %v13862_v39 = vpop.f32.mrb[101].mxu1  ;;  %3773 = vmatmul.mubr.f32.gmra.mrb[198].mxu1 %v11540_v49  ;;  %v13896_v49 = vmul.f32 %v16701_v35, %v16701_v35 }
 0x31e   : > { %8913 = vmatprep.mubr.msk.f32.mxu1 %vm997_vm0, %v11541_v31  ;;  %v11544_v31 = vld [vmem:[%s11864_s1 + $0x60] sm:$0xff] }
 0x31f   : > { %16757 = vst [vmem:[#allocation97_spill] sm:$0xff] %v13896_v49  ;;  %v11547_v49 = vld [vmem:[%s11864_s1 + $0x88] sm:$0xff] }
 0x320   : > { %v13873_v28 = vpop.f32.mrb[102].mxu1 }
 0x321   : > { %v13881_v25 = vpop.f32.mrb[103].mxu1  ;;  %3778 = vmatmul.mubr.f32.gmra.mrb[200].mxu1 %v11542_v20  ;;  %v13915_v20 = vmul.f32 %v16709_v60, %v16709_v60 }
 0x322   : > { %8914 = vmatprep.mubr.msk.f32.mxu1 %vm997_vm0, %v11543_v52  ;;  %v11546_v52 = vld [vmem:[%s11864_s1 + $0x70] sm:$0xff] }
 0x323   : > { %16759 = vst [vmem:[#allocation99_spill] sm:$0xff] %v13915_v20  ;;  %v11549_v20 = vld [vmem:[%s11864_s1 + $0x98] sm:$0xff] }
 0x324   : > { %v13892_v23 = vpop.f32.mrb[104].mxu1 }
 0x325   : > { %v13900_v9 = vpop.f32.mrb[105].mxu1  ;;  %3783 = vmatmul.mubr.f32.gmra.mrb[202].mxu1 %v11544_v31  ;;  %v13934_v31 = vmul.f32 %v16717_v62, %v16717_v62 }
 0x326   : > { %8915 = vmatprep.mubr.msk.f32.mxu1 %vm997_vm0, %v11545_v24  ;;  %v11548_v24 = vld [vmem:[%s11864_s1 + $0x80] sm:$0xff] }
 0x327   : > { %16761 = vst [vmem:[#allocation101_spill] sm:$0xff] %v13934_v31 }
 0x328   : > { %v13911_v35 = vpop.f32.mrb[106].mxu1 }
 0x329   : > { %v13919_v14 = vpop.f32.mrb[107].mxu1  ;;  %3788 = vmatmul.mubr.f32.gmra.mrb[204].mxu1 %v11546_v52  ;;  %v13953_v52 = vmul.f32 %v16725_v36, %v16725_v36  ;;  %v13966_v36 = vmul.f32 %v16730_v37, %v16730_v37  ;;  %v11553_v37 = vld [vmem:[%s11864_s1 + $0xb8] sm:$0xff] }
 0x32a   : > { %8916 = vmatprep.mubr.msk.f32.mxu1 %vm997_vm0, %v11547_v49  ;;  %v11550_v49 = vld [vmem:[%s11864_s1 + $0x90] sm:$0xff] }
 0x32b   : > { %16763 = vst [vmem:[#allocation103_spill] sm:$0xff] %v13953_v52  ;;  %16765 = vst [vmem:[#allocation105_spill] sm:$0xff] %v13966_v36  ;;  %v11554_v52 = vld [vmem:[%s11864_s1 + $0xb0] sm:$0xff] }
 0x32c   : > { %v13930_v60 = vpop.f32.mrb[108].mxu1 }
 0x32d   : > { %v13938_v59 = vpop.f32.mrb[109].mxu1  ;;  %3793 = vmatmul.mubr.f32.gmra.mrb[206].mxu1 %v11548_v24  ;;  %v13972_v24 = vmul.f32 %v16733_v34, %v16733_v34  ;;  %v11556_v34 = vld [vmem:[%s11864_s1 + $0xc0] sm:$0xff] }
 0x32e   : > { %8917 = vmatprep.mubr.msk.f32.mxu1 %vm997_vm0, %v11549_v20  ;;  %v11551_v20 = vld [vmem:[%s11864_s1 + $0xa8] sm:$0xff] }
 0x32f   : > { %16766 = vst [vmem:[#allocation106_spill] sm:$0xff] %v13972_v24 }
 0x330   : > { %v13949_v62 = vpop.f32.mrb[110].mxu1 }
 0x331   : > { %v13957_v17 = vpop.f32.mrb[111].mxu1  ;;  %3798 = vmatmul.mubr.f32.gmra.mrb[208].mxu1 %v11550_v49  ;;  %v11557_v49 = vld [vmem:[%s11864_s1 + $0xd8] sm:$0xff] }
 0x332   : > { %16764 = vst [vmem:[#allocation104_spill] sm:$0xff] %v13957_v17  ;;  %8918 = vmatprep.mubr.msk.f32.mxu1 %vm997_vm0, %v11551_v20  ;;  %v11555_v17 = vld [vmem:[%s11864_s1 + $0xc8] sm:$0xff]  ;;  %v2999_v20 = vmul.f32 %v13230_v40, %v13230_v40  ;;  %v16769_v40 = vsub.f32 %v13604_v51, %v13600_v6  ;;  %v3002_v51 = vmul.f32 %v13258_v21, %v13258_v21 }
 0x333   : > { %v16772_v21 = vsub.f32 %v13642_v56, %v13640_v12  ;;  %v11565_v12 = vld [vmem:[%s11864_s1 + $0x118] sm:$0xff] }
 0x334   : > { %v13968_v31 = vpop.f32.mrb[112].mxu1 }
 0x335   : > { %v13976_v33 = vpop.f32.mrb[113].mxu1  ;;  %3803 = vmatmul.mubr.f32.gmra.mrb[210].mxu1 %v11552_v55  ;;  %v2998_v55 = vmul.f32 %v13228_v4, %v13228_v4  ;;  %v3000_v4 = vmul.f32 %v13243_v50, %v13243_v50  ;;  %v16770_v50 = vsub.f32 %v13619_v44, %v13617_v16  ;;  %v11563_v16 = vld [vmem:[%s11864_s1 + $0x108] sm:$0xff] }
 0x336   : > { %16767 = vst [vmem:[#allocation107_spill] sm:$0xff] %v13976_v33  ;;  %8919 = vmatprep.mubr.msk.f32.mxu1 %vm997_vm0, %v11553_v37 }
 0x339   : > { %3808 = vmatmul.mubr.f32.gmra.mrb[212].mxu1 %v11554_v52  ;;  %v11558_v52 = vld [vmem:[%s11864_s1 + $0xd0] sm:$0xff] }
 0x33a   : > { %8920 = vmatprep.mubr.msk.f32.mxu1 %vm997_vm0, %v11555_v17  ;;  %v11559_v17 = vld [vmem:[%s11864_s1 + $0xe8] sm:$0xff] }
 0x33d   : > { %3813 = vmatmul.mubr.f32.gmra.mrb[214].mxu1 %v11556_v34 }
 0x33e   : > { %8921 = vmatprep.mubr.msk.f32.mxu1 %vm997_vm0, %v11557_v49  ;;  %v16768_v49 = vsub.f32 %v13596_v8, %v13593_v11  ;;  %v11561_v8 = vld [vmem:[%s11864_s1 + $0xf8] sm:$0xff] }
 0x340   : > { %v2668_v36 = vpop.f32.mrb[114].mxu1 }
 0x341   : > { %v3112_v37 = vsub.f32 %v2668_v36, %v2998_v55  ;;  %v2670_v24 = vpop.f32.mrb[115].mxu1  ;;  %3818 = vmatmul.mubr.f32.gmra.mrb[216].mxu1 %v11558_v52 }
 0x342   : > { %v3113_v33 = vsub.f32 %v2670_v24, %v2999_v20  ;;  %8922 = vmatprep.mubr.msk.f32.mxu1 %vm997_vm0, %v11559_v17  ;;  %v3001_v24 = vmul.f32 %v13245_v26, %v13245_v26  ;;  %v11560_v17 = vld [vmem:[%s11864_s1 + $0xe0] sm:$0xff]  ;;  %v16771_v26 = vsub.f32 %v13627_v43, %v13623_v27  ;;  %v3004_v43 = vmul.f32 %v13273_v1, %v13273_v1 }
 0x343   : > { %v13999_v34 = vadd.f32 %v3112_v37, %v16768_v49  ;;  %v3003_v49 = vmul.f32 %v13260_v15, %v13260_v15  ;;  %v16773_v15 = vsub.f32 %v13650_v45, %v13646_v53  ;;  %v16774_v1 = vsub.f32 %v13665_v63, %v13663_v54  ;;  %v11567_v54 = vld [vmem:[%s11864_s1 + $0x128] sm:$0xff] }
 0x344   : > { %v14006_v36 = vadd.f32 %v3113_v33, %v16769_v40  ;;  %v2674_v55 = vpop.f32.mrb[116].mxu1  ;;  %v3006_v45 = vmul.f32 %v13288_v7, %v13288_v7  ;;  %v16776_v7 = vsub.f32 %v13688_v10, %v13686_v38  ;;  %v11569_v38 = vld [vmem:[%s11864_s1 + $0x138] sm:$0xff] }
 0x345   : > { %v3114_v20 = vsub.f32 %v2674_v55, %v3000_v4  ;;  %v2676_v52 = vpop.f32.mrb[117].mxu1  ;;  %3823 = vmatmul.mubr.f32.gmra.mrb[218].mxu1 %v11560_v17  ;;  %v11562_v55 = vld [vmem:[%s11864_s1 + $0xf0] sm:$0xff] }
 0x346   : > { %v3115_v11 = vsub.f32 %v2676_v52, %v3001_v24  ;;  %8923 = vmatprep.mubr.msk.f32.mxu1 %vm997_vm0, %v11561_v8  ;;  %v3005_v52 = vmul.f32 %v13275_v48, %v13275_v48  ;;  %v11564_v8 = vld [vmem:[%s11864_s1 + $0x100] sm:$0xff]  ;;  %v16775_v48 = vsub.f32 %v13673_v42, %v13669_v19  ;;  %v16777_v42 = vld [vmem:[#allocation42_spill] sm:$0xff] }
 0x347   : > { %v14016_v6 = vadd.f32 %v3114_v20, %v16770_v50 }
 0x348   : > { %v14023_v33 = vadd.f32 %v3115_v11, %v16771_v26  ;;  %v2680_v37 = vpop.f32.mrb[118].mxu1  ;;  %v3007_v26 = vmul.f32 %v13290_v32, %v13290_v32 }
 0x349   : > { %v3116_v4 = vsub.f32 %v2680_v37, %v3002_v51  ;;  %v2682_v40 = vpop.f32.mrb[119].mxu1  ;;  %3828 = vmatmul.mubr.f32.gmra.mrb[220].mxu1 %v11562_v55  ;;  %v16778_v55 = vld [vmem:[#allocation30_spill] sm:$0xff] }
 0x34a   : > { %v3117_v44 = vsub.f32 %v2682_v40, %v3003_v49  ;;  %8924 = vmatprep.mubr.msk.f32.mxu1 %vm997_vm0, %v11563_v16  ;;  %v3008_v40 = vmul.f32 %v16777_v42, %v16777_v42  ;;  %v16779_v32 = vsub.f32 %v13696_v13, %v16778_v55  ;;  %v16783_v13 = vld [vmem:[#allocation46_spill] sm:$0xff]  ;;  %v16791_v55 = vld [vmem:[#allocation81_spill] sm:$0xff] }
 0x34b   : > { %v14033_v27 = vadd.f32 %v3116_v4, %v16772_v21  ;;  %v11566_v4 = vld [vmem:[%s11864_s1 + $0x110] sm:$0xff]  ;;  %v16780_v21 = vld [vmem:[#allocation43_spill] sm:$0xff] }
 0x34c   : > { %v14040_v24 = vadd.f32 %v3117_v44, %v16773_v15  ;;  %v2686_v20 = vpop.f32.mrb[120].mxu1  ;;  %v16790_v42 = vld [vmem:[#allocation50_spill] sm:$0xff] }
 0x34d   : > { %v3118_v17 = vsub.f32 %v2686_v20, %v3004_v43  ;;  %v2688_v11 = vpop.f32.mrb[121].mxu1  ;;  %3833 = vmatmul.mubr.f32.gmra.mrb[222].mxu1 %v11564_v8  ;;  %v3009_v43 = vmul.f32 %v16780_v21, %v16780_v21 }
 0x34e   : > { %v3119_v56 = vsub.f32 %v2688_v11, %v3005_v52  ;;  %8925 = vmatprep.mubr.msk.f32.mxu1 %vm997_vm0, %v11565_v12  ;;  %v11568_v52 = vld [vmem:[%s11864_s1 + $0x120] sm:$0xff]  ;;  %v16784_v12 = vld [vmem:[#allocation31_spill] sm:$0xff] }
 0x34f   : > { %v14050_v53 = vadd.f32 %v3118_v17, %v16774_v1  ;;  %v16781_v17 = vld [vmem:[#allocation29_spill] sm:$0xff]  ;;  %v16785_v1 = vsub.f32 %v13719_v41, %v16784_v12  ;;  %v16797_v12 = vld [vmem:[#allocation54_spill] sm:$0xff] }
 0x350   : > { %v14057_v50 = vadd.f32 %v3119_v56, %v16775_v48  ;;  %v2692_v51 = vpop.f32.mrb[122].mxu1  ;;  %v16782_v11 = vsub.f32 %v13711_v18, %v16781_v17  ;;  %v3010_v56 = vmul.f32 %v16783_v13, %v16783_v13  ;;  %v11572_v17 = vld [vmem:[%s12126_s2 + $0x8] sm:$0xff] }
 0x351   : > { %v3120_v37 = vsub.f32 %v2692_v51, %v3006_v45  ;;  %v2694_v49 = vpop.f32.mrb[123].mxu1  ;;  %3838 = vmatmul.mubr.f32.gmra.mrb[224].mxu1 %v11566_v4  ;;  %v16786_v51 = vld [vmem:[#allocation47_spill] sm:$0xff]  ;;  %v11570_v4 = vld [vmem:[%s11864_s1 + $0x130] sm:$0xff] }
 0x352   : > { %v3121_v63 = vsub.f32 %v2694_v49, %v3007_v26  ;;  %8926 = vmatprep.mubr.msk.f32.mxu1 %vm997_vm0, %v11567_v54  ;;  %v3011_v26 = vmul.f32 %v16786_v51, %v16786_v51  ;;  %v16788_v54 = vld [vmem:[#allocation79_spill] sm:$0xff] }
 0x353   : > { %v14067_v19 = vadd.f32 %v3120_v37, %v16776_v7  ;;  %v16789_v7 = vsub.f32 %v13734_v47, %v16788_v54  ;;  %v11573_v54 = vld [vmem:[%s12126_s2] sm:$0xff] }
 0x354   : > { %v14074_v44 = vadd.f32 %v3121_v63, %v16779_v32  ;;  %v2698_v16 = vpop.f32.mrb[124].mxu1  ;;  %v16787_v63 = vld [vmem:[#allocation8_spill] sm:$0xff] }
 0x355   : > { %v3122_v15 = vsub.f32 %v2698_v16, %v3008_v40  ;;  %v2700_v20 = vpop.f32.mrb[125].mxu1  ;;  %3843 = vmatmul.mubr.f32.gmra.mrb[226].mxu1 %v11568_v52  ;;  %v3012_v40 = vmul.f32 %v16790_v42, %v16790_v42  ;;  %v16792_v32 = vld [vmem:[#allocation80_spill] sm:$0xff] }
 0x356   : > { %v3123_v10 = vsub.f32 %v2700_v20, %v3009_v43  ;;  %8927 = vmatprep.mubr.msk.f32.mxu1 %vm997_vm0, %v11569_v38  ;;  %v16793_v16 = vsub.f32 %v16791_v55, %v16792_v32  ;;  %v11571_v38 = vld [vmem:[%s11864_s1 + $0x140] sm:$0x1]  ;;  %v16803_v55 = vld [vmem:[#allocation58_spill] sm:$0xff] }
 0x357   : > { %v14084_v8 = vadd.f32 %v3122_v15, %v16782_v11  ;;  %v16794_v15 = vld [vmem:[#allocation51_spill] sm:$0xff]  ;;  %v16795_v11 = vld [vmem:[#allocation82_spill] sm:$0xff]  ;;  %v16801_v42 = vld [vmem:[#allocation84_spill] sm:$0xff]  ;;  %v3016_v32 = vmul.f32 %v16803_v55, %v16803_v55 }
 0x358   : > { %v14091_v45 = vadd.f32 %v3123_v10, %v16785_v1  ;;  %v2704_v48 = vpop.f32.mrb[126].mxu1  ;;  %v3013_v20 = vmul.f32 %v16794_v15, %v16794_v15  ;;  %v16796_v13 = vsub.f32 %v13757_v0, %v16795_v11  ;;  %v3014_v1 = vmul.f32 %v16797_v12, %v16797_v12  ;;  %v11576_v11 = vld [vmem:[%s12126_s2 + $0x28] sm:$0xff]  ;;  %v11578_v55 = vld [vmem:[%s12126_s2 + $0x38] sm:$0xff] }
 0x359   : > { %v3124_v37 = vsub.f32 %v2704_v48, %v3010_v56  ;;  %v2706_v49 = vpop.f32.mrb[127].mxu1  ;;  %3848 = vmatmul.mubr.f32.gmra.mrb[228].mxu1 %v11570_v4  ;;  %v16798_v48 = vld [vmem:[#allocation83_spill] sm:$0xff] }
 0x35a   : > { %v3125_v18 = vsub.f32 %v2706_v49, %v3011_v26  ;;  %8928 = vmatprep.mubr.msk.f32.mxu1 %vm997_vm0, %v16787_v63  ;;  %v16799_v51 = vsub.f32 %v13765_v22, %v16798_v48  ;;  %v16800_v49 = vld [vmem:[#allocation55_spill] sm:$0xff]  ;;  %v16809_v48 = vld [vmem:[#allocation62_spill] sm:$0xff] }
 0x35b   : > { %v14101_v41 = vadd.f32 %v3124_v37, %v16789_v7  ;;  %v3015_v4 = vmul.f32 %v16800_v49, %v16800_v49  ;;  %v11574_v7 = vld [vmem:[%s12126_s2 + $0x18] sm:$0xff] }
 0x35c   : > { %v14108_v21 = vadd.f32 %v3125_v18, %v16793_v16  ;;  %v2710_v43 = vpop.f32.mrb[128].mxu1  ;;  %v16804_v16 = vld [vmem:[#allocation85_spill] sm:$0xff]  ;;  %v16810_v49 = vld [vmem:[#allocation87_spill] sm:$0xff] }
 0x35d   : > { %v3126_v52 = vsub.f32 %v2710_v43, %v3012_v40  ;;  %v2712_v10 = vpop.f32.mrb[129].mxu1  ;;  %8929 = vmatmul.mubr.msk.f32.gmra.mrb[230].mxu1 %vm786_vm1, %v11571_v38  ;;  %v16802_v40 = vsub.f32 %v13778_v5, %v16801_v42  ;;  %v16805_v43 = vsub.f32 %v13786_v61, %v16804_v16  ;;  %v16807_v61 = vld [vmem:[#allocation86_spill] sm:$0xff]  ;;  %v11577_v42 = vld [vmem:[%s12126_s2 + $0x20] sm:$0xff] }
 0x35e   : > { %v3127_v47 = vsub.f32 %v2712_v10, %v3013_v20  ;;  %8930 = vmatprep.mubr.msk.f32.mxu1 %vm997_vm0, %v11572_v17  ;;  %v11575_v17 = vld [vmem:[%s12126_s2 + $0x10] sm:$0xff]  ;;  %v16808_v12 = vsub.f32 %v13797_v2, %v16807_v61 }
 0x35f   : > { %v14119_v56 = vadd.f32 %v3126_v52, %v16796_v13  ;;  %v16806_v52 = vld [vmem:[#allocation59_spill] sm:$0xff]  ;;  %v14151_v13 = vadd.f32 0.0009, %v13999_v34  ;;  %v16815_v16 = vld [vmem:[#allocation66_spill] sm:$0xff] }
 0x360   : > { %v14126_v26 = vadd.f32 %v3127_v47, %v16799_v51  ;;  %v2716_v37 = vpop.f32.mrb[130].mxu1  ;;  %v3017_v10 = vmul.f32 %v16806_v52, %v16806_v52  ;;  %v3018_v51 = vmul.f32 %v16809_v48, %v16809_v48  ;;  %v16819_v48 = vld [vmem:[#allocation90_spill] sm:$0xff] }
 0x361   : > { %v3128_v18 = vsub.f32 %v2716_v37, %v3014_v1  ;;  %v2718_v63 = vpop.f32.mrb[131].mxu1  ;;  %3858 = vmatmul.mubr.f32.gmra.mrb[232].mxu1 %v11573_v54  ;;  %v14161_v37 = vadd.f32 0.0009, %v14006_v36  ;;  %v16812_v54 = vld [vmem:[#allocation63_spill] sm:$0xff]  ;;  %v14175_v36 = vadd.f32 0.0009, %v14023_v33  ;;  %11335 = vrcp.f32 %v14151_v13 }
 0x362   : > { %v3129_v0 = vsub.f32 %v2718_v63, %v3015_v4  ;;  %8931 = vmatprep.mubr.msk.f32.mxu1 %vm997_vm0, %v11574_v7  ;;  %v16811_v4 = vsub.f32 %v13805_v3, %v16810_v49  ;;  %v3019_v34 = vmul.f32 %v16812_v54, %v16812_v54  ;;  %v16813_v3 = vld [vmem:[#allocation88_spill] sm:$0xff]  ;;  %v16816_v33 = vld [vmem:[#allocation89_spill] sm:$0xff]  ;;  %v16822_v54 = vld [vmem:[#allocation71_spill] sm:$0xff] }
 0x363   : > { %v14136_v22 = vadd.f32 %v3128_v18, %v16802_v40  ;;  %11337 = vrcp.f32 %v14161_v37 }
 0x364   : > { %v14143_v15 = vadd.f32 %v3129_v0, %v16805_v43  ;;  %v2722_v20 = vpop.f32.mrb[132].mxu1  ;;  %v14171_v0 = vadd.f32 0.0009, %v14016_v6  ;;  %v3020_v43 = vmul.f32 %v16815_v16, %v16815_v16 }
 0x365   : > { %v3130_v38 = vsub.f32 %v2722_v20, %v3016_v32  ;;  %v2724_v47 = vpop.f32.mrb[133].mxu1  ;;  %3863 = vmatmul.mubr.f32.gmra.mrb[234].mxu1 %v11575_v17  ;;  %v16814_v32 = vsub.f32 %v13816_v46, %v16813_v3  ;;  %v16817_v20 = vsub.f32 %v13824_v58, %v16816_v33  ;;  %v11580_v58 = vld [vmem:[%s12126_s2 + $0x48] sm:$0xff]  ;;  %v11581_v33 = vld [vmem:[%s12126_s2 + $0x40] sm:$0xff] }
 0x366   : > { %v3131_v5 = vsub.f32 %v2724_v47, %v3017_v10  ;;  %8932 = vmatprep.mubr.msk.f32.mxu1 %vm997_vm0, %v11576_v11  ;;  %11339 = vrcp.f32 %v14171_v0  ;;  %v14199_v11 = vadd.f32 0.0009, %v14033_v27  ;;  %v3023_v27 = vmul.f32 %v16822_v54, %v16822_v54 }
 0x367   : > { %v14156_v1 = vadd.f32 %v3130_v38, %v16808_v12  ;;  %v16818_v38 = vld [vmem:[#allocation67_spill] sm:$0xff]  ;;  %11341 = vrcp.f32 %v14175_v36  ;;  %v14204_v12 = vadd.f32 0.0009, %v14040_v24 }
 0x368   : > { %v14166_v18 = vadd.f32 %v3131_v5, %v16811_v4  ;;  %v2728_v63 = vpop.f32.mrb[134].mxu1  ;;  %v3021_v47 = vmul.f32 %v16818_v38, %v16818_v38  ;;  %v11579_v5 = vld [vmem:[%s12126_s2 + $0x30] sm:$0xff]  ;;  %11343 = vrcp.f32 %v14199_v11  ;;  %v14239_v38 = vadd.f32 0.0009, %v14067_v19  ;;  %v16832_v19 = vld [vmem:[#allocation13_spill] sm:$0xff] }
 0x369   : > { %v3132_v2 = vsub.f32 %v2728_v63, %v3018_v51  ;;  %v2730_v7 = vpop.f32.mrb[135].mxu1  ;;  %3868 = vmatmul.mubr.f32.gmra.mrb[236].mxu1 %v11577_v42  ;;  %v16820_v51 = vsub.f32 %v13835_v57, %v16819_v48  ;;  %v16821_v4 = vld [vmem:[#allocation70_spill] sm:$0xff]  ;;  %11345 = vrcp.f32 %v14204_v12 }
 0x36a   : > { %v3133_v40 = vsub.f32 %v2730_v7, %v3019_v34  ;;  %8933 = vmatprep.mubr.msk.f32.mxu1 %vm997_vm0, %v11578_v55  ;;  %v3022_v63 = vmul.f32 %v16821_v4, %v16821_v4  ;;  %v14216_v34 = vadd.f32 0.0009, %v14050_v53  ;;  %v16826_v55 = vld [vmem:[#allocation75_spill] sm:$0xff]  ;;  %v16827_v53 = vld [vmem:[#allocation77_spill] sm:$0xff]  ;;  %v14262_v4 = vadd.f32 0.0009, %v14084_v8 }
 0x36b   : > { %v14183_v6 = vadd.f32 %v3132_v2, %v16814_v32  ;;  %v16823_v2 = vld [vmem:[#allocation91_spill] sm:$0xff]  ;;  %v3025_v3 = vmul.f32 %v16826_v55, %v16826_v55  ;;  %v14228_v32 = vadd.f32 0.0009, %v14057_v50  ;;  %v16829_v50 = vld [vmem:[#allocation14_spill] sm:$0xff] }
 0x36c   : > { %v14191_v52 = vadd.f32 %v3133_v40, %v16817_v20  ;;  %v2734_v10 = vpop.f32.mrb[136].mxu1  ;;  %v16824_v7 = vsub.f32 %v13843_v29, %v16823_v2  ;;  %v16825_v40 = vld [vmem:[#allocation74_spill] sm:$0xff]  ;;  %v3026_v20 = vmul.f32 %v16827_v53, %v16827_v53  ;;  %11347 = vrcp.f32 %v14216_v34 }
 0x36d   : > { %v3134_v17 = vsub.f32 %v2734_v10, %v3020_v43  ;;  %v2736_v46 = vpop.f32.mrb[137].mxu1  ;;  %3873 = vmatmul.mubr.f32.gmra.mrb[238].mxu1 %v11579_v5  ;;  %v3024_v57 = vmul.f32 %v16825_v40, %v16825_v40  ;;  %v16828_v29 = vld [vmem:[#allocation78_spill] sm:$0xff]  ;;  %v14249_v5 = vadd.f32 0.0009, %v14074_v44  ;;  %11349 = vrcp.f32 %v14228_v32 }
 0x36e   : > { %v3135_v61 = vsub.f32 %v2736_v46, %v3021_v47  ;;  %8934 = vmatprep.mubr.msk.f32.mxu1 %vm997_vm0, %v11580_v58  ;;  %v14235_v10 = vmul.f32 %v16828_v29, %v16828_v29  ;;  %v14245_v46 = vmul.f32 %v16829_v50, %v16829_v50  ;;  %v16835_v2 = vld [vmem:[#allocation18_spill] sm:$0xff]  ;;  %11351 = vrcp.f32 %v14239_v38  ;;  %v11584_v29 = vld [vmem:[%s12126_s2 + $0x68] sm:$0xff] }
 0x36f   : > { %v14209_v49 = vadd.f32 %v3134_v17, %v16820_v51  ;;  %v11582_v17 = vld [vmem:[%s12126_s2 + $0x58] sm:$0xff]  ;;  %v14258_v51 = vmul.f32 %v16832_v19, %v16832_v19  ;;  %v11583_v55 = vld [vmem:[%s12126_s2 + $0x50] sm:$0xff]  ;;  %11353 = vrcp.f32 %v14249_v5 }
 0x370   : > { %v14221_v24 = vadd.f32 %v3135_v61, %v16824_v7  ;;  %v2740_v42 = vpop.f32.mrb[138].mxu1  ;;  %v16830_v61 = vld [vmem:[#allocation92_spill] sm:$0xff]  ;;  %v14273_v7 = vpop.eup %11335  ;;  %v16838_v50 = vld [vmem:[#allocation94_spill] sm:$0xff]  ;;  %11355 = vrcp.f32 %v14262_v4 }
 0x371   : > { %v3136_v16 = vsub.f32 %v2740_v42, %v3022_v63  ;;  %v2742_v43 = vpop.f32.mrb[139].mxu1  ;;  %3878 = vmatmul.mubr.f32.gmra.mrb[240].mxu1 %v11581_v33  ;;  %v16831_v58 = vsub.f32 %v13854_v30, %v16830_v61  ;;  %v16833_v63 = vld [vmem:[#allocation93_spill] sm:$0xff]  ;;  %v14271_v30 = vmul.f32 %v16835_v2, %v16835_v2  ;;  %v14277_v42 = vadd.f32 0.0009, %v14091_v45  ;;  %v16837_v45 = vld [vmem:[#allocation22_spill] sm:$0xff] }
 0x372   : > { %v3137_v47 = vsub.f32 %v2742_v43, %v3023_v27  ;;  %8935 = vmatprep.mubr.msk.f32.mxu1 %vm997_vm0, %v11582_v17  ;;  %v16834_v54 = vsub.f32 %v13862_v39, %v16833_v63  ;;  %v16836_v39 = vld [vmem:[#allocation17_spill] sm:$0xff]  ;;  %v14284_v43 = vpop.eup %11337  ;;  %v14288_v33 = vadd.f32 0.0009, %v14101_v41  ;;  %v14300_v17 = vadd.f32 0.0009, %v14108_v21 }
 0x373   : > { %v14254_v48 = vadd.f32 %v3136_v16, %v16831_v58  ;;  %v14282_v16 = vmul.f32 %v16836_v39, %v16836_v39  ;;  %v16839_v41 = vsub.f32 %v13873_v28, %v16838_v50  ;;  %v14315_v63 = vmul.f32 %v14273_v7, %v14151_v13  ;;  %v16841_v28 = vld [vmem:[#allocation95_spill] sm:$0xff]  ;;  %v11585_v39 = vld [vmem:[%s12126_s2 + $0x60] sm:$0xff] }
 0x374   : > { %v14267_v44 = vadd.f32 %v3137_v47, %v16834_v54  ;;  %v2746_v27 = vpop.f32.mrb[140].mxu1  ;;  %v14296_v47 = vpop.eup %11339  ;;  %v14319_v21 = vadd.f32 0.0009, %v14119_v56  ;;  %v16842_v54 = vsub.f32 %v13881_v25, %v16841_v28  ;;  %11357 = vrcp.f32 %v14277_v42 }
 0x375   : > { %v3138_v8 = vsub.f32 %v2746_v27, %v3024_v57  ;;  %v2748_v40 = vpop.f32.mrb[141].mxu1  ;;  %3883 = vmatmul.mubr.f32.gmra.mrb[242].mxu1 %v11583_v55  ;;  %v14294_v57 = vmul.f32 %v16837_v45, %v16837_v45  ;;  %v14311_v19 = vpop.eup %11341  ;;  %v14332_v13 = vadd.f32 0.0009, %v14126_v26  ;;  %v3380_v56 = vmul.f32 %v14296_v47, %v14171_v0  ;;  %v16843_v0 = vld [vmem:[#allocation96_spill] sm:$0xff] }
 0x376   : > { %v3139_v53 = vsub.f32 %v2748_v40, %v3025_v3  ;;  %8936 = vmatprep.mubr.msk.f32.mxu1 %vm997_vm0, %v11584_v29  ;;  %v16840_v3 = vld [vmem:[#allocation21_spill] sm:$0xff]  ;;  %11359 = vrcp.f32 %v14288_v33  ;;  %v14339_v25 = vadd.f32 0.0009, %v14136_v22  ;;  %v3381_v26 = vmul.f32 %v14311_v19, %v14175_v36  ;;  %v14355_v22 = vpop.eup %11343 }
 0x377   : > { %v14305_v61 = vadd.f32 %v3138_v8, %v16839_v41  ;;  %v14309_v58 = vmul.f32 %v16840_v3, %v16840_v3  ;;  %v14328_v8 = vmul.f32 %v14284_v43, %v14161_v37  ;;  %11361 = vrcp.f32 %v14300_v17  ;;  %v16845_v36 = vld [vmem:[#allocation97_spill] sm:$0xff]  ;;  %v16847_v3 = vld [vmem:[#allocation26_spill] sm:$0xff] }
 0x378   : > { %v14324_v27 = vadd.f32 %v3139_v53, %v16842_v54  ;;  %v2752_v2 = vpop.f32.mrb[142].mxu1  ;;  %v11586_v53 = vld [vmem:[%s12126_s2 + $0x78] sm:$0xff]  ;;  %v16844_v29 = vsub.f32 %v13892_v23, %v16843_v0  ;;  %11363 = vrcp.f32 %v14319_v21  ;;  %v16846_v50 = vsub.f32 %v13900_v9, %v16845_v36  ;;  %v14370_v23 = vpop.eup %11345 }
 0x379   : > { %v3140_v40 = vsub.f32 %v2752_v2, %v3026_v20  ;;  %v2754_v55 = vpop.f32.mrb[143].mxu1  ;;  %3888 = vmatmul.mubr.f32.gmra.mrb[244].mxu1 %v11585_v39  ;;  %v14348_v20 = vadd.f32 0.0009, %v14143_v15  ;;  %v14368_v28 = vmul.f32 %v16847_v3, %v16847_v3  ;;  %v3416_v54 = vsub.f32 2.0, %v14315_v63 }
 0x37a   : > { %v3141_v37 = vsub.f32 %v2754_v55, %v14235_v10  ;;  %8937 = vmatprep.mubr.msk.f32.mxu1 %vm997_vm0, %v11586_v53  ;;  %v14359_v10 = vadd.f32 0.0009, %v14156_v1  ;;  %11365 = vrcp.f32 %v14332_v13  ;;  %v14375_v1 = vadd.f32 0.0009, %v14166_v18  ;;  %v14379_v55 = vpop.eup %11347  ;;  %v11588_v53 = vld [vmem:[%s12126_s2 + $0x88] sm:$0xff] }
 0x37b   : > { %v14353_v45 = vadd.f32 %v3140_v40, %v16844_v29  ;;  %v11587_v40 = vld [vmem:[%s12126_s2 + $0x70] sm:$0xff]  ;;  %v3417_v39 = vsub.f32 2.0, %v14328_v8  ;;  %11367 = vrcp.f32 %v14339_v25  ;;  %v14389_v18 = vpop.eup %11349  ;;  %v3419_v0 = vsub.f32 2.0, %v3381_v26 }
 0x37c   : > { %v14364_v41 = vadd.f32 %v3141_v37, %v16846_v50  ;;  %v2758_v15 = vpop.f32.mrb[144].mxu1  ;;  %v14384_v37 = vadd.f32 0.0009, %v14183_v6  ;;  %11369 = vrcp.f32 %v14348_v20  ;;  %v16848_v29 = vld [vmem:[#allocation98_spill] sm:$0xff]  ;;  %v14397_v50 = vpop.eup %11351  ;;  %v3382_v6 = vmul.f32 %v14355_v22, %v14199_v11 }
 0x37d   : > { %v3142_v2 = vsub.f32 %v2758_v15, %v14245_v46  ;;  %v2760_v9 = vpop.f32.mrb[145].mxu1  ;;  %3893 = vmatmul.mubr.f32.gmra.mrb[246].mxu1 %v11587_v40  ;;  %v3418_v46 = vsub.f32 2.0, %v3380_v56  ;;  %v16849_v8 = vsub.f32 %v13911_v35, %v16848_v29  ;;  %11371 = vrcp.f32 %v14359_v10  ;;  %v16850_v56 = vld [vmem:[#allocation99_spill] sm:$0xff]  ;;  %v14409_v35 = vpop.eup %11353  ;;  %v16852_v40 = vld [vmem:[#allocation25_spill] sm:$0xff] }
 0x37e   : > { %v3143_v63 = vsub.f32 %v2760_v9, %v14258_v51  ;;  %8938 = vmatprep.mubr.msk.f32.mxu1 %vm997_vm0, %v11588_v53  ;;  %v3383_v51 = vmul.f32 %v14370_v23, %v14204_v12  ;;  %v16851_v26 = vsub.f32 %v13919_v14, %v16850_v56  ;;  %11373 = vrcp.f32 %v14375_v1  ;;  %v11589_v12 = vld [vmem:[%s12126_s2 + $0x80] sm:$0xff]  ;;  %v14421_v14 = vpop.eup %11355 }
 0x37f   : > { %v14395_v36 = vadd.f32 %v3142_v2, %v16849_v8  ;;  %v14413_v2 = vadd.f32 0.0009, %v14191_v52  ;;  %v14419_v53 = vmul.f32 %v16852_v40, %v16852_v40  ;;  %11375 = vrcp.f32 %v14384_v37  ;;  %v11590_v52 = vld [vmem:[%s12126_s2 + $0x98] sm:$0xff]  ;;  %v14433_v8 = vpop.eup %11357  ;;  %v16855_v40 = vld [vmem:[#allocation101_spill] sm:$0xff] }
 0x380   : > { %v14407_v15 = vadd.f32 %v3143_v63, %v16851_v26  ;;  %v2764_v3 = vpop.f32.mrb[146].mxu1  ;;  %v14425_v63 = vadd.f32 0.0009, %v14209_v49  ;;  %v14436_v56 = vadd.f32 0.0009, %v14221_v24  ;;  %v16853_v26 = vld [vmem:[#allocation100_spill] sm:$0xff]  ;;  %v14444_v49 = vmul.f32 %v14284_v43, %v3417_v39 }
 0x381   : > { %v3144_v11 = vsub.f32 %v2764_v3, %v14271_v30  ;;  %v2766_v9 = vpop.f32.mrb[147].mxu1  ;;  %3898 = vmatmul.mubr.f32.gmra.mrb[248].mxu1 %v11589_v12  ;;  %v14431_v30 = vmul.f32 %v14273_v7, %v3416_v54  ;;  %v16854_v3 = vsub.f32 %v13930_v60, %v16853_v26  ;;  %v3420_v7 = vsub.f32 2.0, %v3382_v6 }
 0x382   : > { %v3145_v29 = vsub.f32 %v2766_v9, %v14282_v16  ;;  %8939 = vmatprep.mubr.msk.f32.mxu1 %vm997_vm0, %v11590_v52  ;;  %v14447_v16 = vmul.f32 %v14296_v47, %v3418_v46  ;;  %v14449_v9 = vpop.eup %11359  ;;  %v3421_v54 = vsub.f32 2.0, %v3383_v51  ;;  %v16856_v24 = vsub.f32 %v13938_v59, %v16855_v40  ;;  %v11591_v46 = vld [vmem:[%s12126_s2 + $0x90] sm:$0xff] }
 0x383   : > { %v14441_v12 = vadd.f32 %v3144_v11, %v16854_v3  ;;  %v14457_v11 = vmul.f32 %v14311_v19, %v3419_v0  ;;  %v14459_v26 = vpop.eup %11361  ;;  %v3384_v43 = vmul.f32 %v14379_v55, %v14216_v34  ;;  %v3385_v47 = vmul.f32 %v14389_v18, %v14228_v32  ;;  %v11592_v32 = vld [vmem:[%s12126_s2 + $0xa8] sm:$0xff] }
 0x384   : > { %v14454_v52 = vadd.f32 %v3145_v29, %v16856_v24  ;;  %v2770_v60 = vpop.f32.mrb[148].mxu1  ;;  %11377 = vrcp.f32 %v14413_v2  ;;  %v14468_v6 = vpop.eup %11363  ;;  %v3386_v19 = vmul.f32 %v14397_v50, %v14239_v38  ;;  %v3387_v0 = vmul.f32 %v14409_v35, %v14249_v5  ;;  %v16857_v38 = vld [vmem:[#allocation102_spill] sm:$0xff]  ;;  %v16859_v24 = vld [vmem:[#allocation104_spill] sm:$0xff] }
 0x385   : > { %v3146_v39 = vsub.f32 %v2770_v60, %v14294_v57  ;;  %v2772_v59 = vpop.f32.mrb[149].mxu1  ;;  %3903 = vmatmul.mubr.f32.gmra.mrb[250].mxu1 %v11591_v46  ;;  %11379 = vrcp.f32 %v14425_v63  ;;  %v14478_v51 = vpop.eup %11365  ;;  %v3388_v57 = vmul.f32 %v14421_v14, %v14262_v4  ;;  %v14484_v29 = vmul.f32 %v14433_v8, %v14277_v42  ;;  %v16860_v60 = vld [vmem:[#allocation103_spill] sm:$0xff] }
 0x386   : > { %v3147_v34 = vsub.f32 %v2772_v59, %v14309_v58  ;;  %8940 = vmatprep.mubr.msk.f32.mxu1 %vm997_vm0, %v11592_v32  ;;  %11381 = vrcp.f32 %v14436_v56  ;;  %v16858_v5 = vsub.f32 %v13949_v62, %v16857_v38  ;;  %v14492_v58 = vpop.eup %11367  ;;  %v14495_v40 = vadd.f32 0.0009, %v14254_v48 }
 0x387   : > { %v16861_v4 = vsub.f32 %v16859_v24, %v16860_v60  ;;  %v14503_v42 = vmul.f32 %v14355_v22, %v3420_v7  ;;  %v14506_v32 = vmul.f32 %v14370_v23, %v3421_v54  ;;  %v14508_v62 = vpop.eup %11369  ;;  %v3423_v38 = vsub.f32 2.0, %v3385_v47  ;;  %v11594_v54 = vld [vmem:[%s12126_s2 + $0xb8] sm:$0xff] }
 0x388   : > { %v14490_v3 = vadd.f32 %v3146_v39, %v16858_v5  ;;  %v2776_v46 = vpop.f32.mrb[150].mxu1  ;;  %v3422_v39 = vsub.f32 2.0, %v3384_v43  ;;  %v14511_v48 = vadd.f32 0.0009, %v14267_v44  ;;  %v14515_v60 = vpop.eup %11371  ;;  %v3425_v22 = vsub.f32 2.0, %v3387_v0 }
 0x389   : > { %v14500_v59 = vadd.f32 %v3147_v34, %v16861_v4  ;;  %v3148_v5 = vsub.f32 %v2776_v46, %v14368_v28  ;;  %v2778_v24 = vpop.f32.mrb[151].mxu1  ;;  %v11593_v34 = vld [vmem:[%s12126_s2 + $0xa0] sm:$0xff]  ;;  %v3424_v4 = vsub.f32 2.0, %v3386_v19  ;;  %v3390_v23 = vmul.f32 %v14449_v9, %v14288_v33  ;;  %v14522_v44 = vpop.eup %11373  ;;  %v16862_v19 = vld [vmem:[#allocation105_spill] sm:$0xff] }
 0x38a   : > { %3908 = vmatmul.mubr.f32.gmra.mrb[252].mxu1 %v11593_v34  ;;  %v3149_v7 = vsub.f32 %v2778_v24, %v14419_v53  ;;  %v3426_v43 = vsub.f32 2.0, %v3388_v57  ;;  %v3427_v28 = vsub.f32 2.0, %v14484_v29  ;;  %v3391_v47 = vmul.f32 %v14459_v26, %v14300_v17  ;;  %v14532_v33 = vpop.eup %11375  ;;  %v16864_v57 = vld [vmem:[#allocation107_spill] sm:$0xff]  ;;  %v16865_v29 = vld [vmem:[#allocation106_spill] sm:$0xff] }
 0x38b   : > { %8941 = vmatprep.mubr.msk.f32.mxu1 %vm997_vm0, %v11594_v54  ;;  %v16863_v0 = vsub.f32 %v13968_v31, %v16862_v19  ;;  %v3392_v53 = vmul.f32 %v14468_v6, %v14319_v21  ;;  %v3393_v24 = vmul.f32 %v14478_v51, %v14332_v13  ;;  %11383 = vrcp.f32 %v14495_v40  ;;  %v11595_v21 = vld [vmem:[%s12126_s2 + $0xb0] sm:$0xff] }
 0x38c   : > { %v16866_v34 = vsub.f32 %v16864_v57, %v16865_v29  ;;  %v3394_v31 = vmul.f32 %v14492_v58, %v14339_v25  ;;  %v3395_v17 = vmul.f32 %v14508_v62, %v14348_v20  ;;  %11385 = vrcp.f32 %v14511_v48 }
 0x38d   : > { %v14530_v46 = vadd.f32 %v3148_v5, %v16863_v0  ;;  %v3396_v5 = vmul.f32 %v14515_v60, %v14359_v10  ;;  %v3428_v13 = vsub.f32 2.0, %v3390_v23  ;;  %v3397_v19 = vmul.f32 %v14522_v44, %v14375_v1  ;;  %v11596_v0 = vld [vmem:[%s12126_s2 + $0xc8] sm:$0xff] }
 0x38e   : > { %v14542_v54 = vadd.f32 %v3149_v7, %v16866_v34  ;;  %3913 = vmatmul.mubr.f32.gmra.mrb[254].mxu1 %v11595_v21  ;;  %v14557_v7 = vmul.f32 %v14379_v55, %v3422_v39  ;;  %v14560_v25 = vmul.f32 %v14389_v18, %v3423_v38  ;;  %v14562_v20 = vpop.eup %11377  ;;  %v3429_v10 = vsub.f32 2.0, %v3391_v47  ;;  %v11597_v21 = vld [vmem:[%s12126_s2 + $0xc0] sm:$0xff] }
 0x38f   : > { %8942 = vmatprep.mubr.msk.f32.mxu1 %vm997_vm0, %v11596_v0  ;;  %v3398_v57 = vmul.f32 %v14532_v33, %v14384_v37  ;;  %v14567_v23 = vadd.f32 0.0009, %v14305_v61  ;;  %v14570_v1 = vmul.f32 %v14397_v50, %v3424_v4  ;;  %v14572_v29 = vpop.eup %11379  ;;  %v3430_v55 = vsub.f32 2.0, %v3392_v53 }
 0x390   : > { %v3431_v39 = vsub.f32 2.0, %v3393_v24  ;;  %v14575_v18 = vmul.f32 %v14409_v35, %v3425_v22  ;;  %v14578_v38 = vmul.f32 %v14421_v14, %v3426_v43  ;;  %v14580_v47 = vpop.eup %11381  ;;  %v3432_v37 = vsub.f32 2.0, %v3394_v31  ;;  %v11598_v14 = vld [vmem:[%s12126_s2 + $0xd8] sm:$0xff] }
 0x391   : > { %v3433_v34 = vsub.f32 2.0, %v3395_v17  ;;  %v3434_v61 = vsub.f32 2.0, %v3396_v5  ;;  %v14584_v50 = vmul.f32 %v14433_v8, %v3427_v28  ;;  %v3435_v4 = vsub.f32 2.0, %v3397_v19 }
 0x392   : > { %3918 = vmatmul.mubr.f32.gmra.mrb[0].mxu1 %v11597_v21  ;;  %v3399_v53 = vmul.f32 %v14562_v20, %v14413_v2  ;;  %v14589_v35 = vadd.f32 0.0009, %v14324_v27  ;;  %v14594_v22 = vmul.f32 %v14449_v9, %v3428_v13  ;;  %v3436_v43 = vsub.f32 2.0, %v3398_v57 }
 0x393   : > { %8943 = vmatprep.mubr.msk.f32.mxu1 %vm997_vm0, %v11598_v14  ;;  %v3400_v24 = vmul.f32 %v14572_v29, %v14425_v63  ;;  %11387 = vrcp.f32 %v14567_v23  ;;  %v14600_v8 = vmul.f32 %v14459_v26, %v3429_v10  ;;  %v3401_v27 = vmul.f32 %v14580_v47, %v14436_v56  ;;  %v16867_v63 = vld [vmem:[#allocation33_spill] sm:$0xff]  ;;  %v11599_v26 = vld [vmem:[%s12126_s2 + $0xd0] sm:$0xff] }
 0x394   : > { %v14605_v2 = vadd.f32 0.0009, %v14353_v45  ;;  %v2847_v28 = vpop.f32.mrb[152].mxu1  ;;  %v14608_v9 = vmul.f32 %v14468_v6, %v3430_v55  ;;  %v14611_v31 = vmul.f32 %v14478_v51, %v3431_v39  ;;  %v14616_v13 = vmul.f32 %v14492_v58, %v3432_v37  ;;  %v16868_v51 = vld [vmem:[#allocation34_spill] sm:$0xff]  ;;  %v11600_v10 = vld [vmem:[%s12126_s2 + $0xe8] sm:$0xff] }
 0x395   : > { %v3150_v17 = vsub.f32 %v2847_v28, %v16867_v63  ;;  %v2849_v5 = vpop.f32.mrb[153].mxu1  ;;  %v14619_v45 = vmul.f32 %v14508_v62, %v3433_v34  ;;  %v14622_v56 = vmul.f32 %v14515_v60, %v3434_v61  ;;  %v14624_v6 = vpop.eup %11383  ;;  %v3437_v19 = vsub.f32 2.0, %v3399_v53  ;;  %v16869_v53 = vld [vmem:[#allocation9_spill] sm:$0xff]  ;;  %v11602_v63 = vld [vmem:[%s12126_s2 + $0xf8] sm:$0xff] }
 0x396   : > { %3923 = vmatmul.mubr.f32.gmra.mrb[2].mxu1 %v11599_v26  ;;  %11389 = vrcp.f32 %v14589_v35  ;;  %v3151_v0 = vsub.f32 %v2849_v5, %v16868_v51  ;;  %v14631_v57 = vmul.f32 %v14522_v44, %v3435_v4  ;;  %v14633_v58 = vpop.eup %11385  ;;  %v3438_v62 = vsub.f32 2.0, %v3400_v24 }
 0x397   : > { %8944 = vmatprep.mubr.msk.f32.mxu1 %vm997_vm0, %v11600_v10  ;;  %v14636_v60 = vadd.f32 0.0009, %v14364_v41  ;;  %v3188_v55 = vmul.f32 2.0, %v3150_v17  ;;  %v14639_v39 = vmul.f32 %v14532_v33, %v3436_v43  ;;  %v3439_v37 = vsub.f32 2.0, %v3401_v27  ;;  %v11601_v43 = vld [vmem:[%s12126_s2 + $0xe0] sm:$0xff]  ;;  %v16870_v27 = vld [vmem:[#allocation35_spill] sm:$0xff] }
 0x398   : > { %11391 = vrcp.f32 %v14605_v2  ;;  %v14643_v34 = vadd.f32 0.0009, %v14395_v36  ;;  %v3189_v44 = vmul.f32 2.0, %v3151_v0  ;;  %v2853_v61 = vpop.f32.mrb[154].mxu1  ;;  %v14647_v21 = vmul.f32 %v14624_v6, %v14495_v40  ;;  %v16871_v10 = vld [vmem:[#allocation36_spill] sm:$0xff] }
 0x399   : > { %v14650_v41 = vadd.f32 0.0009, %v14407_v15  ;;  %v3226_v4 = vadd.f32 0.0009, %v3188_v55  ;;  %v3152_v33 = vsub.f32 %v2853_v61, %v16869_v53  ;;  %v2855_v14 = vpop.f32.mrb[155].mxu1  ;;  %v14656_v24 = vmul.f32 %v14633_v58, %v14511_v48  ;;  %v11603_v55 = vld [vmem:[%s12126_s2 + $0xf0] sm:$0xff] }
 0x39a   : > { %3928 = vmatmul.mubr.f32.gmra.mrb[4].mxu1 %v11601_v43  ;;  %v3227_v36 = vadd.f32 0.0009, %v3189_v44  ;;  %v3153_v28 = vsub.f32 %v2855_v14, %v16870_v27  ;;  %v14662_v40 = vmul.f32 %v14562_v20, %v3437_v19  ;;  %11393 = vrcp.f32 %v14636_v60 }
 0x39b   : > { %8945 = vmatprep.mubr.msk.f32.mxu1 %vm997_vm0, %v11602_v63  ;;  %v3492_v15 = vmul.f32 %v14431_v30, %v3226_v4  ;;  %v3190_v17 = vmul.f32 2.0, %v3152_v33  ;;  %v14667_v5 = vmul.f32 %v14572_v29, %v3438_v62  ;;  %11395 = vrcp.f32 %v14643_v34  ;;  %v16872_v4 = vld [vmem:[#allocation37_spill] sm:$0xff] }
 0x39c   : > { %v3493_v48 = vmul.f32 %v14444_v49, %v3227_v36  ;;  %v3191_v26 = vmul.f32 2.0, %v3153_v28  ;;  %v2859_v51 = vpop.f32.mrb[156].mxu1  ;;  %v14672_v0 = vmul.f32 %v14580_v47, %v3439_v37  ;;  %v3440_v19 = vsub.f32 2.0, %v14647_v21  ;;  %v11604_v47 = vld [vmem:[%s12126_s2 + $0x108] sm:$0xff] }
 0x39d   : > { %v14674_v20 = vpop.eup %11387  ;;  %11397 = vrcp.f32 %v14650_v41  ;;  %v3228_v30 = vadd.f32 0.0009, %v3190_v17  ;;  %v3154_v29 = vsub.f32 %v2859_v51, %v16871_v10  ;;  %v2861_v62 = vpop.f32.mrb[157].mxu1  ;;  %v3441_v49 = vsub.f32 2.0, %v14656_v24  ;;  %v11605_v51 = vld [vmem:[%s12126_s2 + $0x100] sm:$0xff] }
 0x39e   : > { %3933 = vmatmul.mubr.f32.gmra.mrb[6].mxu1 %v11603_v55  ;;  %v3531_v44 = vmax.f32 %v3493_v48, 0.0  ;;  %v3229_v61 = vadd.f32 0.0009, %v3191_v26  ;;  %v3155_v53 = vsub.f32 %v2861_v62, %v16872_v4  ;;  %v14685_v37 = vadd.f32 0.0009, %v14441_v12  ;;  %v16874_v62 = vld [vmem:[#allocation39_spill] sm:$0xff] }
 0x39f   : > { %8946 = vmatprep.mubr.msk.f32.mxu1 %vm997_vm0, %v11604_v47  ;;  %v3530_v21 = vmax.f32 %v3492_v15, 0.0  ;;  %v3494_v33 = vmul.f32 %v14447_v16, %v3228_v30  ;;  %v3192_v14 = vmul.f32 2.0, %v3154_v29  ;;  %v14692_v24 = vmul.f32 %v14674_v20, %v14567_v23  ;;  %v16873_v15 = vld [vmem:[#allocation38_spill] sm:$0xff] }
 0x3a0   : > { %v14688_v43 = vpop.eup %11389  ;;  %v3574_v36 = vsel %vm3573_vm2, %v3531_v44, 0.0  ;;  %v3495_v27 = vmul.f32 %v14457_v11, %v3229_v61  ;;  %v3193_v28 = vmul.f32 2.0, %v3155_v53  ;;  %v2865_v63 = vpop.f32.mrb[158].mxu1  ;;  %v14701_v23 = vadd.f32 0.0009, %v14454_v52  ;;  %v11606_v11 = vld [vmem:[%s12126_s2 + $0x118] sm:$0xff] }
 0x3a1   : > { %v3575_v17 = vadd.f32 %v3574_v36, %v3530_v21  ;;  %v3532_v12 = vmax.f32 %v3494_v33, 0.0  ;;  %v3230_v48 = vadd.f32 0.0009, %v3192_v14  ;;  %v3156_v26 = vsub.f32 %v2865_v63, %v16873_v15  ;;  %v2867_v16 = vpop.f32.mrb[159].mxu1  ;;  %v16875_v63 = vld [vmem:[#allocation40_spill] sm:$0xff] }
 0x3a2   : > { %3938 = vmatmul.mubr.f32.gmra.mrb[8].mxu1 %v11605_v51  ;;  %v14698_v30 = vpop.eup %11391  ;;  %v3533_v10 = vmax.f32 %v3495_v27, 0.0  ;;  %v3231_v29 = vadd.f32 0.0009, %v3193_v28  ;;  %v3157_v55 = vsub.f32 %v2867_v16, %v16874_v62  ;;  %v14708_v53 = vmul.f32 %v14624_v6, %v3440_v19  ;;  %v11607_v19 = vld [vmem:[%s12126_s2 + $0x110] sm:$0xff] }
 0x3a3   : > { %8947 = vmatprep.mubr.msk.f32.mxu1 %vm997_vm0, %v11606_v11  ;;  %v3576_v44 = vadd.f32 %v3575_v17, %v3532_v12  ;;  %v3496_v61 = vmul.f32 %v14503_v42, %v3230_v48  ;;  %v3194_v4 = vmul.f32 2.0, %v3156_v26  ;;  %v14712_v47 = vmul.f32 %v14688_v43, %v14589_v35  ;;  %v11608_v26 = vld [vmem:[%s12126_s2 + $0x128] sm:$0xff] }
 0x3a4   : > { %v3577_v52 = vsel %vm3573_vm2, %v3533_v10, 0.0  ;;  %v3497_v21 = vmul.f32 %v14506_v32, %v3231_v29  ;;  %v3195_v33 = vmul.f32 2.0, %v3157_v55  ;;  %v2871_v14 = vpop.f32.mrb[160].mxu1  ;;  %v14716_v36 = vpop.eup %11393  ;;  %11399 = vrcp.f32 %v14685_v37  ;;  %v16876_v32 = vld [vmem:[#allocation41_spill] sm:$0xff] }
 0x3a5   : > { %v3578_v27 = vadd.f32 %v3577_v52, %v3576_v44  ;;  %v3534_v28 = vmax.f32 %v3496_v61, 0.0  ;;  %v3232_v42 = vadd.f32 0.0009, %v3194_v4  ;;  %v3158_v17 = vsub.f32 %v2871_v14, %v16875_v63  ;;  %v2873_v6 = vpop.f32.mrb[161].mxu1  ;;  %v14720_v12 = vpop.eup %11395  ;;  %v16877_v14 = vld [vmem:[#allocation44_spill] sm:$0xff]  ;;  %v11610_v63 = vld [vmem:[%s12126_s2 + $0x138] sm:$0xff] }
 0x3a6   : > { %3943 = vmatmul.mubr.f32.gmra.mrb[10].mxu1 %v11607_v19  ;;  %v3535_v35 = vmax.f32 %v3497_v21, 0.0  ;;  %v3233_v48 = vadd.f32 0.0009, %v3195_v33  ;;  %v3159_v15 = vsub.f32 %v2873_v6, %v16876_v32  ;;  %v14730_v62 = vmul.f32 %v14633_v58, %v3441_v49 }
 0x3a7   : > { %8948 = vmatprep.mubr.msk.f32.mxu1 %vm997_vm0, %v11608_v26  ;;  %v14726_v16 = vpop.eup %11397  ;;  %v3579_v51 = vadd.f32 %v3578_v27, %v3534_v28  ;;  %v3498_v10 = vmul.f32 %v14557_v7, %v3232_v42  ;;  %v3196_v29 = vmul.f32 2.0, %v3158_v17  ;;  %v3442_v55 = vsub.f32 2.0, %v14692_v24  ;;  %v11609_v7 = vld [vmem:[%s12126_s2 + $0x120] sm:$0xff]  ;;  %v16878_v24 = vld [vmem:[#allocation45_spill] sm:$0xff] }
 0x3a8   : > { %v3580_v11 = vsel %vm3573_vm2, %v3535_v35, 0.0  ;;  %v3499_v44 = vmul.f32 %v14560_v25, %v3233_v48  ;;  %v3197_v61 = vmul.f32 2.0, %v3159_v15  ;;  %v2877_v4 = vpop.f32.mrb[162].mxu1  ;;  %11401 = vrcp.f32 %v14701_v23 }
 0x3a9   : > { %v3581_v52 = vadd.f32 %v3580_v11, %v3579_v51  ;;  %v3536_v21 = vmax.f32 %v3498_v10, 0.0  ;;  %v3234_v33 = vadd.f32 0.0009, %v3196_v29  ;;  %v3160_v27 = vsub.f32 %v2877_v4, %v16877_v14  ;;  %v2879_v28 = vpop.f32.mrb[163].mxu1  ;;  %v16879_v11 = vld [vmem:[#allocation48_spill] sm:$0xff] }
 0x3aa   : > { %3948 = vmatmul.mubr.f32.gmra.mrb[12].mxu1 %v11609_v7  ;;  %v3537_v58 = vmax.f32 %v3499_v44, 0.0  ;;  %v3235_v49 = vadd.f32 0.0009, %v3197_v61  ;;  %v3161_v42 = vsub.f32 %v2879_v28, %v16878_v24  ;;  %v3443_v25 = vsub.f32 2.0, %v14712_v47  ;;  %v11611_v47 = vld [vmem:[%s12126_s2 + $0x130] sm:$0xff] }
 0x3ab   : > { %8949 = vmatprep.mubr.msk.f32.mxu1 %vm997_vm0, %v11610_v63  ;;  %v3582_v17 = vadd.f32 %v3581_v52, %v3536_v21  ;;  %v3500_v6 = vmul.f32 %v14570_v1, %v3234_v33  ;;  %v3198_v19 = vmul.f32 2.0, %v3160_v27  ;;  %v14744_v35 = vadd.f32 0.0009, %v14490_v3  ;;  %v16880_v52 = vld [vmem:[#allocation49_spill] sm:$0xff]  ;;  %v16881_v33 = vld [vmem:[#allocation32_spill] sm:$0xff] }
 0x3ac   : > { %v3583_v48 = vsel %vm3573_vm2, %v3537_v58, 0.0  ;;  %v3501_v32 = vmul.f32 %v14575_v18, %v3235_v49  ;;  %v3199_v15 = vmul.f32 2.0, %v3161_v42  ;;  %v2883_v26 = vpop.f32.mrb[164].mxu1  ;;  %v14752_v1 = vmul.f32 %v14698_v30, %v14605_v2 }
 0x3ad   : > { %v3584_v51 = vadd.f32 %v3583_v48, %v3582_v17  ;;  %v3538_v10 = vmax.f32 %v3500_v6, 0.0  ;;  %v3236_v29 = vadd.f32 0.0009, %v3198_v19  ;;  %v3162_v44 = vsub.f32 %v2883_v26, %v16879_v11  ;;  %v2885_v61 = vpop.f32.mrb[165].mxu1  ;;  %v16883_v26 = vld [vmem:[#allocation53_spill] sm:$0xff] }
 0x3ae   : > { %3953 = vmatmul.mubr.f32.gmra.mrb[14].mxu1 %v11611_v47  ;;  %v3539_v3 = vmax.f32 %v3501_v32, 0.0  ;;  %v3237_v4 = vadd.f32 0.0009, %v3199_v15  ;;  %v3163_v21 = vsub.f32 %v2885_v61, %v16880_v52  ;;  %v14758_v18 = vadd.f32 0.0009, %v14500_v59  ;;  %v14761_v7 = vpop.eup %11399  ;;  %v16882_v59 = vld [vmem:[#allocation52_spill] sm:$0xff] }
 0x3af   : > { %8950 = vmatprep.mubr.msk.f32.mxu1 %vm997_vm0, %v16881_v33  ;;  %v3585_v14 = vadd.f32 %v3584_v51, %v3538_v10  ;;  %v3502_v27 = vmul.f32 %v14578_v38, %v3236_v29  ;;  %v3200_v28 = vmul.f32 2.0, %v3162_v44  ;;  %v14766_v42 = vmul.f32 %v14674_v20, %v3442_v55  ;;  %v11612_v32 = vld [vmem:[%s12126_s2 + $0x140] sm:$0x1]  ;;  %s16912_s2 = sld [smem:[#allocation113_spill]] }
 0x3b0   : > { %v3586_v2 = vsel %vm3573_vm2, %v3539_v3, 0.0  ;;  %v3503_v58 = vmul.f32 %v14584_v50, %v3237_v4  ;;  %v3201_v49 = vmul.f32 2.0, %v3163_v21  ;;  %v2889_v24 = vpop.f32.mrb[166].mxu1  ;;  %v14773_v38 = vmul.f32 %v14716_v36, %v14636_v60  ;;  %v16884_v21 = vld [vmem:[#allocation56_spill] sm:$0xff] }
 0x3b1   : > { %v3587_v63 = vadd.f32 %v3586_v2, %v3585_v14  ;;  %v3540_v17 = vmax.f32 %v3502_v27, 0.0  ;;  %v3238_v6 = vadd.f32 0.0009, %v3200_v28  ;;  %v3164_v19 = vsub.f32 %v2889_v24, %v16882_v59  ;;  %v2891_v48 = vpop.f32.mrb[167].mxu1  ;;  %v16886_v2 = vld [vmem:[#allocation57_spill] sm:$0xff] }
 0x3b2   : > { %8951 = vmatmul.mubr.msk.f32.gmra.mrb[16].mxu1 %vm786_vm1, %v11612_v32  ;;  %v3541_v15 = vmax.f32 %v3503_v58, 0.0  ;;  %v3239_v50 = vadd.f32 0.0009, %v3201_v49  ;;  %v3165_v51 = vsub.f32 %v2891_v48, %v16883_v26  ;;  %11403 = vrcp.f32 %v14744_v35  ;;  %v14778_v29 = vpop.eup %11401  ;;  %v16887_v32 = vld [vmem:[#allocation60_spill] sm:$0xff] }
 0x3b3   : > { %v3588_v20 = vadd.f32 %v3587_v63, %v3540_v17  ;;  %v3504_v55 = vmul.f32 %v14594_v22, %v3238_v6  ;;  %v3202_v10 = vmul.f32 2.0, %v3164_v19  ;;  %v14783_v60 = vmul.f32 %v14688_v43, %v3443_v25  ;;  %v14789_v22 = vld [vmem:[%s16885_s3 + $0x8] sm:$0xff] }
 0x3b4   : > { %v3589_v11 = vsel %vm3573_vm2, %v3541_v15, 0.0  ;;  %v3505_v44 = vmul.f32 %v14600_v8, %v3239_v50  ;;  %v3203_v61 = vmul.f32 2.0, %v3165_v51  ;;  %v2895_v47 = vpop.f32.mrb[168].mxu1  ;;  %v3444_v27 = vsub.f32 2.0, %v14752_v1  ;;  %8952 = vmatprep.mubr.msk.f32.mxu0 %vm997_vm0, %v14789_v22 }
 0x3b5   : > { %v3590_v3 = vadd.f32 %v3589_v11, %v3588_v20  ;;  %v3542_v4 = vmax.f32 %v3504_v55, 0.0  ;;  %v3240_v52 = vadd.f32 0.0009, %v3202_v10  ;;  %v3166_v33 = vsub.f32 %v2895_v47, %v16884_v21  ;;  %v2897_v14 = vpop.f32.mrb[169].mxu1  ;;  %v16888_v20 = vld [vmem:[#allocation61_spill] sm:$0xff] }
 0x3b6   : > { %v3543_v28 = vmax.f32 %v3505_v44, 0.0  ;;  %v3241_v8 = vadd.f32 0.0009, %v3203_v61  ;;  %v3167_v58 = vsub.f32 %v2897_v14, %v16886_v2  ;;  %11405 = vrcp.f32 %v14758_v18  ;;  %v16890_v2 = vld [vmem:[#allocation65_spill] sm:$0xff] }
 0x3b7   : > { %v3591_v43 = vadd.f32 %v3590_v3, %v3542_v4  ;;  %v3506_v25 = vmul.f32 %v14608_v9, %v3240_v52  ;;  %v3204_v49 = vmul.f32 2.0, %v3166_v33  ;;  %v3445_v24 = vsub.f32 2.0, %v14773_v38 }
 0x3b8   : > { %v3592_v63 = vsel %vm3573_vm2, %v3543_v28, 0.0  ;;  %v3507_v17 = vmul.f32 %v14611_v31, %v3241_v8  ;;  %v3205_v1 = vmul.f32 2.0, %v3167_v58  ;;  %v2901_v6 = vpop.f32.mrb[170].mxu1  ;;  %v14802_v26 = vadd.f32 0.0009, %v14530_v46 }
 0x3b9   : > { %v3593_v59 = vadd.f32 %v3592_v63, %v3591_v43  ;;  %v3544_v19 = vmax.f32 %v3506_v25, 0.0  ;;  %v3242_v48 = vadd.f32 0.0009, %v3204_v49  ;;  %v3168_v15 = vsub.f32 %v2901_v6, %v16887_v32  ;;  %v2903_v50 = vpop.f32.mrb[171].mxu1 }
 0x3ba   : > { %v3545_v51 = vmax.f32 %v3507_v17, 0.0  ;;  %v3243_v9 = vadd.f32 0.0009, %v3205_v1  ;;  %v3169_v55 = vsub.f32 %v2903_v50, %v16888_v20  ;;  %v14807_v38 = vmul.f32 %v14720_v12, %v14643_v34  ;;  %v16889_v34 = vld [vmem:[#allocation64_spill] sm:$0xff] }
 0x3bb   : > { %v3594_v31 = vadd.f32 %v3593_v59, %v3544_v19  ;;  %v3508_v10 = vmul.f32 %v14616_v13, %v3242_v48  ;;  %v3206_v11 = vmul.f32 2.0, %v3168_v15  ;;  %v14811_v44 = vadd.f32 0.0009, %v14542_v54  ;;  %v16891_v48 = vld [vmem:[#allocation68_spill] sm:$0xff] }
 0x3bc   : > { %v3595_v61 = vsel %vm3573_vm2, %v3545_v51, 0.0  ;;  %v3509_v46 = vmul.f32 %v14619_v45, %v3243_v9  ;;  %v3207_v47 = vmul.f32 2.0, %v3169_v55  ;;  %v2907_v3 = vpop.f32.mrb[172].mxu1  ;;  %v14815_v4 = vpop.eup %11403  ;;  %v14820_v54 = vmul.f32 %v14698_v30, %v3444_v27 }
 0x3bd   : > { %v3596_v52 = vadd.f32 %v3595_v61, %v3594_v31  ;;  %v3546_v21 = vmax.f32 %v3508_v10, 0.0  ;;  %v3244_v33 = vadd.f32 0.0009, %v3206_v11  ;;  %v3170_v14 = vsub.f32 %v2907_v3, %v16889_v34  ;;  %v2909_v28 = vpop.f32.mrb[173].mxu1 }
 0x3be   : > { %v3547_v8 = vmax.f32 %v3509_v46, 0.0  ;;  %v3245_v13 = vadd.f32 0.0009, %v3207_v47  ;;  %v3171_v58 = vsub.f32 %v2909_v28, %v16890_v2  ;;  %v3409_v45 = vmul.f32 %v14726_v16, %v14650_v41 }
 0x3bf   : > { %v3597_v43 = vadd.f32 %v3596_v52, %v3546_v21  ;;  %v3510_v25 = vmul.f32 %v14622_v56, %v3244_v33  ;;  %v3208_v49 = vmul.f32 2.0, %v3170_v14  ;;  %11407 = vrcp.f32 %v14802_v26  ;;  %v16892_v56 = vld [vmem:[#allocation69_spill] sm:$0xff]  ;;  %v16893_v21 = vld [vmem:[#allocation72_spill] sm:$0xff] }
 0x3c0   : > { %v3598_v63 = vsel %vm3573_vm2, %v3547_v8, 0.0  ;;  %v3511_v17 = vmul.f32 %v14631_v57, %v3245_v13  ;;  %v3209_v1 = vmul.f32 2.0, %v3171_v58  ;;  %v2913_v6 = vpop.f32.mrb[174].mxu1  ;;  %v14828_v59 = vpop.eup %11405  ;;  %v14833_v9 = vmul.f32 %v14716_v36, %v3445_v24  ;;  %v16894_v14 = vld [vmem:[#allocation73_spill] sm:$0xff] }
 0x3c1   : > { %v3599_v19 = vadd.f32 %v3598_v63, %v3597_v43  ;;  %v3548_v30 = vmax.f32 %v3510_v25, 0.0  ;;  %v3246_v27 = vadd.f32 0.0009, %v3208_v49  ;;  %v3172_v32 = vsub.f32 %v2913_v6, %v16891_v48  ;;  %v2915_v41 = vpop.f32.mrb[175].mxu1  ;;  %v16896_v48 = vld [vmem:[#allocation10_spill] sm:$0xff] }
 0x3c2   : > { %v3549_v15 = vmax.f32 %v3511_v17, 0.0  ;;  %v3247_v50 = vadd.f32 0.0009, %v3209_v1  ;;  %v3173_v51 = vsub.f32 %v2915_v41, %v16892_v56  ;;  %v3446_v20 = vsub.f32 2.0, %v14807_v38  ;;  %v16895_v1 = vld [vmem:[#allocation76_spill] sm:$0xff] }
 0x3c3   : > { %v3600_v57 = vadd.f32 %v3599_v19, %v3548_v30  ;;  %v3512_v55 = vmul.f32 %v14639_v39, %v3246_v27  ;;  %v3210_v31 = vmul.f32 2.0, %v3172_v32  ;;  %11409 = vrcp.f32 %v14811_v44 }
 0x3c4   : > { %v3601_v10 = vsel %vm3573_vm2, %v3549_v15, 0.0  ;;  %v3513_v11 = vmul.f32 %v14662_v40, %v3247_v50  ;;  %v3211_v61 = vmul.f32 2.0, %v3173_v51  ;;  %v2919_v46 = vpop.f32.mrb[176].mxu1  ;;  %v3447_v33 = vsub.f32 2.0, %v3409_v45 }
 0x3c5   : > { %v3602_v47 = vadd.f32 %v3601_v10, %v3600_v57  ;;  %v3550_v3 = vmax.f32 %v3512_v55, 0.0  ;;  %v3248_v52 = vadd.f32 0.0009, %v3210_v31  ;;  %v3174_v36 = vsub.f32 %v2919_v46, %v16893_v21  ;;  %v2921_v24 = vpop.f32.mrb[177].mxu1  ;;  %v16897_v10 = vld [vmem:[#allocation12_spill] sm:$0xff] }
 0x3c6   : > { %v3551_v38 = vmax.f32 %v3513_v11, 0.0  ;;  %v3249_v34 = vadd.f32 0.0009, %v3211_v61  ;;  %v3175_v39 = vsub.f32 %v2921_v24, %v16894_v14  ;;  %v3410_v28 = vmul.f32 %v14761_v7, %v14685_v37 }
 0x3c7   : > { %v3603_v8 = vadd.f32 %v3602_v47, %v3550_v3  ;;  %v3514_v13 = vmul.f32 %v14667_v5, %v3248_v52  ;;  %v3212_v40 = vmul.f32 2.0, %v3174_v36  ;;  %v14848_v49 = vmul.f32 %v14720_v12, %v3446_v20  ;;  %v16898_v52 = vld [vmem:[#allocation11_spill] sm:$0xff] }
 0x3c8   : > { %v3604_v2 = vsel %vm3573_vm2, %v3551_v38, 0.0  ;;  %v3515_v58 = vmul.f32 %v14672_v0, %v3249_v34  ;;  %v3213_v43 = vmul.f32 2.0, %v3175_v39  ;;  %v2925_v25 = vpop.f32.mrb[178].mxu1  ;;  %v3411_v5 = vmul.f32 %v14778_v29, %v14701_v23 }
 0x3c9   : > { %v3605_v45 = vadd.f32 %v3604_v2, %v3603_v8  ;;  %v3552_v63 = vmax.f32 %v3514_v13, 0.0  ;;  %v3250_v17 = vadd.f32 0.0009, %v3212_v40  ;;  %v3176_v6 = vsub.f32 %v2925_v25, %v16895_v1  ;;  %v2927_v19 = vpop.f32.mrb[179].mxu1  ;;  %v14851_v37 = vpop.eup %11407  ;;  %v16899_v40 = vld [vmem:[#allocation16_spill] sm:$0xff]  ;;  %v16900_v25 = vld [vmem:[#allocation15_spill] sm:$0xff] }
 0x3ca   : > { %v3553_v30 = vmax.f32 %v3515_v58, 0.0  ;;  %v3251_v27 = vadd.f32 0.0009, %v3213_v43  ;;  %v3177_v0 = vsub.f32 %v2927_v19, %v16896_v48  ;;  %v3485_v15 = vmul.f32 %v14726_v16, %v3447_v33 }
 0x3cb   : > { %v3606_v32 = vadd.f32 %v3605_v45, %v3552_v63  ;;  %v3516_v41 = vmul.f32 %v14708_v53, %v3250_v17  ;;  %v3214_v12 = vmul.f32 2.0, %v3176_v6  ;;  %v3448_v50 = vsub.f32 2.0, %v3410_v28 }
 0x3cc   : > { %v3607_v56 = vsel %vm3573_vm2, %v3553_v30, 0.0  ;;  %v3517_v51 = vmul.f32 %v14730_v62, %v3251_v27  ;;  %v3215_v20 = vmul.f32 2.0, %v3177_v0  ;;  %v2931_v57 = vpop.f32.mrb[180].mxu1  ;;  %v3449_v47 = vsub.f32 2.0, %v3411_v5  ;;  %v16901_v0 = vld [vmem:[#allocation20_spill] sm:$0xff] }
 0x3cd   : > { %v3608_v55 = vadd.f32 %v3607_v56, %v3606_v32  ;;  %v3554_v31 = vmax.f32 %v3516_v41, 0.0  ;;  %v3252_v23 = vadd.f32 0.0009, %v3214_v12  ;;  %v3178_v11 = vsub.f32 %v2931_v57, %v16897_v10  ;;  %v2933_v61 = vpop.f32.mrb[181].mxu1  ;;  %v14861_v46 = vpop.eup %11409 }
 0x3ce   : > { %v3555_v53 = vmax.f32 %v3517_v51, 0.0  ;;  %v3253_v3 = vadd.f32 0.0009, %v3215_v20  ;;  %v3179_v16 = vsub.f32 %v2933_v61, %v16898_v52  ;;  %v3412_v21 = vmul.f32 %v14815_v4, %v14744_v35 }
 0x3cf   : > { %v3609_v36 = vadd.f32 %v3608_v55, %v3554_v31  ;;  %v3518_v62 = vmul.f32 %v14766_v42, %v3252_v23  ;;  %v3216_v24 = vmul.f32 2.0, %v3178_v11  ;;  %v3486_v39 = vmul.f32 %v14761_v7, %v3448_v50 }
 0x3d0   : > { %v3610_v33 = vsel %vm3573_vm2, %v3555_v53, 0.0  ;;  %v3519_v38 = vmul.f32 %v14783_v60, %v3253_v3  ;;  %v3217_v34 = vmul.f32 2.0, %v3179_v16  ;;  %v2937_v14 = vpop.f32.mrb[182].mxu1  ;;  %v3413_v35 = vmul.f32 %v14828_v59, %v14758_v18  ;;  %v16903_v3 = vld [vmem:[#allocation24_spill] sm:$0xff] }
 0x3d1   : > { %v3611_v28 = vadd.f32 %v3610_v33, %v3609_v36  ;;  %v3556_v8 = vmax.f32 %v3518_v62, 0.0  ;;  %v3254_v13 = vadd.f32 0.0009, %v3216_v24  ;;  %v3180_v2 = vsub.f32 %v2937_v14, %v16899_v40  ;;  %v2939_v58 = vpop.f32.mrb[183].mxu1 }
 0x3d2   : > { %v3557_v43 = vmax.f32 %v3519_v38, 0.0  ;;  %v3255_v42 = vadd.f32 0.0009, %v3217_v34  ;;  %v3181_v45 = vsub.f32 %v2939_v58, %v16900_v25  ;;  %v3487_v1 = vmul.f32 %v14778_v29, %v3449_v47  ;;  %v16905_v58 = vld [vmem:[#allocation28_spill] sm:$0xff] }
 0x3d3   : > { %v3612_v63 = vadd.f32 %v3611_v28, %v3556_v8  ;;  %v3520_v60 = vmul.f32 %v14820_v54, %v3254_v13  ;;  %v3218_v17 = vmul.f32 2.0, %v3180_v2  ;;  %v3450_v7 = vsub.f32 2.0, %v3412_v21  ;;  %v16902_v54 = vld [vmem:[#allocation19_spill] sm:$0xff] }
 0x3d4   : > { %v3613_v6 = vsel %vm3573_vm2, %v3557_v43, 0.0  ;;  %v3521_v19 = vmul.f32 %v14833_v9, %v3255_v42  ;;  %v3219_v5 = vmul.f32 2.0, %v3181_v45  ;;  %v2943_v30 = vpop.f32.mrb[184].mxu1  ;;  %v3451_v12 = vsub.f32 2.0, %v3413_v35 }
 0x3d5   : > { %v3614_v27 = vadd.f32 %v3613_v6, %v3612_v63  ;;  %v3558_v48 = vmax.f32 %v3520_v60, 0.0  ;;  %v3256_v18 = vadd.f32 0.0009, %v3218_v17  ;;  %v3182_v32 = vsub.f32 %v2943_v30, %v16901_v0  ;;  %v2945_v41 = vpop.f32.mrb[185].mxu1 }
 0x3d6   : > { %v3559_v50 = vmax.f32 %v3521_v19, 0.0  ;;  %v3257_v56 = vadd.f32 0.0009, %v3219_v5  ;;  %v3183_v51 = vsub.f32 %v2945_v41, %v16902_v54  ;;  %v3414_v29 = vmul.f32 %v14851_v37, %v14802_v26  ;;  %v16904_v26 = vld [vmem:[#allocation23_spill] sm:$0xff] }
 0x3d7   : > { %v3615_v20 = vadd.f32 %v3614_v27, %v3558_v48  ;;  %v3522_v57 = vmul.f32 %v14848_v49, %v3256_v18  ;;  %v3220_v9 = vmul.f32 2.0, %v3182_v32  ;;  %v3488_v11 = vmul.f32 %v14815_v4, %v3450_v7 }
 0x3d8   : > { %v3616_v55 = vsel %vm3573_vm2, %v3559_v50, 0.0  ;;  %v3523_v31 = vmul.f32 %v3485_v15, %v3257_v56  ;;  %v3221_v23 = vmul.f32 2.0, %v3183_v51  ;;  %v2949_v10 = vpop.f32.mrb[186].mxu1  ;;  %v3415_v49 = vmul.f32 %v14861_v46, %v14811_v44  ;;  %v16906_v44 = vld [vmem:[#allocation27_spill] sm:$0xff] }
 0x3d9   : > { %v3617_v61 = vadd.f32 %v3616_v55, %v3615_v20  ;;  %v3560_v47 = vmax.f32 %v3522_v57, 0.0  ;;  %v3258_v53 = vadd.f32 0.0009, %v3220_v9  ;;  %v3184_v52 = vsub.f32 %v2949_v10, %v16903_v3  ;;  %v2951_v16 = vpop.f32.mrb[187].mxu1 }
 0x3da   : > { %v3561_v21 = vmax.f32 %v3523_v31, 0.0  ;;  %v3259_v36 = vadd.f32 0.0009, %v3221_v23  ;;  %v3185_v62 = vsub.f32 %v2951_v16, %v16904_v26  ;;  %v3489_v38 = vmul.f32 %v14828_v59, %v3451_v12 }
 0x3db   : > { %v3618_v24 = vadd.f32 %v3617_v61, %v3560_v47  ;;  %v3524_v33 = vmul.f32 %v3486_v39, %v3258_v53  ;;  %v3222_v15 = vmul.f32 2.0, %v3184_v52  ;;  %v3452_v34 = vsub.f32 2.0, %v3414_v29 }
 0x3dc   : > { %v3619_v4 = vsel %vm3573_vm2, %v3561_v21, 0.0  ;;  %v3525_v14 = vmul.f32 %v3487_v1, %v3259_v36  ;;  %v3223_v28 = vmul.f32 2.0, %v3185_v62  ;;  %v2955_v8 = vpop.f32.mrb[188].mxu1  ;;  %v3453_v39 = vsub.f32 2.0, %v3415_v49 }
 0x3dd   : > { %v3620_v13 = vadd.f32 %v3619_v4, %v3618_v24  ;;  %v3562_v40 = vmax.f32 %v3524_v33, 0.0  ;;  %v3260_v2 = vadd.f32 0.0009, %v3222_v15  ;;  %v3186_v35 = vsub.f32 %v2955_v8, %v16905_v58  ;;  %v2957_v43 = vpop.f32.mrb[189].mxu1 }
 0x3de   : > { %v3563_v42 = vmax.f32 %v3525_v14, 0.0  ;;  %v3261_v25 = vadd.f32 0.0009, %v3223_v28  ;;  %v3187_v45 = vsub.f32 %v2957_v43, %v16906_v44  ;;  %v3490_v27 = vmul.f32 %v14851_v37, %v3452_v34 }
 0x3df   : > { %v3621_v63 = vadd.f32 %v3620_v13, %v3562_v40  ;;  %v3526_v60 = vmul.f32 %v3488_v11, %v3260_v2  ;;  %v3224_v59 = vmul.f32 2.0, %v3186_v35  ;;  %v3491_v0 = vmul.f32 %v14861_v46, %v3453_v39 }
 0x3e0   : > { %v3527_v17 = vmul.f32 %v3489_v38, %v3261_v25  ;;  %v3225_v7 = vmul.f32 2.0, %v3187_v45  ;;  %v3754_v6 = vpop.f32.mrb[190].mxu1  ;;  %v3622_v1 = vsel %vm3573_vm2, %v3563_v42, 0.0  ;;  %v16907_v46 = vmov 0.0|0.0  }
 0x3e1   : > { %v3564_v19 = vmax.f32 %v3526_v60, 0.0  ;;  %v3262_v5 = vadd.f32 0.0009, %v3224_v59  ;;  %v3756_v30 = vpop.f32.mrb[191].mxu1  ;;  %v3623_v48 = vadd.f32 %v3622_v1, %v3621_v63  ;;  %vm7144_vm1 = vcmask 171008  }
 0x3e2   : > { %v3263_v18 = vadd.f32 0.0009, %v3225_v7  ;;  %v3565_v32 = vmax.f32 %v3527_v17, 0.0 }
 0x3e3   : > { %v3528_v41 = vmul.f32 %v3490_v27, %v3262_v5  ;;  %v3624_v12 = vadd.f32 %v3623_v48, %v3564_v19 }
 0x3e4   : > { %v3759_v50 = vpop.f32.mrb[192].mxu1  ;;  %v3529_v56 = vmul.f32 %v3491_v0, %v3263_v18  ;;  %v3625_v54 = vsel %vm3573_vm2, %v3565_v32, 0.0  ;;  %v16908_v0 = vmov 0.0   ;;  %vm6803_vm2 = vcmask 261120  }
 0x3e5   : > { %v10906_v51 = vpack.c.bf16 %v3759_v50, %v3754_v6  ;;  %v3761_v29 = vpop.f32.mrb[193].mxu1  ;;  %v3566_v20 = vmax.f32 %v3528_v41, 0.0  ;;  %v3626_v57 = vadd.f32 %v3625_v54, %v3624_v12  ;;  %v14910_v41 = vld [vmem:[%s16885_s3] sm:$0xff]  ;;  %v14915_v12 = vld [vmem:[%s16885_s3 + $0x18] sm:$0xff]  ;;  %v14924_v54 = vld [vmem:[%s16885_s3 + $0x10] sm:$0xff]  ;;  %9893 = vmatprep.mubr.msk.f32.mxu1 %vm11655_vm5, %v16908_v0 }
 0x3e6   : > { %v3567_v9 = vmax.f32 %v3529_v56, 0.0 }
 0x3e7   : > { %10907 = vmatpush1.bf16.msra.mxu0 %v10906_v51  ;;  %v3628_v37 = vsel %vm3627_vm3, %v3566_v20, 0.0  ;;  %v14929_v51 = vld [vmem:[%s16885_s3 + $0x28] sm:$0xff]  ;;  %vm6809_vm3 = vcmask 260096  }
 0x3e8   : > { %v3629_v55 = vadd.f32 %v3628_v37, %v3626_v57  ;;  %v3631_v31 = vsel %vm3630_vm4, %v3567_v9, 0.0  ;;  %v3764_v23 = vpop.f32.mrb[194].mxu1  ;;  %10908 = vmatprep.subr.bf16.mxu0 %v16907_v46  ;;  %v14937_v9 = vld [vmem:[%s16885_s3 + $0x20] sm:$0xff]  ;;  %v14942_v37 = vld [vmem:[%s16885_s3 + $0x38] sm:$0xff]  ;;  %vm7334_vm4 = vcmask 195584  }
 0x3e9   : > { %v3766_v10 = vpop.f32.mrb[195].mxu1 }
 0x3ea   : > { %v3632_v11 = vadd.f32 %v3631_v31, %v3629_v55  ;;  %v14956_v10 = vld [vmem:[%s16885_s3 + $0x48] sm:$0xff] }
 0x3ec   : > { %3633 = vadd.xlane.f32.xlu0 %v3632_v11  ;;  %v3769_v61 = vpop.f32.mrb[196].mxu1 }
 0x3ed   : > { %v10909_v47 = vpack.c.bf16 %v3769_v61, %v3764_v23  ;;  %v3771_v53 = vpop.f32.mrb[197].mxu1  ;;  %v14951_v23 = vld [vmem:[%s16885_s3 + $0x30] sm:$0xff] }
 0x3ee   : > { %v14964_v53 = vld [vmem:[%s16885_s3 + $0x40] sm:$0xff] }
 0x3ef   : > { %10910 = vmatpush1.bf16.msra.mxu0 %v10909_v47 }
 0x3f0   : > { %v3774_v3 = vpop.f32.mrb[198].mxu1  ;;  %10911 = vmatprep.subr.bf16.mxu0 %v16907_v46 }
 0x3f1   : > { %v3776_v52 = vpop.f32.mrb[199].mxu1 }
 0x3f4   : > { %v3779_v16 = vpop.f32.mrb[200].mxu1 }
 0x3f5   : > { %v10912_v21 = vpack.c.bf16 %v3779_v16, %v3774_v3  ;;  %v3781_v36 = vpop.f32.mrb[201].mxu1  ;;  %v14969_v3 = vld [vmem:[%s16885_s3 + $0x58] sm:$0xff] }
 0x3f6   : > { %v14983_v36 = vld [vmem:[%s16885_s3 + $0x68] sm:$0xff] }
 0x3f7   : > { %10913 = vmatpush1.bf16.msra.mxu0 %v10912_v21  ;;  %v14978_v21 = vld [vmem:[%s16885_s3 + $0x50] sm:$0xff] }
 0x3f8   : > { %v3784_v26 = vpop.f32.mrb[202].mxu1  ;;  %10914 = vmatprep.subr.bf16.mxu0 %v16907_v46 }
 0x3f9   : > { %v3786_v62 = vpop.f32.mrb[203].mxu1 }
 0x3fc   : > { %v3789_v49 = vpop.f32.mrb[204].mxu1 }
 0x3fd   : > { %v10915_v24 = vpack.c.bf16 %v3789_v49, %v3784_v26  ;;  %v3791_v33 = vpop.f32.mrb[205].mxu1 }
 0x3fe   : > { %v14996_v33 = vld [vmem:[%s16885_s3 + $0x78] sm:$0xff] }
 0x3ff   : > { %10916 = vmatpush1.bf16.msra.mxu0 %v10915_v24  ;;  %v14991_v24 = vld [vmem:[%s16885_s3 + $0x60] sm:$0xff] }
 0x400   : > { %v3794_v15 = vpop.f32.mrb[206].mxu1  ;;  %10917 = vmatprep.subr.bf16.mxu0 %v16907_v46 }
 0x401   : > { %v3796_v38 = vpop.f32.mrb[207].mxu1 }
 0x404   : > { %v3799_v34 = vpop.f32.mrb[208].mxu1 }
 0x405   : > { %v10918_v4 = vpack.c.bf16 %v3799_v34, %v3794_v15  ;;  %v3801_v14 = vpop.f32.mrb[209].mxu1  ;;  %v15005_v34 = vld [vmem:[%s16885_s3 + $0x70] sm:$0xff] }
 0x407   : > { %10919 = vmatpush1.bf16.msra.mxu0 %v10918_v4  ;;  %v15010_v4 = vld [vmem:[%s16885_s3 + $0x88] sm:$0xff] }
 0x408   : > { %v3804_v28 = vpop.f32.mrb[210].mxu1  ;;  %10920 = vmatprep.subr.bf16.mxu0 %v16907_v46 }
 0x409   : > { %v3806_v8 = vpop.f32.mrb[211].mxu1 }
 0x40c   : > { %v3809_v13 = vpop.f32.mrb[212].mxu1 }
 0x40d   : > { %v10921_v40 = vpack.c.bf16 %v3809_v13, %v3804_v28  ;;  %v3811_v2 = vpop.f32.mrb[213].mxu1  ;;  %v15018_v13 = vld [vmem:[%s16885_s3 + $0x80] sm:$0xff] }
 0x40f   : > { %10922 = vmatpush1.bf16.msra.mxu0 %v10921_v40  ;;  %v15023_v40 = vld [vmem:[%s16885_s3 + $0x98] sm:$0xff] }
 0x410   : > { %v3814_v58 = vpop.f32.mrb[214].mxu1  ;;  %10923 = vmatprep.subr.bf16.mxu0 %v16907_v46 }
 0x411   : > { %v3816_v35 = vpop.f32.mrb[215].mxu1 }
 0x412   : > { %v15032_v35 = vld [vmem:[%s16885_s3 + $0x90] sm:$0xff] }
 0x414   : > { %v3819_v43 = vpop.f32.mrb[216].mxu1 }
 0x415   : > { %v10924_v42 = vpack.c.bf16 %v3819_v43, %v3814_v58  ;;  %v3821_v25 = vpop.f32.mrb[217].mxu1  ;;  %v15037_v43 = vld [vmem:[%s16885_s3 + $0xa8] sm:$0xff] }
 0x417   : > { %10925 = vmatpush1.bf16.msra.mxu0 %v10924_v42 }
 0x418   : > { %v3824_v44 = vpop.f32.mrb[218].mxu1  ;;  %10926 = vmatprep.subr.bf16.mxu0 %v16907_v46 }
 0x419   : > { %v3826_v45 = vpop.f32.mrb[219].mxu1 }
 0x41a   : > { %v15045_v45 = vld [vmem:[%s16885_s3 + $0xa0] sm:$0xff] }
 0x41c   : > { %v3829_v39 = vpop.f32.mrb[220].mxu1 }
 0x41d   : > { %v10927_v63 = vpack.c.bf16 %v3829_v39, %v3824_v44  ;;  %v3831_v60 = vpop.f32.mrb[221].mxu1 }
 0x41f   : > { %10928 = vmatpush1.bf16.msra.mxu0 %v10927_v63 }
 0x420   : > { %v3834_v59 = vpop.f32.mrb[222].mxu1  ;;  %10929 = vmatprep.subr.bf16.mxu0 %v16907_v46 }
 0x421   : > { %v3836_v17 = vpop.f32.mrb[223].mxu1 }
 0x424   : > { %v3839_v7 = vpop.f32.mrb[224].mxu1 }
 0x425   : > { %v10930_v6 = vpack.c.bf16 %v3839_v7, %v3834_v59  ;;  %v3841_v1 = vpop.f32.mrb[225].mxu1 }
 0x427   : > { %10931 = vmatpush1.bf16.msra.mxu0 %v10930_v6 }
 0x428   : > { %v3844_v19 = vpop.f32.mrb[226].mxu1  ;;  %10932 = vmatprep.subr.bf16.mxu0 %v16907_v46 }
 0x429   : > { %v3846_v5 = vpop.f32.mrb[227].mxu1 }
 0x42c   : > { %v3849_v30 = vpop.f32.mrb[228].mxu1 }
 0x42d   : > { %v10933_v27 = vpack.c.bf16 %v3849_v30, %v3844_v19  ;;  %v3851_v48 = vpop.f32.mrb[229].mxu1 }
 0x42f   : > { %10934 = vmatpush1.bf16.msra.mxu0 %v10933_v27 }
 0x430   : > { %v3854_v18 = vpop.f32.mrb[230].mxu1  ;;  %4036 = vmatprep.subr.mxu0 %v16908_v0 }
 0x431   : > { %v3856_v32 = vpop.f32.mrb[231].mxu1 }
 0x433   : > { %4037 = vmatpush1.msra.mxu0 %v3854_v18 }
 0x434   : > { %v3859_v50 = vpop.f32.mrb[232].mxu1  ;;  %4061 = vmatmul.mubr.f32.vlgmr.msra.gmra.mrb[210].mxu0 %v14910_v41  ;;  %10935 = vmatprep.subr.bf16.mxu0 %v16907_v46 }
 0x435   : > { %v3861_v56 = vpop.f32.mrb[233].mxu1  ;;  %8953 = vmatprep.mubr.msk.f32.mxu0 %vm997_vm0, %v14915_v12 }
 0x438   : > { %v3864_v29 = vpop.f32.mrb[234].mxu1  ;;  %4066 = vmatmul.mubr.f32.gmra.mrb[212].mxu0 %v14924_v54 }
 0x439   : > { %v10936_v20 = vpack.c.bf16 %v3864_v29, %v3859_v50  ;;  %v3866_v57 = vpop.f32.mrb[235].mxu1  ;;  %8954 = vmatprep.mubr.msk.f32.mxu0 %vm997_vm0, %v14929_v51 }
 0x43b   : > { %10937 = vmatpush1.bf16.msra.mxu0 %v10936_v20 }
 0x43c   : > { %v3869_v55 = vpop.f32.mrb[236].mxu1  ;;  %10938 = vmatprep.subr.bf16.mxu0 %v16907_v46  ;;  %4071 = vmatmul.mubr.f32.gmra.mrb[214].mxu0 %v14937_v9 }
 0x43d   : > { %v3871_v31 = vpop.f32.mrb[237].mxu1  ;;  %8955 = vmatprep.mubr.msk.f32.mxu0 %vm997_vm0, %v14942_v37 }
 0x440   : > { %v3874_v11 = vpop.f32.mrb[238].mxu1  ;;  %4076 = vmatmul.mubr.f32.gmra.mrb[216].mxu0 %v14951_v23 }
 0x441   : > { %v10939_v61 = vpack.c.bf16 %v3874_v11, %v3869_v55  ;;  %v3876_v47 = vpop.f32.mrb[239].mxu1  ;;  %8956 = vmatprep.mubr.msk.f32.mxu0 %vm997_vm0, %v14956_v10 }
 0x443   : > { %10940 = vmatpush1.bf16.msra.mxu0 %v10939_v61 }
 0x444   : > { %v3879_v52 = vpop.f32.mrb[240].mxu1  ;;  %10941 = vmatprep.subr.bf16.mxu0 %v16907_v46  ;;  %4081 = vmatmul.mubr.f32.gmra.mrb[218].mxu0 %v14964_v53 }
 0x445   : > { %v3881_v16 = vpop.f32.mrb[241].mxu1  ;;  %8957 = vmatprep.mubr.msk.f32.mxu0 %vm997_vm0, %v14969_v3 }
 0x448   : > { %v3884_v26 = vpop.f32.mrb[242].mxu1  ;;  %4086 = vmatmul.mubr.f32.gmra.mrb[220].mxu0 %v14978_v21 }
 0x449   : > { %v10942_v62 = vpack.c.bf16 %v3884_v26, %v3879_v52  ;;  %v3886_v49 = vpop.f32.mrb[243].mxu1  ;;  %8958 = vmatprep.mubr.msk.f32.mxu0 %vm997_vm0, %v14983_v36 }
 0x44b   : > { %10943 = vmatpush1.bf16.msra.mxu0 %v10942_v62 }
 0x44c   : > { %v3889_v15 = vpop.f32.mrb[244].mxu1  ;;  %10944 = vmatprep.subr.bf16.mxu0 %v16907_v46  ;;  %4091 = vmatmul.mubr.f32.gmra.mrb[222].mxu0 %v14991_v24 }
 0x44d   : > { %v3891_v38 = vpop.f32.mrb[245].mxu1  ;;  %8959 = vmatprep.mubr.msk.f32.mxu0 %vm997_vm0, %v14996_v33 }
 0x44e   : > { %v4246_v38 = vld [vmem:[%s16401_s7 + $0x8] sm:$0xff] }
 0x450   : > { %v3894_v14 = vpop.f32.mrb[246].mxu1  ;;  %4096 = vmatmul.mubr.f32.gmra.mrb[224].mxu0 %v15005_v34 }
 0x451   : > { %v10945_v28 = vpack.c.bf16 %v3894_v14, %v3889_v15  ;;  %v3896_v8 = vpop.f32.mrb[247].mxu1  ;;  %8960 = vmatprep.mubr.msk.f32.mxu0 %vm997_vm0, %v15010_v4  ;;  %v4245_v15 = vld [vmem:[%s16401_s7] sm:$0xff] }
 0x452   : > { %v10966_v8 = vpack.c.bf16 %v4246_v38, %v4245_v15 }
 0x453   : > { %10946 = vmatpush1.bf16.msra.mxu0 %v10945_v28 }
 0x454   : > { %v3899_v2 = vpop.f32.mrb[248].mxu1  ;;  %10947 = vmatprep.subr.bf16.mxu0 %v16907_v46  ;;  %4101 = vmatmul.mubr.f32.gmra.mrb[226].mxu0 %v15018_v13 }
 0x455   : > { %v3901_v58 = vpop.f32.mrb[249].mxu1  ;;  %8961 = vmatprep.mubr.msk.f32.mxu0 %vm997_vm0, %v15023_v40 }
 0x456   : > { %v4247_v58 = vld [vmem:[%s16401_s7 + $0x10] sm:$0xff] }
 0x458   : > { %v3904_v42 = vpop.f32.mrb[250].mxu1  ;;  %4106 = vmatmul.mubr.f32.gmra.mrb[228].mxu0 %v15032_v35 }
 0x459   : > { %v10948_v25 = vpack.c.bf16 %v3904_v42, %v3899_v2  ;;  %v3906_v44 = vpop.f32.mrb[251].mxu1  ;;  %8962 = vmatprep.mubr.msk.f32.mxu0 %vm997_vm0, %v15037_v43  ;;  %v4248_v42 = vld [vmem:[%s16401_s7 + $0x18] sm:$0xff] }
 0x45a   : > { %v4249_v44 = vld [vmem:[%s16401_s7 + $0x20] sm:$0xff] }
 0x45b   : > { %10949 = vmatpush1.bf16.msra.mxu0 %v10948_v25  ;;  %v10969_v25 = vpack.c.bf16 %v4248_v42, %v4247_v58 }
 0x45c   : > { %10950 = vmatprep.subr.bf16.mxu0 %v16907_v46  ;;  %4111 = vmatmul.mubr.f32.gmra.mrb[230].mxu0 %v15045_v45 }
 0x45d   : > { %v3909_v39 = vpop.f32.mrb[252].mxu1  ;;  %8963 = vmatprep.mubr.msk.f32.mxu0 %vm997_vm0, %v14789_v22 }
 0x45e   : > { %v3911_v63 = vpop.f32.mrb[253].mxu1 }
 0x45f   : > { %v4252_v63 = vld [vmem:[%s16401_s7 + $0x38] sm:$0xff] }
 0x461   : > { %v3914_v60 = vpop.f32.mrb[254].mxu1 }
 0x462   : > { %v10951_v59 = vpack.c.bf16 %v3914_v60, %v3909_v39  ;;  %v3916_v17 = vpop.f32.mrb[255].mxu1  ;;  %v4250_v39 = vld [vmem:[%s16401_s7 + $0x28] sm:$0xff] }
 0x463   : > { %v4254_v60 = vld [vmem:[%s16401_s7 + $0x48] sm:$0xff] }
 0x464   : > { %10952 = vmatpush1.bf16.msra.mxu0 %v10951_v59 }
 0x465   : > { %v3919_v7 = vpop.f32.mrb[0].mxu1  ;;  %10953 = vmatprep.subr.bf16.mxu0 %v16907_v46 }
 0x466   : > { %v3921_v6 = vpop.f32.mrb[1].mxu1 }
 0x469   : > { %v3924_v1 = vpop.f32.mrb[2].mxu1 }
 0x46a   : > { %v10954_v19 = vpack.c.bf16 %v3924_v1, %v3919_v7  ;;  %v3926_v5 = vpop.f32.mrb[3].mxu1 }
 0x46c   : > { %10955 = vmatpush1.bf16.msra.mxu0 %v10954_v19 }
 0x46d   : > { %v3929_v30 = vpop.f32.mrb[4].mxu1  ;;  %10956 = vmatprep.subr.bf16.mxu0 %v16907_v46 }
 0x46e   : > { %v3931_v27 = vpop.f32.mrb[5].mxu1 }
 0x471   : > { %v3934_v48 = vpop.f32.mrb[6].mxu1 }
 0x472   : > { %v10957_v18 = vpack.c.bf16 %v3934_v48, %v3929_v30  ;;  %v3936_v32 = vpop.f32.mrb[7].mxu1 }
 0x474   : > { %10958 = vmatpush1.bf16.msra.mxu0 %v10957_v18 }
 0x475   : > { %v3939_v22 = vpop.f32.mrb[8].mxu1  ;;  %10959 = vmatprep.subr.bf16.mxu0 %v16907_v46 }
 0x476   : > { %v3941_v50 = vpop.f32.mrb[9].mxu1 }
 0x479   : > { %v3944_v56 = vpop.f32.mrb[10].mxu1  ;;  %v3634_v29 = vpop.xlane.xlu0 %3633 }
 0x47a   : > { %v10960_v20 = vpack.c.bf16 %v3944_v56, %v3939_v22  ;;  %v3946_v57 = vpop.f32.mrb[11].mxu1  ;;  %v3635_v55 = vrot.slane %v3634_v29, 4 }
 0x47c   : > { %10961 = vmatpush1.bf16.msra.mxu0 %v10960_v20  ;;  %v3636_v31 = vadd.f32 %v3635_v55, %v3634_v29 }
 0x47d   : > { %v3949_v11 = vpop.f32.mrb[12].mxu1  ;;  %10962 = vmatprep.subr.bf16.mxu0 %v16907_v46 }
 0x47e   : > { %v3951_v61 = vpop.f32.mrb[13].mxu1  ;;  %v3637_v47 = vrot.slane %v3636_v31, 2 }
 0x480   : > { %v3638_v16 = vadd.f32 %v3637_v47, %v3636_v31 }
 0x481   : > { %v3954_v52 = vpop.f32.mrb[14].mxu1 }
 0x482   : > { %v10963_v26 = vpack.c.bf16 %v3954_v52, %v3949_v11  ;;  %v3956_v62 = vpop.f32.mrb[15].mxu1  ;;  %v3639_v49 = vrot.slane %v3638_v16, 1 }
 0x483   : > { %v5562_v62 = vld [vmem:[%s16403_s9] sm:$0xff] }
 0x484   : > { %10964 = vmatpush1.bf16.msra.mxu0 %v10963_v26  ;;  %v3640_v14 = vadd.f32 %v3639_v49, %v3638_v16  ;;  %v5563_v49 = vld [vmem:[%s16403_s9 + $0x8] sm:$0xff] }
 0x485   : > { %v3959_v28 = vpop.f32.mrb[16].mxu1  ;;  %4156 = vmatprep.subr.mxu0 %v16908_v0 }
 0x486   : > { %v3961_v2 = vpop.f32.mrb[17].mxu1  ;;  %11279 = vpush %v3640_v14  ;;  %v11055_v14 = vpack.c.bf16 %v5563_v49, %v5562_v62 }
 0x487   : > { %v5565_v2 = vld [vmem:[%s16403_s9 + $0x18] sm:$0xff] }
 0x488   : > { %4157 = vmatpush1.msra.mxu0 %v3959_v28 }
 0x489   : > { %4181 = vmatmul.mubr.f32.vlgmr.msra.gmra.mrb[232].mxu0 %v14910_v41  ;;  %10965 = vmatprep.subr.bf16.mxu0 %v16907_v46  ;;  %v10972_v41 = vpack.c.bf16 %v4250_v39, %v4249_v44  ;;  %v5566_v39 = vld [vmem:[%s16403_s9 + $0x20] sm:$0xff] }
 0x48a   : > { %8964 = vmatprep.mubr.msk.f32.mxu0 %vm997_vm0, %v14915_v12  ;;  %10967 = vmatpush3.bf16.msra.mxu0 %v10966_v8  ;;  %v4251_v12 = vld [vmem:[%s16401_s7 + $0x30] sm:$0xff] }
 0x48b   : > { %10968 = vmatprep.subr.bf16.mxu0 %v16907_v46  ;;  %v5564_v8 = vld [vmem:[%s16403_s9 + $0x10] sm:$0xff] }
 0x48d   : > { %4186 = vmatmul.mubr.f32.gmra.mrb[234].mxu0 %v14924_v54  ;;  %v10975_v54 = vpack.c.bf16 %v4252_v63, %v4251_v12 }
 0x48e   : > { %8965 = vmatprep.mubr.msk.f32.mxu0 %vm997_vm0, %v14929_v51  ;;  %10970 = vmatpush3.bf16.msra.mxu0 %v10969_v25  ;;  %v4253_v51 = vld [vmem:[%s16401_s7 + $0x40] sm:$0xff]  ;;  %v11059_v25 = vpack.c.bf16 %v5565_v2, %v5564_v8 }
 0x48f   : > { %10971 = vmatprep.subr.bf16.mxu0 %v16907_v46 }
 0x491   : > { %4191 = vmatmul.mubr.f32.gmra.mrb[236].mxu0 %v14937_v9  ;;  %v10978_v9 = vpack.c.bf16 %v4254_v60, %v4253_v51  ;;  %v5568_v60 = vld [vmem:[%s16403_s9 + $0x30] sm:$0xff] }
 0x492   : > { %8966 = vmatprep.mubr.msk.f32.mxu0 %vm997_vm0, %v14942_v37  ;;  %10973 = vmatpush3.bf16.msra.mxu0 %v10972_v41  ;;  %v4255_v37 = vld [vmem:[%s16401_s7 + $0x50] sm:$0xf]  ;;  %v5567_v41 = vld [vmem:[%s16403_s9 + $0x28] sm:$0xff] }
 0x493   : > { %10974 = vmatprep.subr.bf16.mxu0 %v16907_v46 }
 0x495   : > { %4196 = vmatmul.mubr.f32.gmra.mrb[238].mxu0 %v14951_v23 }
 0x496   : > { %8967 = vmatprep.mubr.msk.f32.mxu0 %vm997_vm0, %v14956_v10  ;;  %10976 = vmatpush3.bf16.msra.mxu0 %v10975_v54  ;;  %v11063_v54 = vpack.c.bf16 %v5567_v41, %v5566_v39 }
 0x497   : > { %10977 = vmatprep.subr.bf16.mxu0 %v16907_v46 }
 0x499   : > { %4201 = vmatmul.mubr.f32.gmra.mrb[240].mxu0 %v14964_v53 }
 0x49a   : > { %8968 = vmatprep.mubr.msk.f32.mxu0 %vm997_vm0, %v14969_v3  ;;  %10979 = vmatpush3.bf16.msra.mxu0 %v10978_v9  ;;  %v5569_v9 = vld [vmem:[%s16403_s9 + $0x38] sm:$0xff] }
 0x49b   : > { %9704 = vmatprep.subr.mxu0 %v16908_v0 }
 0x49d   : > { %4206 = vmatmul.mubr.f32.gmra.mrb[242].mxu0 %v14978_v21 }
 0x49e   : > { %8969 = vmatprep.mubr.msk.f32.mxu0 %vm997_vm0, %v14983_v36  ;;  %9705 = vmatpush3.msk.msra.mxu0 %vm4455_vm6, %v4255_v37 }
 0x49f   : > { %11056 = vmatprep.subr.bf16.mxu0 %v11055_v14 }
 0x4a1   : > { %4211 = vmatmul.mubr.f32.gmra.mrb[244].mxu0 %v14991_v24 }
 0x4a2   : > { %8970 = vmatprep.mubr.msk.f32.mxu0 %vm997_vm0, %v14996_v33 }
 0x4a5   : > { %4216 = vmatmul.mubr.f32.gmra.mrb[246].mxu0 %v15005_v34 }
 0x4a6   : > { %8971 = vmatprep.mubr.msk.f32.mxu0 %vm997_vm0, %v15010_v4 }
 0x4a9   : > { %4221 = vmatmul.mubr.f32.gmra.mrb[248].mxu0 %v15018_v13 }
 0x4aa   : > { %8972 = vmatprep.mubr.msk.f32.mxu0 %vm997_vm0, %v15023_v40 }
 0x4ad   : > { %4226 = vmatmul.mubr.f32.gmra.mrb[250].mxu0 %v15032_v35 }
 0x4ae   : > { %8973 = vmatprep.mubr.msk.f32.mxu0 %vm997_vm0, %v15037_v43  ;;  %vm7190_vm0 = vcmask 1044480  }
 0x4b1   : > { %4231 = vmatmul.mubr.f32.gmra.mrb[252].mxu0 %v15045_v45 }
 0x4b2   : > { %9706 = vmatprep.mubr.msk.f32.mxu0 %vm11655_vm5, %v16908_v0 }
 0x4b7   : > { %s11280_s21 = spop %11279 }
 0x507   : > { %v15131_v23 = vpop.f32.mrb[210].mxu0 }
 0x508   : > { %9707 = vmatmul.mubr.msk.f32.vlgmr.msra.gmra.mrb[254].mxu0 %vm4289_vm7, %v15131_v23  ;;  %v4064_v10 = vpop.f32.mrb[211].mxu0 }
 0x509   : > { %9709 = vmatprep.mubr.msk.f32.mxu0 %vm11655_vm5, %v16908_v0  ;;  %11058 = vmatpush3.bf16.msra.mxu0 %v11055_v14 }
 0x50a   : > { %11060 = vmatprep.subr.bf16.mxu0 %v11059_v25 }
 0x50b   : > { %v15137_v53 = vpop.f32.mrb[212].mxu0 }
 0x50c   : > { %9710 = vmatmul.mubr.msk.f32.gmra.mrb[0].mxu0 %vm4289_vm7, %v15137_v53  ;;  %v4069_v3 = vpop.f32.mrb[213].mxu0 }
 0x50d   : > { %9712 = vmatprep.mubr.msk.f32.mxu0 %vm11655_vm5, %v16908_v0  ;;  %11062 = vmatpush3.bf16.msra.mxu0 %v11059_v25  ;;  %v11067_v3 = vpack.c.bf16 %v5569_v9, %v5568_v60 }
 0x50e   : > { %11064 = vmatprep.subr.bf16.mxu0 %v11063_v54 }
 0x50f   : > { %v15143_v21 = vpop.f32.mrb[214].mxu0 }
 0x510   : > { %9713 = vmatmul.mubr.msk.f32.gmra.mrb[2].mxu0 %vm4289_vm7, %v15143_v21  ;;  %v4074_v36 = vpop.f32.mrb[215].mxu0 }
 0x511   : > { %9715 = vmatprep.mubr.msk.f32.mxu0 %vm11655_vm5, %v16908_v0  ;;  %11066 = vmatpush3.bf16.msra.mxu0 %v11063_v54 }
 0x512   : > { %11068 = vmatprep.subr.bf16.mxu0 %v11067_v3 }
 0x513   : > { %v15149_v24 = vpop.f32.mrb[216].mxu0 }
 0x514   : > { %9716 = vmatmul.mubr.msk.f32.gmra.mrb[4].mxu0 %vm4289_vm7, %v15149_v24  ;;  %v4079_v33 = vpop.f32.mrb[217].mxu0 }
 0x515   : > { %9718 = vmatprep.mubr.msk.f32.mxu0 %vm11655_vm5, %v16908_v0  ;;  %11070 = vmatpush3.bf16.msra.mxu0 %v11067_v3  ;;  %v5570_v33 = vld [vmem:[%s16403_s9 + $0x40] sm:$0xff] }
 0x517   : > { %v15155_v34 = vpop.f32.mrb[218].mxu0 }
 0x518   : > { %9719 = vmatmul.mubr.msk.f32.gmra.mrb[6].mxu0 %vm4289_vm7, %v15155_v34  ;;  %v4084_v4 = vpop.f32.mrb[219].mxu0 }
 0x519   : > { %9721 = vmatprep.mubr.msk.f32.mxu0 %vm11655_vm5, %v16908_v0  ;;  %v5571_v4 = vld [vmem:[%s16403_s9 + $0x48] sm:$0xff] }
 0x51b   : > { %v15161_v13 = vpop.f32.mrb[220].mxu0 }
 0x51c   : > { %9722 = vmatmul.mubr.msk.f32.gmra.mrb[8].mxu0 %vm4289_vm7, %v15161_v13  ;;  %v4089_v40 = vpop.f32.mrb[221].mxu0 }
 0x51d   : > { %9724 = vmatprep.mubr.msk.f32.mxu0 %vm11655_vm5, %v16908_v0 }
 0x51f   : > { %v15167_v35 = vpop.f32.mrb[222].mxu0 }
 0x520   : > { %9725 = vmatmul.mubr.msk.f32.gmra.mrb[10].mxu0 %vm4289_vm7, %v15167_v35  ;;  %v4094_v43 = vpop.f32.mrb[223].mxu0 }
 0x521   : > { %9727 = vmatprep.mubr.msk.f32.mxu0 %vm11655_vm5, %v16908_v0  ;;  %v11071_v43 = vpack.c.bf16 %v5571_v4, %v5570_v33 }
 0x523   : > { %v15173_v45 = vpop.f32.mrb[224].mxu0  ;;  %11072 = vmatprep.subr.bf16.mxu0 %v11071_v43 }
 0x524   : > { %9728 = vmatmul.mubr.msk.f32.gmra.mrb[12].mxu0 %vm4289_vm7, %v15173_v45  ;;  %v4099_v59 = vpop.f32.mrb[225].mxu0 }
 0x525   : > { %9730 = vmatprep.mubr.msk.f32.mxu0 %vm11655_vm5, %v16908_v0  ;;  %11074 = vmatpush3.bf16.msra.mxu0 %v11071_v43 }
 0x527   : > { %v15179_v17 = vpop.f32.mrb[226].mxu0 }
 0x528   : > { %9731 = vmatmul.mubr.msk.f32.gmra.mrb[14].mxu0 %vm4289_vm7, %v15179_v17  ;;  %v4104_v7 = vpop.f32.mrb[227].mxu0  ;;  %v4264_v62 = vmul.f32 %v15179_v17, %v15179_v17 }
 0x529   : > { %9733 = vmatprep.mubr.msk.f32.mxu0 %vm11655_vm5, %v16908_v0  ;;  %v4256_v7 = vmul.f32 %v15131_v23, %v15131_v23 }
 0x52b   : > { %v15185_v6 = vpop.f32.mrb[228].mxu0 }
 0x52c   : > { %9734 = vmatmul.mubr.msk.f32.gmra.mrb[16].mxu0 %vm4289_vm7, %v15185_v6  ;;  %v4109_v1 = vpop.f32.mrb[229].mxu0  ;;  %v4265_v49 = vmul.f32 %v15185_v6, %v15185_v6 }
 0x52d   : > { %9736 = vmatprep.mubr.msk.f32.mxu0 %vm11655_vm5, %v16908_v0  ;;  %v5572_v1 = vld [vmem:[%s16403_s9 + $0x50] sm:$0xf] }
 0x52e   : > { %10136 = vmatprep.subr.msk.mxu0 %vm4455_vm6, %v5572_v1 }
 0x52f   : > { %v15191_v19 = vpop.f32.mrb[230].mxu0  ;;  %10137 = vmatpush3.msk.msra.mxu0 %vm4455_vm6, %v5572_v1  ;;  %vm7754_vm6 = vcmask 83968  }
 0x530   : > { %9737 = vmatmul.mubr.msk.f32.gmra.mrb[18].mxu0 %vm4289_vm7, %v15191_v19  ;;  %v4114_v5 = vpop.f32.mrb[231].mxu0 }
 0x531   : > { %9739 = vmatprep.mubr.msk.f32.mxu0 %vm11655_vm5, %v16908_v0  ;;  %v4257_v5 = vmul.f32 %v15137_v53, %v15137_v53 }
 0x55c   : > { %v15197_v30 = vpop.f32.mrb[232].mxu0 }
 0x55d   : > { %v15201_v27 = vmul.f32 %v15197_v30, %v15131_v23  ;;  %9740 = vmatmul.mubr.msk.f32.gmra.mrb[20].mxu0 %vm4289_vm7, %v15197_v30  ;;  %v4184_v48 = vpop.f32.mrb[233].mxu0  ;;  %v4267_v14 = vmul.f32 %v15197_v30, %v15197_v30 }
 0x55e   : > { %9742 = vmatprep.mubr.msk.f32.mxu0 %vm11655_vm5, %v16908_v0  ;;  %v4258_v48 = vmul.f32 %v15143_v21, %v15143_v21 }
 0x560   : > { %v15207_v18 = vpop.f32.mrb[234].mxu0 }
 0x561   : > { %v15211_v32 = vmul.f32 %v15207_v18, %v15137_v53  ;;  %9743 = vmatmul.mubr.msk.f32.gmra.mrb[22].mxu0 %vm4289_vm7, %v15207_v18  ;;  %v4189_v22 = vpop.f32.mrb[235].mxu0  ;;  %v4268_v8 = vmul.f32 %v15207_v18, %v15207_v18 }
 0x562   : > { %9745 = vmatprep.mubr.msk.f32.mxu0 %vm11655_vm5, %v16908_v0  ;;  %v4259_v22 = vmul.f32 %v15149_v24, %v15149_v24 }
 0x564   : > { %v15217_v50 = vpop.f32.mrb[236].mxu0 }
 0x565   : > { %v15221_v56 = vmul.f32 %v15217_v50, %v15143_v21  ;;  %9746 = vmatmul.mubr.msk.f32.gmra.mrb[24].mxu0 %vm4289_vm7, %v15217_v50  ;;  %v4194_v29 = vpop.f32.mrb[237].mxu0  ;;  %v4269_v2 = vmul.f32 %v15217_v50, %v15217_v50 }
 0x566   : > { %9748 = vmatprep.mubr.msk.f32.mxu0 %vm11655_vm5, %v16908_v0  ;;  %v4260_v29 = vmul.f32 %v15155_v34, %v15155_v34 }
 0x568   : > { %v15227_v20 = vpop.f32.mrb[238].mxu0 }
 0x569   : > { %v15231_v57 = vmul.f32 %v15227_v20, %v15149_v24  ;;  %9749 = vmatmul.mubr.msk.f32.gmra.mrb[26].mxu0 %vm4289_vm7, %v15227_v20  ;;  %v4199_v55 = vpop.f32.mrb[239].mxu0 }
 0x56a   : > { %9751 = vmatprep.mubr.msk.f32.mxu0 %vm11655_vm5, %v16908_v0  ;;  %v4261_v55 = vmul.f32 %v15161_v13, %v15161_v13 }
 0x56c   : > { %v15237_v31 = vpop.f32.mrb[240].mxu0 }
 0x56d   : > { %v15241_v11 = vmul.f32 %v15237_v31, %v15155_v34  ;;  %9752 = vmatmul.mubr.msk.f32.gmra.mrb[28].mxu0 %vm4289_vm7, %v15237_v31  ;;  %v4204_v61 = vpop.f32.mrb[241].mxu0  ;;  %v4271_v25 = vmul.f32 %v15237_v31, %v15237_v31 }
 0x56e   : > { %9754 = vmatprep.mubr.msk.f32.mxu0 %vm11655_vm5, %v16908_v0  ;;  %v4262_v61 = vmul.f32 %v15167_v35, %v15167_v35 }
 0x570   : > { %v15247_v47 = vpop.f32.mrb[242].mxu0 }
 0x571   : > { %v15251_v52 = vmul.f32 %v15247_v47, %v15161_v13  ;;  %9755 = vmatmul.mubr.msk.f32.gmra.mrb[30].mxu0 %vm4289_vm7, %v15247_v47  ;;  %v4209_v16 = vpop.f32.mrb[243].mxu0  ;;  %v4272_v39 = vmul.f32 %v15247_v47, %v15247_v47 }
 0x572   : > { %9757 = vmatprep.mubr.msk.f32.mxu0 %vm11655_vm5, %v16908_v0  ;;  %v4263_v16 = vmul.f32 %v15173_v45, %v15173_v45 }
 0x574   : > { %v15257_v26 = vpop.f32.mrb[244].mxu0 }
 0x575   : > { %v15267_v15 = vmul.f32 %v15257_v26, %v15167_v35  ;;  %9758 = vmatmul.mubr.msk.f32.gmra.mrb[32].mxu0 %vm4289_vm7, %v15257_v26  ;;  %v4214_v38 = vpop.f32.mrb[245].mxu0  ;;  %v4273_v41 = vmul.f32 %v15257_v26, %v15257_v26 }
 0x576   : > { %9760 = vmatprep.mubr.msk.f32.mxu0 %vm11655_vm5, %v16908_v0  ;;  %v4266_v38 = vmul.f32 %v15191_v19, %v15191_v19 }
 0x578   : > { %v15273_v28 = vpop.f32.mrb[246].mxu0 }
 0x579   : > { %v15283_v58 = vmul.f32 %v15273_v28, %v15173_v45  ;;  %9761 = vmatmul.mubr.msk.f32.gmra.mrb[34].mxu0 %vm4289_vm7, %v15273_v28  ;;  %v4219_v42 = vpop.f32.mrb[247].mxu0 }
 0x57a   : > { %9763 = vmatprep.mubr.msk.f32.mxu0 %vm11655_vm5, %v16908_v0  ;;  %v4270_v42 = vmul.f32 %v15227_v20, %v15227_v20 }
 0x57c   : > { %v15289_v44 = vpop.f32.mrb[248].mxu0 }
 0x57d   : > { %v15299_v12 = vmul.f32 %v15289_v44, %v15179_v17  ;;  %9764 = vmatmul.mubr.msk.f32.gmra.mrb[36].mxu0 %vm4289_vm7, %v15289_v44  ;;  %v4224_v63 = vpop.f32.mrb[249].mxu0  ;;  %v4275_v54 = vmul.f32 %v15289_v44, %v15289_v44 }
 0x57e   : > { %9766 = vmatprep.mubr.msk.f32.mxu0 %vm11655_vm5, %v16908_v0  ;;  %v4274_v63 = vmul.f32 %v15273_v28, %v15273_v28 }
 0x580   : > { %v15305_v51 = vpop.f32.mrb[250].mxu0 }
 0x581   : > { %v15315_v37 = vmul.f32 %v15305_v51, %v15185_v6  ;;  %9767 = vmatmul.mubr.msk.f32.gmra.mrb[38].mxu0 %vm4289_vm7, %v15305_v51  ;;  %v4229_v10 = vpop.f32.mrb[251].mxu0  ;;  %v4276_v60 = vmul.f32 %v15305_v51, %v15305_v51 }
 0x582   : > { %9769 = vmatprep.mubr.msk.f32.mxu0 %vm11655_vm5, %v16908_v0 }
 0x584   : > { %v15321_v36 = vpop.f32.mrb[252].mxu0 }
 0x585   : > { %v15331_v40 = vmul.f32 %v15321_v36, %v15191_v19  ;;  %9770 = vmatmul.mubr.msk.f32.gmra.mrb[40].mxu0 %vm4289_vm7, %v15321_v36  ;;  %v4234_v59 = vpop.f32.mrb[253].mxu0  ;;  %v4277_v9 = vmul.f32 %v15321_v36, %v15321_v36 }
 0x586   : > { %9772 = vmatprep.mubr.msk.f32.mxu0 %vm11655_vm5, %v16908_v0 }
 0x589   : > { %9773 = vmatmul.mubr.msk.f32.gmra.mrb[42].mxu0 %vm4289_vm7, %v4256_v7 }
 0x58a   : > { %9775 = vmatprep.mubr.msk.f32.mxu0 %vm11655_vm5, %v16908_v0 }
 0x58d   : > { %9776 = vmatmul.mubr.msk.f32.gmra.mrb[44].mxu0 %vm4289_vm7, %v4257_v5 }
 0x58e   : > { %9778 = vmatprep.mubr.msk.f32.mxu0 %vm11655_vm5, %v16908_v0 }
 0x591   : > { %9779 = vmatmul.mubr.msk.f32.gmra.mrb[46].mxu0 %vm4289_vm7, %v4258_v48 }
 0x592   : > { %9781 = vmatprep.mubr.msk.f32.mxu0 %vm11655_vm5, %v16908_v0 }
 0x595   : > { %9782 = vmatmul.mubr.msk.f32.gmra.mrb[48].mxu0 %vm4289_vm7, %v4259_v22 }
 0x596   : > { %9784 = vmatprep.mubr.msk.f32.mxu0 %vm11655_vm5, %v16908_v0 }
 0x599   : > { %9785 = vmatmul.mubr.msk.f32.gmra.mrb[50].mxu0 %vm4289_vm7, %v4260_v29 }
 0x59a   : > { %9787 = vmatprep.mubr.msk.f32.mxu0 %vm11655_vm5, %v16908_v0 }
 0x59d   : > { %9788 = vmatmul.mubr.msk.f32.gmra.mrb[52].mxu0 %vm4289_vm7, %v4261_v55 }
 0x59e   : > { %9790 = vmatprep.mubr.msk.f32.mxu0 %vm11655_vm5, %v16908_v0 }
 0x5a1   : > { %9791 = vmatmul.mubr.msk.f32.gmra.mrb[54].mxu0 %vm4289_vm7, %v4262_v61 }
 0x5a2   : > { %9793 = vmatprep.mubr.msk.f32.mxu0 %vm11655_vm5, %v16908_v0 }
 0x5a5   : > { %9794 = vmatmul.mubr.msk.f32.gmra.mrb[56].mxu0 %vm4289_vm7, %v4263_v16 }
 0x5a6   : > { %9796 = vmatprep.mubr.msk.f32.mxu0 %vm11655_vm5, %v16908_v0 }
 0x5a9   : > { %9797 = vmatmul.mubr.msk.f32.gmra.mrb[58].mxu0 %vm4289_vm7, %v4264_v62 }
 0x5aa   : > { %9799 = vmatprep.mubr.msk.f32.mxu0 %vm11655_vm5, %v16908_v0 }
 0x5ad   : > { %9800 = vmatmul.mubr.msk.f32.gmra.mrb[60].mxu0 %vm4289_vm7, %v4265_v49 }
 0x5ae   : > { %9802 = vmatprep.mubr.msk.f32.mxu0 %vm11655_vm5, %v16908_v0 }
 0x5b1   : > { %9803 = vmatmul.mubr.msk.f32.gmra.mrb[62].mxu0 %vm4289_vm7, %v4266_v38 }
 0x5b2   : > { %9805 = vmatprep.mubr.msk.f32.mxu0 %vm11655_vm5, %v16908_v0 }
 0x5b5   : > { %9806 = vmatmul.mubr.msk.f32.gmra.mrb[64].mxu0 %vm4289_vm7, %v4267_v14 }
 0x5b6   : > { %9808 = vmatprep.mubr.msk.f32.mxu0 %vm11655_vm5, %v16908_v0 }
 0x5b9   : > { %9809 = vmatmul.mubr.msk.f32.gmra.mrb[66].mxu0 %vm4289_vm7, %v4268_v8 }
 0x5ba   : > { %9811 = vmatprep.mubr.msk.f32.mxu0 %vm11655_vm5, %v16908_v0 }
 0x5bd   : > { %9812 = vmatmul.mubr.msk.f32.gmra.mrb[68].mxu0 %vm4289_vm7, %v4269_v2 }
 0x5be   : > { %9814 = vmatprep.mubr.msk.f32.mxu0 %vm11655_vm5, %v16908_v0 }
 0x5c1   : > { %9815 = vmatmul.mubr.msk.f32.gmra.mrb[70].mxu0 %vm4289_vm7, %v4270_v42 }
 0x5c2   : > { %9817 = vmatprep.mubr.msk.f32.mxu0 %vm11655_vm5, %v16908_v0 }
 0x5c5   : > { %9818 = vmatmul.mubr.msk.f32.gmra.mrb[72].mxu0 %vm4289_vm7, %v4271_v25 }
 0x5c6   : > { %9820 = vmatprep.mubr.msk.f32.mxu0 %vm11655_vm5, %v16908_v0 }
 0x5c9   : > { %9821 = vmatmul.mubr.msk.f32.gmra.mrb[74].mxu0 %vm4289_vm7, %v4272_v39 }
 0x5ca   : > { %9823 = vmatprep.mubr.msk.f32.mxu0 %vm11655_vm5, %v16908_v0 }
 0x5cd   : > { %9824 = vmatmul.mubr.msk.f32.gmra.mrb[76].mxu0 %vm4289_vm7, %v4273_v41 }
 0x5ce   : > { %9826 = vmatprep.mubr.msk.f32.mxu0 %vm11655_vm5, %v16908_v0 }
 0x5d1   : > { %9827 = vmatmul.mubr.msk.f32.gmra.mrb[78].mxu0 %vm4289_vm7, %v4274_v63 }
 0x5d2   : > { %9829 = vmatprep.mubr.msk.f32.mxu0 %vm11655_vm5, %v16908_v0 }
 0x5d5   : > { %9830 = vmatmul.mubr.msk.f32.gmra.mrb[80].mxu0 %vm4289_vm7, %v4275_v54 }
 0x5d6   : > { %9832 = vmatprep.mubr.msk.f32.mxu0 %vm11655_vm5, %v16908_v0 }
 0x5d9   : > { %9833 = vmatmul.mubr.msk.f32.gmra.mrb[82].mxu0 %vm4289_vm7, %v4276_v60 }
 0x5da   : > { %9835 = vmatprep.mubr.msk.f32.mxu0 %vm11655_vm5, %v16908_v0 }
 0x5db   : > { %v4525_v10 = vpop.f32.mrb[254].mxu0 }
 0x5dc   : > { %v9708_v3 = vpop.f32.mrb[255].mxu0 }
 0x5dd   : > { %9836 = vmatmul.mubr.msk.f32.gmra.mrb[84].mxu0 %vm4289_vm7, %v4277_v9 }
 0x5de   : > { %9838 = vmatprep.mubr.msk.f32.mxu0 %vm11655_vm5, %v16908_v0 }
 0x5df   : > { %v4530_v33 = vpop.f32.mrb[0].mxu0 }
 0x5e0   : > { %v10981_v4 = vpack.c.bf16 %v4530_v33, %v4525_v10  ;;  %v9711_v43 = vpop.f32.mrb[1].mxu0 }
 0x5e1   : > { %9839 = vmatmul.mubr.msk.f32.gmra.mrb[86].mxu0 %vm4289_vm7, %v15201_v27 }
 0x5e2   : > { %9841 = vmatprep.mubr.msk.f32.mxu0 %vm11655_vm5, %v16908_v0  ;;  %10982 = vmatpush3.bf16.msra.mxu1 %v10981_v4 }
 0x5e3   : > { %v4535_v59 = vpop.f32.mrb[2].mxu0  ;;  %10983 = vmatprep.subr.bf16.mxu1 %v16907_v46 }
 0x5e4   : > { %v9714_v7 = vpop.f32.mrb[3].mxu0 }
 0x5e5   : > { %9842 = vmatmul.mubr.msk.f32.gmra.mrb[88].mxu0 %vm4289_vm7, %v15211_v32 }
 0x5e6   : > { %9844 = vmatprep.mubr.msk.f32.mxu0 %vm11655_vm5, %v16908_v0 }
 0x5e7   : > { %v4540_v1 = vpop.f32.mrb[4].mxu0 }
 0x5e8   : > { %v10984_v27 = vpack.c.bf16 %v4540_v1, %v4535_v59  ;;  %v9717_v5 = vpop.f32.mrb[5].mxu0 }
 0x5e9   : > { %9845 = vmatmul.mubr.msk.f32.gmra.mrb[90].mxu0 %vm4289_vm7, %v15221_v56 }
 0x5ea   : > { %9847 = vmatprep.mubr.msk.f32.mxu0 %vm11655_vm5, %v16908_v0  ;;  %10985 = vmatpush3.bf16.msra.mxu1 %v10984_v27 }
 0x5eb   : > { %v4545_v48 = vpop.f32.mrb[6].mxu0  ;;  %10986 = vmatprep.subr.bf16.mxu1 %v16907_v46 }
 0x5ec   : > { %v9720_v32 = vpop.f32.mrb[7].mxu0 }
 0x5ed   : > { %9848 = vmatmul.mubr.msk.f32.gmra.mrb[92].mxu0 %vm4289_vm7, %v15231_v57 }
 0x5ee   : > { %9850 = vmatprep.mubr.msk.f32.mxu0 %vm11655_vm5, %v16908_v0 }
 0x5ef   : > { %v4550_v22 = vpop.f32.mrb[8].mxu0 }
 0x5f0   : > { %v10987_v56 = vpack.c.bf16 %v4550_v22, %v4545_v48  ;;  %v9723_v29 = vpop.f32.mrb[9].mxu0 }
 0x5f1   : > { %9851 = vmatmul.mubr.msk.f32.gmra.mrb[94].mxu0 %vm4289_vm7, %v15241_v11 }
 0x5f2   : > { %9853 = vmatprep.mubr.msk.f32.mxu0 %vm11655_vm5, %v16908_v0  ;;  %10988 = vmatpush3.bf16.msra.mxu1 %v10987_v56 }
 0x5f3   : > { %v4555_v55 = vpop.f32.mrb[10].mxu0  ;;  %10989 = vmatprep.subr.bf16.mxu1 %v16907_v46 }
 0x5f4   : > { %v9726_v57 = vpop.f32.mrb[11].mxu0 }
 0x5f5   : > { %9854 = vmatmul.mubr.msk.f32.gmra.mrb[96].mxu0 %vm4289_vm7, %v15251_v52 }
 0x5f6   : > { %9856 = vmatprep.mubr.msk.f32.mxu0 %vm11655_vm5, %v16908_v0 }
 0x5f7   : > { %v4560_v61 = vpop.f32.mrb[12].mxu0 }
 0x5f8   : > { %v10990_v11 = vpack.c.bf16 %v4560_v61, %v4555_v55  ;;  %v9729_v16 = vpop.f32.mrb[13].mxu0 }
 0x5f9   : > { %9857 = vmatmul.mubr.msk.f32.gmra.mrb[98].mxu0 %vm4289_vm7, %v15267_v15 }
 0x5fa   : > { %9859 = vmatprep.mubr.msk.f32.mxu0 %vm11655_vm5, %v16908_v0  ;;  %10991 = vmatpush3.bf16.msra.mxu1 %v10990_v11 }
 0x5fb   : > { %v4565_v62 = vpop.f32.mrb[14].mxu0  ;;  %10992 = vmatprep.subr.bf16.mxu1 %v16907_v46 }
 0x5fc   : > { %v9732_v52 = vpop.f32.mrb[15].mxu0 }
 0x5fd   : > { %9860 = vmatmul.mubr.msk.f32.gmra.mrb[100].mxu0 %vm4289_vm7, %v15283_v58  ;;  %v15498_v58 = vld [vmem:[%s16400_s6] sm:$0xff] }
 0x5fe   : > { %9862 = vmatprep.mubr.msk.f32.mxu0 %vm11655_vm5, %v16908_v0 }
 0x5ff   : > { %v4570_v49 = vpop.f32.mrb[16].mxu0 }
 0x600   : > { %v10993_v15 = vpack.c.bf16 %v4570_v49, %v4565_v62  ;;  %v9735_v38 = vpop.f32.mrb[17].mxu0 }
 0x601   : > { %9863 = vmatmul.mubr.msk.f32.gmra.mrb[102].mxu0 %vm4289_vm7, %v15299_v12  ;;  %v15512_v12 = vld [vmem:[%s16400_s6 + $0x8] sm:$0xff] }
 0x602   : > { %9865 = vmatprep.mubr.msk.f32.mxu0 %vm11655_vm5, %v16908_v0  ;;  %10994 = vmatpush3.bf16.msra.mxu1 %v10993_v15 }
 0x603   : > { %v4575_v14 = vpop.f32.mrb[18].mxu0  ;;  %9891 = vmatprep.subr.mxu1 %v16908_v0 }
 0x604   : > { %v9738_v8 = vpop.f32.mrb[19].mxu0 }
 0x605   : > { %9866 = vmatmul.mubr.msk.f32.gmra.mrb[104].mxu0 %vm4289_vm7, %v15315_v37  ;;  %v15525_v37 = vld [vmem:[%s16400_s6 + $0x10] sm:$0xff] }
 0x606   : > { %9868 = vmatprep.mubr.msk.f32.mxu0 %vm11655_vm5, %v16908_v0  ;;  %9892 = vmatpush3.msra.mxu1 %v4575_v14 }
 0x607   : > { %9894 = vmatmul.mubr.msk.f32.vlgmr.msra.gmra.mrb[18].mxu1 %vm4799_vm8, %v15498_v58  ;;  %10995 = vmatprep.subr.bf16.mxu1 %v16907_v46 }
 0x608   : > { %9896 = vmatprep.mubr.msk.f32.mxu1 %vm11655_vm5, %v16908_v0 }
 0x609   : > { %9869 = vmatmul.mubr.msk.f32.gmra.mrb[106].mxu0 %vm4289_vm7, %v15331_v40 }
 0x60a   : > { %10138 = vmatprep.mubr.msk.f32.mxu0 %vm4289_vm7, %v15131_v23  ;;  %v15538_v23 = vld [vmem:[%s16400_s6 + $0x18] sm:$0xff] }
 0x60b   : > { %9897 = vmatmul.mubr.msk.f32.gmra.mrb[20].mxu1 %vm4799_vm8, %v15512_v12 }
 0x60c   : > { %9899 = vmatprep.mubr.msk.f32.mxu1 %vm11655_vm5, %v16908_v0 }
 0x60d   : > { %10139 = vmatmul.mubr.msk.f32.vlgmr.msra.gmra.mrb[108].mxu0 %vm4289_vm7, %v15137_v53  ;;  %v15551_v53 = vld [vmem:[%s16400_s6 + $0x20] sm:$0xff] }
 0x60e   : > { %10141 = vmatprep.mubr.msk.f32.mxu0 %vm4289_vm7, %v15143_v21  ;;  %v15564_v21 = vld [vmem:[%s16400_s6 + $0x28] sm:$0xff] }
 0x60f   : > { %9900 = vmatmul.mubr.msk.f32.gmra.mrb[22].mxu1 %vm4799_vm8, %v15525_v37 }
 0x610   : > { %9902 = vmatprep.mubr.msk.f32.mxu1 %vm11655_vm5, %v16908_v0 }
 0x611   : > { %10142 = vmatmul.mubr.msk.f32.gmra.mrb[110].mxu0 %vm4289_vm7, %v15149_v24  ;;  %v15577_v24 = vld [vmem:[%s16400_s6 + $0x30] sm:$0xff] }
 0x612   : > { %10144 = vmatprep.mubr.msk.f32.mxu0 %vm4289_vm7, %v15155_v34  ;;  %v15590_v34 = vld [vmem:[%s16400_s6 + $0x38] sm:$0xff] }
 0x613   : > { %9903 = vmatmul.mubr.msk.f32.gmra.mrb[24].mxu1 %vm4799_vm8, %v15538_v23 }
 0x614   : > { %9905 = vmatprep.mubr.msk.f32.mxu1 %vm11655_vm5, %v16908_v0 }
 0x615   : > { %10145 = vmatmul.mubr.msk.f32.gmra.mrb[112].mxu0 %vm4289_vm7, %v15161_v13  ;;  %v15603_v13 = vld [vmem:[%s16400_s6 + $0x40] sm:$0x7f] }
 0x616   : > { %10147 = vmatprep.mubr.msk.f32.mxu0 %vm4289_vm7, %v15167_v35 }
 0x617   : > { %9906 = vmatmul.mubr.msk.f32.gmra.mrb[26].mxu1 %vm4799_vm8, %v15551_v53 }
 0x618   : > { %9908 = vmatprep.mubr.msk.f32.mxu1 %vm11655_vm5, %v16908_v0 }
 0x619   : > { %10148 = vmatmul.mubr.msk.f32.gmra.mrb[114].mxu0 %vm4289_vm7, %v15173_v45 }
 0x61a   : > { %10150 = vmatprep.mubr.msk.f32.mxu0 %vm4289_vm7, %v15179_v17 }
 0x61b   : > { %9909 = vmatmul.mubr.msk.f32.gmra.mrb[28].mxu1 %vm4799_vm8, %v15564_v21 }
 0x61c   : > { %9911 = vmatprep.mubr.msk.f32.mxu1 %vm11655_vm5, %v16908_v0 }
 0x61d   : > { %10151 = vmatmul.mubr.msk.f32.gmra.mrb[116].mxu0 %vm4289_vm7, %v15185_v6 }
 0x61e   : > { %10153 = vmatprep.mubr.msk.f32.mxu0 %vm4289_vm7, %v15191_v19 }
 0x61f   : > { %9912 = vmatmul.mubr.msk.f32.gmra.mrb[30].mxu1 %vm4799_vm8, %v15577_v24 }
 0x620   : > { %9914 = vmatprep.mubr.msk.f32.mxu1 %vm11655_vm5, %v16908_v0 }
 0x621   : > { %10154 = vmatmul.mubr.msk.f32.gmra.mrb[118].mxu0 %vm4289_vm7, %v15197_v30 }
 0x622   : > { %10156 = vmatprep.mubr.msk.f32.mxu0 %vm4289_vm7, %v15207_v18 }
 0x623   : > { %9915 = vmatmul.mubr.msk.f32.gmra.mrb[32].mxu1 %vm4799_vm8, %v15590_v34 }
 0x624   : > { %9917 = vmatprep.mubr.msk.f32.mxu1 %vm11655_vm5, %v16908_v0 }
 0x625   : > { %10157 = vmatmul.mubr.msk.f32.gmra.mrb[120].mxu0 %vm4289_vm7, %v15217_v50 }
 0x626   : > { %10159 = vmatprep.mubr.msk.f32.mxu0 %vm4289_vm7, %v15227_v20 }
 0x627   : > { %9918 = vmatmul.mubr.msk.f32.gmra.mrb[34].mxu1 %vm4799_vm8, %v15603_v13 }
 0x628   : > { %9942 = vmatprep.mubr.msk.f32.mxu1 %vm11655_vm5, %v16908_v0 }
 0x629   : > { %10160 = vmatmul.mubr.msk.f32.gmra.mrb[122].mxu0 %vm4289_vm7, %v15237_v31 }
 0x62a   : > { %10162 = vmatprep.mubr.msk.f32.mxu0 %vm4289_vm7, %v15247_v47 }
 0x62d   : > { %10163 = vmatmul.mubr.msk.f32.gmra.mrb[124].mxu0 %vm4289_vm7, %v15257_v26 }
 0x62e   : > { %10165 = vmatprep.mubr.msk.f32.mxu0 %vm4289_vm7, %v15273_v28 }
 0x630   : > { %v4580_v35 = vpop.f32.mrb[20].mxu0 }
 0x631   : > { %10166 = vmatmul.mubr.msk.f32.gmra.mrb[126].mxu0 %vm4289_vm7, %v15289_v44  ;;  %v9741_v45 = vpop.f32.mrb[21].mxu0 }
 0x632   : > { %10168 = vmatprep.mubr.msk.f32.mxu0 %vm4289_vm7, %v15305_v51 }
 0x634   : > { %v4585_v17 = vpop.f32.mrb[22].mxu0 }
 0x635   : > { %10169 = vmatmul.mubr.msk.f32.gmra.mrb[128].mxu0 %vm4289_vm7, %v15321_v36  ;;  %v10996_v6 = vpack.c.bf16 %v4585_v17, %v4580_v35  ;;  %v9744_v19 = vpop.f32.mrb[23].mxu0  ;;  %vm7752_vm7 = vcmask 89088  }
 0x637   : > { %10997 = vmatpush3.bf16.msra.mxu1 %v10996_v6 }
 0x638   : > { %v4590_v30 = vpop.f32.mrb[24].mxu0  ;;  %10998 = vmatprep.subr.bf16.mxu1 %v16907_v46 }
 0x639   : > { %v9747_v18 = vpop.f32.mrb[25].mxu0 }
 0x63c   : > { %v4595_v50 = vpop.f32.mrb[26].mxu0 }
 0x63d   : > { %v10999_v20 = vpack.c.bf16 %v4595_v50, %v4590_v30  ;;  %v9750_v31 = vpop.f32.mrb[27].mxu0 }
 0x63f   : > { %11000 = vmatpush3.bf16.msra.mxu1 %v10999_v20 }
 0x640   : > { %v4600_v47 = vpop.f32.mrb[28].mxu0  ;;  %11001 = vmatprep.subr.bf16.mxu1 %v16907_v46 }
 0x641   : > { %v9753_v26 = vpop.f32.mrb[29].mxu0 }
 0x644   : > { %v4605_v28 = vpop.f32.mrb[30].mxu0 }
 0x645   : > { %v11002_v44 = vpack.c.bf16 %v4605_v28, %v4600_v47  ;;  %v9756_v51 = vpop.f32.mrb[31].mxu0 }
 0x647   : > { %11003 = vmatpush3.bf16.msra.mxu1 %v11002_v44 }
 0x648   : > { %v4610_v36 = vpop.f32.mrb[32].mxu0  ;;  %11004 = vmatprep.subr.bf16.mxu1 %v16907_v46 }
 0x649   : > { %v9759_v40 = vpop.f32.mrb[33].mxu0 }
 0x64c   : > { %v4615_v2 = vpop.f32.mrb[34].mxu0 }
 0x64d   : > { %v11005_v42 = vpack.c.bf16 %v4615_v2, %v4610_v36  ;;  %v9762_v25 = vpop.f32.mrb[35].mxu0 }
 0x64f   : > { %11006 = vmatpush3.bf16.msra.mxu1 %v11005_v42 }
 0x650   : > { %v4620_v39 = vpop.f32.mrb[36].mxu0  ;;  %11007 = vmatprep.subr.bf16.mxu1 %v16907_v46 }
 0x651   : > { %v9765_v41 = vpop.f32.mrb[37].mxu0 }
 0x654   : > { %v4625_v63 = vpop.f32.mrb[38].mxu0 }
 0x655   : > { %v11008_v54 = vpack.c.bf16 %v4625_v63, %v4620_v39  ;;  %v9768_v60 = vpop.f32.mrb[39].mxu0 }
 0x657   : > { %11009 = vmatpush3.bf16.msra.mxu1 %v11008_v54 }
 0x658   : > { %v4630_v9 = vpop.f32.mrb[40].mxu0  ;;  %9940 = vmatprep.subr.mxu1 %v16908_v0 }
 0x659   : > { %v9771_v10 = vpop.f32.mrb[41].mxu0 }
 0x65b   : > { %9941 = vmatpush3.msra.mxu1 %v4630_v9 }
 0x65c   : > { %9943 = vmatmul.mubr.msk.f32.vlgmr.msra.gmra.mrb[36].mxu1 %vm4799_vm8, %v15498_v58  ;;  %v4635_v3 = vpop.f32.mrb[42].mxu0  ;;  %11010 = vmatprep.subr.bf16.mxu1 %v16907_v46 }
 0x65d   : > { %9945 = vmatprep.mubr.msk.f32.mxu1 %vm11655_vm5, %v16908_v0  ;;  %v9774_v33 = vpop.f32.mrb[43].mxu0 }
 0x660   : > { %9946 = vmatmul.mubr.msk.f32.gmra.mrb[38].mxu1 %vm4799_vm8, %v15512_v12  ;;  %v4640_v4 = vpop.f32.mrb[44].mxu0 }
 0x661   : > { %9948 = vmatprep.mubr.msk.f32.mxu1 %vm11655_vm5, %v16908_v0  ;;  %v11011_v43 = vpack.c.bf16 %v4640_v4, %v4635_v3  ;;  %v9777_v59 = vpop.f32.mrb[45].mxu0 }
 0x663   : > { %11012 = vmatpush3.bf16.msra.mxu1 %v11011_v43 }
 0x664   : > { %9949 = vmatmul.mubr.msk.f32.gmra.mrb[40].mxu1 %vm4799_vm8, %v15525_v37  ;;  %v4645_v7 = vpop.f32.mrb[46].mxu0  ;;  %11013 = vmatprep.subr.bf16.mxu1 %v16907_v46 }
 0x665   : > { %9951 = vmatprep.mubr.msk.f32.mxu1 %vm11655_vm5, %v16908_v0  ;;  %v9780_v1 = vpop.f32.mrb[47].mxu0 }
 0x668   : > { %9952 = vmatmul.mubr.msk.f32.gmra.mrb[42].mxu1 %vm4799_vm8, %v15538_v23  ;;  %v4650_v27 = vpop.f32.mrb[48].mxu0 }
 0x669   : > { %9954 = vmatprep.mubr.msk.f32.mxu1 %vm11655_vm5, %v16908_v0  ;;  %v11014_v5 = vpack.c.bf16 %v4650_v27, %v4645_v7  ;;  %v9783_v48 = vpop.f32.mrb[49].mxu0 }
 0x66b   : > { %11015 = vmatpush3.bf16.msra.mxu1 %v11014_v5 }
 0x66c   : > { %9955 = vmatmul.mubr.msk.f32.gmra.mrb[44].mxu1 %vm4799_vm8, %v15551_v53  ;;  %v4655_v32 = vpop.f32.mrb[50].mxu0  ;;  %11016 = vmatprep.subr.bf16.mxu1 %v16907_v46 }
 0x66d   : > { %v9786_v22 = vpop.f32.mrb[51].mxu0  ;;  %9957 = vmatprep.mubr.msk.f32.mxu1 %vm11655_vm5, %v16908_v0 }
 0x670   : > { %v4660_v56 = vpop.f32.mrb[52].mxu0  ;;  %9958 = vmatmul.mubr.msk.f32.gmra.mrb[46].mxu1 %vm4799_vm8, %v15564_v21 }
 0x671   : > { %v11017_v29 = vpack.c.bf16 %v4660_v56, %v4655_v32  ;;  %v9789_v55 = vpop.f32.mrb[53].mxu0  ;;  %9960 = vmatprep.mubr.msk.f32.mxu1 %vm11655_vm5, %v16908_v0 }
 0x673   : > { %11018 = vmatpush3.bf16.msra.mxu1 %v11017_v29 }
 0x674   : > { %v4665_v57 = vpop.f32.mrb[54].mxu0  ;;  %9961 = vmatmul.mubr.msk.f32.gmra.mrb[48].mxu1 %vm4799_vm8, %v15577_v24  ;;  %11019 = vmatprep.subr.bf16.mxu1 %v16907_v46 }
 0x675   : > { %v9792_v61 = vpop.f32.mrb[55].mxu0  ;;  %9963 = vmatprep.mubr.msk.f32.mxu1 %vm11655_vm5, %v16908_v0 }
 0x678   : > { %v4670_v11 = vpop.f32.mrb[56].mxu0  ;;  %9964 = vmatmul.mubr.msk.f32.gmra.mrb[50].mxu1 %vm4799_vm8, %v15590_v34 }
 0x679   : > { %v11020_v16 = vpack.c.bf16 %v4670_v11, %v4665_v57  ;;  %v9795_v62 = vpop.f32.mrb[57].mxu0  ;;  %9966 = vmatprep.mubr.msk.f32.mxu1 %vm11655_vm5, %v16908_v0 }
 0x67b   : > { %11021 = vmatpush3.bf16.msra.mxu1 %v11020_v16 }
 0x67c   : > { %v4675_v52 = vpop.f32.mrb[58].mxu0  ;;  %11022 = vmatprep.subr.bf16.mxu1 %v16907_v46  ;;  %9967 = vmatmul.mubr.msk.f32.gmra.mrb[52].mxu1 %vm4799_vm8, %v15603_v13 }
 0x67d   : > { %v9798_v49 = vpop.f32.mrb[59].mxu0  ;;  %9991 = vmatprep.mubr.msk.f32.mxu1 %vm11655_vm5, %v16908_v0 }
 0x680   : > { %v4680_v15 = vpop.f32.mrb[60].mxu0 }
 0x681   : > { %v11023_v38 = vpack.c.bf16 %v4680_v15, %v4675_v52  ;;  %v9801_v14 = vpop.f32.mrb[61].mxu0 }
 0x683   : > { %11024 = vmatpush3.bf16.msra.mxu1 %v11023_v38 }
 0x684   : > { %v4685_v8 = vpop.f32.mrb[62].mxu0  ;;  %9989 = vmatprep.subr.mxu1 %v16908_v0 }
 0x685   : > { %v9804_v35 = vpop.f32.mrb[63].mxu0 }
 0x687   : > { %9990 = vmatpush3.msra.mxu1 %v4685_v8 }
 0x688   : > { %9992 = vmatmul.mubr.msk.f32.vlgmr.msra.gmra.mrb[54].mxu1 %vm4799_vm8, %v15498_v58  ;;  %v4690_v45 = vpop.f32.mrb[64].mxu0  ;;  %11025 = vmatprep.subr.bf16.mxu1 %v16907_v46 }
 0x689   : > { %9994 = vmatprep.mubr.msk.f32.mxu1 %vm11655_vm5, %v16908_v0  ;;  %v9807_v17 = vpop.f32.mrb[65].mxu0 }
 0x68c   : > { %9995 = vmatmul.mubr.msk.f32.gmra.mrb[56].mxu1 %vm4799_vm8, %v15512_v12  ;;  %v4695_v6 = vpop.f32.mrb[66].mxu0 }
 0x68d   : > { %9997 = vmatprep.mubr.msk.f32.mxu1 %vm11655_vm5, %v16908_v0  ;;  %v11026_v19 = vpack.c.bf16 %v4695_v6, %v4690_v45  ;;  %v9810_v30 = vpop.f32.mrb[67].mxu0 }
 0x68f   : > { %11027 = vmatpush3.bf16.msra.mxu1 %v11026_v19 }
 0x690   : > { %9998 = vmatmul.mubr.msk.f32.gmra.mrb[58].mxu1 %vm4799_vm8, %v15525_v37  ;;  %v4700_v18 = vpop.f32.mrb[68].mxu0  ;;  %11028 = vmatprep.subr.bf16.mxu1 %v16907_v46 }
 0x691   : > { %10000 = vmatprep.mubr.msk.f32.mxu1 %vm11655_vm5, %v16908_v0  ;;  %v9813_v50 = vpop.f32.mrb[69].mxu0 }
 0x694   : > { %10001 = vmatmul.mubr.msk.f32.gmra.mrb[60].mxu1 %vm4799_vm8, %v15538_v23  ;;  %v4705_v20 = vpop.f32.mrb[70].mxu0 }
 0x695   : > { %10003 = vmatprep.mubr.msk.f32.mxu1 %vm11655_vm5, %v16908_v0  ;;  %v11029_v31 = vpack.c.bf16 %v4705_v20, %v4700_v18  ;;  %v9816_v47 = vpop.f32.mrb[71].mxu0 }
 0x697   : > { %11030 = vmatpush3.bf16.msra.mxu1 %v11029_v31 }
 0x698   : > { %10004 = vmatmul.mubr.msk.f32.gmra.mrb[62].mxu1 %vm4799_vm8, %v15551_v53  ;;  %v4710_v26 = vpop.f32.mrb[72].mxu0  ;;  %11031 = vmatprep.subr.bf16.mxu1 %v16907_v46 }
 0x699   : > { %v9819_v28 = vpop.f32.mrb[73].mxu0  ;;  %10006 = vmatprep.mubr.msk.f32.mxu1 %vm11655_vm5, %v16908_v0 }
 0x69c   : > { %v4715_v44 = vpop.f32.mrb[74].mxu0  ;;  %10007 = vmatmul.mubr.msk.f32.gmra.mrb[64].mxu1 %vm4799_vm8, %v15564_v21 }
 0x69d   : > { %v11032_v51 = vpack.c.bf16 %v4715_v44, %v4710_v26  ;;  %v9822_v36 = vpop.f32.mrb[75].mxu0  ;;  %10009 = vmatprep.mubr.msk.f32.mxu1 %vm11655_vm5, %v16908_v0 }
 0x69f   : > { %11033 = vmatpush3.bf16.msra.mxu1 %v11032_v51 }
 0x6a0   : > { %v4720_v40 = vpop.f32.mrb[76].mxu0  ;;  %10010 = vmatmul.mubr.msk.f32.gmra.mrb[66].mxu1 %vm4799_vm8, %v15577_v24  ;;  %11034 = vmatprep.subr.bf16.mxu1 %v16907_v46 }
 0x6a1   : > { %v9825_v2 = vpop.f32.mrb[77].mxu0  ;;  %10012 = vmatprep.mubr.msk.f32.mxu1 %vm11655_vm5, %v16908_v0 }
 0x6a4   : > { %v4725_v42 = vpop.f32.mrb[78].mxu0  ;;  %10013 = vmatmul.mubr.msk.f32.gmra.mrb[68].mxu1 %vm4799_vm8, %v15590_v34 }
 0x6a5   : > { %v11035_v25 = vpack.c.bf16 %v4725_v42, %v4720_v40  ;;  %v9828_v39 = vpop.f32.mrb[79].mxu0  ;;  %10015 = vmatprep.mubr.msk.f32.mxu1 %vm11655_vm5, %v16908_v0 }
 0x6a7   : > { %11036 = vmatpush3.bf16.msra.mxu1 %v11035_v25 }
 0x6a8   : > { %v4730_v41 = vpop.f32.mrb[80].mxu0  ;;  %11037 = vmatprep.subr.bf16.mxu1 %v16907_v46  ;;  %10016 = vmatmul.mubr.msk.f32.gmra.mrb[70].mxu1 %vm4799_vm8, %v15603_v13 }
 0x6a9   : > { %v9831_v63 = vpop.f32.mrb[81].mxu0  ;;  %10040 = vmatprep.mubr.msk.f32.mxu1 %vm11655_vm5, %v16908_v0 }
 0x6ac   : > { %v4735_v54 = vpop.f32.mrb[82].mxu0 }
 0x6ad   : > { %v11038_v60 = vpack.c.bf16 %v4735_v54, %v4730_v41  ;;  %v9834_v9 = vpop.f32.mrb[83].mxu0 }
 0x6af   : > { %11039 = vmatpush3.bf16.msra.mxu1 %v11038_v60 }
 0x6b0   : > { %v4740_v10 = vpop.f32.mrb[84].mxu0  ;;  %10038 = vmatprep.subr.mxu1 %v16908_v0 }
 0x6b1   : > { %v9837_v3 = vpop.f32.mrb[85].mxu0 }
 0x6b3   : > { %10039 = vmatpush3.msra.mxu1 %v4740_v10 }
 0x6b4   : > { %10041 = vmatmul.mubr.msk.f32.vlgmr.msra.gmra.mrb[72].mxu1 %vm4799_vm8, %v15498_v58  ;;  %v4745_v33 = vpop.f32.mrb[86].mxu0  ;;  %11040 = vmatprep.subr.bf16.mxu1 %v16907_v46 }
 0x6b5   : > { %10043 = vmatprep.mubr.msk.f32.mxu1 %vm11655_vm5, %v16908_v0  ;;  %v9840_v4 = vpop.f32.mrb[87].mxu0 }
 0x6b8   : > { %10044 = vmatmul.mubr.msk.f32.gmra.mrb[74].mxu1 %vm4799_vm8, %v15512_v12  ;;  %v4750_v43 = vpop.f32.mrb[88].mxu0 }
 0x6b9   : > { %10046 = vmatprep.mubr.msk.f32.mxu1 %vm11655_vm5, %v16908_v0  ;;  %v11041_v59 = vpack.c.bf16 %v4750_v43, %v4745_v33  ;;  %v9843_v7 = vpop.f32.mrb[89].mxu0 }
 0x6bb   : > { %11042 = vmatpush3.bf16.msra.mxu1 %v11041_v59 }
 0x6bc   : > { %10047 = vmatmul.mubr.msk.f32.gmra.mrb[76].mxu1 %vm4799_vm8, %v15525_v37  ;;  %v4755_v1 = vpop.f32.mrb[90].mxu0  ;;  %11043 = vmatprep.subr.bf16.mxu1 %v16907_v46 }
 0x6bd   : > { %10049 = vmatprep.mubr.msk.f32.mxu1 %vm11655_vm5, %v16908_v0  ;;  %v9846_v27 = vpop.f32.mrb[91].mxu0 }
 0x6c0   : > { %10050 = vmatmul.mubr.msk.f32.gmra.mrb[78].mxu1 %vm4799_vm8, %v15538_v23  ;;  %v4760_v5 = vpop.f32.mrb[92].mxu0 }
 0x6c1   : > { %10052 = vmatprep.mubr.msk.f32.mxu1 %vm11655_vm5, %v16908_v0  ;;  %v11044_v48 = vpack.c.bf16 %v4760_v5, %v4755_v1  ;;  %v9849_v32 = vpop.f32.mrb[93].mxu0  ;;  %v5556_v5 = vld [vmem:[%s16402_s8] sm:$0xff] }
 0x6c3   : > { %11045 = vmatpush3.bf16.msra.mxu1 %v11044_v48 }
 0x6c4   : > { %10053 = vmatmul.mubr.msk.f32.gmra.mrb[80].mxu1 %vm4799_vm8, %v15551_v53  ;;  %v4765_v22 = vpop.f32.mrb[94].mxu0  ;;  %11046 = vmatprep.subr.bf16.mxu1 %v16907_v46 }
 0x6c5   : > { %v9852_v56 = vpop.f32.mrb[95].mxu0  ;;  %10055 = vmatprep.mubr.msk.f32.mxu1 %vm11655_vm5, %v16908_v0 }
 0x6c8   : > { %v4770_v29 = vpop.f32.mrb[96].mxu0  ;;  %10056 = vmatmul.mubr.msk.f32.gmra.mrb[82].mxu1 %vm4799_vm8, %v15564_v21 }
 0x6c9   : > { %v11047_v55 = vpack.c.bf16 %v4770_v29, %v4765_v22  ;;  %v9855_v57 = vpop.f32.mrb[97].mxu0  ;;  %10058 = vmatprep.mubr.msk.f32.mxu1 %vm11655_vm5, %v16908_v0  ;;  %v5558_v29 = vld [vmem:[%s16402_s8 + $0x10] sm:$0xff] }
 0x6cb   : > { %11048 = vmatpush3.bf16.msra.mxu1 %v11047_v55 }
 0x6cc   : > { %v4775_v61 = vpop.f32.mrb[98].mxu0  ;;  %10059 = vmatmul.mubr.msk.f32.gmra.mrb[84].mxu1 %vm4799_vm8, %v15577_v24  ;;  %11049 = vmatprep.subr.bf16.mxu1 %v16907_v46 }
 0x6cd   : > { %v9858_v11 = vpop.f32.mrb[99].mxu0  ;;  %10061 = vmatprep.mubr.msk.f32.mxu1 %vm11655_vm5, %v16908_v0 }
 0x6ce   : > { %v5560_v11 = vld [vmem:[%s16402_s8 + $0x20] sm:$0xff] }
 0x6d0   : > { %v4780_v16 = vpop.f32.mrb[100].mxu0  ;;  %10062 = vmatmul.mubr.msk.f32.gmra.mrb[86].mxu1 %vm4799_vm8, %v15590_v34 }
 0x6d1   : > { %v11050_v62 = vpack.c.bf16 %v4780_v16, %v4775_v61  ;;  %v9861_v52 = vpop.f32.mrb[101].mxu0  ;;  %10064 = vmatprep.mubr.msk.f32.mxu1 %vm11655_vm5, %v16908_v0 }
 0x6d2   : > { %v5561_v52 = vld [vmem:[%s16402_s8 + $0x28] sm:$0xff] }
 0x6d3   : > { %11051 = vmatpush3.bf16.msra.mxu1 %v11050_v62 }
 0x6d4   : > { %v4785_v49 = vpop.f32.mrb[102].mxu0  ;;  %11052 = vmatprep.subr.bf16.mxu1 %v16907_v46  ;;  %10065 = vmatmul.mubr.msk.f32.gmra.mrb[88].mxu1 %vm4799_vm8, %v15603_v13 }
 0x6d5   : > { %v9864_v15 = vpop.f32.mrb[103].mxu0  ;;  %10089 = vmatprep.mubr.msk.f32.mxu1 %vm11655_vm5, %v16908_v0 }
 0x6d8   : > { %v4790_v38 = vpop.f32.mrb[104].mxu0 }
 0x6d9   : > { %v11053_v14 = vpack.c.bf16 %v4790_v38, %v4785_v49  ;;  %v9867_v8 = vpop.f32.mrb[105].mxu0 }
 0x6da   : > { %v15755_v35 = vpop.f32.mrb[18].mxu1 }
 0x6db   : > { %11054 = vmatpush3.bf16.msra.mxu1 %v11053_v14  ;;  %v9895_v17 = vpop.f32.mrb[19].mxu1 }
 0x6dc   : > { %v4795_v45 = vpop.f32.mrb[106].mxu0  ;;  %10087 = vmatprep.subr.mxu1 %v16908_v0 }
 0x6dd   : > { %v9870_v6 = vpop.f32.mrb[107].mxu0 }
 0x6de   : > { %v15758_v19 = vpop.f32.mrb[20].mxu1 }
 0x6df   : > { %10088 = vmatpush3.msra.mxu1 %v4795_v45  ;;  %v9898_v18 = vpop.f32.mrb[21].mxu1 }
 0x6e0   : > { %10090 = vmatmul.mubr.msk.f32.vlgmr.msra.gmra.mrb[90].mxu1 %vm4799_vm8, %v15498_v58  ;;  %v10140_v30 = vpop.f32.mrb[108].mxu0 }
 0x6e1   : > { %v5642_v50 = vpop.f32.mrb[109].mxu0  ;;  %10092 = vmatprep.mubr.msk.f32.mxu1 %vm11655_vm5, %v16908_v0 }
 0x6e2   : > { %v11075_v20 = vpack.c.bf16 %v10140_v30, %v5642_v50  ;;  %v15764_v31 = vpop.f32.mrb[22].mxu1 }
 0x6e3   : > { %v9901_v26 = vpop.f32.mrb[23].mxu1 }
 0x6e4   : > { %10093 = vmatmul.mubr.msk.f32.gmra.mrb[92].mxu1 %vm4799_vm8, %v15512_v12  ;;  %11076 = vmatprep.subr.bf16.mxu1 %v11075_v20  ;;  %v10143_v47 = vpop.f32.mrb[110].mxu0 }
 0x6e5   : > { %11078 = vmatpush3.bf16.msra.mxu1 %v11075_v20  ;;  %10095 = vmatprep.mubr.msk.f32.mxu1 %vm11655_vm5, %v16908_v0  ;;  %v5652_v58 = vpop.f32.mrb[111].mxu0 }
 0x6e6   : > { %v11079_v28 = vpack.c.bf16 %v10143_v47, %v5652_v58  ;;  %v15770_v44 = vpop.f32.mrb[24].mxu1 }
 0x6e7   : > { %v9904_v36 = vpop.f32.mrb[25].mxu1 }
 0x6e8   : > { %10096 = vmatmul.mubr.msk.f32.gmra.mrb[94].mxu1 %vm4799_vm8, %v15525_v37  ;;  %v10146_v51 = vpop.f32.mrb[112].mxu0  ;;  %11080 = vmatprep.subr.bf16.mxu1 %v11079_v28 }
 0x6e9   : > { %10098 = vmatprep.mubr.msk.f32.mxu1 %vm11655_vm5, %v16908_v0  ;;  %v5662_v12 = vpop.f32.mrb[113].mxu0  ;;  %11082 = vmatpush3.bf16.msra.mxu1 %v11079_v28 }
 0x6ea   : > { %v11083_v40 = vpack.c.bf16 %v10146_v51, %v5662_v12  ;;  %v15776_v2 = vpop.f32.mrb[26].mxu1 }
 0x6eb   : > { %v9907_v25 = vpop.f32.mrb[27].mxu1 }
 0x6ec   : > { %10099 = vmatmul.mubr.msk.f32.gmra.mrb[96].mxu1 %vm4799_vm8, %v15538_v23  ;;  %v10149_v42 = vpop.f32.mrb[114].mxu0  ;;  %11084 = vmatprep.subr.bf16.mxu1 %v11083_v40 }
 0x6ed   : > { %10101 = vmatprep.mubr.msk.f32.mxu1 %vm11655_vm5, %v16908_v0  ;;  %v5672_v37 = vpop.f32.mrb[115].mxu0  ;;  %11086 = vmatpush3.bf16.msra.mxu1 %v11083_v40 }
 0x6ee   : > { %v11087_v39 = vpack.c.bf16 %v10149_v42, %v5672_v37  ;;  %v15782_v41 = vpop.f32.mrb[28].mxu1 }
 0x6ef   : > { %v9910_v54 = vpop.f32.mrb[29].mxu1 }
 0x6f0   : > { %10102 = vmatmul.mubr.msk.f32.gmra.mrb[98].mxu1 %vm4799_vm8, %v15551_v53  ;;  %v10152_v63 = vpop.f32.mrb[116].mxu0  ;;  %11088 = vmatprep.subr.bf16.mxu1 %v11087_v39  ;;  %v5963_v54 = vld [vmem:[%s16405_s11] sm:$0xff] }
 0x6f1   : > { %10104 = vmatprep.mubr.msk.f32.mxu1 %vm11655_vm5, %v16908_v0  ;;  %v5682_v23 = vpop.f32.mrb[117].mxu0  ;;  %11090 = vmatpush3.bf16.msra.mxu1 %v11087_v39 }
 0x6f2   : > { %v11091_v60 = vpack.c.bf16 %v10152_v63, %v5682_v23  ;;  %v15788_v9 = vpop.f32.mrb[30].mxu1  ;;  %v5964_v23 = vld [vmem:[%s16405_s11 + $0x8] sm:$0xff] }
 0x6f3   : > { %v9913_v3 = vpop.f32.mrb[31].mxu1 }
 0x6f4   : > { %10105 = vmatmul.mubr.msk.f32.gmra.mrb[100].mxu1 %vm4799_vm8, %v15564_v21  ;;  %v10155_v10 = vpop.f32.mrb[118].mxu0  ;;  %11092 = vmatprep.subr.bf16.mxu1 %v11091_v60 }
 0x6f5   : > { %10107 = vmatprep.mubr.msk.f32.mxu1 %vm11655_vm5, %v16908_v0  ;;  %v5692_v53 = vpop.f32.mrb[119].mxu0  ;;  %11094 = vmatpush3.bf16.msra.mxu1 %v11091_v60  ;;  %v11115_v60 = vpack.c.bf16 %v5964_v23, %v5963_v54 }
 0x6f6   : > { %10191 = vmatprep.subr.mxu1 %v5692_v53  ;;  %v15794_v33 = vpop.f32.mrb[32].mxu1 }
 0x6f7   : > { %v9916_v43 = vpop.f32.mrb[33].mxu1  ;;  %v5384_v54 = vmul.f32 %v15794_v33, %v15794_v33 }
 0x6f8   : > { %10108 = vmatmul.mubr.msk.f32.gmra.mrb[102].mxu1 %vm4799_vm8, %v15577_v24  ;;  %v10158_v4 = vpop.f32.mrb[120].mxu0  ;;  %v5966_v43 = vld [vmem:[%s16405_s11 + $0x18] sm:$0xff] }
 0x6f9   : > { %10110 = vmatprep.mubr.msk.f32.mxu1 %vm11655_vm5, %v16908_v0  ;;  %v5702_v21 = vpop.f32.mrb[121].mxu0  ;;  %10192 = vmatpush3.msra.mxu1 %v5692_v53 }
 0x6fa   : > { %v11095_v59 = vpack.c.bf16 %v5702_v21, %v10155_v10  ;;  %v15800_v7 = vpop.f32.mrb[34].mxu1 }
 0x6fb   : > { %v9919_v27 = vpop.f32.mrb[35].mxu1 }
 0x6fc   : > { %10111 = vmatmul.mubr.msk.f32.gmra.mrb[104].mxu1 %vm4799_vm8, %v15590_v34  ;;  %v10161_v1 = vpop.f32.mrb[122].mxu0  ;;  %11096 = vmatprep.subr.bf16.mxu1 %v11095_v59  ;;  %v5557_v34 = vld [vmem:[%s16402_s8 + $0x8] sm:$0xff] }
 0x6fd   : > { %10113 = vmatprep.mubr.msk.f32.mxu1 %vm11655_vm5, %v16908_v0  ;;  %v5712_v24 = vpop.f32.mrb[123].mxu0 }
 0x6fe   : > { %v11099_v48 = vpack.c.bf16 %v5712_v24, %v10158_v4  ;;  %v5965_v4 = vld [vmem:[%s16405_s11 + $0x10] sm:$0xff] }
 0x6ff   : > { %v11119_v21 = vpack.c.bf16 %v5966_v43, %v5965_v4 }
 0x700   : > { %10114 = vmatmul.mubr.msk.f32.gmra.mrb[106].mxu1 %vm4799_vm8, %v15603_v13  ;;  %v10164_v32 = vpop.f32.mrb[124].mxu0  ;;  %v5559_v13 = vld [vmem:[%s16402_s8 + $0x18] sm:$0xff] }
 0x701   : > { %10193 = vmatprep.mubr.msk.f32.mxu1 %vm4799_vm8, %v5556_v5  ;;  %v5722_v22 = vpop.f32.mrb[125].mxu0 }
 0x702   : > { %v11103_v56 = vpack.c.bf16 %v5722_v22, %v10161_v1  ;;  %v5968_v1 = vld [vmem:[%s16405_s11 + $0x28] sm:$0x3]  ;;  %v5378_v22 = vmul.f32 %v15758_v19, %v15758_v19 }
 0x704   : > { %10194 = vmatmul.mubr.msk.f32.vlgmr.msra.gmra.mrb[108].mxu1 %vm4799_vm8, %v5557_v34  ;;  %v10167_v55 = vpop.f32.mrb[126].mxu0 }
 0x705   : > { %11098 = vmatpush3.bf16.msra.mxu1 %v11095_v59  ;;  %v5732_v57 = vpop.f32.mrb[127].mxu0  ;;  %10196 = vmatprep.mubr.msk.f32.mxu1 %vm4799_vm8, %v5558_v29  ;;  %v5967_v59 = vld [vmem:[%s16405_s11 + $0x20] sm:$0xff] }
 0x706   : > { %11100 = vmatprep.subr.bf16.mxu1 %v11099_v48  ;;  %v11107_v61 = vpack.c.bf16 %v5732_v57, %v10164_v32  ;;  %v11123_v27 = vpack.c.bf16 %v5968_v1, %v5967_v59  ;;  %v5379_v57 = vmul.f32 %v15764_v31, %v15764_v31 }
 0x708   : > { %v10170_v16 = vpop.f32.mrb[128].mxu0  ;;  %10197 = vmatmul.mubr.msk.f32.gmra.mrb[110].mxu1 %vm4799_vm8, %v5559_v13 }
 0x709   : > { %11102 = vmatpush3.bf16.msra.mxu1 %v11099_v48  ;;  %v5742_v62 = vpop.f32.mrb[129].mxu0  ;;  %10199 = vmatprep.mubr.msk.f32.mxu1 %vm4799_vm8, %v5560_v11 }
 0x70a   : > { %11104 = vmatprep.subr.bf16.mxu1 %v11103_v56  ;;  %v11111_v49 = vpack.c.bf16 %v5742_v62, %v10167_v55 }
 0x70c   : > { %10200 = vmatmul.mubr.msk.f32.gmra.mrb[112].mxu1 %vm4799_vm8, %v5561_v52 }
 0x70d   : > { %11106 = vmatpush3.bf16.msra.mxu1 %v11103_v56  ;;  %10224 = vmatprep.mubr.msk.f32.mxu1 %vm4799_vm8, %v5556_v5  ;;  %v5377_v5 = vmul.f32 %v15755_v35, %v15755_v35 }
 0x70e   : > { %11108 = vmatprep.subr.bf16.mxu1 %v11107_v61 }
 0x711   : > { %11110 = vmatpush3.bf16.msra.mxu1 %v11107_v61 }
 0x712   : > { %11112 = vmatprep.subr.bf16.mxu1 %v11111_v49 }
 0x715   : > { %11114 = vmatpush3.bf16.msra.mxu1 %v11111_v49  ;;  %v5381_v49 = vmul.f32 %v15776_v2, %v15776_v2 }
 0x716   : > { %10222 = vmatprep.subr.mxu1 %v10170_v16 }
 0x719   : > { %10223 = vmatpush3.msra.mxu1 %v10170_v16  ;;  %v5380_v16 = vmul.f32 %v15770_v44, %v15770_v44 }
 0x71a   : > { %10225 = vmatmul.mubr.msk.f32.vlgmr.msra.gmra.mrb[114].mxu1 %vm4799_vm8, %v5557_v34  ;;  %11116 = vmatprep.subr.bf16.mxu1 %v11115_v60 }
 0x71b   : > { %10227 = vmatprep.mubr.msk.f32.mxu1 %vm4799_vm8, %v5558_v29  ;;  %11118 = vmatpush3.bf16.msra.mxu1 %v11115_v60 }
 0x71c   : > { %11120 = vmatprep.subr.bf16.mxu1 %v11119_v21 }
 0x71e   : > { %10228 = vmatmul.mubr.msk.f32.gmra.mrb[116].mxu1 %vm4799_vm8, %v5559_v13 }
 0x71f   : > { %10230 = vmatprep.mubr.msk.f32.mxu1 %vm4799_vm8, %v5560_v11  ;;  %11122 = vmatpush3.bf16.msra.mxu1 %v11119_v21 }
 0x720   : > { %11125 = vmatprep.subr.msk.bf16.mxu1 %vm15911_vm11, %v11123_v27 }
 0x722   : > { %10231 = vmatmul.mubr.msk.f32.gmra.mrb[118].mxu1 %vm4799_vm8, %v5561_v52  ;;  %vm8067_vm8 = vcmask 1042432  }
 0x723   : > { %11128 = vmatpush3.bf16.msk.msra.mxu1 %vm15911_vm11, %v11123_v27  ;;  %vm11257_vm9 = vmpackc.low %vm8067_vm8, %vm11656_vm10  ;;  %vm8186_vm10 = vcmask 130048  }
 0x72f   : > { %v15838_v15 = vpop.f32.mrb[36].mxu1 }
 0x730   : > { %v15842_v38 = vmul.f32 %v15838_v15, %v15755_v35  ;;  %v9944_v14 = vpop.f32.mrb[37].mxu1  ;;  %v5386_v21 = vmul.f32 %v15838_v15, %v15838_v15  ;;  %v6827_v15 = vld [vmem:[%s16407_s13] sm:$0xff] }
 0x733   : > { %v15844_v8 = vpop.f32.mrb[38].mxu1 }
 0x734   : > { %v15848_v45 = vmul.f32 %v15844_v8, %v15758_v19  ;;  %v9947_v17 = vpop.f32.mrb[39].mxu1  ;;  %v5387_v27 = vmul.f32 %v15844_v8, %v15844_v8 }
 0x737   : > { %v15850_v6 = vpop.f32.mrb[40].mxu1 }
 0x738   : > { %v15854_v30 = vmul.f32 %v15850_v6, %v15764_v31  ;;  %v9950_v18 = vpop.f32.mrb[41].mxu1 }
 0x739   : > { %v5382_v18 = vmul.f32 %v15782_v41, %v15782_v41 }
 0x73b   : > { %v15856_v50 = vpop.f32.mrb[42].mxu1 }
 0x73c   : > { %v15860_v20 = vmul.f32 %v15856_v50, %v15770_v44  ;;  %v9953_v47 = vpop.f32.mrb[43].mxu1  ;;  %v5389_v8 = vmul.f32 %v15856_v50, %v15856_v50 }
 0x73f   : > { %v15862_v26 = vpop.f32.mrb[44].mxu1 }
 0x740   : > { %v15866_v58 = vmul.f32 %v15862_v26, %v15776_v2  ;;  %v9956_v28 = vpop.f32.mrb[45].mxu1 }
 0x743   : > { %v15868_v51 = vpop.f32.mrb[46].mxu1 }
 0x744   : > { %v15872_v36 = vmul.f32 %v15868_v51, %v15782_v41  ;;  %v9959_v12 = vpop.f32.mrb[47].mxu1 }
 0x745   : > { %v5383_v12 = vmul.f32 %v15788_v9, %v15788_v9 }
 0x747   : > { %v15874_v40 = vpop.f32.mrb[48].mxu1 }
 0x748   : > { %v15878_v42 = vmul.f32 %v15874_v40, %v15788_v9  ;;  %v9962_v25 = vpop.f32.mrb[49].mxu1 }
 0x74b   : > { %v15880_v37 = vpop.f32.mrb[50].mxu1 }
 0x74c   : > { %v15884_v39 = vmul.f32 %v15880_v37, %v15794_v33  ;;  %v9965_v63 = vpop.f32.mrb[51].mxu1 }
 0x74f   : > { %v15892_v10 = vpop.f32.mrb[52].mxu1 }
 0x750   : > { %v15896_v3 = vmul.f32 %v15892_v10, %v15800_v7  ;;  %v9968_v53 = vpop.f32.mrb[53].mxu1 }
 0x751   : > { %v5385_v53 = vmul.f32 %v15800_v7, %v15800_v7 }
 0x75b   : > { %v5113_v48 = vpop.f32.mrb[54].mxu1 }
 0x75c   : > { %v5404_v32 = vsub.f32 %v5113_v48, %v5377_v5  ;;  %v9993_v34 = vpop.f32.mrb[55].mxu1 }
 0x75f   : > { %v5118_v56 = vpop.f32.mrb[56].mxu1 }
 0x760   : > { %v5405_v29 = vsub.f32 %v5118_v56, %v5378_v22  ;;  %v9996_v55 = vpop.f32.mrb[57].mxu1  ;;  %v5388_v22 = vmul.f32 %v15850_v6, %v15850_v6 }
 0x763   : > { %v5123_v13 = vpop.f32.mrb[58].mxu1 }
 0x764   : > { %v5406_v61 = vsub.f32 %v5123_v13, %v5379_v57  ;;  %v9999_v11 = vpop.f32.mrb[59].mxu1  ;;  %v6828_v13 = vld [vmem:[%s16407_s13 + $0x8] sm:$0xff] }
 0x765   : > { %v15951_v11 = vpack.c.bf16 %v6828_v13, %v6827_v15 }
 0x767   : > { %v5128_v62 = vpop.f32.mrb[60].mxu1  ;;  %11190 = vmatprep.subr.bf16.mxu1 %v15951_v11 }
 0x768   : > { %v5407_v35 = vsub.f32 %v5128_v62, %v5380_v16  ;;  %v10002_v52 = vpop.f32.mrb[61].mxu1  ;;  %v5390_v62 = vmul.f32 %v15862_v26, %v15862_v26  ;;  %v5393_v26 = vmul.f32 %v15880_v37, %v15880_v37 }
 0x76b   : > { %v5133_v14 = vpop.f32.mrb[62].mxu1 }
 0x76c   : > { %v5408_v19 = vsub.f32 %v5133_v14, %v5381_v49  ;;  %v10005_v17 = vpop.f32.mrb[63].mxu1 }
 0x76f   : > { %v5138_v47 = vpop.f32.mrb[64].mxu1 }
 0x770   : > { %v5409_v31 = vsub.f32 %v5138_v47, %v5382_v18  ;;  %v10008_v28 = vpop.f32.mrb[65].mxu1  ;;  %v5391_v18 = vmul.f32 %v15868_v51, %v15868_v51 }
 0x773   : > { %v5143_v25 = vpop.f32.mrb[66].mxu1 }
 0x774   : > { %v5410_v44 = vsub.f32 %v5143_v25, %v5383_v12  ;;  %v10011_v63 = vpop.f32.mrb[67].mxu1  ;;  %v5392_v12 = vmul.f32 %v15874_v40, %v15874_v40 }
 0x777   : > { %v5148_v23 = vpop.f32.mrb[68].mxu1 }
 0x778   : > { %v5411_v2 = vsub.f32 %v5148_v23, %v5384_v54  ;;  %v10014_v60 = vpop.f32.mrb[69].mxu1 }
 0x77b   : > { %v5153_v4 = vpop.f32.mrb[70].mxu1 }
 0x77c   : > { %v5412_v41 = vsub.f32 %v5153_v4, %v5385_v53  ;;  %v10017_v43 = vpop.f32.mrb[71].mxu1 }
 0x77d   : > { %v5394_v43 = vmul.f32 %v15892_v10, %v15892_v10 }
 0x787   : > { %v5223_v59 = vpop.f32.mrb[72].mxu1 }
 0x788   : > { %v5413_v9 = vsub.f32 %v5223_v59, %v5386_v21  ;;  %v10042_v1 = vpop.f32.mrb[73].mxu1 }
 0x78a   : > { %v5449_v5 = vadd.f32 %v5413_v9, %v5404_v32 }
 0x78b   : > { %v5228_v33 = vpop.f32.mrb[74].mxu1 }
 0x78c   : > { %v5414_v48 = vsub.f32 %v5228_v33, %v5387_v27  ;;  %v10045_v34 = vpop.f32.mrb[75].mxu1  ;;  %v5458_v25 = vadd.f32 0.0009, %v5449_v5 }
 0x78e   : > { %v5450_v7 = vadd.f32 %v5414_v48, %v5405_v29  ;;  %11411 = vrcp.f32 %v5458_v25 }
 0x78f   : > { %v5233_v56 = vpop.f32.mrb[76].mxu1 }
 0x790   : > { %v5415_v55 = vsub.f32 %v5233_v56, %v5388_v22  ;;  %v10048_v57 = vpop.f32.mrb[77].mxu1  ;;  %v5459_v53 = vadd.f32 0.0009, %v5450_v7 }
 0x792   : > { %v5451_v32 = vadd.f32 %v5415_v55, %v5406_v61  ;;  %11413 = vrcp.f32 %v5459_v53 }
 0x793   : > { %v5238_v16 = vpop.f32.mrb[78].mxu1 }
 0x794   : > { %v5416_v6 = vsub.f32 %v5238_v16, %v5389_v8  ;;  %v10051_v29 = vpop.f32.mrb[79].mxu1  ;;  %v5460_v40 = vadd.f32 0.0009, %v5451_v32 }
 0x796   : > { %v5452_v52 = vadd.f32 %v5416_v6, %v5407_v35  ;;  %11415 = vrcp.f32 %v5460_v40 }
 0x797   : > { %v5243_v49 = vpop.f32.mrb[80].mxu1 }
 0x798   : > { %v5417_v14 = vsub.f32 %v5243_v49, %v5390_v62  ;;  %v10054_v17 = vpop.f32.mrb[81].mxu1  ;;  %v5461_v1 = vadd.f32 0.0009, %v5452_v52  ;;  %v11412_v5 = vpop.eup %11411 }
 0x79a   : > { %v5453_v47 = vadd.f32 %v5417_v14, %v5408_v19  ;;  %11417 = vrcp.f32 %v5461_v1 }
 0x79b   : > { %v5248_v50 = vpop.f32.mrb[82].mxu1 }
 0x79c   : > { %v5418_v61 = vsub.f32 %v5248_v50, %v5391_v18  ;;  %v10057_v28 = vpop.f32.mrb[83].mxu1  ;;  %v5462_v37 = vadd.f32 0.0009, %v5453_v47  ;;  %v11414_v33 = vpop.eup %11413 }
 0x79d   : > { %v5477_v7 = vmul.f32 %v11414_v33, %v5459_v53 }
 0x79e   : > { %v5454_v63 = vadd.f32 %v5418_v61, %v5409_v31  ;;  %11419 = vrcp.f32 %v5462_v37 }
 0x79f   : > { %v5253_v54 = vpop.f32.mrb[84].mxu1  ;;  %v5486_v8 = vsub.f32 2.0, %v5477_v7 }
 0x7a0   : > { %v5419_v23 = vsub.f32 %v5253_v54, %v5392_v12  ;;  %v10060_v60 = vpop.f32.mrb[85].mxu1  ;;  %v5463_v34 = vadd.f32 0.0009, %v5454_v63  ;;  %v11416_v56 = vpop.eup %11415 }
 0x7a1   : > { %v5478_v32 = vmul.f32 %v11416_v56, %v5460_v40  ;;  %v5495_v50 = vmul.f32 %v11414_v33, %v5486_v8 }
 0x7a2   : > { %v5455_v35 = vadd.f32 %v5419_v23, %v5410_v44  ;;  %v5476_v44 = vmul.f32 %v11412_v5, %v5458_v25  ;;  %11421 = vrcp.f32 %v5463_v34 }
 0x7a3   : > { %v5258_v4 = vpop.f32.mrb[86].mxu1  ;;  %v5487_v18 = vsub.f32 2.0, %v5478_v32 }
 0x7a4   : > { %v5420_v51 = vsub.f32 %v5258_v4, %v5393_v26  ;;  %v10063_v19 = vpop.f32.mrb[87].mxu1  ;;  %v5485_v48 = vsub.f32 2.0, %v5476_v44  ;;  %v5464_v55 = vadd.f32 0.0009, %v5455_v35  ;;  %v11418_v13 = vpop.eup %11417 }
 0x7a5   : > { %v5479_v14 = vmul.f32 %v11418_v13, %v5461_v1  ;;  %v5496_v53 = vmul.f32 %v11416_v56, %v5487_v18 }
 0x7a6   : > { %v5456_v21 = vadd.f32 %v5420_v51, %v5411_v2  ;;  %v5494_v15 = vmul.f32 %v11412_v5, %v5485_v48  ;;  %11423 = vrcp.f32 %v5464_v55 }
 0x7a7   : > { %v5263_v59 = vpop.f32.mrb[88].mxu1  ;;  %v5488_v54 = vsub.f32 2.0, %v5479_v14 }
 0x7a8   : > { %v5421_v31 = vsub.f32 %v5263_v59, %v5394_v43  ;;  %v10066_v9 = vpop.f32.mrb[89].mxu1  ;;  %v5465_v62 = vadd.f32 0.0009, %v5456_v21  ;;  %v11420_v17 = vpop.eup %11419 }
 0x7a9   : > { %v5497_v9 = vmul.f32 %v11418_v13, %v5488_v54 }
 0x7aa   : > { %v5457_v27 = vadd.f32 %v5421_v31, %v5412_v41  ;;  %11425 = vrcp.f32 %v5465_v62 }
 0x7ac   : > { %v5466_v23 = vadd.f32 0.0009, %v5457_v27  ;;  %v11422_v19 = vpop.eup %11421 }
 0x7ad   : > { %v5481_v5 = vmul.f32 %v11422_v19, %v5463_v34 }
 0x7ae   : > { %11427 = vrcp.f32 %v5466_v23 }
 0x7b0   : > { %v11424_v27 = vpop.eup %11423 }
 0x7b3   : > { %v5333_v22 = vpop.f32.mrb[90].mxu1 }
 0x7b4   : > { %v5422_v10 = vsub.f32 %v5333_v22, %v15842_v38  ;;  %v10091_v2 = vpop.f32.mrb[91].mxu1 }
 0x7b6   : > { %v5431_v57 = vmul.f32 2.0, %v5422_v10  ;;  %v5482_v10 = vmul.f32 %v11424_v27, %v5464_v55 }
 0x7b7   : > { %v5338_v41 = vpop.f32.mrb[92].mxu1 }
 0x7b8   : > { %v5440_v16 = vadd.f32 0.0009, %v5431_v57  ;;  %v5423_v6 = vsub.f32 %v5338_v41, %v15848_v45  ;;  %v10094_v29 = vpop.f32.mrb[93].mxu1  ;;  %v5480_v45 = vmul.f32 %v11420_v17, %v5462_v37  ;;  %v5490_v41 = vsub.f32 2.0, %v5481_v5 }
 0x7b9   : > { %v5491_v29 = vsub.f32 2.0, %v5482_v10 }
 0x7ba   : > { %v5503_v52 = vmul.f32 %v5494_v15, %v5440_v16  ;;  %v5432_v49 = vmul.f32 2.0, %v5423_v6  ;;  %v5489_v59 = vsub.f32 2.0, %v5480_v45  ;;  %v11426_v15 = vpop.eup %11425  ;;  %v5499_v18 = vmul.f32 %v11422_v19, %v5490_v41 }
 0x7bb   : > { %v5343_v38 = vpop.f32.mrb[94].mxu1 }
 0x7bc   : > { %v5441_v47 = vadd.f32 0.0009, %v5432_v49  ;;  %v5424_v61 = vsub.f32 %v5343_v38, %v15854_v30  ;;  %v10097_v28 = vpop.f32.mrb[95].mxu1  ;;  %v5512_v12 = vmax.f32 %v5503_v52, 0.0  ;;  %v5498_v56 = vmul.f32 %v11420_v17, %v5489_v59 }
 0x7bd   : > { %v5483_v52 = vmul.f32 %v11426_v15, %v5465_v62 }
 0x7be   : > { %v5504_v25 = vmul.f32 %v5495_v50, %v5441_v47  ;;  %v5433_v63 = vmul.f32 2.0, %v5424_v61  ;;  %v5526_v43 = vsel %vm5525_vm12, %v5512_v12, 0.0  ;;  %v11428_v50 = vpop.eup %11427 }
 0x7bf   : > { %v5348_v60 = vpop.f32.mrb[96].mxu1  ;;  %v5492_v12 = vsub.f32 2.0, %v5483_v52  ;;  %v5484_v45 = vmul.f32 %v11428_v50, %v5466_v23  ;;  %v6829_v23 = vld [vmem:[%s16407_s13 + $0x10] sm:$0xff] }
 0x7c0   : > { %v5513_v26 = vmax.f32 %v5504_v25, 0.0  ;;  %v5442_v35 = vadd.f32 0.0009, %v5433_v63  ;;  %v5425_v4 = vsub.f32 %v5348_v60, %v15860_v20  ;;  %v10100_v51 = vpop.f32.mrb[97].mxu1  ;;  %v5500_v63 = vmul.f32 %v11424_v27, %v5491_v29 }
 0x7c1   : > { %v5501_v19 = vmul.f32 %v11426_v15, %v5492_v12 }
 0x7c2   : > { %v5527_v30 = vsel %vm5525_vm12, %v5513_v26, 0.0  ;;  %v5505_v21 = vmul.f32 %v5496_v53, %v5442_v35  ;;  %v5434_v40 = vmul.f32 2.0, %v5425_v4 }
 0x7c3   : > { %v5528_v31 = vadd.f32 %v5527_v30, %v5526_v43  ;;  %v5353_v1 = vpop.f32.mrb[98].mxu1  ;;  %v5493_v30 = vsub.f32 2.0, %v5484_v45 }
 0x7c4   : > { %v5514_v37 = vmax.f32 %v5505_v21, 0.0  ;;  %v5443_v44 = vadd.f32 0.0009, %v5434_v40  ;;  %v5426_v33 = vsub.f32 %v5353_v1, %v15866_v58  ;;  %v10103_v20 = vpop.f32.mrb[99].mxu1 }
 0x7c6   : > { %v5529_v48 = vsel %vm5525_vm12, %v5514_v37, 0.0  ;;  %v5506_v22 = vmul.f32 %v5497_v9, %v5443_v44  ;;  %v5435_v7 = vmul.f32 2.0, %v5426_v33 }
 0x7c7   : > { %v5530_v2 = vadd.f32 %v5529_v48, %v5528_v31  ;;  %v5358_v57 = vpop.f32.mrb[100].mxu1 }
 0x7c8   : > { %v5515_v8 = vmax.f32 %v5506_v22, 0.0  ;;  %v5444_v13 = vadd.f32 0.0009, %v5435_v7  ;;  %v5427_v32 = vsub.f32 %v5358_v57, %v15872_v36  ;;  %v10106_v34 = vpop.f32.mrb[101].mxu1  ;;  %v6831_v22 = vld [vmem:[%s16407_s13 + $0x20] sm:$0xff] }
 0x7c9   : > { %v6832_v7 = vld [vmem:[%s16407_s13 + $0x28] sm:$0x3] }
 0x7ca   : > { %v5531_v16 = vsel %vm5525_vm12, %v5515_v8, 0.0  ;;  %v5507_v6 = vmul.f32 %v5498_v56, %v5444_v13  ;;  %v5436_v58 = vmul.f32 2.0, %v5427_v32  ;;  %v11197_v8 = vpack.c.bf16 %v6832_v7, %v6831_v22 }
 0x7cb   : > { %v5532_v49 = vadd.f32 %v5531_v16, %v5530_v2  ;;  %v5363_v14 = vpop.f32.mrb[102].mxu1 }
 0x7cc   : > { %v5516_v38 = vmax.f32 %v5507_v6, 0.0  ;;  %v5445_v55 = vadd.f32 0.0009, %v5436_v58  ;;  %v5428_v17 = vsub.f32 %v5363_v14, %v15878_v42  ;;  %v10109_v47 = vpop.f32.mrb[103].mxu1 }
 0x7ce   : > { %v5533_v61 = vsel %vm5525_vm12, %v5516_v38, 0.0  ;;  %v5508_v28 = vmul.f32 %v5499_v18, %v5445_v55  ;;  %v5437_v36 = vmul.f32 2.0, %v5428_v17 }
 0x7cf   : > { %v5534_v25 = vadd.f32 %v5533_v61, %v5532_v49  ;;  %v5368_v54 = vpop.f32.mrb[104].mxu1 }
 0x7d0   : > { %v5517_v60 = vmax.f32 %v5508_v28, 0.0  ;;  %v5446_v62 = vadd.f32 0.0009, %v5437_v36  ;;  %v5429_v26 = vsub.f32 %v5368_v54, %v15884_v39  ;;  %v10112_v35 = vpop.f32.mrb[105].mxu1  ;;  %v6830_v39 = vld [vmem:[%s16407_s13 + $0x18] sm:$0xff] }
 0x7d1   : > { %v11193_v48 = vpack.c.bf16 %v6830_v39, %v6829_v23 }
 0x7d2   : > { %v5535_v53 = vsel %vm5525_vm12, %v5517_v60, 0.0  ;;  %v5509_v4 = vmul.f32 %v5500_v63, %v5446_v62  ;;  %v5438_v42 = vmul.f32 2.0, %v5429_v26  ;;  %v16074_v26 = vld [vmem:[%s16404_s10] sm:$0xff] }
 0x7d3   : > { %v5536_v51 = vadd.f32 %v5535_v53, %v5534_v25  ;;  %v5373_v43 = vpop.f32.mrb[106].mxu1  ;;  %10302 = vmatprep.mubr.msk.f32.mxu0 %vm6297_vm15, %v16074_v26 }
 0x7d4   : > { %v5518_v21 = vmax.f32 %v5509_v4, 0.0  ;;  %v5447_v40 = vadd.f32 0.0009, %v5438_v42  ;;  %v5430_v59 = vsub.f32 %v5373_v43, %v15896_v3  ;;  %v10115_v31 = vpop.f32.mrb[107].mxu1  ;;  %v5502_v3 = vmul.f32 %v11428_v50, %v5493_v30 }
 0x7d6   : > { %v5537_v9 = vsel %vm5525_vm12, %v5518_v21, 0.0  ;;  %v5510_v1 = vmul.f32 %v5501_v19, %v5447_v40  ;;  %v5439_v27 = vmul.f32 2.0, %v5430_v59 }
 0x7d7   : > { %v15986_v5 = vpop.f32.mrb[108].mxu1  ;;  %v5538_v37 = vadd.f32 %v5537_v9, %v5536_v51 }
 0x7d8   : > { %v5519_v44 = vmax.f32 %v5510_v1, 0.0  ;;  %v5448_v33 = vadd.f32 0.0009, %v5439_v27  ;;  %v15988_v20 = vpop.f32.mrb[109].mxu1  ;;  %v5970_v50 = vmul.f32 %v15986_v5, %v15986_v5  ;;  %v16081_v27 = vld [vmem:[%s16404_s10 + $0x8] sm:$0xff] }
 0x7d9   : > { %10245 = vmatprep.mubr.msk.f32.mxu1 %vm5987_vm13, %v15988_v20  ;;  %v5969_v17 = vmul.f32 %v15988_v20, %v15988_v20 }
 0x7da   : > { %v5511_v10 = vmul.f32 %v5502_v3, %v5448_v33  ;;  %v5539_v2 = vsel %vm5525_vm12, %v5519_v44, 0.0  ;;  %10246 = vmatmul.mubr.msk.f32.vlgmr.msra.gmra.mrb[120].mxu1 %vm5987_vm13, %v15986_v5 }
 0x7db   : > { %v5540_v56 = vadd.f32 %v5539_v2, %v5538_v37  ;;  %v16001_v57 = vpop.f32.mrb[110].mxu1  ;;  %11192 = vmatpush3.bf16.msra.mxu1 %v15951_v11  ;;  %v16095_v37 = vld [vmem:[%s16404_s10 + $0x18] sm:$0x7f] }
 0x7dc   : > { %v5520_v15 = vmax.f32 %v5511_v10, 0.0  ;;  %v16004_v41 = vpop.f32.mrb[111].mxu1  ;;  %11194 = vmatprep.subr.bf16.mxu1 %v11193_v48  ;;  %v5972_v28 = vmul.f32 %v16001_v57, %v16001_v57 }
 0x7dd   : > { %10248 = vmatprep.mubr.msk.f32.mxu1 %vm5987_vm13, %v16004_v41  ;;  %v5971_v61 = vmul.f32 %v16004_v41, %v16004_v41 }
 0x7de   : > { %v5542_v13 = vsel %vm5541_vm14, %v5520_v15, 0.0  ;;  %10249 = vmatmul.mubr.msk.f32.gmra.mrb[122].mxu1 %vm5987_vm13, %v16001_v57 }
 0x7df   : > { %v5543_v32 = vadd.f32 %v5542_v13, %v5540_v56  ;;  %v10201_v34 = vpop.f32.mrb[112].mxu1  ;;  %11196 = vmatpush3.bf16.msra.mxu1 %v11193_v48 }
 0x7e0   : > { %v5855_v16 = vpop.f32.mrb[113].mxu1  ;;  %11199 = vmatprep.subr.msk.bf16.mxu1 %vm15911_vm11, %v11197_v8  ;;  %v5974_v12 = vmul.f32 %v10201_v34, %v10201_v34 }
 0x7e1   : > { %5544 = vadd.xlane.f32.xlu0 %v5543_v32  ;;  %10251 = vmatprep.mubr.msk.f32.mxu1 %vm5987_vm13, %v5855_v16  ;;  %v5973_v36 = vmul.f32 %v5855_v16, %v5855_v16 }
 0x7e2   : > { %10252 = vmatmul.mubr.msk.f32.gmra.mrb[124].mxu1 %vm5987_vm13, %v10201_v34 }
 0x7e3   : > { %11202 = vmatpush3.bf16.msk.msra.mxu1 %vm15911_vm11, %v11197_v8 }
 0x7e4   : > { %11221 = vmatprep.subr.bf16.mxu1 %v16907_v46 }
 0x7ed   : > { %v10226_v11 = vpop.f32.mrb[114].mxu1 }
 0x7ee   : > { %v5982_v6 = vmul.f32 %v10226_v11, %v15986_v5  ;;  %v5930_v58 = vpop.f32.mrb[115].mxu1  ;;  %v5976_v63 = vmul.f32 %v10226_v11, %v10226_v11 }
 0x7ef   : > { %v5981_v29 = vmul.f32 %v5930_v58, %v15988_v20  ;;  %10254 = vmatprep.mubr.msk.f32.mxu1 %vm5987_vm13, %v5930_v58  ;;  %v5975_v25 = vmul.f32 %v5930_v58, %v5930_v58 }
 0x7f0   : > { %10255 = vmatmul.mubr.msk.f32.gmra.mrb[126].mxu1 %vm5987_vm13, %v10226_v11 }
 0x7f1   : > { %v10229_v52 = vpop.f32.mrb[116].mxu1 }
 0x7f2   : > { %v5984_v49 = vmul.f32 %v10229_v52, %v16001_v57  ;;  %v5940_v14 = vpop.f32.mrb[117].mxu1  ;;  %v5978_v45 = vmul.f32 %v10229_v52, %v10229_v52 }
 0x7f3   : > { %v5983_v38 = vmul.f32 %v5940_v14, %v16004_v41  ;;  %10257 = vmatprep.mubr.msk.f32.mxu1 %vm5987_vm13, %v5940_v14  ;;  %v5977_v54 = vmul.f32 %v5940_v14, %v5940_v14 }
 0x7f4   : > { %10258 = vmatmul.mubr.msk.f32.gmra.mrb[128].mxu1 %vm5987_vm13, %v10229_v52 }
 0x7f5   : > { %v10232_v24 = vpop.f32.mrb[118].mxu1 }
 0x7f6   : > { %v5986_v55 = vmul.f32 %v10232_v24, %v10201_v34  ;;  %v5950_v18 = vpop.f32.mrb[119].mxu1  ;;  %v5980_v62 = vmul.f32 %v10232_v24, %v10232_v24 }
 0x7f7   : > { %v5985_v47 = vmul.f32 %v5950_v18, %v5855_v16  ;;  %10260 = vmatprep.mubr.msk.f32.mxu1 %vm5987_vm13, %v5950_v18  ;;  %v5979_v60 = vmul.f32 %v5950_v18, %v5950_v18 }
 0x7f8   : > { %10261 = vmatmul.mubr.msk.f32.gmra.mrb[130].mxu1 %vm5987_vm13, %v10232_v24 }
 0x7f9   : > { %10263 = vmatprep.mubr.msk.f32.mxu1 %vm5987_vm13, %v5969_v17 }
 0x7fc   : > { %10264 = vmatmul.mubr.msk.f32.gmra.mrb[132].mxu1 %vm5987_vm13, %v5970_v50 }
 0x7fd   : > { %10266 = vmatprep.mubr.msk.f32.mxu1 %vm5987_vm13, %v5971_v61 }
 0x800   : > { %10267 = vmatmul.mubr.msk.f32.gmra.mrb[134].mxu1 %vm5987_vm13, %v5972_v28 }
 0x801   : > { %10269 = vmatprep.mubr.msk.f32.mxu1 %vm5987_vm13, %v5973_v36 }
 0x804   : > { %10270 = vmatmul.mubr.msk.f32.gmra.mrb[136].mxu1 %vm5987_vm13, %v5974_v12 }
 0x805   : > { %10272 = vmatprep.mubr.msk.f32.mxu1 %vm5987_vm13, %v5975_v25 }
 0x808   : > { %10273 = vmatmul.mubr.msk.f32.gmra.mrb[138].mxu1 %vm5987_vm13, %v5976_v63 }
 0x809   : > { %10275 = vmatprep.mubr.msk.f32.mxu1 %vm5987_vm13, %v5977_v54 }
 0x80c   : > { %10276 = vmatmul.mubr.msk.f32.gmra.mrb[140].mxu1 %vm5987_vm13, %v5978_v45 }
 0x80d   : > { %10278 = vmatprep.mubr.msk.f32.mxu1 %vm5987_vm13, %v5979_v60 }
 0x810   : > { %10279 = vmatmul.mubr.msk.f32.gmra.mrb[142].mxu1 %vm5987_vm13, %v5980_v62 }
 0x811   : > { %10281 = vmatprep.mubr.msk.f32.mxu1 %vm5987_vm13, %v5981_v29 }
 0x814   : > { %10282 = vmatmul.mubr.msk.f32.gmra.mrb[144].mxu1 %vm5987_vm13, %v5982_v6 }
 0x815   : > { %10284 = vmatprep.mubr.msk.f32.mxu1 %vm5987_vm13, %v5983_v38 }
 0x818   : > { %10285 = vmatmul.mubr.msk.f32.gmra.mrb[146].mxu1 %vm5987_vm13, %v5984_v49 }
 0x819   : > { %10287 = vmatprep.mubr.msk.f32.mxu1 %vm5987_vm13, %v5985_v47 }
 0x81c   : > { %10288 = vmatmul.mubr.msk.f32.gmra.mrb[148].mxu1 %vm5987_vm13, %v5986_v55 }
 0x81d   : > { %10392 = vmatprep.mubr.msk.f32.mxu1 %vm5987_vm13, %v15988_v20 }
 0x820   : > { %10393 = vmatmul.mubr.msk.f32.vlgmr.msra.gmra.mrb[150].mxu1 %vm5987_vm13, %v15986_v5  ;;  %v16086_v5 = vld [vmem:[%s16404_s10 + $0x10] sm:$0xff] }
 0x821   : > { %10395 = vmatprep.mubr.msk.f32.mxu1 %vm5987_vm13, %v16004_v41 }
 0x824   : > { %10396 = vmatmul.mubr.msk.f32.gmra.mrb[152].mxu1 %vm5987_vm13, %v16001_v57 }
 0x825   : > { %10398 = vmatprep.mubr.msk.f32.mxu1 %vm5987_vm13, %v5855_v16 }
 0x828   : > { %10399 = vmatmul.mubr.msk.f32.gmra.mrb[154].mxu1 %vm5987_vm13, %v10201_v34 }
 0x829   : > { %10401 = vmatprep.mubr.msk.f32.mxu1 %vm5987_vm13, %v5930_v58 }
 0x82c   : > { %10402 = vmatmul.mubr.msk.f32.gmra.mrb[156].mxu1 %vm5987_vm13, %v10226_v11 }
 0x82d   : > { %10404 = vmatprep.mubr.msk.f32.mxu1 %vm5987_vm13, %v5940_v14 }
 0x830   : > { %10405 = vmatmul.mubr.msk.f32.gmra.mrb[158].mxu1 %vm5987_vm13, %v10229_v52 }
 0x831   : > { %10407 = vmatprep.mubr.msk.f32.mxu1 %vm5987_vm13, %v5950_v18 }
 0x834   : > { %10408 = vmatmul.mubr.msk.f32.gmra.mrb[160].mxu1 %vm5987_vm13, %v10232_v24 }
 0x835   : > { %10458 = vmatprep.mubr.msk.f32.mxu1 %vm11655_vm5, %v16908_v0 }
 0x86e   : > { %v5545_v35 = vpop.xlane.xlu0 %5544 }
 0x86f   : > { %v5546_v53 = vrot.slane %v5545_v35, 4 }
 0x871   : > { %v5547_v4 = vadd.f32 %v5546_v53, %v5545_v35 }
 0x873   : > { %v5548_v42 = vrot.slane %v5547_v4, 2 }
 0x875   : > { %v5549_v51 = vadd.f32 %v5548_v42, %v5547_v4 }
 0x877   : > { %v5550_v19 = vrot.slane %v5549_v51, 1 }
 0x879   : > { %v5551_v43 = vadd.f32 %v5550_v19, %v5549_v51  ;;  %v6824_v51 = vld [vmem:[%s16406_s12] sm:$0xff] }
 0x87b   : > { %11281 = vpush %v5551_v43 }
 0x8ac   : > { %s11282_s24 = spop %11281 }
 0x8ad   : > { %v10247_v30 = vpop.f32.mrb[120].mxu1 }
 0x8ae   : > { %v6148_v21 = vpop.f32.mrb[121].mxu1 }
 0x8af   : > { %v11129_v40 = vpack.c.bf16 %v10247_v30, %v6148_v21  ;;  %v6825_v21 = vld [vmem:[%s16406_s12 + $0x8] sm:$0xff] }
 0x8b1   : > { %v10250_v59 = vpop.f32.mrb[122].mxu1  ;;  %11130 = vmatprep.subr.bf16.mxu0 %v11129_v40 }
 0x8b2   : > { %v6158_v31 = vpop.f32.mrb[123].mxu1  ;;  %11132 = vmatpush3.bf16.msra.mxu0 %v11129_v40 }
 0x8b3   : > { %v11133_v23 = vpack.c.bf16 %v10250_v59, %v6158_v31 }
 0x8b5   : > { %v10253_v39 = vpop.f32.mrb[124].mxu1  ;;  %11134 = vmatprep.subr.bf16.mxu0 %v11133_v23 }
 0x8b6   : > { %v6168_v9 = vpop.f32.mrb[125].mxu1  ;;  %11136 = vmatpush3.bf16.msra.mxu0 %v11133_v23  ;;  %v6826_v23 = vld [vmem:[%s16406_s12 + $0x10] sm:$0xff] }
 0x8b7   : > { %v11137_v1 = vpack.c.bf16 %v10253_v39, %v6168_v9  ;;  %v7132_v9 = vld [vmem:[%s16409_s15] sm:$0xff] }
 0x8b9   : > { %11138 = vmatprep.subr.bf16.mxu0 %v11137_v1 }
 0x8ba   : > { %11140 = vmatpush3.bf16.msra.mxu0 %v11137_v1  ;;  %v7133_v1 = vld [vmem:[%s16409_s15 + $0x8] sm:$0xff] }
 0x8bd   : > { %10303 = vmatmul.mubr.msk.f32.vlgmr.msra.gmra.mrb[130].mxu0 %vm6297_vm15, %v16081_v27 }
 0x8be   : > { %10305 = vmatprep.mubr.msk.f32.mxu0 %vm6297_vm15, %v16086_v5 }
 0x8c1   : > { %10306 = vmatmul.mubr.msk.f32.gmra.mrb[132].mxu0 %vm6297_vm15, %v16095_v37 }
 0x8c2   : > { %10320 = vmatprep.mubr.msk.f32.mxu0 %vm6297_vm15, %v16074_v26 }
 0x8c3   : > { %v10256_v44 = vpop.f32.mrb[126].mxu1 }
 0x8c4   : > { %v6178_v33 = vpop.f32.mrb[127].mxu1 }
 0x8c5   : > { %v11141_v3 = vpack.c.bf16 %v10256_v44, %v6178_v33 }
 0x8c7   : > { %v10259_v20 = vpop.f32.mrb[128].mxu1  ;;  %11142 = vmatprep.subr.bf16.mxu0 %v11141_v3 }
 0x8c8   : > { %v6188_v48 = vpop.f32.mrb[129].mxu1  ;;  %11144 = vmatpush3.bf16.msra.mxu0 %v11141_v3 }
 0x8c9   : > { %v11145_v22 = vpack.c.bf16 %v10259_v20, %v6188_v48 }
 0x8cb   : > { %v10262_v7 = vpop.f32.mrb[130].mxu1  ;;  %11146 = vmatprep.subr.bf16.mxu0 %v11145_v22 }
 0x8cc   : > { %v6198_v10 = vpop.f32.mrb[131].mxu1  ;;  %11148 = vmatpush3.bf16.msra.mxu0 %v11145_v22 }
 0x8cd   : > { %v11149_v2 = vpack.c.bf16 %v10262_v7, %v6198_v10 }
 0x8cf   : > { %v10265_v56 = vpop.f32.mrb[132].mxu1  ;;  %11150 = vmatprep.subr.bf16.mxu0 %v11149_v2 }
 0x8d0   : > { %v6208_v57 = vpop.f32.mrb[133].mxu1  ;;  %11152 = vmatpush3.bf16.msra.mxu0 %v11149_v2 }
 0x8d1   : > { %v11153_v15 = vpack.c.bf16 %v10265_v56, %v6208_v57 }
 0x8d3   : > { %v10268_v41 = vpop.f32.mrb[134].mxu1  ;;  %11154 = vmatprep.subr.bf16.mxu0 %v11153_v15  ;;  %10321 = vmatmul.mubr.msk.f32.vlgmr.msra.gmra.mrb[134].mxu0 %vm6297_vm15, %v16081_v27 }
 0x8d4   : > { %v6218_v8 = vpop.f32.mrb[135].mxu1  ;;  %11156 = vmatpush3.bf16.msra.mxu0 %v11153_v15  ;;  %10323 = vmatprep.mubr.msk.f32.mxu0 %vm6297_vm15, %v16086_v5 }
 0x8d5   : > { %v11157_v13 = vpack.c.bf16 %v10268_v41, %v6218_v8 }
 0x8d7   : > { %v10271_v32 = vpop.f32.mrb[136].mxu1  ;;  %11158 = vmatprep.subr.bf16.mxu0 %v11157_v13  ;;  %10324 = vmatmul.mubr.msk.f32.gmra.mrb[136].mxu0 %vm6297_vm15, %v16095_v37 }
 0x8d8   : > { %v6228_v34 = vpop.f32.mrb[137].mxu1  ;;  %11160 = vmatpush3.bf16.msra.mxu0 %v11157_v13  ;;  %10338 = vmatprep.mubr.msk.f32.mxu0 %vm6297_vm15, %v16074_v26 }
 0x8d9   : > { %v11161_v16 = vpack.c.bf16 %v10271_v32, %v6228_v34 }
 0x8db   : > { %v10274_v11 = vpop.f32.mrb[138].mxu1  ;;  %11162 = vmatprep.subr.bf16.mxu0 %v11161_v16 }
 0x8dc   : > { %v6238_v6 = vpop.f32.mrb[139].mxu1  ;;  %11164 = vmatpush3.bf16.msra.mxu0 %v11161_v16 }
 0x8dd   : > { %v11165_v58 = vpack.c.bf16 %v10274_v11, %v6238_v6 }
 0x8df   : > { %v10277_v29 = vpop.f32.mrb[140].mxu1  ;;  %11166 = vmatprep.subr.bf16.mxu0 %v11165_v58  ;;  %10339 = vmatmul.mubr.msk.f32.vlgmr.msra.gmra.mrb[138].mxu0 %vm6297_vm15, %v16081_v27 }
 0x8e0   : > { %v6248_v52 = vpop.f32.mrb[141].mxu1  ;;  %11168 = vmatpush3.bf16.msra.mxu0 %v11165_v58  ;;  %10341 = vmatprep.mubr.msk.f32.mxu0 %vm6297_vm15, %v16086_v5 }
 0x8e1   : > { %v11169_v49 = vpack.c.bf16 %v10277_v29, %v6248_v52 }
 0x8e3   : > { %v10280_v14 = vpop.f32.mrb[142].mxu1  ;;  %11170 = vmatprep.subr.bf16.mxu0 %v11169_v49  ;;  %10342 = vmatmul.mubr.msk.f32.gmra.mrb[140].mxu0 %vm6297_vm15, %v16095_v37 }
 0x8e4   : > { %v6258_v38 = vpop.f32.mrb[143].mxu1  ;;  %11172 = vmatpush3.bf16.msra.mxu0 %v11169_v49  ;;  %10356 = vmatprep.mubr.msk.f32.mxu0 %vm6297_vm15, %v16074_v26 }
 0x8e5   : > { %v11173_v24 = vpack.c.bf16 %v10280_v14, %v6258_v38 }
 0x8e7   : > { %v10283_v55 = vpop.f32.mrb[144].mxu1  ;;  %11174 = vmatprep.subr.bf16.mxu0 %v11173_v24 }
 0x8e8   : > { %v6268_v18 = vpop.f32.mrb[145].mxu1  ;;  %11176 = vmatpush3.bf16.msra.mxu0 %v11173_v24 }
 0x8e9   : > { %v11177_v17 = vpack.c.bf16 %v10283_v55, %v6268_v18 }
 0x8eb   : > { %v10286_v47 = vpop.f32.mrb[146].mxu1  ;;  %10357 = vmatmul.mubr.msk.f32.vlgmr.msra.gmra.mrb[142].mxu0 %vm6297_vm15, %v16081_v27  ;;  %11178 = vmatprep.subr.bf16.mxu0 %v11177_v17 }
 0x8ec   : > { %v6278_v50 = vpop.f32.mrb[147].mxu1  ;;  %11180 = vmatpush3.bf16.msra.mxu0 %v11177_v17  ;;  %10359 = vmatprep.mubr.msk.f32.mxu0 %vm6297_vm15, %v16086_v5 }
 0x8ed   : > { %v11181_v61 = vpack.c.bf16 %v10286_v47, %v6278_v50 }
 0x8ef   : > { %v10289_v28 = vpop.f32.mrb[148].mxu1  ;;  %10360 = vmatmul.mubr.msk.f32.gmra.mrb[144].mxu0 %vm6297_vm15, %v16095_v37  ;;  %11182 = vmatprep.subr.bf16.mxu0 %v11181_v61 }
 0x8f0   : > { %v6288_v36 = vpop.f32.mrb[149].mxu1  ;;  %11184 = vmatpush3.bf16.msra.mxu0 %v11181_v61  ;;  %10374 = vmatprep.mubr.msk.f32.mxu0 %vm6297_vm15, %v16074_v26 }
 0x8f1   : > { %v11185_v12 = vpack.c.bf16 %v10289_v28, %v6288_v36 }
 0x8f3   : > { %11186 = vmatprep.subr.bf16.mxu0 %v11185_v12  ;;  %v10394_v25 = vpop.f32.mrb[150].mxu1 }
 0x8f4   : > { %11188 = vmatpush3.bf16.msra.mxu0 %v11185_v12  ;;  %v6902_v63 = vpop.f32.mrb[151].mxu1 }
 0x8f5   : > { %v11204_v54 = vpack.c.bf16 %v10394_v25, %v6902_v63  ;;  %11203 = vmatprep.subr.bf16.mxu0 %v16907_v46 }
 0x8f7   : > { %10375 = vmatmul.mubr.msk.f32.vlgmr.msra.gmra.mrb[146].mxu0 %vm6297_vm15, %v16081_v27  ;;  %v10397_v45 = vpop.f32.mrb[152].mxu1  ;;  %v11222_v27 = vpack.c.bf16 %v7133_v1, %v7132_v9 }
 0x8f8   : > { %11205 = vmatpush3.bf16.msra.mxu0 %v11204_v54  ;;  %v6912_v60 = vpop.f32.mrb[153].mxu1  ;;  %10377 = vmatprep.mubr.msk.f32.mxu0 %vm6297_vm15, %v16086_v5  ;;  %v7134_v5 = vld [vmem:[%s16409_s15 + $0x10] sm:$0x1f] }
 0x8f9   : > { %v11207_v62 = vpack.c.bf16 %v10397_v45, %v6912_v60  ;;  %11206 = vmatprep.subr.bf16.mxu0 %v16907_v46  ;;  %11223 = vmatpush3.bf16.msra.mxu1 %v11222_v27 }
 0x8fa   : > { %10456 = vmatprep.subr.mxu1 %v16908_v0 }
 0x8fb   : > { %v10400_v26 = vpop.f32.mrb[154].mxu1  ;;  %10378 = vmatmul.mubr.msk.f32.gmra.mrb[148].mxu0 %vm6297_vm15, %v16095_v37 }
 0x8fc   : > { %11208 = vmatpush3.bf16.msra.mxu0 %v11207_v62  ;;  %v6922_v35 = vpop.f32.mrb[155].mxu1  ;;  %10422 = vmatprep.mubr.msk.f32.mxu0 %vm11655_vm5, %v16908_v0 }
 0x8fd   : > { %v11210_v53 = vpack.c.bf16 %v10400_v26, %v6922_v35  ;;  %11209 = vmatprep.subr.bf16.mxu0 %v16907_v46  ;;  %10457 = vmatpush3.msk.msra.mxu1 %vm7190_vm0, %v7134_v5 }
 0x8ff   : > { %v10403_v4 = vpop.f32.mrb[156].mxu1 }
 0x900   : > { %11211 = vmatpush3.bf16.msra.mxu0 %v11210_v53  ;;  %v6932_v42 = vpop.f32.mrb[157].mxu1 }
 0x901   : > { %v11213_v19 = vpack.c.bf16 %v10403_v4, %v6932_v42  ;;  %11212 = vmatprep.subr.bf16.mxu0 %v16907_v46 }
 0x903   : > { %10423 = vmatmul.mubr.msk.f32.vlgmr.msra.gmra.mrb[150].mxu0 %vm6297_vm15, %v6824_v51  ;;  %v10406_v43 = vpop.f32.mrb[158].mxu1 }
 0x904   : > { %11214 = vmatpush3.bf16.msra.mxu0 %v11213_v19  ;;  %v6942_v30 = vpop.f32.mrb[159].mxu1  ;;  %10425 = vmatprep.mubr.msk.f32.mxu0 %vm11655_vm5, %v16908_v0 }
 0x905   : > { %v11216_v40 = vpack.c.bf16 %v10406_v43, %v6942_v30  ;;  %11215 = vmatprep.subr.bf16.mxu0 %v16907_v46 }
 0x907   : > { %10426 = vmatmul.mubr.msk.f32.gmra.mrb[152].mxu0 %vm6297_vm15, %v6825_v21  ;;  %v10409_v59 = vpop.f32.mrb[160].mxu1 }
 0x908   : > { %11217 = vmatpush3.bf16.msra.mxu0 %v11216_v40  ;;  %v6952_v31 = vpop.f32.mrb[161].mxu1  ;;  %10428 = vmatprep.mubr.msk.f32.mxu0 %vm11655_vm5, %v16908_v0 }
 0x909   : > { %v11219_v39 = vpack.c.bf16 %v10409_v59, %v6952_v31  ;;  %11218 = vmatprep.subr.bf16.mxu0 %v16907_v46 }
 0x90b   : > { %10429 = vmatmul.mubr.msk.f32.gmra.mrb[154].mxu0 %vm6297_vm15, %v6826_v23 }
 0x90c   : > { %11220 = vmatpush3.bf16.msra.mxu0 %v11219_v39  ;;  %10443 = vmatprep.mubr.msk.f32.mxu0 %vm11655_vm5, %v16908_v0 }
 0x90f   : > { %10444 = vmatmul.mubr.msk.f32.vlgmr.msra.gmra.mrb[156].mxu0 %vm6297_vm15, %v6824_v51 }
 0x910   : > { %10446 = vmatprep.mubr.msk.f32.mxu0 %vm11655_vm5, %v16908_v0 }
 0x913   : > { %10447 = vmatmul.mubr.msk.f32.gmra.mrb[158].mxu0 %vm6297_vm15, %v6825_v21 }
 0x914   : > { %10449 = vmatprep.mubr.msk.f32.mxu0 %vm11655_vm5, %v16908_v0 }
 0x917   : > { %10450 = vmatmul.mubr.msk.f32.gmra.mrb[160].mxu0 %vm6297_vm15, %v6826_v23 }
 0x990   : > { %v10304_v37 = vpop.f32.mrb[130].mxu0 }
 0x991   : > { %v6376_v44 = vpop.f32.mrb[131].mxu0  ;;  %v6736_v15 = vmul.f32 %v10304_v37, %v10304_v37 }
 0x992   : > { %v6735_v41 = vmul.f32 %v6376_v44, %v6376_v44 }
 0x994   : > { %v10307_v33 = vpop.f32.mrb[132].mxu0 }
 0x995   : > { %v6386_v3 = vpop.f32.mrb[133].mxu0  ;;  %v6738_v16 = vmul.f32 %v10307_v33, %v10307_v33 }
 0x996   : > { %v6737_v11 = vmul.f32 %v6386_v3, %v6386_v3 }
 0x9a6   : > { %v10322_v20 = vpop.f32.mrb[134].mxu0 }
 0x9a7   : > { %v6744_v48 = vmul.f32 %v10322_v20, %v10304_v37  ;;  %v6461_v22 = vpop.f32.mrb[135].mxu0  ;;  %v6740_v49 = vmul.f32 %v10322_v20, %v10322_v20 }
 0x9a8   : > { %v6743_v7 = vmul.f32 %v6461_v22, %v6376_v44  ;;  %v6739_v14 = vmul.f32 %v6461_v22, %v6461_v22 }
 0x9aa   : > { %v10325_v10 = vpop.f32.mrb[136].mxu0 }
 0x9ab   : > { %v6746_v2 = vmul.f32 %v10325_v10, %v10307_v33  ;;  %v6471_v56 = vpop.f32.mrb[137].mxu0  ;;  %v6742_v17 = vmul.f32 %v10325_v10, %v10325_v10 }
 0x9ac   : > { %v16175_v57 = vmul.f32 %v6471_v56, %v6386_v3  ;;  %v6741_v50 = vmul.f32 %v6471_v56, %v6471_v56 }
 0x9b2   : > { %v10340_v8 = vpop.f32.mrb[138].mxu0 }
 0x9b3   : > { %v6748_v13 = vsub.f32 %v10340_v8, %v6736_v15  ;;  %v6546_v32 = vpop.f32.mrb[139].mxu0 }
 0x9b4   : > { %v6747_v34 = vsub.f32 %v6546_v32, %v6735_v41 }
 0x9b6   : > { %v10343_v6 = vpop.f32.mrb[140].mxu0 }
 0x9b7   : > { %v6750_v58 = vsub.f32 %v10343_v6, %v6738_v16  ;;  %v6556_v29 = vpop.f32.mrb[141].mxu0 }
 0x9b8   : > { %v6749_v52 = vsub.f32 %v6556_v29, %v6737_v11 }
 0x9be   : > { %v10358_v38 = vpop.f32.mrb[142].mxu0 }
 0x9bf   : > { %v6752_v24 = vsub.f32 %v10358_v38, %v6740_v49  ;;  %v6631_v55 = vpop.f32.mrb[143].mxu0 }
 0x9c0   : > { %v6751_v18 = vsub.f32 %v6631_v55, %v6739_v14 }
 0x9c1   : > { %v6768_v47 = vadd.f32 %v6752_v24, %v6748_v13 }
 0x9c2   : > { %v6767_v61 = vadd.f32 %v6751_v18, %v6747_v34  ;;  %v10361_v28 = vpop.f32.mrb[144].mxu0 }
 0x9c3   : > { %v6772_v36 = vadd.f32 0.0009, %v6768_v47  ;;  %v6754_v12 = vsub.f32 %v10361_v28, %v6742_v17  ;;  %v6641_v25 = vpop.f32.mrb[145].mxu0 }
 0x9c4   : > { %v6771_v63 = vadd.f32 0.0009, %v6767_v61  ;;  %v6753_v54 = vsub.f32 %v6641_v25, %v6741_v50 }
 0x9c5   : > { %11429 = vrcp.f32 %v6772_v36  ;;  %v6770_v45 = vadd.f32 %v6754_v12, %v6750_v58 }
 0x9c6   : > { %11431 = vrcp.f32 %v6771_v63  ;;  %v6769_v60 = vadd.f32 %v6753_v54, %v6749_v52 }
 0x9c7   : > { %v6774_v62 = vadd.f32 0.0009, %v6770_v45 }
 0x9c8   : > { %v6773_v26 = vadd.f32 0.0009, %v6769_v60 }
 0x9c9   : > { %11433 = vrcp.f32 %v6774_v62 }
 0x9ca   : > { %11435 = vrcp.f32 %v6773_v26  ;;  %v10376_v35 = vpop.f32.mrb[146].mxu0 }
 0x9cb   : > { %v6756_v53 = vsub.f32 %v10376_v35, %v6744_v48  ;;  %v6716_v4 = vpop.f32.mrb[147].mxu0 }
 0x9cc   : > { %v6755_v42 = vsub.f32 %v6716_v4, %v6743_v7 }
 0x9cd   : > { %v6760_v59 = vmul.f32 2.0, %v6756_v53 }
 0x9ce   : > { %v10379_v51 = vpop.f32.mrb[148].mxu0  ;;  %v6759_v39 = vmul.f32 2.0, %v6755_v42 }
 0x9cf   : > { %v11430_v19 = vpop.eup %11429  ;;  %v6758_v43 = vsub.f32 %v10379_v51, %v6746_v2  ;;  %v6726_v30 = vpop.f32.mrb[149].mxu0  ;;  %v6764_v44 = vadd.f32 0.0009, %v6760_v59 }
 0x9d0   : > { %v11432_v21 = vpop.eup %11431  ;;  %v6780_v40 = vmul.f32 %v11430_v19, %v6772_v36  ;;  %v6757_v31 = vsub.f32 %v6726_v30, %v16175_v57  ;;  %v6763_v48 = vadd.f32 0.0009, %v6759_v39 }
 0x9d1   : > { %v6779_v23 = vmul.f32 %v11432_v21, %v6771_v63  ;;  %v6762_v3 = vmul.f32 2.0, %v6758_v43  ;;  %v16263_v43 = vld [vmem:[%s16408_s14] sm:$0xff] }
 0x9d2   : > { %v6784_v9 = vsub.f32 2.0, %v6780_v40  ;;  %v6761_v7 = vmul.f32 2.0, %v6757_v31  ;;  %10509 = vmatprep.mubr.msk.f32.mxu0 %vm7334_vm4, %v16263_v43 }
 0x9d3   : > { %v11434_v1 = vpop.eup %11433  ;;  %v6783_v27 = vsub.f32 2.0, %v6779_v23  ;;  %v6766_v13 = vadd.f32 0.0009, %v6762_v3  ;;  %v7131_v3 = vld [vmem:[%s16408_s14 + $0x8] sm:$0x7] }
 0x9d4   : > { %v11436_v5 = vpop.eup %11435  ;;  %v6782_v37 = vmul.f32 %v11434_v1, %v6774_v62  ;;  %v6788_v33 = vmul.f32 %v11430_v19, %v6784_v9  ;;  %v6765_v16 = vadd.f32 0.0009, %v6761_v7 }
 0x9d5   : > { %v6781_v20 = vmul.f32 %v11436_v5, %v6773_v26  ;;  %v6787_v22 = vmul.f32 %v11432_v21, %v6783_v27 }
 0x9d6   : > { %v6786_v10 = vsub.f32 2.0, %v6782_v37  ;;  %v6792_v2 = vmul.f32 %v6788_v33, %v6764_v44  ;;  %v16178_v56 = vpop.f32.mrb[150].mxu0 }
 0x9d7   : > { %v6785_v57 = vsub.f32 2.0, %v6781_v20  ;;  %v6791_v15 = vmul.f32 %v6787_v22, %v6763_v48  ;;  %10459 = vmatmul.mubr.msk.f32.vlgmr.msra.gmra.mrb[162].mxu1 %vm7144_vm1, %v16178_v56  ;;  %v10424_v41 = vpop.f32.mrb[151].mxu0  ;;  %v7135_v35 = vmul.f32 %v16178_v56, %v16178_v56 }
 0x9d8   : > { %v6796_v8 = vmax.f32 %v6792_v2, 0.0  ;;  %10461 = vmatprep.mubr.msk.f32.mxu1 %vm11655_vm5, %v16908_v0  ;;  %v6790_v32 = vmul.f32 %v11434_v1, %v6786_v10 }
 0x9d9   : > { %v6795_v34 = vmax.f32 %v6791_v15, 0.0  ;;  %v6789_v11 = vmul.f32 %v11436_v5, %v6785_v57 }
 0x9da   : > { %v16184_v6 = vpop.f32.mrb[152].mxu0  ;;  %v6794_v58 = vmul.f32 %v6790_v32, %v6766_v13  ;;  %v6805_v29 = vsel %vm6803_vm2, %v6796_v8, 0.0 }
 0x9db   : > { %v6793_v52 = vmul.f32 %v6789_v11, %v6765_v16  ;;  %10462 = vmatmul.mubr.msk.f32.gmra.mrb[164].mxu1 %vm7144_vm1, %v16184_v6  ;;  %v10427_v49 = vpop.f32.mrb[153].mxu0  ;;  %v6804_v14 = vsel %vm6803_vm2, %v6795_v34, 0.0  ;;  %v7136_v53 = vmul.f32 %v16184_v6, %v16184_v6 }
 0x9dc   : > { %10464 = vmatprep.mubr.msk.f32.mxu1 %vm11655_vm5, %v16908_v0  ;;  %v6806_v38 = vadd.f32 %v6805_v29, %v6804_v14  ;;  %v6798_v55 = vmax.f32 %v6794_v58, 0.0 }
 0x9dd   : > { %v6797_v24 = vmax.f32 %v6793_v52, 0.0 }
 0x9de   : > { %v16192_v18 = vpop.f32.mrb[154].mxu0  ;;  %v6810_v61 = vsel %vm6809_vm3, %v6798_v55, 0.0 }
 0x9df   : > { %10465 = vmatmul.mubr.msk.f32.gmra.mrb[166].mxu1 %vm7144_vm1, %v16192_v18  ;;  %v10430_v17 = vpop.f32.mrb[155].mxu0  ;;  %v6807_v47 = vsel %vm6803_vm2, %v6797_v24, 0.0  ;;  %v7137_v4 = vmul.f32 %v16192_v18, %v16192_v18 }
 0x9e0   : > { %10467 = vmatprep.mubr.msk.f32.mxu1 %vm11655_vm5, %v16908_v0  ;;  %v6808_v50 = vadd.f32 %v6807_v47, %v6806_v38 }
 0x9e2   : > { %v16199_v28 = vpop.f32.mrb[156].mxu0  ;;  %v6811_v36 = vadd.f32 %v6810_v61, %v6808_v50  ;;  %v7771_v61 = vld [vmem:[%s16411_s17] sm:$0xff] }
 0x9e3   : > { %v7141_v12 = vmul.f32 %v16199_v28, %v16178_v56  ;;  %10468 = vmatmul.mubr.msk.f32.gmra.mrb[168].mxu1 %vm7144_vm1, %v16199_v28  ;;  %v10445_v25 = vpop.f32.mrb[157].mxu0  ;;  %v7138_v42 = vmul.f32 %v16199_v28, %v16199_v28 }
 0x9e4   : > { %6812 = vadd.xlane.f32.xlu1 %v6811_v36  ;;  %10470 = vmatprep.mubr.msk.f32.mxu1 %vm11655_vm5, %v16908_v0  ;;  %v7772_v36 = vld [vmem:[%s16411_s17 + $0x8] sm:$0xff] }
 0x9e5   : > { %v11244_v25 = vpack.c.bf16 %v7772_v36, %v7771_v61  ;;  %v8030_v61 = vld [vmem:[%s16413_s19 + $0x8] sm:$0x7] }
 0x9e6   : > { %v16207_v63 = vpop.f32.mrb[158].mxu0 }
 0x9e7   : > { %v7142_v54 = vmul.f32 %v16207_v63, %v16184_v6  ;;  %10471 = vmatmul.mubr.msk.f32.gmra.mrb[170].mxu1 %vm7144_vm1, %v16207_v63  ;;  %v10448_v45 = vpop.f32.mrb[159].mxu0  ;;  %v7139_v51 = vmul.f32 %v16207_v63, %v16207_v63 }
 0x9e8   : > { %10473 = vmatprep.mubr.msk.f32.mxu1 %vm11655_vm5, %v16908_v0  ;;  %v7773_v45 = vld [vmem:[%s16411_s17 + $0x10] sm:$0x1f] }
 0x9ea   : > { %v16215_v60 = vpop.f32.mrb[160].mxu0 }
 0x9eb   : > { %v7143_v62 = vmul.f32 %v16215_v60, %v16192_v18  ;;  %10474 = vmatmul.mubr.msk.f32.gmra.mrb[172].mxu1 %vm7144_vm1, %v16215_v60  ;;  %v10451_v26 = vpop.f32.mrb[161].mxu0  ;;  %v7140_v19 = vmul.f32 %v16215_v60, %v16215_v60 }
 0x9ec   : > { %10476 = vmatprep.mubr.msk.f32.mxu1 %vm11655_vm5, %v16908_v0 }
 0x9ef   : > { %10477 = vmatmul.mubr.msk.f32.gmra.mrb[174].mxu1 %vm7144_vm1, %v7135_v35 }
 0x9f0   : > { %10479 = vmatprep.mubr.msk.f32.mxu1 %vm11655_vm5, %v16908_v0 }
 0x9f3   : > { %10480 = vmatmul.mubr.msk.f32.gmra.mrb[176].mxu1 %vm7144_vm1, %v7136_v53 }
 0x9f4   : > { %10482 = vmatprep.mubr.msk.f32.mxu1 %vm11655_vm5, %v16908_v0 }
 0x9f7   : > { %10483 = vmatmul.mubr.msk.f32.gmra.mrb[178].mxu1 %vm7144_vm1, %v7137_v4 }
 0x9f8   : > { %10485 = vmatprep.mubr.msk.f32.mxu1 %vm11655_vm5, %v16908_v0 }
 0x9fb   : > { %10486 = vmatmul.mubr.msk.f32.gmra.mrb[180].mxu1 %vm7144_vm1, %v7138_v42 }
 0x9fc   : > { %10488 = vmatprep.mubr.msk.f32.mxu1 %vm11655_vm5, %v16908_v0 }
 0x9ff   : > { %10489 = vmatmul.mubr.msk.f32.gmra.mrb[182].mxu1 %vm7144_vm1, %v7139_v51 }
 0xa00   : > { %10491 = vmatprep.mubr.msk.f32.mxu1 %vm11655_vm5, %v16908_v0 }
 0xa03   : > { %10492 = vmatmul.mubr.msk.f32.gmra.mrb[184].mxu1 %vm7144_vm1, %v7140_v19 }
 0xa04   : > { %10494 = vmatprep.mubr.msk.f32.mxu1 %vm11655_vm5, %v16908_v0 }
 0xa07   : > { %10495 = vmatmul.mubr.msk.f32.gmra.mrb[186].mxu1 %vm7144_vm1, %v7141_v12 }
 0xa08   : > { %10497 = vmatprep.mubr.msk.f32.mxu1 %vm11655_vm5, %v16908_v0 }
 0xa0b   : > { %10498 = vmatmul.mubr.msk.f32.gmra.mrb[188].mxu1 %vm7144_vm1, %v7142_v54 }
 0xa0c   : > { %10500 = vmatprep.mubr.msk.f32.mxu1 %vm11655_vm5, %v16908_v0 }
 0xa0f   : > { %10501 = vmatmul.mubr.msk.f32.gmra.mrb[190].mxu1 %vm7144_vm1, %v7143_v62 }
 0xa71   : > { %v6813_v30 = vpop.xlane.xlu1 %6812 }
 0xa72   : > { %v6814_v21 = vrot.slane %v6813_v30, 4 }
 0xa74   : > { %v6815_v40 = vadd.f32 %v6814_v21, %v6813_v30 }
 0xa76   : > { %v6816_v59 = vrot.slane %v6815_v40, 2 }
 0xa78   : > { %v6817_v31 = vadd.f32 %v6816_v59, %v6815_v40 }
 0xa7a   : > { %v6818_v23 = vrot.slane %v6817_v31, 1 }
 0xa7c   : > { %v6819_v39 = vadd.f32 %v6818_v23, %v6817_v31 }
 0xa7e   : > { %11283 = vpush %v6819_v39 }
 0xaaa   : > { %v7260_v9 = vpop.f32.mrb[162].mxu1 }
 0xaab   : > { %v10460_v1 = vpop.f32.mrb[163].mxu1 }
 0xaae   : > { %v7265_v27 = vpop.f32.mrb[164].mxu1 }
 0xaaf   : > { %v11224_v5 = vpack.c.bf16 %v7265_v27, %v7260_v9  ;;  %v10463_v37 = vpop.f32.mrb[165].mxu1  ;;  %s11284_s20 = spop %11283 }
 0xab1   : > { %11225 = vmatprep.subr.bf16.mxu0 %v11224_v5 }
 0xab2   : > { %v7270_v44 = vpop.f32.mrb[166].mxu1  ;;  %11227 = vmatpush3.bf16.msra.mxu0 %v11224_v5 }
 0xab3   : > { %v10466_v33 = vpop.f32.mrb[167].mxu1  ;;  %10507 = vmatprep.subr.mxu0 %v7270_v44 }
 0xab6   : > { %v7275_v20 = vpop.f32.mrb[168].mxu1  ;;  %10508 = vmatpush3.msra.mxu0 %v7270_v44 }
 0xab7   : > { %v10469_v48 = vpop.f32.mrb[169].mxu1  ;;  %10510 = vmatmul.mubr.msk.f32.vlgmr.msra.gmra.mrb[162].mxu0 %vm7334_vm4, %v7131_v3 }
 0xab8   : > { %10518 = vmatprep.mubr.msk.f32.mxu0 %vm7334_vm4, %v16263_v43 }
 0xaba   : > { %v7280_v22 = vpop.f32.mrb[170].mxu1 }
 0xabb   : > { %v11228_v7 = vpack.c.bf16 %v7280_v22, %v7275_v20  ;;  %v10472_v10 = vpop.f32.mrb[171].mxu1 }
 0xabd   : > { %11229 = vmatprep.subr.bf16.mxu0 %v11228_v7 }
 0xabe   : > { %v7285_v2 = vpop.f32.mrb[172].mxu1  ;;  %11231 = vmatpush3.bf16.msra.mxu0 %v11228_v7 }
 0xabf   : > { %v10475_v57 = vpop.f32.mrb[173].mxu1  ;;  %10516 = vmatprep.subr.mxu0 %v7285_v2 }
 0xac2   : > { %v7290_v15 = vpop.f32.mrb[174].mxu1  ;;  %10517 = vmatpush3.msra.mxu0 %v7285_v2 }
 0xac3   : > { %v10478_v41 = vpop.f32.mrb[175].mxu1  ;;  %10519 = vmatmul.mubr.msk.f32.vlgmr.msra.gmra.mrb[164].mxu0 %vm7334_vm4, %v7131_v3 }
 0xac4   : > { %10527 = vmatprep.mubr.msk.f32.mxu0 %vm7334_vm4, %v16263_v43 }
 0xac6   : > { %v7295_v8 = vpop.f32.mrb[176].mxu1 }
 0xac7   : > { %v11232_v13 = vpack.c.bf16 %v7295_v8, %v7290_v15  ;;  %v10481_v32 = vpop.f32.mrb[177].mxu1 }
 0xac9   : > { %11233 = vmatprep.subr.bf16.mxu0 %v11232_v13 }
 0xaca   : > { %v7300_v34 = vpop.f32.mrb[178].mxu1  ;;  %11235 = vmatpush3.bf16.msra.mxu0 %v11232_v13 }
 0xacb   : > { %v10484_v16 = vpop.f32.mrb[179].mxu1  ;;  %10525 = vmatprep.subr.mxu0 %v7300_v34 }
 0xace   : > { %v7305_v11 = vpop.f32.mrb[180].mxu1  ;;  %10526 = vmatpush3.msra.mxu0 %v7300_v34 }
 0xacf   : > { %v10487_v58 = vpop.f32.mrb[181].mxu1  ;;  %10528 = vmatmul.mubr.msk.f32.vlgmr.msra.gmra.mrb[166].mxu0 %vm7334_vm4, %v7131_v3 }
 0xad0   : > { %10536 = vmatprep.mubr.msk.f32.mxu0 %vm7334_vm4, %v16263_v43 }
 0xad2   : > { %v7310_v29 = vpop.f32.mrb[182].mxu1 }
 0xad3   : > { %v11236_v52 = vpack.c.bf16 %v7310_v29, %v7305_v11  ;;  %v10490_v49 = vpop.f32.mrb[183].mxu1  ;;  %v7770_v29 = vld [vmem:[%s16410_s16 + $0x8] sm:$0xff] }
 0xad5   : > { %11237 = vmatprep.subr.bf16.mxu0 %v11236_v52 }
 0xad6   : > { %11239 = vmatpush3.bf16.msra.mxu0 %v11236_v52  ;;  %v7315_v14 = vpop.f32.mrb[184].mxu1 }
 0xad7   : > { %10534 = vmatprep.subr.mxu0 %v7315_v14  ;;  %v10493_v38 = vpop.f32.mrb[185].mxu1 }
 0xada   : > { %10535 = vmatpush3.msra.mxu0 %v7315_v14  ;;  %v7320_v24 = vpop.f32.mrb[186].mxu1 }
 0xadb   : > { %10537 = vmatmul.mubr.msk.f32.vlgmr.msra.gmra.mrb[168].mxu0 %vm7334_vm4, %v7131_v3  ;;  %v10496_v55 = vpop.f32.mrb[187].mxu1 }
 0xadc   : > { %10545 = vmatprep.mubr.msk.f32.mxu0 %vm7334_vm4, %v16263_v43 }
 0xade   : > { %v7325_v17 = vpop.f32.mrb[188].mxu1 }
 0xadf   : > { %v11240_v47 = vpack.c.bf16 %v7325_v17, %v7320_v24  ;;  %v10499_v50 = vpop.f32.mrb[189].mxu1 }
 0xae0   : > { %v8029_v50 = vld [vmem:[%s16413_s19] sm:$0xff] }
 0xae1   : > { %11241 = vmatprep.subr.bf16.mxu0 %v11240_v47  ;;  %v11256_v36 = vpack.c.bf16 %v8030_v61, %v8029_v50 }
 0xae2   : > { %11243 = vmatpush3.bf16.msra.mxu0 %v11240_v47  ;;  %v7330_v12 = vpop.f32.mrb[190].mxu1 }
 0xae3   : > { %10543 = vmatprep.subr.mxu0 %v7330_v12  ;;  %v10502_v54 = vpop.f32.mrb[191].mxu1  ;;  %11258 = vmatprep.subr.msk.bf16.mxu1 %vm11257_vm9, %v11256_v36 }
 0xae4   : > { %11261 = vmatpush3.bf16.msk.msra.mxu1 %vm11257_vm9, %v11256_v36 }
 0xae6   : > { %10544 = vmatpush3.msra.mxu0 %v7330_v12 }
 0xae7   : > { %11245 = vmatprep.subr.bf16.mxu0 %v11244_v25  ;;  %10546 = vmatmul.mubr.msk.f32.vlgmr.msra.gmra.mrb[170].mxu0 %vm7334_vm4, %v7131_v3 }
 0xae8   : > { %11247 = vmatpush3.bf16.msra.mxu0 %v11244_v25  ;;  %10554 = vmatprep.mubr.msk.f32.mxu0 %vm7144_vm1, %v16178_v56  ;;  %v16309_v56 = vld [vmem:[%s16410_s16] sm:$0xff] }
 0xae9   : > { %10552 = vmatprep.subr.msk.mxu0 %vm7190_vm0, %v7773_v45 }
 0xaec   : > { %10553 = vmatpush3.msk.msra.mxu0 %vm7190_vm0, %v7773_v45 }
 0xaed   : > { %10555 = vmatmul.mubr.msk.f32.vlgmr.msra.gmra.mrb[172].mxu0 %vm7144_vm1, %v16184_v6 }
 0xaee   : > { %10557 = vmatprep.mubr.msk.f32.mxu0 %vm7144_vm1, %v16192_v18 }
 0xaf1   : > { %10558 = vmatmul.mubr.msk.f32.gmra.mrb[174].mxu0 %vm7144_vm1, %v16199_v28 }
 0xaf2   : > { %10560 = vmatprep.mubr.msk.f32.mxu0 %vm7144_vm1, %v16207_v63 }
 0xaf5   : > { %10561 = vmatmul.mubr.msk.f32.gmra.mrb[176].mxu0 %vm7144_vm1, %v16215_v60 }
 0xaf6   : > { %10569 = vmatprep.mubr.msk.f32.mxu0 %vm7334_vm4, %v16309_v56 }
 0xb8a   : > { %v10511_v6 = vpop.f32.mrb[162].mxu0 }
 0xb8b   : > { %v7407_v62 = vpop.f32.mrb[163].mxu0  ;;  %v7717_v53 = vmul.f32 %v10511_v6, %v10511_v6 }
 0xb8c   : > { %v7716_v4 = vmul.f32 %v7407_v62, %v7407_v62 }
 0xb96   : > { %v10520_v18 = vpop.f32.mrb[164].mxu0 }
 0xb97   : > { %v7721_v26 = vmul.f32 %v10520_v18, %v10511_v6  ;;  %v7482_v35 = vpop.f32.mrb[165].mxu0  ;;  %v7719_v19 = vmul.f32 %v10520_v18, %v10520_v18 }
 0xb98   : > { %v7720_v28 = vmul.f32 %v7482_v35, %v7407_v62  ;;  %v7718_v43 = vmul.f32 %v7482_v35, %v7482_v35 }
 0xba2   : > { %v10529_v63 = vpop.f32.mrb[166].mxu0 }
 0xba3   : > { %v7723_v42 = vsub.f32 %v10529_v63, %v7717_v53  ;;  %v7557_v51 = vpop.f32.mrb[167].mxu0 }
 0xba4   : > { %v7722_v60 = vsub.f32 %v7557_v51, %v7716_v4 }
 0xbae   : > { %v10538_v30 = vpop.f32.mrb[168].mxu0 }
 0xbaf   : > { %v7725_v21 = vsub.f32 %v10538_v30, %v7719_v19  ;;  %v7632_v40 = vpop.f32.mrb[169].mxu0 }
 0xbb0   : > { %v7724_v59 = vsub.f32 %v7632_v40, %v7718_v43 }
 0xbb1   : > { %v7733_v31 = vadd.f32 %v7725_v21, %v7723_v42  ;;  %v8028_v21 = vld [vmem:[%s16412_s18] sm:$0x1] }
 0xbb2   : > { %v7732_v23 = vadd.f32 %v7724_v59, %v7722_v60 }
 0xbb3   : > { %v7735_v39 = vadd.f32 0.0009, %v7733_v31 }
 0xbb4   : > { %v7734_v9 = vadd.f32 0.0009, %v7732_v23 }
 0xbb5   : > { %11437 = vrcp.f32 %v7735_v39 }
 0xbb6   : > { %11439 = vrcp.f32 %v7734_v9 }
 0xbba   : > { %v10547_v1 = vpop.f32.mrb[170].mxu0 }
 0xbbb   : > { %v7727_v27 = vsub.f32 %v10547_v1, %v7721_v26  ;;  %v7707_v5 = vpop.f32.mrb[171].mxu0 }
 0xbbc   : > { %v7726_v37 = vsub.f32 %v7707_v5, %v7720_v28 }
 0xbbd   : > { %v7729_v20 = vmul.f32 2.0, %v7727_v27 }
 0xbbe   : > { %v7728_v7 = vmul.f32 2.0, %v7726_v37 }
 0xbbf   : > { %v11438_v44 = vpop.eup %11437  ;;  %v7731_v41 = vadd.f32 0.0009, %v7729_v20 }
 0xbc0   : > { %v11440_v33 = vpop.eup %11439  ;;  %v7739_v3 = vmul.f32 %v11438_v44, %v7735_v39  ;;  %v10556_v48 = vpop.f32.mrb[172].mxu0  ;;  %v7730_v32 = vadd.f32 0.0009, %v7728_v7 }
 0xbc1   : > { %v7738_v22 = vmul.f32 %v11440_v33, %v7734_v9  ;;  %v7843_v10 = vpop.f32.mrb[173].mxu0 }
 0xbc2   : > { %v7741_v2 = vsub.f32 2.0, %v7739_v3  ;;  %v11248_v57 = vpack.c.bf16 %v10556_v48, %v7843_v10 }
 0xbc3   : > { %v7740_v15 = vsub.f32 2.0, %v7738_v22 }
 0xbc4   : > { %v7743_v8 = vmul.f32 %v11438_v44, %v7741_v2  ;;  %v10559_v13 = vpop.f32.mrb[174].mxu0  ;;  %11249 = vmatprep.subr.bf16.mxu0 %v11248_v57 }
 0xbc5   : > { %v7742_v34 = vmul.f32 %v11440_v33, %v7740_v15  ;;  %v7853_v16 = vpop.f32.mrb[175].mxu0  ;;  %11251 = vmatpush3.bf16.msra.mxu0 %v11248_v57 }
 0xbc6   : > { %v7745_v11 = vmul.f32 %v7743_v8, %v7731_v41  ;;  %10567 = vmatprep.subr.mxu0 %v7853_v16 }
 0xbc7   : > { %v7744_v58 = vmul.f32 %v7742_v34, %v7730_v32 }
 0xbc8   : > { %v7747_v52 = vmax.f32 %v7745_v11, 0.0  ;;  %v10562_v49 = vpop.f32.mrb[176].mxu0 }
 0xbc9   : > { %v7746_v14 = vmax.f32 %v7744_v58, 0.0  ;;  %v7863_v38 = vpop.f32.mrb[177].mxu0  ;;  %10568 = vmatpush3.msra.mxu0 %v7853_v16 }
 0xbca   : > { %v11252_v24 = vpack.c.bf16 %v7863_v38, %v10559_v13  ;;  %10570 = vmatmul.mubr.msk.f32.vlgmr.msra.gmra.mrb[178].mxu0 %vm7334_vm4, %v7770_v29  ;;  %v7755_v55 = vsel %vm7754_vm6, %v7747_v52, 0.0 }
 0xbcb   : > { %v7753_v17 = vsel %vm7752_vm7, %v7746_v14, 0.0  ;;  %10578 = vmatprep.mubr.msk.f32.mxu0 %vm7334_vm4, %v16309_v56 }
 0xbcc   : > { %11253 = vmatprep.subr.bf16.mxu0 %v11252_v24  ;;  %v7756_v47 = vadd.f32 %v7755_v55, %v7753_v17 }
 0xbcd   : > { %11255 = vmatpush3.bf16.msra.mxu0 %v11252_v24 }
 0xbce   : > { %7757 = vadd.xlane.f32.xlu1 %v7756_v47  ;;  %10576 = vmatprep.subr.mxu0 %v10562_v49 }
 0xbd1   : > { %10577 = vmatpush3.msra.mxu0 %v10562_v49 }
 0xbd2   : > { %10579 = vmatmul.mubr.msk.f32.vlgmr.msra.gmra.mrb[180].mxu0 %vm7334_vm4, %v7770_v29  ;;  %11262 = vmatprep.subr.bf16.mxu0 %v16907_v46 }
 0xbd3   : > { %10604 = vmatprep.mubr.msk.f32.mxu0 %vm11655_vm5, %v16908_v0 }
 0xc5b   : > { %v7758_v12 = vpop.xlane.xlu1 %7757 }
 0xc5c   : > { %v7759_v25 = vrot.slane %v7758_v12, 4 }
 0xc5e   : > { %v7760_v54 = vadd.f32 %v7759_v25, %v7758_v12 }
 0xc60   : > { %v7761_v45 = vrot.slane %v7760_v54, 2 }
 0xc62   : > { %v7762_v56 = vadd.f32 %v7761_v45, %v7760_v54 }
 0xc64   : > { %v7763_v6 = vrot.slane %v7762_v56, 1 }
 0xc66   : > { %v7764_v62 = vadd.f32 %v7763_v6, %v7762_v56 }
 0xc68   : > { %11285 = vpush %v7764_v62 }
 0xc99   : > { %s11286_s23 = spop %11285 }
 0xc9d   : > { %v10571_v18 = vpop.f32.mrb[178].mxu0 }
 0xc9e   : > { %v7944_v26 = vpop.f32.mrb[179].mxu0  ;;  %v8032_v42 = vmul.f32 %v10571_v18, %v10571_v18 }
 0xc9f   : > { %10585 = vmatprep.mubr.msk.f32.mxu1 %vm7752_vm7, %v7944_v26  ;;  %v8031_v4 = vmul.f32 %v7944_v26, %v7944_v26 }
 0xca0   : > { %10586 = vmatmul.mubr.msk.f32.vlgmr.msra.gmra.mrb[192].mxu1 %vm7752_vm7, %v10571_v18 }
 0xca5   : > { %v10580_v35 = vpop.f32.mrb[180].mxu0 }
 0xca6   : > { %v8036_v28 = vmul.f32 %v10580_v35, %v10571_v18  ;;  %v8019_v53 = vpop.f32.mrb[181].mxu0  ;;  %v8034_v60 = vmul.f32 %v10580_v35, %v10580_v35  ;;  %v698_v18 = vlaneseq }
 0xca7   : > { %v8035_v63 = vmul.f32 %v8019_v53, %v7944_v26  ;;  %10588 = vmatprep.mubr.msk.f32.mxu1 %vm7752_vm7, %v8019_v53  ;;  %v8033_v51 = vmul.f32 %v8019_v53, %v8019_v53  ;;  %v5553_v53 = vstv %s11282_s24 }
 0xca8   : > { %10589 = vmatmul.mubr.msk.f32.gmra.mrb[194].mxu1 %vm7752_vm7, %v10580_v35  ;;  %v699_v26 = vshrl.u32 %v698_v18, 7  ;;  %v701_v35 = vand.u32 127, %v698_v18 }
 0xca9   : > { %10591 = vmatprep.mubr.msk.f32.mxu1 %vm7752_vm7, %v8031_v4 }
 0xcaa   : > { %vm3568_vm11 = vcmp.eq.s32.totalorder %v699_v26, 1  ;;  %vm3569_vm12 = vcmp.eq.s32.totalorder %v701_v35, 0  ;;  %vm6799_vm13 = vcmp.eq.s32.totalorder %v701_v35, 2  ;;  %vm7748_vm0 = vcmp.eq.s32.totalorder %v701_v35, 3 }
 0xcab   : > { %vm3570_vm15 = vmand %vm3568_vm11, %vm3569_vm12  ;;  %vm8556_vm2 = vcmp.eq.s32.totalorder %v701_v35, 4  ;;  %vm8576_vm6 = vcmp.eq.s32.totalorder %v699_v26, 0 }
 0xcac   : > { %10592 = vmatmul.mubr.msk.f32.gmra.mrb[196].mxu1 %vm7752_vm7, %v8032_v42  ;;  %vm6800_vm1 = vmand %vm3568_vm11, %vm6799_vm13  ;;  %v8907_v4 = vsel %vm3570_vm15, 1.0, %v16908_v0 }
 0xcad   : > { %10594 = vmatprep.mubr.msk.f32.mxu1 %vm7752_vm7, %v8033_v51  ;;  %vm7749_vm3 = vmand %vm3568_vm11, %vm7748_vm0  ;;  %v9162_v42 = vsel %vm6800_vm1, 1.0, %v16908_v0  ;;  %v6821_v51 = vstv %s11284_s20 }
 0xcae   : > { %vm8557_vm4 = vmand %vm3568_vm11, %vm8556_vm2 }
 0xcb0   : > { %10595 = vmatmul.mubr.msk.f32.gmra.mrb[198].mxu1 %vm7752_vm7, %v8034_v60 }
 0xcb1   : > { %10597 = vmatprep.mubr.msk.f32.mxu1 %vm7752_vm7, %v8035_v63  ;;  %v3642_v63 = vstv %s11280_s21  ;;  %s697_s21 = scalar_lea.vmem %s16912_s2, %s8704_s29 }
 0xcb4   : > { %10598 = vmatmul.mubr.msk.f32.gmra.mrb[200].mxu1 %vm7752_vm7, %v8036_v28  ;;  %vm8577_vm7 = vmand %vm8576_vm6, %vm3569_vm12 }
 0xd73   : > { %v10587_v19 = vpop.f32.mrb[192].mxu1 }
 0xd74   : > { %v8137_v43 = vpop.f32.mrb[193].mxu1 }
 0xd75   : > { %v11263_v30 = vpack.c.bf16 %v10587_v19, %v8137_v43  ;;  %v9208_v19 = vsel %vm7749_vm3, 1.0, %v16908_v0  ;;  %v7766_v43 = vstv %s11286_s23 }
 0xd77   : > { %11264 = vmatpush3.bf16.msra.mxu0 %v11263_v30  ;;  %v3643_v30 = vmul.f32 %v8907_v4, %v3642_v63 }
 0xd78   : > { %11265 = vmatprep.subr.bf16.mxu0 %v16907_v46 }
 0xd7a   : > { %10605 = vmatmul.mubr.msk.f32.vlgmr.msra.gmra.mrb[182].mxu0 %vm8186_vm10, %v8028_v21 }
 0xd7b   : > { %v10590_v40 = vpop.f32.mrb[194].mxu1  ;;  %10611 = vmatprep.mubr.msk.f32.mxu0 %vm11655_vm5, %v16908_v0 }
 0xd7c   : > { %v8147_v59 = vpop.f32.mrb[195].mxu1 }
 0xd7d   : > { %v11266_v31 = vpack.c.bf16 %v10590_v40, %v8147_v59  ;;  %v9236_v40 = vsel %vm8557_vm4, 1.0, %v16908_v0 }
 0xd7f   : > { %v10593_v23 = vpop.f32.mrb[196].mxu1  ;;  %11267 = vmatpush3.bf16.msra.mxu0 %v11266_v31  ;;  %v7767_v31 = vmul.f32 %v9208_v19, %v7766_v43 }
 0xd80   : > { %v8157_v39 = vpop.f32.mrb[197].mxu1  ;;  %11268 = vmatprep.subr.bf16.mxu0 %v16907_v46 }
 0xd81   : > { %v11269_v9 = vpack.c.bf16 %v10593_v23, %v8157_v39 }
 0xd82   : > { %10612 = vmatmul.mubr.msk.f32.vlgmr.msra.gmra.mrb[184].mxu0 %vm8186_vm10, %v8028_v21 }
 0xd83   : > { %v10596_v1 = vpop.f32.mrb[198].mxu1  ;;  %11270 = vmatpush3.bf16.msra.mxu0 %v11269_v9  ;;  %10618 = vmatprep.mubr.msk.f32.mxu0 %vm11655_vm5, %v16908_v0 }
 0xd84   : > { %v8167_v27 = vpop.f32.mrb[199].mxu1  ;;  %11271 = vmatprep.subr.bf16.mxu0 %v16907_v46 }
 0xd85   : > { %v11272_v5 = vpack.c.bf16 %v10596_v1, %v8167_v27  ;;  %v9237_v1 = vsel %vm8577_vm7, 1.0, %v16908_v0 }
 0xd86   : > { %10619 = vmatmul.mubr.msk.f32.vlgmr.msra.gmra.mrb[186].mxu0 %vm8186_vm10, %v8028_v21 }
 0xd87   : > { %11273 = vmatpush3.bf16.msra.mxu0 %v11272_v5  ;;  %10625 = vmatprep.mubr.msk.f32.mxu0 %vm11655_vm5, %v16908_v0  ;;  %v10599_v37 = vpop.f32.mrb[200].mxu1 }
 0xd88   : > { %v8177_v44 = vpop.f32.mrb[201].mxu1  ;;  %11274 = vmatprep.subr.bf16.mxu0 %v16907_v46 }
 0xd89   : > { %v11275_v33 = vpack.c.bf16 %v10599_v37, %v8177_v44 }
 0xd8a   : > { %10626 = vmatmul.mubr.msk.f32.vlgmr.msra.gmra.mrb[188].mxu0 %vm8186_vm10, %v8028_v21 }
 0xd8b   : > { %11276 = vmatpush3.bf16.msra.mxu0 %v11275_v33  ;;  %10632 = vmatprep.mubr.msk.f32.mxu0 %vm11655_vm5, %v16908_v0  ;;  %vm5521_vm5 = vcmp.eq.s32.totalorder %v701_v35, 1 }
 0xd8c   : > { %vm5522_vm14 = vmand %vm3568_vm11, %vm5521_vm5 }
 0xd8d   : > { %v9075_v28 = vsel %vm5522_vm14, 1.0, %v16908_v0 }
 0xd8e   : > { %10633 = vmatmul.mubr.msk.f32.vlgmr.msra.gmra.mrb[190].mxu0 %vm8186_vm10, %v8028_v21  ;;  %v5554_v60 = vmul.f32 %v9075_v28, %v5553_v53  ;;  %v6822_v21 = vmul.f32 %v9162_v42, %v6821_v51 }
 0xd90   : > { %v5555_v59 = vadd.f32 %v5554_v60, %v3643_v30 }
 0xd92   : > { %v6823_v39 = vadd.f32 %v6822_v21, %v5555_v59 }
 0xd94   : > { %v7768_v27 = vadd.f32 %v7767_v31, %v6823_v39 }
 0xe4d   : > { %v8256_v3 = vpop.f32.mrb[182].mxu0 }
 0xe4e   : > { %v10606_v20 = vpop.f32.mrb[183].mxu0  ;;  %v8540_v22 = vmul.f32 %v8256_v3, %v8256_v3 }
 0xe55   : > { %v8326_v48 = vpop.f32.mrb[184].mxu0 }
 0xe56   : > { %v8541_v7 = vmul.f32 %v8326_v48, %v8326_v48  ;;  %v8542_v10 = vmul.f32 %v8326_v48, %v8256_v3  ;;  %v10613_v2 = vpop.f32.mrb[185].mxu0 }
 0xe58   : > { %v8567_v57 = vadd.f32 %v8541_v7, %v8540_v22  ;;  %v8565_v14 = vmul.f32 2.0, %v8542_v10 }
 0xe59   : > { %v8396_v15 = vpop.f32.mrb[186].mxu0 }
 0xe5a   : > { %v8568_v41 = vadd.f32 0.0001, %v8567_v57  ;;  %v8543_v46 = vsub.f32 %v8396_v15, %v8540_v22  ;;  %v10620_v8 = vpop.f32.mrb[187].mxu0  ;;  %v8566_v55 = vadd.f32 0.0001, %v8565_v14 }
 0xe5c   : > { %11441 = vrcp.f32 %v8568_v41 }
 0xe5d   : > { %v8466_v13 = vpop.f32.mrb[188].mxu0 }
 0xe5e   : > { %v8544_v32 = vsub.f32 %v8466_v13, %v8541_v7  ;;  %v10627_v34 = vpop.f32.mrb[189].mxu0 }
 0xe60   : > { %v8548_v16 = vadd.f32 %v8544_v32, %v8543_v46 }
 0xe61   : > { %v8536_v11 = vpop.f32.mrb[190].mxu0 }
 0xe62   : > { %v8549_v58 = vadd.f32 0.0009, %v8548_v16  ;;  %v8545_v29 = vsub.f32 %v8536_v11, %v8542_v10  ;;  %v10634_v52 = vpop.f32.mrb[191].mxu0 }
 0xe64   : > { %11443 = vrcp.f32 %v8549_v58  ;;  %v8546_v36 = vmul.f32 2.0, %v8545_v29 }
 0xe66   : > { %v11442_v49 = vpop.eup %11441  ;;  %v8547_v25 = vadd.f32 0.0009, %v8546_v36 }
 0xe67   : > { %v8570_v38 = vmul.f32 %v11442_v49, %v8568_v41 }
 0xe69   : > { %v8571_v24 = vsub.f32 2.0, %v8570_v38 }
 0xe6b   : > { %v8572_v17 = vmul.f32 %v11442_v49, %v8571_v24 }
 0xe6d   : > { %v8573_v47 = vmul.f32 %v8572_v17, %v8566_v55 }
 0xe6e   : > { %v11444_v50 = vpop.eup %11443 }
 0xe6f   : > { %v8551_v61 = vmul.f32 %v11444_v50, %v8549_v58 }
 0xe71   : > { %v8552_v12 = vsub.f32 2.0, %v8551_v61 }
 0xe73   : > { %v8553_v54 = vmul.f32 %v11444_v50, %v8552_v12 }
 0xe75   : > { %v8554_v45 = vmul.f32 %v8553_v54, %v8547_v25 }
 0xe77   : > { %v8555_v56 = vmax.f32 %v8554_v45, 0.0 }
 0xe79   : > { %11287 = vpush %v8555_v56  ;;  %v8574_v6 = vmul.f32 %v8573_v47, %v8555_v56 }
 0xe7b   : > { %v8575_v62 = vmax.f32 %v8574_v6, 0.0 }
 0xe7d   : > { %11289 = vpush %v8575_v62 }
 0xeaa   : > { %s11288_s25 = spop %11287 }
 0xeab   : > { %v8562_v23 = vstv %s11288_s25 }
 0xeac   : > { %v8563_v9 = vmul.f32 %v9236_v40, %v8562_v23 }
 0xeae   : > { %s11290_s30 = spop %11289  ;;  %v8564_v37 = vadd.f32 %v8563_v9, %v7768_v27 }
 0xeaf   : > { %v8582_v5 = vstv %s11290_s30 }
 0xeb0   : > { %v8583_v44 = vmul.f32 %v9237_v1, %v8582_v5 }
 0xeb2   : > { %v8584_v33 = vadd.f32 %v8583_v44, %v8564_v37 }
 0xeb4   : > { %8585 = vst [vmem:[%s697_s21] sm:$0xff] %v8584_v33 }
 0xeb5 PF: > { %s16913_s24 = sld [smem:[#allocation4_spill]]  ;;  %s16914_s1 = sld [smem:[#allocation2_spill]] }
 0xeb6   : > { %s16915_s22 = sld [smem:[#allocation3_spill]]  ;;  %s16916_s23 = sld [smem:[#allocation5_spill]] }
 0xebb   : > { %s30_s2 = sadd.s32 1, %s16913_s24   ;;  %s16917_s24 = sld [smem:[#allocation6_spill]] }
 0xebc   : > { %p27_p7 = scmp.ge.s32.totalorder %s30_s2, 6  }
 0xebe   :  { %29 = sbr.rel (!%p27_p7) target bundleno = 7 (0x7), region = 133 }

</bundles_post_ra>
